<compile_context>
chip_gen: v7x
topology: tpu7x:2x2x1
jax: 0.10.0
libtpu: 0.0.40
codegen_flags: <defaults>
</compile_context>

<pallas_src>
import functools

import jax
import jax.numpy as jnp
from jax.experimental import pallas as pl
from jax.experimental.pallas import tpu as pltpu


# ----------------------------------------------------------------------------
# Fused whole-network kernel (one grid step == one image).
# ----------------------------------------------------------------------------
def _d_resnet_kernel(
    x_ref,                                   # (1, H, W, C), C = ndf (channel-padded input)
    w1_1_ref, w2_1_ref, wsc1_ref,            # block1 (down=True, first=True)
    w1_2_ref, w2_2_ref, wsc2_ref,            # block2 (down=True)
    w1_3_ref, w2_3_ref,                      # block3
    w1_4_ref, w2_4_ref,                      # block4
    p1_ref, p2_ref,                          # 2x2 avg-pool matrices (HW/4,HW), (HW/16,HW/4)
    wl_ref, bl_ref,                          # linear head: (1, ndf), (1, 1)
    o_ref,                                   # (1, 1, 1)
    pad_a, pad_b, pad_c,                     # zero-bordered activation scratch (VMEM)
    *, H, W, C):
    f32 = jnp.float32

    # Zero the padded scratch buffers (trivially small).  Conv stores only ever
    # touch the interior, so the 1-pixel zero border implements 'same' padding.
    pad_a[...] = jnp.zeros(pad_a.shape, f32)
    pad_b[...] = jnp.zeros(pad_b.shape, f32)
    pad_c[...] = jnp.zeros(pad_c.shape, f32)

    def conv3x3(pad_ref, x_flat, w_ref, hs, ws, relu_in):
        """3x3 'same' conv = 9 accumulated MXU matmuls on shifted VMEM slices."""
        xin = jnp.maximum(x_flat, 0.0) if relu_in else x_flat
        pad_ref[1:hs + 1, 1:ws + 1, :] = xin.reshape(hs, ws, xin.shape[-1])
        acc = None
        for k in range(9):
            dy, dx = k // 3, k % 3
            xs = pad_ref[dy:dy + hs, dx:dx + ws, :].reshape(hs * ws, -1)
            t = jnp.dot(xs, w_ref[k], preferred_element_type=f32)
            acc = t if acc is None else acc + t
        return acc                                           # (hs*ws, Cout)

    # ---------------- block1: down=True, first=True,  HxW -> H/2 x W/2 -------
    xf = x_ref[0].reshape(H * W, C)
    h = conv3x3(pad_a, xf, w1_1_ref, H, W, relu_in=False)    # first: no input relu
    h = conv3x3(pad_a, h, w2_1_ref, H, W, relu_in=True)
    p1 = p1_ref[...]
    # avg_pool(out) + avg_pool(conv1x1(x));  pool and 1x1-conv commute, so the
    # shortcut is (P1 @ x) @ Wsc on the already-pooled map.
    b1 = (jnp.dot(p1, h, preferred_element_type=f32)
          + jnp.dot(jnp.dot(p1, xf, preferred_element_type=f32),
                    wsc1_ref[...], preferred_element_type=f32))   # (H*W/4, C)

    # ---------------- block2: down=True,  H/2 x W/2 -> H/4 x W/4 -------------
    H2, W2 = H // 2, W // 2
    h = conv3x3(pad_b, b1, w1_2_ref, H2, W2, relu_in=True)
    h = conv3x3(pad_b, h, w2_2_ref, H2, W2, relu_in=True)
    p2 = p2_ref[...]
    b2 = (jnp.dot(p2, h, preferred_element_type=f32)
          + jnp.dot(jnp.dot(p2, b1, preferred_element_type=f32),
                    wsc2_ref[...], preferred_element_type=f32))   # (H*W/16, C)

    # ---------------- block3 / block4: identity shortcut ----------------------
    H4, W4 = H // 4, W // 4
    h = conv3x3(pad_c, b2, w1_3_ref, H4, W4, relu_in=True)
    h = conv3x3(pad_c, h, w2_3_ref, H4, W4, relu_in=True)
    b3 = h + b2
    h = conv3x3(pad_c, b3, w1_4_ref, H4, W4, relu_in=True)
    h = conv3x3(pad_c, h, w2_4_ref, H4, W4, relu_in=True)
    b4 = h + b3                                              # (H*W/16, C)

    # ---------------- head: relu -> sum over H,W -> Linear(ndf, 1) ------------
    r = jnp.maximum(b4, 0.0)
    s = jnp.sum(jnp.sum(r * wl_ref[...], axis=1, keepdims=True),
                axis=0, keepdims=True)                       # (1, 1)
    o_ref[0] = s + bl_ref[...]


# ----------------------------------------------------------------------------
# Wrapper
# ----------------------------------------------------------------------------
def _pool_matrix(hs, ws):
    """(hh*wh, hs*ws) matrix P so that P @ flat(x) == flat(avg_pool2d(x, 2, 2))."""
    hh, wh = hs // 2, ws // 2
    j = jnp.arange(hs * ws)
    tgt = (j // ws) // 2 * wh + (j % ws) // 2
    i = jnp.arange(hh * wh)
    return jnp.where(tgt[None, :] == i[:, None], 0.25, 0.0).astype(jnp.float32)


def _const_index_map(ndim):
    zero = (0,) * ndim
    def imap(n):
        return zero
    return imap


def _const_spec(shape):
    return pl.BlockSpec(shape, _const_index_map(len(shape)))


@jax.jit
def d_resnet_forward(x_nchw, params):
    x = jnp.transpose(x_nchw, (0, 2, 3, 1)).astype(jnp.float32)   # NCHW -> NHWC
    N, H, W, nc = x.shape
    ndf = params["linear_w"].shape[0]
    assert nc <= ndf, "kernel assumes nc <= ndf (input channels are padded to ndf)"
    assert H % 4 == 0 and W % 4 == 0

    # Pad block1's Cin (3 -> ndf) with zeros so every conv matmul has K = ndf.
    x = jnp.pad(x, ((0, 0), (0, 0), (0, 0), (0, ndf - nc)))

    def w9(w, cin_pad=None):                 # (3,3,Cin,Co) -> (9,Cin[,pad],Co)
        w = w.reshape(9, w.shape[2], w.shape[3])
        if cin_pad is not None and w.shape[1] < cin_pad:
            w = jnp.pad(w, ((0, 0), (0, cin_pad - w.shape[1]), (0, 0)))
        return w.astype(jnp.float32)

    def wsc(w, cin_pad):                     # (Cin,Co) -> (pad,Co)
        if w.shape[0] < cin_pad:
            w = jnp.pad(w, ((0, cin_pad - w.shape[0]), (0, 0)))
        return w.astype(jnp.float32)

    b1p, b2p, b3p, b4p = (params[f"block{i}"] for i in range(1, 5))
    args = [
        x,
        w9(b1p["conv1"], ndf), w9(b1p["conv2"]), wsc(b1p["conv_shortcut"], ndf),
        w9(b2p["conv1"]), w9(b2p["conv2"]), wsc(b2p["conv_shortcut"], ndf),
        w9(b3p["conv1"]), w9(b3p["conv2"]),
        w9(b4p["conv1"]), w9(b4p["conv2"]),
        _pool_matrix(H, W), _pool_matrix(H // 2, W // 2),
        params["linear_w"].reshape(1, ndf).astype(jnp.float32),
        params["linear_b"].reshape(1, 1).astype(jnp.float32),
    ]

    in_specs = [pl.BlockSpec((1, H, W, ndf), lambda n: (n, 0, 0, 0))]
    in_specs += [_const_spec(a.shape) for a in args[1:]]

    out = pl.pallas_call(
        functools.partial(_d_resnet_kernel, H=H, W=W, C=ndf),
        out_shape=jax.ShapeDtypeStruct((N, 1, 1), jnp.float32),
        grid=(N,),
        in_specs=in_specs,
        out_specs=pl.BlockSpec((1, 1, 1), lambda n: (n, 0, 0)),
        scratch_shapes=[
            pltpu.VMEM((H + 2, W + 2, ndf), jnp.float32),
            pltpu.VMEM((H // 2 + 2, W // 2 + 2, ndf), jnp.float32),
            pltpu.VMEM((H // 4 + 2, W // 4 + 2, ndf), jnp.float32),
        ],
        compiler_params=pltpu.CompilerParams(
            dimension_semantics=("parallel",)),
    )(*args)
    # matches torch: out.view(-1, 1).squeeze()
    return out.reshape(-1, 1).squeeze()


# ----------------------------------------------------------------------------
# Pure-JAX reference (for correctness check only; not a Pallas kernel)
# ----------------------------------------------------------------------------
def _reference_forward(x_nchw, params):
    x = jnp.transpose(x_nchw, (0, 2, 3, 1)).astype(jnp.float32)

    def conv3(h, w):
        return jax.lax.conv_general_dilated(
            h, w, (1, 1), "SAME", dimension_numbers=("NHWC", "HWIO", "NHWC"))

    def conv1(h, w):
        return jnp.einsum("nhwc,cd->nhwd", h, w)

    def pool(h):
        n, hh, ww, c = h.shape
        return h.reshape(n, hh // 2, 2, ww // 2, 2, c).mean(axis=(2, 4))

    def block(h, p, down, first):
        out = h if first else jax.nn.relu(h)
        out = conv3(out, p["conv1"])
        out = conv3(jax.nn.relu(out), p["conv2"])
        if down:
            out = pool(out)
            sc = pool(conv1(h, p["conv_shortcut"]))
        else:
            sc = h
        return out + sc

    out = block(x, params["block1"], True, True)
    out = block(out, params["block2"], True, False)
    out = block(out, params["block3"], False, False)
    out = block(out, params["block4"], False, False)
    out = jax.nn.relu(out).sum(axis=(1, 2))                   # (N, ndf)
    out = out @ params["linear_w"] + params["linear_b"]       # (N, 1)
    return out.reshape(-1, 1).squeeze()


# ----------------------------------------------------------------------------
# Params (weights stored as (KH, KW, Cin, Cout); 1x1 shortcut as (Cin, Cout))
# ----------------------------------------------------------------------------
def init_params(key, nc, ndf):
    keys = jax.random.split(key, 14)
    params = {}
    for bi in range(1, 5):
        cin = nc if bi == 1 else ndf
        k0, k1, k2 = keys[3 * (bi - 1)], keys[3 * (bi - 1) + 1], keys[3 * (bi - 1) + 2]
        params[f"block{bi}"] = {
            "conv1": 0.05 * jax.random.normal(k0, (3, 3, cin, ndf), jnp.float32),
            "conv2": 0.05 * jax.random.normal(k1, (3, 3, ndf, ndf), jnp.float32),
            # conv_shortcut exists for every block in the torch module; only
            # blocks 1 and 2 (down=True) actually use it in forward.
            "conv_shortcut": 0.05 * jax.random.normal(k2, (cin, ndf), jnp.float32),
        }
    params["linear_w"] = 0.05 * jax.random.normal(keys[12], (ndf, 1), jnp.float32)
    params["linear_b"] = jnp.zeros((1, 1), jnp.float32)
    return params


if __name__ == "__main__":
    nc, ndf = 3, 32
    N, H, W = 2, 16, 16

    key = jax.random.PRNGKey(0)
    kx, kp = jax.random.split(key)
    x = jax.random.normal(kx, (N, nc, H, W), jnp.float32)   # NCHW, like PyTorch
    params = init_params(kp, nc, ndf)

    out = d_resnet_forward(x, params)
    out = jax.block_until_ready(out)
    assert out.shape == (N,), out.shape
    assert out.dtype == jnp.float32

    ref = _reference_forward(x, params)
    max_err = float(jnp.max(jnp.abs(out - ref)))
    assert max_err < 1e-3, f"mismatch vs reference: max_err={max_err}"

    print("KERNEL_OK")
</pallas_src>

<mosaic_0001>
module attributes {stable_mosaic.version = 11 : i64} {
  func.func @_d_resnet_kernel(%arg0: i32, %arg1: memref<1x16x16x32xf32, #tpu.memory_space<vmem>>, %arg2: memref<9x32x32xf32, #tpu.memory_space<vmem>>, %arg3: memref<9x32x32xf32, #tpu.memory_space<vmem>>, %arg4: memref<32x32xf32, #tpu.memory_space<vmem>>, %arg5: memref<9x32x32xf32, #tpu.memory_space<vmem>>, %arg6: memref<9x32x32xf32, #tpu.memory_space<vmem>>, %arg7: memref<32x32xf32, #tpu.memory_space<vmem>>, %arg8: memref<9x32x32xf32, #tpu.memory_space<vmem>>, %arg9: memref<9x32x32xf32, #tpu.memory_space<vmem>>, %arg10: memref<9x32x32xf32, #tpu.memory_space<vmem>>, %arg11: memref<9x32x32xf32, #tpu.memory_space<vmem>>, %arg12: memref<64x256xf32, #tpu.memory_space<vmem>>, %arg13: memref<16x64xf32, #tpu.memory_space<vmem>>, %arg14: memref<1x32xf32, #tpu.memory_space<vmem>>, %arg15: memref<1x1xf32, #tpu.memory_space<vmem>>, %arg16: memref<1x1x1xf32, #tpu.memory_space<vmem>>, %arg17: memref<18x18x32xf32, #tpu.memory_space<vmem>>, %arg18: memref<10x10x32xf32, #tpu.memory_space<vmem>>, %arg19: memref<6x6x32xf32, #tpu.memory_space<vmem>>) attributes {dimension_semantics = [#tpu.dimension_semantics<parallel>], iteration_bounds = array<i64: 2>, scalar_prefetch = 0 : i64, scratch_operands = 3 : i64, tpu.core_type = #tpu.core_type<tc>, window_params = [{transform_indices = @transform_0, window_bounds = array<i64: 1, 16, 16, 32>}, {pipeline_mode = #tpu.pipeline_mode<synchronous>, transform_indices = @transform_1, window_bounds = array<i64: 9, 32, 32>}, {pipeline_mode = #tpu.pipeline_mode<synchronous>, transform_indices = @transform_2, window_bounds = array<i64: 9, 32, 32>}, {pipeline_mode = #tpu.pipeline_mode<synchronous>, transform_indices = @transform_3, window_bounds = array<i64: 32, 32>}, {pipeline_mode = #tpu.pipeline_mode<synchronous>, transform_indices = @transform_4, window_bounds = array<i64: 9, 32, 32>}, {pipeline_mode = #tpu.pipeline_mode<synchronous>, transform_indices = @transform_5, window_bounds = array<i64: 9, 32, 32>}, {pipeline_mode = #tpu.pipeline_mode<synchronous>, transform_indices = @transform_6, window_bounds = array<i64: 32, 32>}, {pipeline_mode = #tpu.pipeline_mode<synchronous>, transform_indices = @transform_7, window_bounds = array<i64: 9, 32, 32>}, {pipeline_mode = #tpu.pipeline_mode<synchronous>, transform_indices = @transform_8, window_bounds = array<i64: 9, 32, 32>}, {pipeline_mode = #tpu.pipeline_mode<synchronous>, transform_indices = @transform_9, window_bounds = array<i64: 9, 32, 32>}, {pipeline_mode = #tpu.pipeline_mode<synchronous>, transform_indices = @transform_10, window_bounds = array<i64: 9, 32, 32>}, {pipeline_mode = #tpu.pipeline_mode<synchronous>, transform_indices = @transform_11, window_bounds = array<i64: 64, 256>}, {pipeline_mode = #tpu.pipeline_mode<synchronous>, transform_indices = @transform_12, window_bounds = array<i64: 16, 64>}, {pipeline_mode = #tpu.pipeline_mode<synchronous>, transform_indices = @transform_13, window_bounds = array<i64: 1, 32>}, {pipeline_mode = #tpu.pipeline_mode<synchronous>, transform_indices = @transform_14, window_bounds = array<i64: 1, 1>}, {transform_indices = @transform_15, window_bounds = array<i64: 1, 1, 1>}]} {
    %cst = arith.constant 0.000000e+00 : f32
    %0 = vector.broadcast %cst : f32 to vector<18x18x32xf32>
    %c0 = arith.constant 0 : index
    %c0_0 = arith.constant 0 : index
    %c0_1 = arith.constant 0 : index
    %1 = vector.load %arg17[%c0, %c0_0, %c0_1] : memref<18x18x32xf32, #tpu.memory_space<vmem>>, vector<18x18x32xf32>
    tpu.vector_store %arg17[%c0, %c0_0, %c0_1], %0 {strides = array<i32>} : memref<18x18x32xf32, #tpu.memory_space<vmem>>, vector<18x18x32xf32>,
    %cst_2 = arith.constant 0.000000e+00 : f32
    %2 = vector.broadcast %cst_2 : f32 to vector<10x10x32xf32>
    %c0_3 = arith.constant 0 : index
    %c0_4 = arith.constant 0 : index
    %c0_5 = arith.constant 0 : index
    %3 = vector.load %arg18[%c0_3, %c0_4, %c0_5] : memref<10x10x32xf32, #tpu.memory_space<vmem>>, vector<10x10x32xf32>
    tpu.vector_store %arg18[%c0_3, %c0_4, %c0_5], %2 {strides = array<i32>} : memref<10x10x32xf32, #tpu.memory_space<vmem>>, vector<10x10x32xf32>,
    %cst_6 = arith.constant 0.000000e+00 : f32
    %4 = vector.broadcast %cst_6 : f32 to vector<6x6x32xf32>
    %c0_7 = arith.constant 0 : index
    %c0_8 = arith.constant 0 : index
    %c0_9 = arith.constant 0 : index
    %5 = vector.load %arg19[%c0_7, %c0_8, %c0_9] : memref<6x6x32xf32, #tpu.memory_space<vmem>>, vector<6x6x32xf32>
    tpu.vector_store %arg19[%c0_7, %c0_8, %c0_9], %4 {strides = array<i32>} : memref<6x6x32xf32, #tpu.memory_space<vmem>>, vector<6x6x32xf32>,
    %c0_10 = arith.constant 0 : index
    %c0_11 = arith.constant 0 : index
    %c0_12 = arith.constant 0 : index
    %c0_13 = arith.constant 0 : index
    %6 = vector.load %arg1[%c0_10, %c0_11, %c0_12, %c0_13] : memref<1x16x16x32xf32, #tpu.memory_space<vmem>>, vector<1x16x16x32xf32>
    %7 = vector.shape_cast %6 : vector<1x16x16x32xf32> to vector<16x16x32xf32>
    %8 = vector.shape_cast %7 : vector<16x16x32xf32> to vector<256x32xf32>
    %9 = vector.shape_cast %8 : vector<256x32xf32> to vector<16x16x32xf32>
    %c1 = arith.constant 1 : index
    %c1_14 = arith.constant 1 : index
    %c0_15 = arith.constant 0 : index
    %10 = vector.load %arg17[%c1, %c1_14, %c0_15] : memref<18x18x32xf32, #tpu.memory_space<vmem>>, vector<16x16x32xf32>
    tpu.vector_store %arg17[%c1, %c1_14, %c0_15], %9 {strides = array<i32>} : memref<18x18x32xf32, #tpu.memory_space<vmem>>, vector<16x16x32xf32>,
    %c0_16 = arith.constant 0 : index
    %c0_17 = arith.constant 0 : index
    %c0_18 = arith.constant 0 : index
    %11 = vector.load %arg17[%c0_16, %c0_17, %c0_18] : memref<18x18x32xf32, #tpu.memory_space<vmem>>, vector<16x16x32xf32>
    %12 = vector.shape_cast %11 : vector<16x16x32xf32> to vector<256x32xf32>
    %c0_19 = arith.constant 0 : index
    %c0_20 = arith.constant 0 : index
    %c0_21 = arith.constant 0 : index
    %13 = vector.load %arg2[%c0_19, %c0_20, %c0_21] : memref<9x32x32xf32, #tpu.memory_space<vmem>>, vector<1x32x32xf32>
    %14 = vector.shape_cast %13 : vector<1x32x32xf32> to vector<32x32xf32>
    %cst_22 = arith.constant dense<0.000000e+00> : vector<256x32xf32>
    %15 = tpu.matmul %12, %14, %cst_22 {dimension_numbers = #tpu.dot_dimension_numbers<[1], [0], [0], [1], [0, 0, 1, 1], [], []>} : vector<256x32xf32>, vector<32x32xf32>, vector<256x32xf32> -> vector<256x32xf32>
    %c0_23 = arith.constant 0 : index
    %c1_24 = arith.constant 1 : index
    %c0_25 = arith.constant 0 : index
    %16 = vector.load %arg17[%c0_23, %c1_24, %c0_25] : memref<18x18x32xf32, #tpu.memory_space<vmem>>, vector<16x16x32xf32>
    %17 = vector.shape_cast %16 : vector<16x16x32xf32> to vector<256x32xf32>
    %c1_26 = arith.constant 1 : index
    %c0_27 = arith.constant 0 : index
    %c0_28 = arith.constant 0 : index
    %18 = vector.load %arg2[%c1_26, %c0_27, %c0_28] : memref<9x32x32xf32, #tpu.memory_space<vmem>>, vector<1x32x32xf32>
    %19 = vector.shape_cast %18 : vector<1x32x32xf32> to vector<32x32xf32>
    %cst_29 = arith.constant dense<0.000000e+00> : vector<256x32xf32>
    %20 = tpu.matmul %17, %19, %cst_29 {dimension_numbers = #tpu.dot_dimension_numbers<[1], [0], [0], [1], [0, 0, 1, 1], [], []>} : vector<256x32xf32>, vector<32x32xf32>, vector<256x32xf32> -> vector<256x32xf32>
    %21 = arith.addf %15, %20 : vector<256x32xf32>
    %c0_30 = arith.constant 0 : index
    %c2 = arith.constant 2 : index
    %c0_31 = arith.constant 0 : index
    %22 = vector.load %arg17[%c0_30, %c2, %c0_31] : memref<18x18x32xf32, #tpu.memory_space<vmem>>, vector<16x16x32xf32>
    %23 = vector.shape_cast %22 : vector<16x16x32xf32> to vector<256x32xf32>
    %c2_32 = arith.constant 2 : index
    %c0_33 = arith.constant 0 : index
    %c0_34 = arith.constant 0 : index
    %24 = vector.load %arg2[%c2_32, %c0_33, %c0_34] : memref<9x32x32xf32, #tpu.memory_space<vmem>>, vector<1x32x32xf32>
    %25 = vector.shape_cast %24 : vector<1x32x32xf32> to vector<32x32xf32>
    %cst_35 = arith.constant dense<0.000000e+00> : vector<256x32xf32>
    %26 = tpu.matmul %23, %25, %cst_35 {dimension_numbers = #tpu.dot_dimension_numbers<[1], [0], [0], [1], [0, 0, 1, 1], [], []>} : vector<256x32xf32>, vector<32x32xf32>, vector<256x32xf32> -> vector<256x32xf32>
    %27 = arith.addf %21, %26 : vector<256x32xf32>
    %c1_36 = arith.constant 1 : index
    %c0_37 = arith.constant 0 : index
    %c0_38 = arith.constant 0 : index
    %28 = vector.load %arg17[%c1_36, %c0_37, %c0_38] : memref<18x18x32xf32, #tpu.memory_space<vmem>>, vector<16x16x32xf32>
    %29 = vector.shape_cast %28 : vector<16x16x32xf32> to vector<256x32xf32>
    %c3 = arith.constant 3 : index
    %c0_39 = arith.constant 0 : index
    %c0_40 = arith.constant 0 : index
    %30 = vector.load %arg2[%c3, %c0_39, %c0_40] : memref<9x32x32xf32, #tpu.memory_space<vmem>>, vector<1x32x32xf32>
    %31 = vector.shape_cast %30 : vector<1x32x32xf32> to vector<32x32xf32>
    %cst_41 = arith.constant dense<0.000000e+00> : vector<256x32xf32>
    %32 = tpu.matmul %29, %31, %cst_41 {dimension_numbers = #tpu.dot_dimension_numbers<[1], [0], [0], [1], [0, 0, 1, 1], [], []>} : vector<256x32xf32>, vector<32x32xf32>, vector<256x32xf32> -> vector<256x32xf32>
    %33 = arith.addf %27, %32 : vector<256x32xf32>
    %c1_42 = arith.constant 1 : index
    %c1_43 = arith.constant 1 : index
    %c0_44 = arith.constant 0 : index
    %34 = vector.load %arg17[%c1_42, %c1_43, %c0_44] : memref<18x18x32xf32, #tpu.memory_space<vmem>>, vector<16x16x32xf32>
    %35 = vector.shape_cast %34 : vector<16x16x32xf32> to vector<256x32xf32>
    %c4 = arith.constant 4 : index
    %c0_45 = arith.constant 0 : index
    %c0_46 = arith.constant 0 : index
    %36 = vector.load %arg2[%c4, %c0_45, %c0_46] : memref<9x32x32xf32, #tpu.memory_space<vmem>>, vector<1x32x32xf32>
    %37 = vector.shape_cast %36 : vector<1x32x32xf32> to vector<32x32xf32>
    %cst_47 = arith.constant dense<0.000000e+00> : vector<256x32xf32>
    %38 = tpu.matmul %35, %37, %cst_47 {dimension_numbers = #tpu.dot_dimension_numbers<[1], [0], [0], [1], [0, 0, 1, 1], [], []>} : vector<256x32xf32>, vector<32x32xf32>, vector<256x32xf32> -> vector<256x32xf32>
    %39 = arith.addf %33, %38 : vector<256x32xf32>
    %c1_48 = arith.constant 1 : index
    %c2_49 = arith.constant 2 : index
    %c0_50 = arith.constant 0 : index
    %40 = vector.load %arg17[%c1_48, %c2_49, %c0_50] : memref<18x18x32xf32, #tpu.memory_space<vmem>>, vector<16x16x32xf32>
    %41 = vector.shape_cast %40 : vector<16x16x32xf32> to vector<256x32xf32>
    %c5 = arith.constant 5 : index
    %c0_51 = arith.constant 0 : index
    %c0_52 = arith.constant 0 : index
    %42 = vector.load %arg2[%c5, %c0_51, %c0_52] : memref<9x32x32xf32, #tpu.memory_space<vmem>>, vector<1x32x32xf32>
    %43 = vector.shape_cast %42 : vector<1x32x32xf32> to vector<32x32xf32>
    %cst_53 = arith.constant dense<0.000000e+00> : vector<256x32xf32>
    %44 = tpu.matmul %41, %43, %cst_53 {dimension_numbers = #tpu.dot_dimension_numbers<[1], [0], [0], [1], [0, 0, 1, 1], [], []>} : vector<256x32xf32>, vector<32x32xf32>, vector<256x32xf32> -> vector<256x32xf32>
    %45 = arith.addf %39, %44 : vector<256x32xf32>
    %c2_54 = arith.constant 2 : index
    %c0_55 = arith.constant 0 : index
    %c0_56 = arith.constant 0 : index
    %46 = vector.load %arg17[%c2_54, %c0_55, %c0_56] : memref<18x18x32xf32, #tpu.memory_space<vmem>>, vector<16x16x32xf32>
    %47 = vector.shape_cast %46 : vector<16x16x32xf32> to vector<256x32xf32>
    %c6 = arith.constant 6 : index
    %c0_57 = arith.constant 0 : index
    %c0_58 = arith.constant 0 : index
    %48 = vector.load %arg2[%c6, %c0_57, %c0_58] : memref<9x32x32xf32, #tpu.memory_space<vmem>>, vector<1x32x32xf32>
    %49 = vector.shape_cast %48 : vector<1x32x32xf32> to vector<32x32xf32>
    %cst_59 = arith.constant dense<0.000000e+00> : vector<256x32xf32>
    %50 = tpu.matmul %47, %49, %cst_59 {dimension_numbers = #tpu.dot_dimension_numbers<[1], [0], [0], [1], [0, 0, 1, 1], [], []>} : vector<256x32xf32>, vector<32x32xf32>, vector<256x32xf32> -> vector<256x32xf32>
    %51 = arith.addf %45, %50 : vector<256x32xf32>
    %c2_60 = arith.constant 2 : index
    %c1_61 = arith.constant 1 : index
    %c0_62 = arith.constant 0 : index
    %52 = vector.load %arg17[%c2_60, %c1_61, %c0_62] : memref<18x18x32xf32, #tpu.memory_space<vmem>>, vector<16x16x32xf32>
    %53 = vector.shape_cast %52 : vector<16x16x32xf32> to vector<256x32xf32>
    %c7 = arith.constant 7 : index
    %c0_63 = arith.constant 0 : index
    %c0_64 = arith.constant 0 : index
    %54 = vector.load %arg2[%c7, %c0_63, %c0_64] : memref<9x32x32xf32, #tpu.memory_space<vmem>>, vector<1x32x32xf32>
    %55 = vector.shape_cast %54 : vector<1x32x32xf32> to vector<32x32xf32>
    %cst_65 = arith.constant dense<0.000000e+00> : vector<256x32xf32>
    %56 = tpu.matmul %53, %55, %cst_65 {dimension_numbers = #tpu.dot_dimension_numbers<[1], [0], [0], [1], [0, 0, 1, 1], [], []>} : vector<256x32xf32>, vector<32x32xf32>, vector<256x32xf32> -> vector<256x32xf32>
    %57 = arith.addf %51, %56 : vector<256x32xf32>
    %c2_66 = arith.constant 2 : index
    %c2_67 = arith.constant 2 : index
    %c0_68 = arith.constant 0 : index
    %58 = vector.load %arg17[%c2_66, %c2_67, %c0_68] : memref<18x18x32xf32, #tpu.memory_space<vmem>>, vector<16x16x32xf32>
    %59 = vector.shape_cast %58 : vector<16x16x32xf32> to vector<256x32xf32>
    %c8 = arith.constant 8 : index
    %c0_69 = arith.constant 0 : index
    %c0_70 = arith.constant 0 : index
    %60 = vector.load %arg2[%c8, %c0_69, %c0_70] : memref<9x32x32xf32, #tpu.memory_space<vmem>>, vector<1x32x32xf32>
    %61 = vector.shape_cast %60 : vector<1x32x32xf32> to vector<32x32xf32>
    %cst_71 = arith.constant dense<0.000000e+00> : vector<256x32xf32>
    %62 = tpu.matmul %59, %61, %cst_71 {dimension_numbers = #tpu.dot_dimension_numbers<[1], [0], [0], [1], [0, 0, 1, 1], [], []>} : vector<256x32xf32>, vector<32x32xf32>, vector<256x32xf32> -> vector<256x32xf32>
    %63 = arith.addf %57, %62 : vector<256x32xf32>
    %cst_72 = arith.constant 0.000000e+00 : f32
    %64 = vector.broadcast %cst_72 : f32 to vector<256x32xf32>
    %65 = arith.maximumf %63, %64 : vector<256x32xf32>
    %66 = vector.shape_cast %65 : vector<256x32xf32> to vector<16x16x32xf32>
    %c1_73 = arith.constant 1 : index
    %c1_74 = arith.constant 1 : index
    %c0_75 = arith.constant 0 : index
    %67 = vector.load %arg17[%c1_73, %c1_74, %c0_75] : memref<18x18x32xf32, #tpu.memory_space<vmem>>, vector<16x16x32xf32>
    tpu.vector_store %arg17[%c1_73, %c1_74, %c0_75], %66 {strides = array<i32>} : memref<18x18x32xf32, #tpu.memory_space<vmem>>, vector<16x16x32xf32>,
    %c0_76 = arith.constant 0 : index
    %c0_77 = arith.constant 0 : index
    %c0_78 = arith.constant 0 : index
    %68 = vector.load %arg17[%c0_76, %c0_77, %c0_78] : memref<18x18x32xf32, #tpu.memory_space<vmem>>, vector<16x16x32xf32>
    %69 = vector.shape_cast %68 : vector<16x16x32xf32> to vector<256x32xf32>
    %c0_79 = arith.constant 0 : index
    %c0_80 = arith.constant 0 : index
    %c0_81 = arith.constant 0 : index
    %70 = vector.load %arg3[%c0_79, %c0_80, %c0_81] : memref<9x32x32xf32, #tpu.memory_space<vmem>>, vector<1x32x32xf32>
    %71 = vector.shape_cast %70 : vector<1x32x32xf32> to vector<32x32xf32>
    %cst_82 = arith.constant dense<0.000000e+00> : vector<256x32xf32>
    %72 = tpu.matmul %69, %71, %cst_82 {dimension_numbers = #tpu.dot_dimension_numbers<[1], [0], [0], [1], [0, 0, 1, 1], [], []>} : vector<256x32xf32>, vector<32x32xf32>, vector<256x32xf32> -> vector<256x32xf32>
    %c0_83 = arith.constant 0 : index
    %c1_84 = arith.constant 1 : index
    %c0_85 = arith.constant 0 : index
    %73 = vector.load %arg17[%c0_83, %c1_84, %c0_85] : memref<18x18x32xf32, #tpu.memory_space<vmem>>, vector<16x16x32xf32>
    %74 = vector.shape_cast %73 : vector<16x16x32xf32> to vector<256x32xf32>
    %c1_86 = arith.constant 1 : index
    %c0_87 = arith.constant 0 : index
    %c0_88 = arith.constant 0 : index
    %75 = vector.load %arg3[%c1_86, %c0_87, %c0_88] : memref<9x32x32xf32, #tpu.memory_space<vmem>>, vector<1x32x32xf32>
    %76 = vector.shape_cast %75 : vector<1x32x32xf32> to vector<32x32xf32>
    %cst_89 = arith.constant dense<0.000000e+00> : vector<256x32xf32>
    %77 = tpu.matmul %74, %76, %cst_89 {dimension_numbers = #tpu.dot_dimension_numbers<[1], [0], [0], [1], [0, 0, 1, 1], [], []>} : vector<256x32xf32>, vector<32x32xf32>, vector<256x32xf32> -> vector<256x32xf32>
    %78 = arith.addf %72, %77 : vector<256x32xf32>
    %c0_90 = arith.constant 0 : index
    %c2_91 = arith.constant 2 : index
    %c0_92 = arith.constant 0 : index
    %79 = vector.load %arg17[%c0_90, %c2_91, %c0_92] : memref<18x18x32xf32, #tpu.memory_space<vmem>>, vector<16x16x32xf32>
    %80 = vector.shape_cast %79 : vector<16x16x32xf32> to vector<256x32xf32>
    %c2_93 = arith.constant 2 : index
    %c0_94 = arith.constant 0 : index
    %c0_95 = arith.constant 0 : index
    %81 = vector.load %arg3[%c2_93, %c0_94, %c0_95] : memref<9x32x32xf32, #tpu.memory_space<vmem>>, vector<1x32x32xf32>
    %82 = vector.shape_cast %81 : vector<1x32x32xf32> to vector<32x32xf32>
    %cst_96 = arith.constant dense<0.000000e+00> : vector<256x32xf32>
    %83 = tpu.matmul %80, %82, %cst_96 {dimension_numbers = #tpu.dot_dimension_numbers<[1], [0], [0], [1], [0, 0, 1, 1], [], []>} : vector<256x32xf32>, vector<32x32xf32>, vector<256x32xf32> -> vector<256x32xf32>
    %84 = arith.addf %78, %83 : vector<256x32xf32>
    %c1_97 = arith.constant 1 : index
    %c0_98 = arith.constant 0 : index
    %c0_99 = arith.constant 0 : index
    %85 = vector.load %arg17[%c1_97, %c0_98, %c0_99] : memref<18x18x32xf32, #tpu.memory_space<vmem>>, vector<16x16x32xf32>
    %86 = vector.shape_cast %85 : vector<16x16x32xf32> to vector<256x32xf32>
    %c3_100 = arith.constant 3 : index
    %c0_101 = arith.constant 0 : index
    %c0_102 = arith.constant 0 : index
    %87 = vector.load %arg3[%c3_100, %c0_101, %c0_102] : memref<9x32x32xf32, #tpu.memory_space<vmem>>, vector<1x32x32xf32>
    %88 = vector.shape_cast %87 : vector<1x32x32xf32> to vector<32x32xf32>
    %cst_103 = arith.constant dense<0.000000e+00> : vector<256x32xf32>
    %89 = tpu.matmul %86, %88, %cst_103 {dimension_numbers = #tpu.dot_dimension_numbers<[1], [0], [0], [1], [0, 0, 1, 1], [], []>} : vector<256x32xf32>, vector<32x32xf32>, vector<256x32xf32> -> vector<256x32xf32>
    %90 = arith.addf %84, %89 : vector<256x32xf32>
    %c1_104 = arith.constant 1 : index
    %c1_105 = arith.constant 1 : index
    %c0_106 = arith.constant 0 : index
    %91 = vector.load %arg17[%c1_104, %c1_105, %c0_106] : memref<18x18x32xf32, #tpu.memory_space<vmem>>, vector<16x16x32xf32>
    %92 = vector.shape_cast %91 : vector<16x16x32xf32> to vector<256x32xf32>
    %c4_107 = arith.constant 4 : index
    %c0_108 = arith.constant 0 : index
    %c0_109 = arith.constant 0 : index
    %93 = vector.load %arg3[%c4_107, %c0_108, %c0_109] : memref<9x32x32xf32, #tpu.memory_space<vmem>>, vector<1x32x32xf32>
    %94 = vector.shape_cast %93 : vector<1x32x32xf32> to vector<32x32xf32>
    %cst_110 = arith.constant dense<0.000000e+00> : vector<256x32xf32>
    %95 = tpu.matmul %92, %94, %cst_110 {dimension_numbers = #tpu.dot_dimension_numbers<[1], [0], [0], [1], [0, 0, 1, 1], [], []>} : vector<256x32xf32>, vector<32x32xf32>, vector<256x32xf32> -> vector<256x32xf32>
    %96 = arith.addf %90, %95 : vector<256x32xf32>
    %c1_111 = arith.constant 1 : index
    %c2_112 = arith.constant 2 : index
    %c0_113 = arith.constant 0 : index
    %97 = vector.load %arg17[%c1_111, %c2_112, %c0_113] : memref<18x18x32xf32, #tpu.memory_space<vmem>>, vector<16x16x32xf32>
    %98 = vector.shape_cast %97 : vector<16x16x32xf32> to vector<256x32xf32>
    %c5_114 = arith.constant 5 : index
    %c0_115 = arith.constant 0 : index
    %c0_116 = arith.constant 0 : index
    %99 = vector.load %arg3[%c5_114, %c0_115, %c0_116] : memref<9x32x32xf32, #tpu.memory_space<vmem>>, vector<1x32x32xf32>
    %100 = vector.shape_cast %99 : vector<1x32x32xf32> to vector<32x32xf32>
    %cst_117 = arith.constant dense<0.000000e+00> : vector<256x32xf32>
    %101 = tpu.matmul %98, %100, %cst_117 {dimension_numbers = #tpu.dot_dimension_numbers<[1], [0], [0], [1], [0, 0, 1, 1], [], []>} : vector<256x32xf32>, vector<32x32xf32>, vector<256x32xf32> -> vector<256x32xf32>
    %102 = arith.addf %96, %101 : vector<256x32xf32>
    %c2_118 = arith.constant 2 : index
    %c0_119 = arith.constant 0 : index
    %c0_120 = arith.constant 0 : index
    %103 = vector.load %arg17[%c2_118, %c0_119, %c0_120] : memref<18x18x32xf32, #tpu.memory_space<vmem>>, vector<16x16x32xf32>
    %104 = vector.shape_cast %103 : vector<16x16x32xf32> to vector<256x32xf32>
    %c6_121 = arith.constant 6 : index
    %c0_122 = arith.constant 0 : index
    %c0_123 = arith.constant 0 : index
    %105 = vector.load %arg3[%c6_121, %c0_122, %c0_123] : memref<9x32x32xf32, #tpu.memory_space<vmem>>, vector<1x32x32xf32>
    %106 = vector.shape_cast %105 : vector<1x32x32xf32> to vector<32x32xf32>
    %cst_124 = arith.constant dense<0.000000e+00> : vector<256x32xf32>
    %107 = tpu.matmul %104, %106, %cst_124 {dimension_numbers = #tpu.dot_dimension_numbers<[1], [0], [0], [1], [0, 0, 1, 1], [], []>} : vector<256x32xf32>, vector<32x32xf32>, vector<256x32xf32> -> vector<256x32xf32>
    %108 = arith.addf %102, %107 : vector<256x32xf32>
    %c2_125 = arith.constant 2 : index
    %c1_126 = arith.constant 1 : index
    %c0_127 = arith.constant 0 : index
    %109 = vector.load %arg17[%c2_125, %c1_126, %c0_127] : memref<18x18x32xf32, #tpu.memory_space<vmem>>, vector<16x16x32xf32>
    %110 = vector.shape_cast %109 : vector<16x16x32xf32> to vector<256x32xf32>
    %c7_128 = arith.constant 7 : index
    %c0_129 = arith.constant 0 : index
    %c0_130 = arith.constant 0 : index
    %111 = vector.load %arg3[%c7_128, %c0_129, %c0_130] : memref<9x32x32xf32, #tpu.memory_space<vmem>>, vector<1x32x32xf32>
    %112 = vector.shape_cast %111 : vector<1x32x32xf32> to vector<32x32xf32>
    %cst_131 = arith.constant dense<0.000000e+00> : vector<256x32xf32>
    %113 = tpu.matmul %110, %112, %cst_131 {dimension_numbers = #tpu.dot_dimension_numbers<[1], [0], [0], [1], [0, 0, 1, 1], [], []>} : vector<256x32xf32>, vector<32x32xf32>, vector<256x32xf32> -> vector<256x32xf32>
    %114 = arith.addf %108, %113 : vector<256x32xf32>
    %c2_132 = arith.constant 2 : index
    %c2_133 = arith.constant 2 : index
    %c0_134 = arith.constant 0 : index
    %115 = vector.load %arg17[%c2_132, %c2_133, %c0_134] : memref<18x18x32xf32, #tpu.memory_space<vmem>>, vector<16x16x32xf32>
    %116 = vector.shape_cast %115 : vector<16x16x32xf32> to vector<256x32xf32>
    %c8_135 = arith.constant 8 : index
    %c0_136 = arith.constant 0 : index
    %c0_137 = arith.constant 0 : index
    %117 = vector.load %arg3[%c8_135, %c0_136, %c0_137] : memref<9x32x32xf32, #tpu.memory_space<vmem>>, vector<1x32x32xf32>
    %118 = vector.shape_cast %117 : vector<1x32x32xf32> to vector<32x32xf32>
    %cst_138 = arith.constant dense<0.000000e+00> : vector<256x32xf32>
    %119 = tpu.matmul %116, %118, %cst_138 {dimension_numbers = #tpu.dot_dimension_numbers<[1], [0], [0], [1], [0, 0, 1, 1], [], []>} : vector<256x32xf32>, vector<32x32xf32>, vector<256x32xf32> -> vector<256x32xf32>
    %120 = arith.addf %114, %119 : vector<256x32xf32>
    %c0_139 = arith.constant 0 : index
    %c0_140 = arith.constant 0 : index
    %121 = vector.load %arg12[%c0_139, %c0_140] : memref<64x256xf32, #tpu.memory_space<vmem>>, vector<64x256xf32>
    %cst_141 = arith.constant dense<0.000000e+00> : vector<64x32xf32>
    %122 = tpu.matmul %121, %120, %cst_141 {dimension_numbers = #tpu.dot_dimension_numbers<[1], [0], [0], [1], [0, 0, 1, 1], [], []>} : vector<64x256xf32>, vector<256x32xf32>, vector<64x32xf32> -> vector<64x32xf32>
    %cst_142 = arith.constant dense<0.000000e+00> : vector<64x32xf32>
    %123 = tpu.matmul %121, %8, %cst_142 {dimension_numbers = #tpu.dot_dimension_numbers<[1], [0], [0], [1], [0, 0, 1, 1], [], []>} : vector<64x256xf32>, vector<256x32xf32>, vector<64x32xf32> -> vector<64x32xf32>
    %c0_143 = arith.constant 0 : index
    %c0_144 = arith.constant 0 : index
    %124 = vector.load %arg4[%c0_143, %c0_144] : memref<32x32xf32, #tpu.memory_space<vmem>>, vector<32x32xf32>
    %cst_145 = arith.constant dense<0.000000e+00> : vector<64x32xf32>
    %125 = tpu.matmul %123, %124, %cst_145 {dimension_numbers = #tpu.dot_dimension_numbers<[1], [0], [0], [1], [0, 0, 1, 1], [], []>} : vector<64x32xf32>, vector<32x32xf32>, vector<64x32xf32> -> vector<64x32xf32>
    %126 = arith.addf %122, %125 : vector<64x32xf32>
    %cst_146 = arith.constant 0.000000e+00 : f32
    %127 = vector.broadcast %cst_146 : f32 to vector<64x32xf32>
    %128 = arith.maximumf %126, %127 : vector<64x32xf32>
    %129 = vector.shape_cast %128 : vector<64x32xf32> to vector<8x8x32xf32>
    %c1_147 = arith.constant 1 : index
    %c1_148 = arith.constant 1 : index
    %c0_149 = arith.constant 0 : index
    %130 = vector.load %arg18[%c1_147, %c1_148, %c0_149] : memref<10x10x32xf32, #tpu.memory_space<vmem>>, vector<8x8x32xf32>
    tpu.vector_store %arg18[%c1_147, %c1_148, %c0_149], %129 {strides = array<i32>} : memref<10x10x32xf32, #tpu.memory_space<vmem>>, vector<8x8x32xf32>,
    %c0_150 = arith.constant 0 : index
    %c0_151 = arith.constant 0 : index
    %c0_152 = arith.constant 0 : index
    %131 = vector.load %arg18[%c0_150, %c0_151, %c0_152] : memref<10x10x32xf32, #tpu.memory_space<vmem>>, vector<8x8x32xf32>
    %132 = vector.shape_cast %131 : vector<8x8x32xf32> to vector<64x32xf32>
    %c0_153 = arith.constant 0 : index
    %c0_154 = arith.constant 0 : index
    %c0_155 = arith.constant 0 : index
    %133 = vector.load %arg5[%c0_153, %c0_154, %c0_155] : memref<9x32x32xf32, #tpu.memory_space<vmem>>, vector<1x32x32xf32>
    %134 = vector.shape_cast %133 : vector<1x32x32xf32> to vector<32x32xf32>
    %cst_156 = arith.constant dense<0.000000e+00> : vector<64x32xf32>
    %135 = tpu.matmul %132, %134, %cst_156 {dimension_numbers = #tpu.dot_dimension_numbers<[1], [0], [0], [1], [0, 0, 1, 1], [], []>} : vector<64x32xf32>, vector<32x32xf32>, vector<64x32xf32> -> vector<64x32xf32>
    %c0_157 = arith.constant 0 : index
    %c1_158 = arith.constant 1 : index
    %c0_159 = arith.constant 0 : index
    %136 = vector.load %arg18[%c0_157, %c1_158, %c0_159] : memref<10x10x32xf32, #tpu.memory_space<vmem>>, vector<8x8x32xf32>
    %137 = vector.shape_cast %136 : vector<8x8x32xf32> to vector<64x32xf32>
    %c1_160 = arith.constant 1 : index
    %c0_161 = arith.constant 0 : index
    %c0_162 = arith.constant 0 : index
    %138 = vector.load %arg5[%c1_160, %c0_161, %c0_162] : memref<9x32x32xf32, #tpu.memory_space<vmem>>, vector<1x32x32xf32>
    %139 = vector.shape_cast %138 : vector<1x32x32xf32> to vector<32x32xf32>
    %cst_163 = arith.constant dense<0.000000e+00> : vector<64x32xf32>
    %140 = tpu.matmul %137, %139, %cst_163 {dimension_numbers = #tpu.dot_dimension_numbers<[1], [0], [0], [1], [0, 0, 1, 1], [], []>} : vector<64x32xf32>, vector<32x32xf32>, vector<64x32xf32> -> vector<64x32xf32>
    %141 = arith.addf %135, %140 : vector<64x32xf32>
    %c0_164 = arith.constant 0 : index
    %c2_165 = arith.constant 2 : index
    %c0_166 = arith.constant 0 : index
    %142 = vector.load %arg18[%c0_164, %c2_165, %c0_166] : memref<10x10x32xf32, #tpu.memory_space<vmem>>, vector<8x8x32xf32>
    %143 = vector.shape_cast %142 : vector<8x8x32xf32> to vector<64x32xf32>
    %c2_167 = arith.constant 2 : index
    %c0_168 = arith.constant 0 : index
    %c0_169 = arith.constant 0 : index
    %144 = vector.load %arg5[%c2_167, %c0_168, %c0_169] : memref<9x32x32xf32, #tpu.memory_space<vmem>>, vector<1x32x32xf32>
    %145 = vector.shape_cast %144 : vector<1x32x32xf32> to vector<32x32xf32>
    %cst_170 = arith.constant dense<0.000000e+00> : vector<64x32xf32>
    %146 = tpu.matmul %143, %145, %cst_170 {dimension_numbers = #tpu.dot_dimension_numbers<[1], [0], [0], [1], [0, 0, 1, 1], [], []>} : vector<64x32xf32>, vector<32x32xf32>, vector<64x32xf32> -> vector<64x32xf32>
    %147 = arith.addf %141, %146 : vector<64x32xf32>
    %c1_171 = arith.constant 1 : index
    %c0_172 = arith.constant 0 : index
    %c0_173 = arith.constant 0 : index
    %148 = vector.load %arg18[%c1_171, %c0_172, %c0_173] : memref<10x10x32xf32, #tpu.memory_space<vmem>>, vector<8x8x32xf32>
    %149 = vector.shape_cast %148 : vector<8x8x32xf32> to vector<64x32xf32>
    %c3_174 = arith.constant 3 : index
    %c0_175 = arith.constant 0 : index
    %c0_176 = arith.constant 0 : index
    %150 = vector.load %arg5[%c3_174, %c0_175, %c0_176] : memref<9x32x32xf32, #tpu.memory_space<vmem>>, vector<1x32x32xf32>
    %151 = vector.shape_cast %150 : vector<1x32x32xf32> to vector<32x32xf32>
    %cst_177 = arith.constant dense<0.000000e+00> : vector<64x32xf32>
    %152 = tpu.matmul %149, %151, %cst_177 {dimension_numbers = #tpu.dot_dimension_numbers<[1], [0], [0], [1], [0, 0, 1, 1], [], []>} : vector<64x32xf32>, vector<32x32xf32>, vector<64x32xf32> -> vector<64x32xf32>
    %153 = arith.addf %147, %152 : vector<64x32xf32>
    %c1_178 = arith.constant 1 : index
    %c1_179 = arith.constant 1 : index
    %c0_180 = arith.constant 0 : index
    %154 = vector.load %arg18[%c1_178, %c1_179, %c0_180] : memref<10x10x32xf32, #tpu.memory_space<vmem>>, vector<8x8x32xf32>
    %155 = vector.shape_cast %154 : vector<8x8x32xf32> to vector<64x32xf32>
    %c4_181 = arith.constant 4 : index
    %c0_182 = arith.constant 0 : index
    %c0_183 = arith.constant 0 : index
    %156 = vector.load %arg5[%c4_181, %c0_182, %c0_183] : memref<9x32x32xf32, #tpu.memory_space<vmem>>, vector<1x32x32xf32>
    %157 = vector.shape_cast %156 : vector<1x32x32xf32> to vector<32x32xf32>
    %cst_184 = arith.constant dense<0.000000e+00> : vector<64x32xf32>
    %158 = tpu.matmul %155, %157, %cst_184 {dimension_numbers = #tpu.dot_dimension_numbers<[1], [0], [0], [1], [0, 0, 1, 1], [], []>} : vector<64x32xf32>, vector<32x32xf32>, vector<64x32xf32> -> vector<64x32xf32>
    %159 = arith.addf %153, %158 : vector<64x32xf32>
    %c1_185 = arith.constant 1 : index
    %c2_186 = arith.constant 2 : index
    %c0_187 = arith.constant 0 : index
    %160 = vector.load %arg18[%c1_185, %c2_186, %c0_187] : memref<10x10x32xf32, #tpu.memory_space<vmem>>, vector<8x8x32xf32>
    %161 = vector.shape_cast %160 : vector<8x8x32xf32> to vector<64x32xf32>
    %c5_188 = arith.constant 5 : index
    %c0_189 = arith.constant 0 : index
    %c0_190 = arith.constant 0 : index
    %162 = vector.load %arg5[%c5_188, %c0_189, %c0_190] : memref<9x32x32xf32, #tpu.memory_space<vmem>>, vector<1x32x32xf32>
    %163 = vector.shape_cast %162 : vector<1x32x32xf32> to vector<32x32xf32>
    %cst_191 = arith.constant dense<0.000000e+00> : vector<64x32xf32>
    %164 = tpu.matmul %161, %163, %cst_191 {dimension_numbers = #tpu.dot_dimension_numbers<[1], [0], [0], [1], [0, 0, 1, 1], [], []>} : vector<64x32xf32>, vector<32x32xf32>, vector<64x32xf32> -> vector<64x32xf32>
    %165 = arith.addf %159, %164 : vector<64x32xf32>
    %c2_192 = arith.constant 2 : index
    %c0_193 = arith.constant 0 : index
    %c0_194 = arith.constant 0 : index
    %166 = vector.load %arg18[%c2_192, %c0_193, %c0_194] : memref<10x10x32xf32, #tpu.memory_space<vmem>>, vector<8x8x32xf32>
    %167 = vector.shape_cast %166 : vector<8x8x32xf32> to vector<64x32xf32>
    %c6_195 = arith.constant 6 : index
    %c0_196 = arith.constant 0 : index
    %c0_197 = arith.constant 0 : index
    %168 = vector.load %arg5[%c6_195, %c0_196, %c0_197] : memref<9x32x32xf32, #tpu.memory_space<vmem>>, vector<1x32x32xf32>
    %169 = vector.shape_cast %168 : vector<1x32x32xf32> to vector<32x32xf32>
    %cst_198 = arith.constant dense<0.000000e+00> : vector<64x32xf32>
    %170 = tpu.matmul %167, %169, %cst_198 {dimension_numbers = #tpu.dot_dimension_numbers<[1], [0], [0], [1], [0, 0, 1, 1], [], []>} : vector<64x32xf32>, vector<32x32xf32>, vector<64x32xf32> -> vector<64x32xf32>
    %171 = arith.addf %165, %170 : vector<64x32xf32>
    %c2_199 = arith.constant 2 : index
    %c1_200 = arith.constant 1 : index
    %c0_201 = arith.constant 0 : index
    %172 = vector.load %arg18[%c2_199, %c1_200, %c0_201] : memref<10x10x32xf32, #tpu.memory_space<vmem>>, vector<8x8x32xf32>
    %173 = vector.shape_cast %172 : vector<8x8x32xf32> to vector<64x32xf32>
    %c7_202 = arith.constant 7 : index
    %c0_203 = arith.constant 0 : index
    %c0_204 = arith.constant 0 : index
    %174 = vector.load %arg5[%c7_202, %c0_203, %c0_204] : memref<9x32x32xf32, #tpu.memory_space<vmem>>, vector<1x32x32xf32>
    %175 = vector.shape_cast %174 : vector<1x32x32xf32> to vector<32x32xf32>
    %cst_205 = arith.constant dense<0.000000e+00> : vector<64x32xf32>
    %176 = tpu.matmul %173, %175, %cst_205 {dimension_numbers = #tpu.dot_dimension_numbers<[1], [0], [0], [1], [0, 0, 1, 1], [], []>} : vector<64x32xf32>, vector<32x32xf32>, vector<64x32xf32> -> vector<64x32xf32>
    %177 = arith.addf %171, %176 : vector<64x32xf32>
    %c2_206 = arith.constant 2 : index
    %c2_207 = arith.constant 2 : index
    %c0_208 = arith.constant 0 : index
    %178 = vector.load %arg18[%c2_206, %c2_207, %c0_208] : memref<10x10x32xf32, #tpu.memory_space<vmem>>, vector<8x8x32xf32>
    %179 = vector.shape_cast %178 : vector<8x8x32xf32> to vector<64x32xf32>
    %c8_209 = arith.constant 8 : index
    %c0_210 = arith.constant 0 : index
    %c0_211 = arith.constant 0 : index
    %180 = vector.load %arg5[%c8_209, %c0_210, %c0_211] : memref<9x32x32xf32, #tpu.memory_space<vmem>>, vector<1x32x32xf32>
    %181 = vector.shape_cast %180 : vector<1x32x32xf32> to vector<32x32xf32>
    %cst_212 = arith.constant dense<0.000000e+00> : vector<64x32xf32>
    %182 = tpu.matmul %179, %181, %cst_212 {dimension_numbers = #tpu.dot_dimension_numbers<[1], [0], [0], [1], [0, 0, 1, 1], [], []>} : vector<64x32xf32>, vector<32x32xf32>, vector<64x32xf32> -> vector<64x32xf32>
    %183 = arith.addf %177, %182 : vector<64x32xf32>
    %cst_213 = arith.constant 0.000000e+00 : f32
    %184 = vector.broadcast %cst_213 : f32 to vector<64x32xf32>
    %185 = arith.maximumf %183, %184 : vector<64x32xf32>
    %186 = vector.shape_cast %185 : vector<64x32xf32> to vector<8x8x32xf32>
    %c1_214 = arith.constant 1 : index
    %c1_215 = arith.constant 1 : index
    %c0_216 = arith.constant 0 : index
    %187 = vector.load %arg18[%c1_214, %c1_215, %c0_216] : memref<10x10x32xf32, #tpu.memory_space<vmem>>, vector<8x8x32xf32>
    tpu.vector_store %arg18[%c1_214, %c1_215, %c0_216], %186 {strides = array<i32>} : memref<10x10x32xf32, #tpu.memory_space<vmem>>, vector<8x8x32xf32>,
    %c0_217 = arith.constant 0 : index
    %c0_218 = arith.constant 0 : index
    %c0_219 = arith.constant 0 : index
    %188 = vector.load %arg18[%c0_217, %c0_218, %c0_219] : memref<10x10x32xf32, #tpu.memory_space<vmem>>, vector<8x8x32xf32>
    %189 = vector.shape_cast %188 : vector<8x8x32xf32> to vector<64x32xf32>
    %c0_220 = arith.constant 0 : index
    %c0_221 = arith.constant 0 : index
    %c0_222 = arith.constant 0 : index
    %190 = vector.load %arg6[%c0_220, %c0_221, %c0_222] : memref<9x32x32xf32, #tpu.memory_space<vmem>>, vector<1x32x32xf32>
    %191 = vector.shape_cast %190 : vector<1x32x32xf32> to vector<32x32xf32>
    %cst_223 = arith.constant dense<0.000000e+00> : vector<64x32xf32>
    %192 = tpu.matmul %189, %191, %cst_223 {dimension_numbers = #tpu.dot_dimension_numbers<[1], [0], [0], [1], [0, 0, 1, 1], [], []>} : vector<64x32xf32>, vector<32x32xf32>, vector<64x32xf32> -> vector<64x32xf32>
    %c0_224 = arith.constant 0 : index
    %c1_225 = arith.constant 1 : index
    %c0_226 = arith.constant 0 : index
    %193 = vector.load %arg18[%c0_224, %c1_225, %c0_226] : memref<10x10x32xf32, #tpu.memory_space<vmem>>, vector<8x8x32xf32>
    %194 = vector.shape_cast %193 : vector<8x8x32xf32> to vector<64x32xf32>
    %c1_227 = arith.constant 1 : index
    %c0_228 = arith.constant 0 : index
    %c0_229 = arith.constant 0 : index
    %195 = vector.load %arg6[%c1_227, %c0_228, %c0_229] : memref<9x32x32xf32, #tpu.memory_space<vmem>>, vector<1x32x32xf32>
    %196 = vector.shape_cast %195 : vector<1x32x32xf32> to vector<32x32xf32>
    %cst_230 = arith.constant dense<0.000000e+00> : vector<64x32xf32>
    %197 = tpu.matmul %194, %196, %cst_230 {dimension_numbers = #tpu.dot_dimension_numbers<[1], [0], [0], [1], [0, 0, 1, 1], [], []>} : vector<64x32xf32>, vector<32x32xf32>, vector<64x32xf32> -> vector<64x32xf32>
    %198 = arith.addf %192, %197 : vector<64x32xf32>
    %c0_231 = arith.constant 0 : index
    %c2_232 = arith.constant 2 : index
    %c0_233 = arith.constant 0 : index
    %199 = vector.load %arg18[%c0_231, %c2_232, %c0_233] : memref<10x10x32xf32, #tpu.memory_space<vmem>>, vector<8x8x32xf32>
    %200 = vector.shape_cast %199 : vector<8x8x32xf32> to vector<64x32xf32>
    %c2_234 = arith.constant 2 : index
    %c0_235 = arith.constant 0 : index
    %c0_236 = arith.constant 0 : index
    %201 = vector.load %arg6[%c2_234, %c0_235, %c0_236] : memref<9x32x32xf32, #tpu.memory_space<vmem>>, vector<1x32x32xf32>
    %202 = vector.shape_cast %201 : vector<1x32x32xf32> to vector<32x32xf32>
    %cst_237 = arith.constant dense<0.000000e+00> : vector<64x32xf32>
    %203 = tpu.matmul %200, %202, %cst_237 {dimension_numbers = #tpu.dot_dimension_numbers<[1], [0], [0], [1], [0, 0, 1, 1], [], []>} : vector<64x32xf32>, vector<32x32xf32>, vector<64x32xf32> -> vector<64x32xf32>
    %204 = arith.addf %198, %203 : vector<64x32xf32>
    %c1_238 = arith.constant 1 : index
    %c0_239 = arith.constant 0 : index
    %c0_240 = arith.constant 0 : index
    %205 = vector.load %arg18[%c1_238, %c0_239, %c0_240] : memref<10x10x32xf32, #tpu.memory_space<vmem>>, vector<8x8x32xf32>
    %206 = vector.shape_cast %205 : vector<8x8x32xf32> to vector<64x32xf32>
    %c3_241 = arith.constant 3 : index
    %c0_242 = arith.constant 0 : index
    %c0_243 = arith.constant 0 : index
    %207 = vector.load %arg6[%c3_241, %c0_242, %c0_243] : memref<9x32x32xf32, #tpu.memory_space<vmem>>, vector<1x32x32xf32>
    %208 = vector.shape_cast %207 : vector<1x32x32xf32> to vector<32x32xf32>
    %cst_244 = arith.constant dense<0.000000e+00> : vector<64x32xf32>
    %209 = tpu.matmul %206, %208, %cst_244 {dimension_numbers = #tpu.dot_dimension_numbers<[1], [0], [0], [1], [0, 0, 1, 1], [], []>} : vector<64x32xf32>, vector<32x32xf32>, vector<64x32xf32> -> vector<64x32xf32>
    %210 = arith.addf %204, %209 : vector<64x32xf32>
    %c1_245 = arith.constant 1 : index
    %c1_246 = arith.constant 1 : index
    %c0_247 = arith.constant 0 : index
    %211 = vector.load %arg18[%c1_245, %c1_246, %c0_247] : memref<10x10x32xf32, #tpu.memory_space<vmem>>, vector<8x8x32xf32>
    %212 = vector.shape_cast %211 : vector<8x8x32xf32> to vector<64x32xf32>
    %c4_248 = arith.constant 4 : index
    %c0_249 = arith.constant 0 : index
    %c0_250 = arith.constant 0 : index
    %213 = vector.load %arg6[%c4_248, %c0_249, %c0_250] : memref<9x32x32xf32, #tpu.memory_space<vmem>>, vector<1x32x32xf32>
    %214 = vector.shape_cast %213 : vector<1x32x32xf32> to vector<32x32xf32>
    %cst_251 = arith.constant dense<0.000000e+00> : vector<64x32xf32>
    %215 = tpu.matmul %212, %214, %cst_251 {dimension_numbers = #tpu.dot_dimension_numbers<[1], [0], [0], [1], [0, 0, 1, 1], [], []>} : vector<64x32xf32>, vector<32x32xf32>, vector<64x32xf32> -> vector<64x32xf32>
    %216 = arith.addf %210, %215 : vector<64x32xf32>
    %c1_252 = arith.constant 1 : index
    %c2_253 = arith.constant 2 : index
    %c0_254 = arith.constant 0 : index
    %217 = vector.load %arg18[%c1_252, %c2_253, %c0_254] : memref<10x10x32xf32, #tpu.memory_space<vmem>>, vector<8x8x32xf32>
    %218 = vector.shape_cast %217 : vector<8x8x32xf32> to vector<64x32xf32>
    %c5_255 = arith.constant 5 : index
    %c0_256 = arith.constant 0 : index
    %c0_257 = arith.constant 0 : index
    %219 = vector.load %arg6[%c5_255, %c0_256, %c0_257] : memref<9x32x32xf32, #tpu.memory_space<vmem>>, vector<1x32x32xf32>
    %220 = vector.shape_cast %219 : vector<1x32x32xf32> to vector<32x32xf32>
    %cst_258 = arith.constant dense<0.000000e+00> : vector<64x32xf32>
    %221 = tpu.matmul %218, %220, %cst_258 {dimension_numbers = #tpu.dot_dimension_numbers<[1], [0], [0], [1], [0, 0, 1, 1], [], []>} : vector<64x32xf32>, vector<32x32xf32>, vector<64x32xf32> -> vector<64x32xf32>
    %222 = arith.addf %216, %221 : vector<64x32xf32>
    %c2_259 = arith.constant 2 : index
    %c0_260 = arith.constant 0 : index
    %c0_261 = arith.constant 0 : index
    %223 = vector.load %arg18[%c2_259, %c0_260, %c0_261] : memref<10x10x32xf32, #tpu.memory_space<vmem>>, vector<8x8x32xf32>
    %224 = vector.shape_cast %223 : vector<8x8x32xf32> to vector<64x32xf32>
    %c6_262 = arith.constant 6 : index
    %c0_263 = arith.constant 0 : index
    %c0_264 = arith.constant 0 : index
    %225 = vector.load %arg6[%c6_262, %c0_263, %c0_264] : memref<9x32x32xf32, #tpu.memory_space<vmem>>, vector<1x32x32xf32>
    %226 = vector.shape_cast %225 : vector<1x32x32xf32> to vector<32x32xf32>
    %cst_265 = arith.constant dense<0.000000e+00> : vector<64x32xf32>
    %227 = tpu.matmul %224, %226, %cst_265 {dimension_numbers = #tpu.dot_dimension_numbers<[1], [0], [0], [1], [0, 0, 1, 1], [], []>} : vector<64x32xf32>, vector<32x32xf32>, vector<64x32xf32> -> vector<64x32xf32>
    %228 = arith.addf %222, %227 : vector<64x32xf32>
    %c2_266 = arith.constant 2 : index
    %c1_267 = arith.constant 1 : index
    %c0_268 = arith.constant 0 : index
    %229 = vector.load %arg18[%c2_266, %c1_267, %c0_268] : memref<10x10x32xf32, #tpu.memory_space<vmem>>, vector<8x8x32xf32>
    %230 = vector.shape_cast %229 : vector<8x8x32xf32> to vector<64x32xf32>
    %c7_269 = arith.constant 7 : index
    %c0_270 = arith.constant 0 : index
    %c0_271 = arith.constant 0 : index
    %231 = vector.load %arg6[%c7_269, %c0_270, %c0_271] : memref<9x32x32xf32, #tpu.memory_space<vmem>>, vector<1x32x32xf32>
    %232 = vector.shape_cast %231 : vector<1x32x32xf32> to vector<32x32xf32>
    %cst_272 = arith.constant dense<0.000000e+00> : vector<64x32xf32>
    %233 = tpu.matmul %230, %232, %cst_272 {dimension_numbers = #tpu.dot_dimension_numbers<[1], [0], [0], [1], [0, 0, 1, 1], [], []>} : vector<64x32xf32>, vector<32x32xf32>, vector<64x32xf32> -> vector<64x32xf32>
    %234 = arith.addf %228, %233 : vector<64x32xf32>
    %c2_273 = arith.constant 2 : index
    %c2_274 = arith.constant 2 : index
    %c0_275 = arith.constant 0 : index
    %235 = vector.load %arg18[%c2_273, %c2_274, %c0_275] : memref<10x10x32xf32, #tpu.memory_space<vmem>>, vector<8x8x32xf32>
    %236 = vector.shape_cast %235 : vector<8x8x32xf32> to vector<64x32xf32>
    %c8_276 = arith.constant 8 : index
    %c0_277 = arith.constant 0 : index
    %c0_278 = arith.constant 0 : index
    %237 = vector.load %arg6[%c8_276, %c0_277, %c0_278] : memref<9x32x32xf32, #tpu.memory_space<vmem>>, vector<1x32x32xf32>
    %238 = vector.shape_cast %237 : vector<1x32x32xf32> to vector<32x32xf32>
    %cst_279 = arith.constant dense<0.000000e+00> : vector<64x32xf32>
    %239 = tpu.matmul %236, %238, %cst_279 {dimension_numbers = #tpu.dot_dimension_numbers<[1], [0], [0], [1], [0, 0, 1, 1], [], []>} : vector<64x32xf32>, vector<32x32xf32>, vector<64x32xf32> -> vector<64x32xf32>
    %240 = arith.addf %234, %239 : vector<64x32xf32>
    %c0_280 = arith.constant 0 : index
    %c0_281 = arith.constant 0 : index
    %241 = vector.load %arg13[%c0_280, %c0_281] : memref<16x64xf32, #tpu.memory_space<vmem>>, vector<16x64xf32>
    %cst_282 = arith.constant dense<0.000000e+00> : vector<16x32xf32>
    %242 = tpu.matmul %241, %240, %cst_282 {dimension_numbers = #tpu.dot_dimension_numbers<[1], [0], [0], [1], [0, 0, 1, 1], [], []>} : vector<16x64xf32>, vector<64x32xf32>, vector<16x32xf32> -> vector<16x32xf32>
    %cst_283 = arith.constant dense<0.000000e+00> : vector<16x32xf32>
    %243 = tpu.matmul %241, %126, %cst_283 {dimension_numbers = #tpu.dot_dimension_numbers<[1], [0], [0], [1], [0, 0, 1, 1], [], []>} : vector<16x64xf32>, vector<64x32xf32>, vector<16x32xf32> -> vector<16x32xf32>
    %c0_284 = arith.constant 0 : index
    %c0_285 = arith.constant 0 : index
    %244 = vector.load %arg7[%c0_284, %c0_285] : memref<32x32xf32, #tpu.memory_space<vmem>>, vector<32x32xf32>
    %cst_286 = arith.constant dense<0.000000e+00> : vector<16x32xf32>
    %245 = tpu.matmul %243, %244, %cst_286 {dimension_numbers = #tpu.dot_dimension_numbers<[1], [0], [0], [1], [0, 0, 1, 1], [], []>} : vector<16x32xf32>, vector<32x32xf32>, vector<16x32xf32> -> vector<16x32xf32>
    %246 = arith.addf %242, %245 : vector<16x32xf32>
    %cst_287 = arith.constant 0.000000e+00 : f32
    %247 = vector.broadcast %cst_287 : f32 to vector<16x32xf32>
    %248 = arith.maximumf %246, %247 : vector<16x32xf32>
    %249 = vector.shape_cast %248 : vector<16x32xf32> to vector<4x4x32xf32>
    %c1_288 = arith.constant 1 : index
    %c1_289 = arith.constant 1 : index
    %c0_290 = arith.constant 0 : index
    %250 = vector.load %arg19[%c1_288, %c1_289, %c0_290] : memref<6x6x32xf32, #tpu.memory_space<vmem>>, vector<4x4x32xf32>
    tpu.vector_store %arg19[%c1_288, %c1_289, %c0_290], %249 {strides = array<i32>} : memref<6x6x32xf32, #tpu.memory_space<vmem>>, vector<4x4x32xf32>,
    %c0_291 = arith.constant 0 : index
    %c0_292 = arith.constant 0 : index
    %c0_293 = arith.constant 0 : index
    %251 = vector.load %arg19[%c0_291, %c0_292, %c0_293] : memref<6x6x32xf32, #tpu.memory_space<vmem>>, vector<4x4x32xf32>
    %252 = vector.shape_cast %251 : vector<4x4x32xf32> to vector<16x32xf32>
    %c0_294 = arith.constant 0 : index
    %c0_295 = arith.constant 0 : index
    %c0_296 = arith.constant 0 : index
    %253 = vector.load %arg8[%c0_294, %c0_295, %c0_296] : memref<9x32x32xf32, #tpu.memory_space<vmem>>, vector<1x32x32xf32>
    %254 = vector.shape_cast %253 : vector<1x32x32xf32> to vector<32x32xf32>
    %cst_297 = arith.constant dense<0.000000e+00> : vector<16x32xf32>
    %255 = tpu.matmul %252, %254, %cst_297 {dimension_numbers = #tpu.dot_dimension_numbers<[1], [0], [0], [1], [0, 0, 1, 1], [], []>} : vector<16x32xf32>, vector<32x32xf32>, vector<16x32xf32> -> vector<16x32xf32>
    %c0_298 = arith.constant 0 : index
    %c1_299 = arith.constant 1 : index
    %c0_300 = arith.constant 0 : index
    %256 = vector.load %arg19[%c0_298, %c1_299, %c0_300] : memref<6x6x32xf32, #tpu.memory_space<vmem>>, vector<4x4x32xf32>
    %257 = vector.shape_cast %256 : vector<4x4x32xf32> to vector<16x32xf32>
    %c1_301 = arith.constant 1 : index
    %c0_302 = arith.constant 0 : index
    %c0_303 = arith.constant 0 : index
    %258 = vector.load %arg8[%c1_301, %c0_302, %c0_303] : memref<9x32x32xf32, #tpu.memory_space<vmem>>, vector<1x32x32xf32>
    %259 = vector.shape_cast %258 : vector<1x32x32xf32> to vector<32x32xf32>
    %cst_304 = arith.constant dense<0.000000e+00> : vector<16x32xf32>
    %260 = tpu.matmul %257, %259, %cst_304 {dimension_numbers = #tpu.dot_dimension_numbers<[1], [0], [0], [1], [0, 0, 1, 1], [], []>} : vector<16x32xf32>, vector<32x32xf32>, vector<16x32xf32> -> vector<16x32xf32>
    %261 = arith.addf %255, %260 : vector<16x32xf32>
    %c0_305 = arith.constant 0 : index
    %c2_306 = arith.constant 2 : index
    %c0_307 = arith.constant 0 : index
    %262 = vector.load %arg19[%c0_305, %c2_306, %c0_307] : memref<6x6x32xf32, #tpu.memory_space<vmem>>, vector<4x4x32xf32>
    %263 = vector.shape_cast %262 : vector<4x4x32xf32> to vector<16x32xf32>
    %c2_308 = arith.constant 2 : index
    %c0_309 = arith.constant 0 : index
    %c0_310 = arith.constant 0 : index
    %264 = vector.load %arg8[%c2_308, %c0_309, %c0_310] : memref<9x32x32xf32, #tpu.memory_space<vmem>>, vector<1x32x32xf32>
    %265 = vector.shape_cast %264 : vector<1x32x32xf32> to vector<32x32xf32>
    %cst_311 = arith.constant dense<0.000000e+00> : vector<16x32xf32>
    %266 = tpu.matmul %263, %265, %cst_311 {dimension_numbers = #tpu.dot_dimension_numbers<[1], [0], [0], [1], [0, 0, 1, 1], [], []>} : vector<16x32xf32>, vector<32x32xf32>, vector<16x32xf32> -> vector<16x32xf32>
    %267 = arith.addf %261, %266 : vector<16x32xf32>
    %c1_312 = arith.constant 1 : index
    %c0_313 = arith.constant 0 : index
    %c0_314 = arith.constant 0 : index
    %268 = vector.load %arg19[%c1_312, %c0_313, %c0_314] : memref<6x6x32xf32, #tpu.memory_space<vmem>>, vector<4x4x32xf32>
    %269 = vector.shape_cast %268 : vector<4x4x32xf32> to vector<16x32xf32>
    %c3_315 = arith.constant 3 : index
    %c0_316 = arith.constant 0 : index
    %c0_317 = arith.constant 0 : index
    %270 = vector.load %arg8[%c3_315, %c0_316, %c0_317] : memref<9x32x32xf32, #tpu.memory_space<vmem>>, vector<1x32x32xf32>
    %271 = vector.shape_cast %270 : vector<1x32x32xf32> to vector<32x32xf32>
    %cst_318 = arith.constant dense<0.000000e+00> : vector<16x32xf32>
    %272 = tpu.matmul %269, %271, %cst_318 {dimension_numbers = #tpu.dot_dimension_numbers<[1], [0], [0], [1], [0, 0, 1, 1], [], []>} : vector<16x32xf32>, vector<32x32xf32>, vector<16x32xf32> -> vector<16x32xf32>
    %273 = arith.addf %267, %272 : vector<16x32xf32>
    %c1_319 = arith.constant 1 : index
    %c1_320 = arith.constant 1 : index
    %c0_321 = arith.constant 0 : index
    %274 = vector.load %arg19[%c1_319, %c1_320, %c0_321] : memref<6x6x32xf32, #tpu.memory_space<vmem>>, vector<4x4x32xf32>
    %275 = vector.shape_cast %274 : vector<4x4x32xf32> to vector<16x32xf32>
    %c4_322 = arith.constant 4 : index
    %c0_323 = arith.constant 0 : index
    %c0_324 = arith.constant 0 : index
    %276 = vector.load %arg8[%c4_322, %c0_323, %c0_324] : memref<9x32x32xf32, #tpu.memory_space<vmem>>, vector<1x32x32xf32>
    %277 = vector.shape_cast %276 : vector<1x32x32xf32> to vector<32x32xf32>
    %cst_325 = arith.constant dense<0.000000e+00> : vector<16x32xf32>
    %278 = tpu.matmul %275, %277, %cst_325 {dimension_numbers = #tpu.dot_dimension_numbers<[1], [0], [0], [1], [0, 0, 1, 1], [], []>} : vector<16x32xf32>, vector<32x32xf32>, vector<16x32xf32> -> vector<16x32xf32>
    %279 = arith.addf %273, %278 : vector<16x32xf32>
    %c1_326 = arith.constant 1 : index
    %c2_327 = arith.constant 2 : index
    %c0_328 = arith.constant 0 : index
    %280 = vector.load %arg19[%c1_326, %c2_327, %c0_328] : memref<6x6x32xf32, #tpu.memory_space<vmem>>, vector<4x4x32xf32>
    %281 = vector.shape_cast %280 : vector<4x4x32xf32> to vector<16x32xf32>
    %c5_329 = arith.constant 5 : index
    %c0_330 = arith.constant 0 : index
    %c0_331 = arith.constant 0 : index
    %282 = vector.load %arg8[%c5_329, %c0_330, %c0_331] : memref<9x32x32xf32, #tpu.memory_space<vmem>>, vector<1x32x32xf32>
    %283 = vector.shape_cast %282 : vector<1x32x32xf32> to vector<32x32xf32>
    %cst_332 = arith.constant dense<0.000000e+00> : vector<16x32xf32>
    %284 = tpu.matmul %281, %283, %cst_332 {dimension_numbers = #tpu.dot_dimension_numbers<[1], [0], [0], [1], [0, 0, 1, 1], [], []>} : vector<16x32xf32>, vector<32x32xf32>, vector<16x32xf32> -> vector<16x32xf32>
    %285 = arith.addf %279, %284 : vector<16x32xf32>
    %c2_333 = arith.constant 2 : index
    %c0_334 = arith.constant 0 : index
    %c0_335 = arith.constant 0 : index
    %286 = vector.load %arg19[%c2_333, %c0_334, %c0_335] : memref<6x6x32xf32, #tpu.memory_space<vmem>>, vector<4x4x32xf32>
    %287 = vector.shape_cast %286 : vector<4x4x32xf32> to vector<16x32xf32>
    %c6_336 = arith.constant 6 : index
    %c0_337 = arith.constant 0 : index
    %c0_338 = arith.constant 0 : index
    %288 = vector.load %arg8[%c6_336, %c0_337, %c0_338] : memref<9x32x32xf32, #tpu.memory_space<vmem>>, vector<1x32x32xf32>
    %289 = vector.shape_cast %288 : vector<1x32x32xf32> to vector<32x32xf32>
    %cst_339 = arith.constant dense<0.000000e+00> : vector<16x32xf32>
    %290 = tpu.matmul %287, %289, %cst_339 {dimension_numbers = #tpu.dot_dimension_numbers<[1], [0], [0], [1], [0, 0, 1, 1], [], []>} : vector<16x32xf32>, vector<32x32xf32>, vector<16x32xf32> -> vector<16x32xf32>
    %291 = arith.addf %285, %290 : vector<16x32xf32>
    %c2_340 = arith.constant 2 : index
    %c1_341 = arith.constant 1 : index
    %c0_342 = arith.constant 0 : index
    %292 = vector.load %arg19[%c2_340, %c1_341, %c0_342] : memref<6x6x32xf32, #tpu.memory_space<vmem>>, vector<4x4x32xf32>
    %293 = vector.shape_cast %292 : vector<4x4x32xf32> to vector<16x32xf32>
    %c7_343 = arith.constant 7 : index
    %c0_344 = arith.constant 0 : index
    %c0_345 = arith.constant 0 : index
    %294 = vector.load %arg8[%c7_343, %c0_344, %c0_345] : memref<9x32x32xf32, #tpu.memory_space<vmem>>, vector<1x32x32xf32>
    %295 = vector.shape_cast %294 : vector<1x32x32xf32> to vector<32x32xf32>
    %cst_346 = arith.constant dense<0.000000e+00> : vector<16x32xf32>
    %296 = tpu.matmul %293, %295, %cst_346 {dimension_numbers = #tpu.dot_dimension_numbers<[1], [0], [0], [1], [0, 0, 1, 1], [], []>} : vector<16x32xf32>, vector<32x32xf32>, vector<16x32xf32> -> vector<16x32xf32>
    %297 = arith.addf %291, %296 : vector<16x32xf32>
    %c2_347 = arith.constant 2 : index
    %c2_348 = arith.constant 2 : index
    %c0_349 = arith.constant 0 : index
    %298 = vector.load %arg19[%c2_347, %c2_348, %c0_349] : memref<6x6x32xf32, #tpu.memory_space<vmem>>, vector<4x4x32xf32>
    %299 = vector.shape_cast %298 : vector<4x4x32xf32> to vector<16x32xf32>
    %c8_350 = arith.constant 8 : index
    %c0_351 = arith.constant 0 : index
    %c0_352 = arith.constant 0 : index
    %300 = vector.load %arg8[%c8_350, %c0_351, %c0_352] : memref<9x32x32xf32, #tpu.memory_space<vmem>>, vector<1x32x32xf32>
    %301 = vector.shape_cast %300 : vector<1x32x32xf32> to vector<32x32xf32>
    %cst_353 = arith.constant dense<0.000000e+00> : vector<16x32xf32>
    %302 = tpu.matmul %299, %301, %cst_353 {dimension_numbers = #tpu.dot_dimension_numbers<[1], [0], [0], [1], [0, 0, 1, 1], [], []>} : vector<16x32xf32>, vector<32x32xf32>, vector<16x32xf32> -> vector<16x32xf32>
    %303 = arith.addf %297, %302 : vector<16x32xf32>
    %cst_354 = arith.constant 0.000000e+00 : f32
    %304 = vector.broadcast %cst_354 : f32 to vector<16x32xf32>
    %305 = arith.maximumf %303, %304 : vector<16x32xf32>
    %306 = vector.shape_cast %305 : vector<16x32xf32> to vector<4x4x32xf32>
    %c1_355 = arith.constant 1 : index
    %c1_356 = arith.constant 1 : index
    %c0_357 = arith.constant 0 : index
    %307 = vector.load %arg19[%c1_355, %c1_356, %c0_357] : memref<6x6x32xf32, #tpu.memory_space<vmem>>, vector<4x4x32xf32>
    tpu.vector_store %arg19[%c1_355, %c1_356, %c0_357], %306 {strides = array<i32>} : memref<6x6x32xf32, #tpu.memory_space<vmem>>, vector<4x4x32xf32>,
    %c0_358 = arith.constant 0 : index
    %c0_359 = arith.constant 0 : index
    %c0_360 = arith.constant 0 : index
    %308 = vector.load %arg19[%c0_358, %c0_359, %c0_360] : memref<6x6x32xf32, #tpu.memory_space<vmem>>, vector<4x4x32xf32>
    %309 = vector.shape_cast %308 : vector<4x4x32xf32> to vector<16x32xf32>
    %c0_361 = arith.constant 0 : index
    %c0_362 = arith.constant 0 : index
    %c0_363 = arith.constant 0 : index
    %310 = vector.load %arg9[%c0_361, %c0_362, %c0_363] : memref<9x32x32xf32, #tpu.memory_space<vmem>>, vector<1x32x32xf32>
    %311 = vector.shape_cast %310 : vector<1x32x32xf32> to vector<32x32xf32>
    %cst_364 = arith.constant dense<0.000000e+00> : vector<16x32xf32>
    %312 = tpu.matmul %309, %311, %cst_364 {dimension_numbers = #tpu.dot_dimension_numbers<[1], [0], [0], [1], [0, 0, 1, 1], [], []>} : vector<16x32xf32>, vector<32x32xf32>, vector<16x32xf32> -> vector<16x32xf32>
    %c0_365 = arith.constant 0 : index
    %c1_366 = arith.constant 1 : index
    %c0_367 = arith.constant 0 : index
    %313 = vector.load %arg19[%c0_365, %c1_366, %c0_367] : memref<6x6x32xf32, #tpu.memory_space<vmem>>, vector<4x4x32xf32>
    %314 = vector.shape_cast %313 : vector<4x4x32xf32> to vector<16x32xf32>
    %c1_368 = arith.constant 1 : index
    %c0_369 = arith.constant 0 : index
    %c0_370 = arith.constant 0 : index
    %315 = vector.load %arg9[%c1_368, %c0_369, %c0_370] : memref<9x32x32xf32, #tpu.memory_space<vmem>>, vector<1x32x32xf32>
    %316 = vector.shape_cast %315 : vector<1x32x32xf32> to vector<32x32xf32>
    %cst_371 = arith.constant dense<0.000000e+00> : vector<16x32xf32>
    %317 = tpu.matmul %314, %316, %cst_371 {dimension_numbers = #tpu.dot_dimension_numbers<[1], [0], [0], [1], [0, 0, 1, 1], [], []>} : vector<16x32xf32>, vector<32x32xf32>, vector<16x32xf32> -> vector<16x32xf32>
    %318 = arith.addf %312, %317 : vector<16x32xf32>
    %c0_372 = arith.constant 0 : index
    %c2_373 = arith.constant 2 : index
    %c0_374 = arith.constant 0 : index
    %319 = vector.load %arg19[%c0_372, %c2_373, %c0_374] : memref<6x6x32xf32, #tpu.memory_space<vmem>>, vector<4x4x32xf32>
    %320 = vector.shape_cast %319 : vector<4x4x32xf32> to vector<16x32xf32>
    %c2_375 = arith.constant 2 : index
    %c0_376 = arith.constant 0 : index
    %c0_377 = arith.constant 0 : index
    %321 = vector.load %arg9[%c2_375, %c0_376, %c0_377] : memref<9x32x32xf32, #tpu.memory_space<vmem>>, vector<1x32x32xf32>
    %322 = vector.shape_cast %321 : vector<1x32x32xf32> to vector<32x32xf32>
    %cst_378 = arith.constant dense<0.000000e+00> : vector<16x32xf32>
    %323 = tpu.matmul %320, %322, %cst_378 {dimension_numbers = #tpu.dot_dimension_numbers<[1], [0], [0], [1], [0, 0, 1, 1], [], []>} : vector<16x32xf32>, vector<32x32xf32>, vector<16x32xf32> -> vector<16x32xf32>
    %324 = arith.addf %318, %323 : vector<16x32xf32>
    %c1_379 = arith.constant 1 : index
    %c0_380 = arith.constant 0 : index
    %c0_381 = arith.constant 0 : index
    %325 = vector.load %arg19[%c1_379, %c0_380, %c0_381] : memref<6x6x32xf32, #tpu.memory_space<vmem>>, vector<4x4x32xf32>
    %326 = vector.shape_cast %325 : vector<4x4x32xf32> to vector<16x32xf32>
    %c3_382 = arith.constant 3 : index
    %c0_383 = arith.constant 0 : index
    %c0_384 = arith.constant 0 : index
    %327 = vector.load %arg9[%c3_382, %c0_383, %c0_384] : memref<9x32x32xf32, #tpu.memory_space<vmem>>, vector<1x32x32xf32>
    %328 = vector.shape_cast %327 : vector<1x32x32xf32> to vector<32x32xf32>
    %cst_385 = arith.constant dense<0.000000e+00> : vector<16x32xf32>
    %329 = tpu.matmul %326, %328, %cst_385 {dimension_numbers = #tpu.dot_dimension_numbers<[1], [0], [0], [1], [0, 0, 1, 1], [], []>} : vector<16x32xf32>, vector<32x32xf32>, vector<16x32xf32> -> vector<16x32xf32>
    %330 = arith.addf %324, %329 : vector<16x32xf32>
    %c1_386 = arith.constant 1 : index
    %c1_387 = arith.constant 1 : index
    %c0_388 = arith.constant 0 : index
    %331 = vector.load %arg19[%c1_386, %c1_387, %c0_388] : memref<6x6x32xf32, #tpu.memory_space<vmem>>, vector<4x4x32xf32>
    %332 = vector.shape_cast %331 : vector<4x4x32xf32> to vector<16x32xf32>
    %c4_389 = arith.constant 4 : index
    %c0_390 = arith.constant 0 : index
    %c0_391 = arith.constant 0 : index
    %333 = vector.load %arg9[%c4_389, %c0_390, %c0_391] : memref<9x32x32xf32, #tpu.memory_space<vmem>>, vector<1x32x32xf32>
    %334 = vector.shape_cast %333 : vector<1x32x32xf32> to vector<32x32xf32>
    %cst_392 = arith.constant dense<0.000000e+00> : vector<16x32xf32>
    %335 = tpu.matmul %332, %334, %cst_392 {dimension_numbers = #tpu.dot_dimension_numbers<[1], [0], [0], [1], [0, 0, 1, 1], [], []>} : vector<16x32xf32>, vector<32x32xf32>, vector<16x32xf32> -> vector<16x32xf32>
    %336 = arith.addf %330, %335 : vector<16x32xf32>
    %c1_393 = arith.constant 1 : index
    %c2_394 = arith.constant 2 : index
    %c0_395 = arith.constant 0 : index
    %337 = vector.load %arg19[%c1_393, %c2_394, %c0_395] : memref<6x6x32xf32, #tpu.memory_space<vmem>>, vector<4x4x32xf32>
    %338 = vector.shape_cast %337 : vector<4x4x32xf32> to vector<16x32xf32>
    %c5_396 = arith.constant 5 : index
    %c0_397 = arith.constant 0 : index
    %c0_398 = arith.constant 0 : index
    %339 = vector.load %arg9[%c5_396, %c0_397, %c0_398] : memref<9x32x32xf32, #tpu.memory_space<vmem>>, vector<1x32x32xf32>
    %340 = vector.shape_cast %339 : vector<1x32x32xf32> to vector<32x32xf32>
    %cst_399 = arith.constant dense<0.000000e+00> : vector<16x32xf32>
    %341 = tpu.matmul %338, %340, %cst_399 {dimension_numbers = #tpu.dot_dimension_numbers<[1], [0], [0], [1], [0, 0, 1, 1], [], []>} : vector<16x32xf32>, vector<32x32xf32>, vector<16x32xf32> -> vector<16x32xf32>
    %342 = arith.addf %336, %341 : vector<16x32xf32>
    %c2_400 = arith.constant 2 : index
    %c0_401 = arith.constant 0 : index
    %c0_402 = arith.constant 0 : index
    %343 = vector.load %arg19[%c2_400, %c0_401, %c0_402] : memref<6x6x32xf32, #tpu.memory_space<vmem>>, vector<4x4x32xf32>
    %344 = vector.shape_cast %343 : vector<4x4x32xf32> to vector<16x32xf32>
    %c6_403 = arith.constant 6 : index
    %c0_404 = arith.constant 0 : index
    %c0_405 = arith.constant 0 : index
    %345 = vector.load %arg9[%c6_403, %c0_404, %c0_405] : memref<9x32x32xf32, #tpu.memory_space<vmem>>, vector<1x32x32xf32>
    %346 = vector.shape_cast %345 : vector<1x32x32xf32> to vector<32x32xf32>
    %cst_406 = arith.constant dense<0.000000e+00> : vector<16x32xf32>
    %347 = tpu.matmul %344, %346, %cst_406 {dimension_numbers = #tpu.dot_dimension_numbers<[1], [0], [0], [1], [0, 0, 1, 1], [], []>} : vector<16x32xf32>, vector<32x32xf32>, vector<16x32xf32> -> vector<16x32xf32>
    %348 = arith.addf %342, %347 : vector<16x32xf32>
    %c2_407 = arith.constant 2 : index
    %c1_408 = arith.constant 1 : index
    %c0_409 = arith.constant 0 : index
    %349 = vector.load %arg19[%c2_407, %c1_408, %c0_409] : memref<6x6x32xf32, #tpu.memory_space<vmem>>, vector<4x4x32xf32>
    %350 = vector.shape_cast %349 : vector<4x4x32xf32> to vector<16x32xf32>
    %c7_410 = arith.constant 7 : index
    %c0_411 = arith.constant 0 : index
    %c0_412 = arith.constant 0 : index
    %351 = vector.load %arg9[%c7_410, %c0_411, %c0_412] : memref<9x32x32xf32, #tpu.memory_space<vmem>>, vector<1x32x32xf32>
    %352 = vector.shape_cast %351 : vector<1x32x32xf32> to vector<32x32xf32>
    %cst_413 = arith.constant dense<0.000000e+00> : vector<16x32xf32>
    %353 = tpu.matmul %350, %352, %cst_413 {dimension_numbers = #tpu.dot_dimension_numbers<[1], [0], [0], [1], [0, 0, 1, 1], [], []>} : vector<16x32xf32>, vector<32x32xf32>, vector<16x32xf32> -> vector<16x32xf32>
    %354 = arith.addf %348, %353 : vector<16x32xf32>
    %c2_414 = arith.constant 2 : index
    %c2_415 = arith.constant 2 : index
    %c0_416 = arith.constant 0 : index
    %355 = vector.load %arg19[%c2_414, %c2_415, %c0_416] : memref<6x6x32xf32, #tpu.memory_space<vmem>>, vector<4x4x32xf32>
    %356 = vector.shape_cast %355 : vector<4x4x32xf32> to vector<16x32xf32>
    %c8_417 = arith.constant 8 : index
    %c0_418 = arith.constant 0 : index
    %c0_419 = arith.constant 0 : index
    %357 = vector.load %arg9[%c8_417, %c0_418, %c0_419] : memref<9x32x32xf32, #tpu.memory_space<vmem>>, vector<1x32x32xf32>
    %358 = vector.shape_cast %357 : vector<1x32x32xf32> to vector<32x32xf32>
    %cst_420 = arith.constant dense<0.000000e+00> : vector<16x32xf32>
    %359 = tpu.matmul %356, %358, %cst_420 {dimension_numbers = #tpu.dot_dimension_numbers<[1], [0], [0], [1], [0, 0, 1, 1], [], []>} : vector<16x32xf32>, vector<32x32xf32>, vector<16x32xf32> -> vector<16x32xf32>
    %360 = arith.addf %354, %359 : vector<16x32xf32>
    %361 = arith.addf %360, %246 : vector<16x32xf32>
    %cst_421 = arith.constant 0.000000e+00 : f32
    %362 = vector.broadcast %cst_421 : f32 to vector<16x32xf32>
    %363 = arith.maximumf %361, %362 : vector<16x32xf32>
    %364 = vector.shape_cast %363 : vector<16x32xf32> to vector<4x4x32xf32>
    %c1_422 = arith.constant 1 : index
    %c1_423 = arith.constant 1 : index
    %c0_424 = arith.constant 0 : index
    %365 = vector.load %arg19[%c1_422, %c1_423, %c0_424] : memref<6x6x32xf32, #tpu.memory_space<vmem>>, vector<4x4x32xf32>
    tpu.vector_store %arg19[%c1_422, %c1_423, %c0_424], %364 {strides = array<i32>} : memref<6x6x32xf32, #tpu.memory_space<vmem>>, vector<4x4x32xf32>,
    %c0_425 = arith.constant 0 : index
    %c0_426 = arith.constant 0 : index
    %c0_427 = arith.constant 0 : index
    %366 = vector.load %arg19[%c0_425, %c0_426, %c0_427] : memref<6x6x32xf32, #tpu.memory_space<vmem>>, vector<4x4x32xf32>
    %367 = vector.shape_cast %366 : vector<4x4x32xf32> to vector<16x32xf32>
    %c0_428 = arith.constant 0 : index
    %c0_429 = arith.constant 0 : index
    %c0_430 = arith.constant 0 : index
    %368 = vector.load %arg10[%c0_428, %c0_429, %c0_430] : memref<9x32x32xf32, #tpu.memory_space<vmem>>, vector<1x32x32xf32>
    %369 = vector.shape_cast %368 : vector<1x32x32xf32> to vector<32x32xf32>
    %cst_431 = arith.constant dense<0.000000e+00> : vector<16x32xf32>
    %370 = tpu.matmul %367, %369, %cst_431 {dimension_numbers = #tpu.dot_dimension_numbers<[1], [0], [0], [1], [0, 0, 1, 1], [], []>} : vector<16x32xf32>, vector<32x32xf32>, vector<16x32xf32> -> vector<16x32xf32>
    %c0_432 = arith.constant 0 : index
    %c1_433 = arith.constant 1 : index
    %c0_434 = arith.constant 0 : index
    %371 = vector.load %arg19[%c0_432, %c1_433, %c0_434] : memref<6x6x32xf32, #tpu.memory_space<vmem>>, vector<4x4x32xf32>
    %372 = vector.shape_cast %371 : vector<4x4x32xf32> to vector<16x32xf32>
    %c1_435 = arith.constant 1 : index
    %c0_436 = arith.constant 0 : index
    %c0_437 = arith.constant 0 : index
    %373 = vector.load %arg10[%c1_435, %c0_436, %c0_437] : memref<9x32x32xf32, #tpu.memory_space<vmem>>, vector<1x32x32xf32>
    %374 = vector.shape_cast %373 : vector<1x32x32xf32> to vector<32x32xf32>
    %cst_438 = arith.constant dense<0.000000e+00> : vector<16x32xf32>
    %375 = tpu.matmul %372, %374, %cst_438 {dimension_numbers = #tpu.dot_dimension_numbers<[1], [0], [0], [1], [0, 0, 1, 1], [], []>} : vector<16x32xf32>, vector<32x32xf32>, vector<16x32xf32> -> vector<16x32xf32>
    %376 = arith.addf %370, %375 : vector<16x32xf32>
    %c0_439 = arith.constant 0 : index
    %c2_440 = arith.constant 2 : index
    %c0_441 = arith.constant 0 : index
    %377 = vector.load %arg19[%c0_439, %c2_440, %c0_441] : memref<6x6x32xf32, #tpu.memory_space<vmem>>, vector<4x4x32xf32>
    %378 = vector.shape_cast %377 : vector<4x4x32xf32> to vector<16x32xf32>
    %c2_442 = arith.constant 2 : index
    %c0_443 = arith.constant 0 : index
    %c0_444 = arith.constant 0 : index
    %379 = vector.load %arg10[%c2_442, %c0_443, %c0_444] : memref<9x32x32xf32, #tpu.memory_space<vmem>>, vector<1x32x32xf32>
    %380 = vector.shape_cast %379 : vector<1x32x32xf32> to vector<32x32xf32>
    %cst_445 = arith.constant dense<0.000000e+00> : vector<16x32xf32>
    %381 = tpu.matmul %378, %380, %cst_445 {dimension_numbers = #tpu.dot_dimension_numbers<[1], [0], [0], [1], [0, 0, 1, 1], [], []>} : vector<16x32xf32>, vector<32x32xf32>, vector<16x32xf32> -> vector<16x32xf32>
    %382 = arith.addf %376, %381 : vector<16x32xf32>
    %c1_446 = arith.constant 1 : index
    %c0_447 = arith.constant 0 : index
    %c0_448 = arith.constant 0 : index
    %383 = vector.load %arg19[%c1_446, %c0_447, %c0_448] : memref<6x6x32xf32, #tpu.memory_space<vmem>>, vector<4x4x32xf32>
    %384 = vector.shape_cast %383 : vector<4x4x32xf32> to vector<16x32xf32>
    %c3_449 = arith.constant 3 : index
    %c0_450 = arith.constant 0 : index
    %c0_451 = arith.constant 0 : index
    %385 = vector.load %arg10[%c3_449, %c0_450, %c0_451] : memref<9x32x32xf32, #tpu.memory_space<vmem>>, vector<1x32x32xf32>
    %386 = vector.shape_cast %385 : vector<1x32x32xf32> to vector<32x32xf32>
    %cst_452 = arith.constant dense<0.000000e+00> : vector<16x32xf32>
    %387 = tpu.matmul %384, %386, %cst_452 {dimension_numbers = #tpu.dot_dimension_numbers<[1], [0], [0], [1], [0, 0, 1, 1], [], []>} : vector<16x32xf32>, vector<32x32xf32>, vector<16x32xf32> -> vector<16x32xf32>
    %388 = arith.addf %382, %387 : vector<16x32xf32>
    %c1_453 = arith.constant 1 : index
    %c1_454 = arith.constant 1 : index
    %c0_455 = arith.constant 0 : index
    %389 = vector.load %arg19[%c1_453, %c1_454, %c0_455] : memref<6x6x32xf32, #tpu.memory_space<vmem>>, vector<4x4x32xf32>
    %390 = vector.shape_cast %389 : vector<4x4x32xf32> to vector<16x32xf32>
    %c4_456 = arith.constant 4 : index
    %c0_457 = arith.constant 0 : index
    %c0_458 = arith.constant 0 : index
    %391 = vector.load %arg10[%c4_456, %c0_457, %c0_458] : memref<9x32x32xf32, #tpu.memory_space<vmem>>, vector<1x32x32xf32>
    %392 = vector.shape_cast %391 : vector<1x32x32xf32> to vector<32x32xf32>
    %cst_459 = arith.constant dense<0.000000e+00> : vector<16x32xf32>
    %393 = tpu.matmul %390, %392, %cst_459 {dimension_numbers = #tpu.dot_dimension_numbers<[1], [0], [0], [1], [0, 0, 1, 1], [], []>} : vector<16x32xf32>, vector<32x32xf32>, vector<16x32xf32> -> vector<16x32xf32>
    %394 = arith.addf %388, %393 : vector<16x32xf32>
    %c1_460 = arith.constant 1 : index
    %c2_461 = arith.constant 2 : index
    %c0_462 = arith.constant 0 : index
    %395 = vector.load %arg19[%c1_460, %c2_461, %c0_462] : memref<6x6x32xf32, #tpu.memory_space<vmem>>, vector<4x4x32xf32>
    %396 = vector.shape_cast %395 : vector<4x4x32xf32> to vector<16x32xf32>
    %c5_463 = arith.constant 5 : index
    %c0_464 = arith.constant 0 : index
    %c0_465 = arith.constant 0 : index
    %397 = vector.load %arg10[%c5_463, %c0_464, %c0_465] : memref<9x32x32xf32, #tpu.memory_space<vmem>>, vector<1x32x32xf32>
    %398 = vector.shape_cast %397 : vector<1x32x32xf32> to vector<32x32xf32>
    %cst_466 = arith.constant dense<0.000000e+00> : vector<16x32xf32>
    %399 = tpu.matmul %396, %398, %cst_466 {dimension_numbers = #tpu.dot_dimension_numbers<[1], [0], [0], [1], [0, 0, 1, 1], [], []>} : vector<16x32xf32>, vector<32x32xf32>, vector<16x32xf32> -> vector<16x32xf32>
    %400 = arith.addf %394, %399 : vector<16x32xf32>
    %c2_467 = arith.constant 2 : index
    %c0_468 = arith.constant 0 : index
    %c0_469 = arith.constant 0 : index
    %401 = vector.load %arg19[%c2_467, %c0_468, %c0_469] : memref<6x6x32xf32, #tpu.memory_space<vmem>>, vector<4x4x32xf32>
    %402 = vector.shape_cast %401 : vector<4x4x32xf32> to vector<16x32xf32>
    %c6_470 = arith.constant 6 : index
    %c0_471 = arith.constant 0 : index
    %c0_472 = arith.constant 0 : index
    %403 = vector.load %arg10[%c6_470, %c0_471, %c0_472] : memref<9x32x32xf32, #tpu.memory_space<vmem>>, vector<1x32x32xf32>
    %404 = vector.shape_cast %403 : vector<1x32x32xf32> to vector<32x32xf32>
    %cst_473 = arith.constant dense<0.000000e+00> : vector<16x32xf32>
    %405 = tpu.matmul %402, %404, %cst_473 {dimension_numbers = #tpu.dot_dimension_numbers<[1], [0], [0], [1], [0, 0, 1, 1], [], []>} : vector<16x32xf32>, vector<32x32xf32>, vector<16x32xf32> -> vector<16x32xf32>
    %406 = arith.addf %400, %405 : vector<16x32xf32>
    %c2_474 = arith.constant 2 : index
    %c1_475 = arith.constant 1 : index
    %c0_476 = arith.constant 0 : index
    %407 = vector.load %arg19[%c2_474, %c1_475, %c0_476] : memref<6x6x32xf32, #tpu.memory_space<vmem>>, vector<4x4x32xf32>
    %408 = vector.shape_cast %407 : vector<4x4x32xf32> to vector<16x32xf32>
    %c7_477 = arith.constant 7 : index
    %c0_478 = arith.constant 0 : index
    %c0_479 = arith.constant 0 : index
    %409 = vector.load %arg10[%c7_477, %c0_478, %c0_479] : memref<9x32x32xf32, #tpu.memory_space<vmem>>, vector<1x32x32xf32>
    %410 = vector.shape_cast %409 : vector<1x32x32xf32> to vector<32x32xf32>
    %cst_480 = arith.constant dense<0.000000e+00> : vector<16x32xf32>
    %411 = tpu.matmul %408, %410, %cst_480 {dimension_numbers = #tpu.dot_dimension_numbers<[1], [0], [0], [1], [0, 0, 1, 1], [], []>} : vector<16x32xf32>, vector<32x32xf32>, vector<16x32xf32> -> vector<16x32xf32>
    %412 = arith.addf %406, %411 : vector<16x32xf32>
    %c2_481 = arith.constant 2 : index
    %c2_482 = arith.constant 2 : index
    %c0_483 = arith.constant 0 : index
    %413 = vector.load %arg19[%c2_481, %c2_482, %c0_483] : memref<6x6x32xf32, #tpu.memory_space<vmem>>, vector<4x4x32xf32>
    %414 = vector.shape_cast %413 : vector<4x4x32xf32> to vector<16x32xf32>
    %c8_484 = arith.constant 8 : index
    %c0_485 = arith.constant 0 : index
    %c0_486 = arith.constant 0 : index
    %415 = vector.load %arg10[%c8_484, %c0_485, %c0_486] : memref<9x32x32xf32, #tpu.memory_space<vmem>>, vector<1x32x32xf32>
    %416 = vector.shape_cast %415 : vector<1x32x32xf32> to vector<32x32xf32>
    %cst_487 = arith.constant dense<0.000000e+00> : vector<16x32xf32>
    %417 = tpu.matmul %414, %416, %cst_487 {dimension_numbers = #tpu.dot_dimension_numbers<[1], [0], [0], [1], [0, 0, 1, 1], [], []>} : vector<16x32xf32>, vector<32x32xf32>, vector<16x32xf32> -> vector<16x32xf32>
    %418 = arith.addf %412, %417 : vector<16x32xf32>
    %cst_488 = arith.constant 0.000000e+00 : f32
    %419 = vector.broadcast %cst_488 : f32 to vector<16x32xf32>
    %420 = arith.maximumf %418, %419 : vector<16x32xf32>
    %421 = vector.shape_cast %420 : vector<16x32xf32> to vector<4x4x32xf32>
    %c1_489 = arith.constant 1 : index
    %c1_490 = arith.constant 1 : index
    %c0_491 = arith.constant 0 : index
    %422 = vector.load %arg19[%c1_489, %c1_490, %c0_491] : memref<6x6x32xf32, #tpu.memory_space<vmem>>, vector<4x4x32xf32>
    tpu.vector_store %arg19[%c1_489, %c1_490, %c0_491], %421 {strides = array<i32>} : memref<6x6x32xf32, #tpu.memory_space<vmem>>, vector<4x4x32xf32>,
    %c0_492 = arith.constant 0 : index
    %c0_493 = arith.constant 0 : index
    %c0_494 = arith.constant 0 : index
    %423 = vector.load %arg19[%c0_492, %c0_493, %c0_494] : memref<6x6x32xf32, #tpu.memory_space<vmem>>, vector<4x4x32xf32>
    %424 = vector.shape_cast %423 : vector<4x4x32xf32> to vector<16x32xf32>
    %c0_495 = arith.constant 0 : index
    %c0_496 = arith.constant 0 : index
    %c0_497 = arith.constant 0 : index
    %425 = vector.load %arg11[%c0_495, %c0_496, %c0_497] : memref<9x32x32xf32, #tpu.memory_space<vmem>>, vector<1x32x32xf32>
    %426 = vector.shape_cast %425 : vector<1x32x32xf32> to vector<32x32xf32>
    %cst_498 = arith.constant dense<0.000000e+00> : vector<16x32xf32>
    %427 = tpu.matmul %424, %426, %cst_498 {dimension_numbers = #tpu.dot_dimension_numbers<[1], [0], [0], [1], [0, 0, 1, 1], [], []>} : vector<16x32xf32>, vector<32x32xf32>, vector<16x32xf32> -> vector<16x32xf32>
    %c0_499 = arith.constant 0 : index
    %c1_500 = arith.constant 1 : index
    %c0_501 = arith.constant 0 : index
    %428 = vector.load %arg19[%c0_499, %c1_500, %c0_501] : memref<6x6x32xf32, #tpu.memory_space<vmem>>, vector<4x4x32xf32>
    %429 = vector.shape_cast %428 : vector<4x4x32xf32> to vector<16x32xf32>
    %c1_502 = arith.constant 1 : index
    %c0_503 = arith.constant 0 : index
    %c0_504 = arith.constant 0 : index
    %430 = vector.load %arg11[%c1_502, %c0_503, %c0_504] : memref<9x32x32xf32, #tpu.memory_space<vmem>>, vector<1x32x32xf32>
    %431 = vector.shape_cast %430 : vector<1x32x32xf32> to vector<32x32xf32>
    %cst_505 = arith.constant dense<0.000000e+00> : vector<16x32xf32>
    %432 = tpu.matmul %429, %431, %cst_505 {dimension_numbers = #tpu.dot_dimension_numbers<[1], [0], [0], [1], [0, 0, 1, 1], [], []>} : vector<16x32xf32>, vector<32x32xf32>, vector<16x32xf32> -> vector<16x32xf32>
    %433 = arith.addf %427, %432 : vector<16x32xf32>
    %c0_506 = arith.constant 0 : index
    %c2_507 = arith.constant 2 : index
    %c0_508 = arith.constant 0 : index
    %434 = vector.load %arg19[%c0_506, %c2_507, %c0_508] : memref<6x6x32xf32, #tpu.memory_space<vmem>>, vector<4x4x32xf32>
    %435 = vector.shape_cast %434 : vector<4x4x32xf32> to vector<16x32xf32>
    %c2_509 = arith.constant 2 : index
    %c0_510 = arith.constant 0 : index
    %c0_511 = arith.constant 0 : index
    %436 = vector.load %arg11[%c2_509, %c0_510, %c0_511] : memref<9x32x32xf32, #tpu.memory_space<vmem>>, vector<1x32x32xf32>
    %437 = vector.shape_cast %436 : vector<1x32x32xf32> to vector<32x32xf32>
    %cst_512 = arith.constant dense<0.000000e+00> : vector<16x32xf32>
    %438 = tpu.matmul %435, %437, %cst_512 {dimension_numbers = #tpu.dot_dimension_numbers<[1], [0], [0], [1], [0, 0, 1, 1], [], []>} : vector<16x32xf32>, vector<32x32xf32>, vector<16x32xf32> -> vector<16x32xf32>
    %439 = arith.addf %433, %438 : vector<16x32xf32>
    %c1_513 = arith.constant 1 : index
    %c0_514 = arith.constant 0 : index
    %c0_515 = arith.constant 0 : index
    %440 = vector.load %arg19[%c1_513, %c0_514, %c0_515] : memref<6x6x32xf32, #tpu.memory_space<vmem>>, vector<4x4x32xf32>
    %441 = vector.shape_cast %440 : vector<4x4x32xf32> to vector<16x32xf32>
    %c3_516 = arith.constant 3 : index
    %c0_517 = arith.constant 0 : index
    %c0_518 = arith.constant 0 : index
    %442 = vector.load %arg11[%c3_516, %c0_517, %c0_518] : memref<9x32x32xf32, #tpu.memory_space<vmem>>, vector<1x32x32xf32>
    %443 = vector.shape_cast %442 : vector<1x32x32xf32> to vector<32x32xf32>
    %cst_519 = arith.constant dense<0.000000e+00> : vector<16x32xf32>
    %444 = tpu.matmul %441, %443, %cst_519 {dimension_numbers = #tpu.dot_dimension_numbers<[1], [0], [0], [1], [0, 0, 1, 1], [], []>} : vector<16x32xf32>, vector<32x32xf32>, vector<16x32xf32> -> vector<16x32xf32>
    %445 = arith.addf %439, %444 : vector<16x32xf32>
    %c1_520 = arith.constant 1 : index
    %c1_521 = arith.constant 1 : index
    %c0_522 = arith.constant 0 : index
    %446 = vector.load %arg19[%c1_520, %c1_521, %c0_522] : memref<6x6x32xf32, #tpu.memory_space<vmem>>, vector<4x4x32xf32>
    %447 = vector.shape_cast %446 : vector<4x4x32xf32> to vector<16x32xf32>
    %c4_523 = arith.constant 4 : index
    %c0_524 = arith.constant 0 : index
    %c0_525 = arith.constant 0 : index
    %448 = vector.load %arg11[%c4_523, %c0_524, %c0_525] : memref<9x32x32xf32, #tpu.memory_space<vmem>>, vector<1x32x32xf32>
    %449 = vector.shape_cast %448 : vector<1x32x32xf32> to vector<32x32xf32>
    %cst_526 = arith.constant dense<0.000000e+00> : vector<16x32xf32>
    %450 = tpu.matmul %447, %449, %cst_526 {dimension_numbers = #tpu.dot_dimension_numbers<[1], [0], [0], [1], [0, 0, 1, 1], [], []>} : vector<16x32xf32>, vector<32x32xf32>, vector<16x32xf32> -> vector<16x32xf32>
    %451 = arith.addf %445, %450 : vector<16x32xf32>
    %c1_527 = arith.constant 1 : index
    %c2_528 = arith.constant 2 : index
    %c0_529 = arith.constant 0 : index
    %452 = vector.load %arg19[%c1_527, %c2_528, %c0_529] : memref<6x6x32xf32, #tpu.memory_space<vmem>>, vector<4x4x32xf32>
    %453 = vector.shape_cast %452 : vector<4x4x32xf32> to vector<16x32xf32>
    %c5_530 = arith.constant 5 : index
    %c0_531 = arith.constant 0 : index
    %c0_532 = arith.constant 0 : index
    %454 = vector.load %arg11[%c5_530, %c0_531, %c0_532] : memref<9x32x32xf32, #tpu.memory_space<vmem>>, vector<1x32x32xf32>
    %455 = vector.shape_cast %454 : vector<1x32x32xf32> to vector<32x32xf32>
    %cst_533 = arith.constant dense<0.000000e+00> : vector<16x32xf32>
    %456 = tpu.matmul %453, %455, %cst_533 {dimension_numbers = #tpu.dot_dimension_numbers<[1], [0], [0], [1], [0, 0, 1, 1], [], []>} : vector<16x32xf32>, vector<32x32xf32>, vector<16x32xf32> -> vector<16x32xf32>
    %457 = arith.addf %451, %456 : vector<16x32xf32>
    %c2_534 = arith.constant 2 : index
    %c0_535 = arith.constant 0 : index
    %c0_536 = arith.constant 0 : index
    %458 = vector.load %arg19[%c2_534, %c0_535, %c0_536] : memref<6x6x32xf32, #tpu.memory_space<vmem>>, vector<4x4x32xf32>
    %459 = vector.shape_cast %458 : vector<4x4x32xf32> to vector<16x32xf32>
    %c6_537 = arith.constant 6 : index
    %c0_538 = arith.constant 0 : index
    %c0_539 = arith.constant 0 : index
    %460 = vector.load %arg11[%c6_537, %c0_538, %c0_539] : memref<9x32x32xf32, #tpu.memory_space<vmem>>, vector<1x32x32xf32>
    %461 = vector.shape_cast %460 : vector<1x32x32xf32> to vector<32x32xf32>
    %cst_540 = arith.constant dense<0.000000e+00> : vector<16x32xf32>
    %462 = tpu.matmul %459, %461, %cst_540 {dimension_numbers = #tpu.dot_dimension_numbers<[1], [0], [0], [1], [0, 0, 1, 1], [], []>} : vector<16x32xf32>, vector<32x32xf32>, vector<16x32xf32> -> vector<16x32xf32>
    %463 = arith.addf %457, %462 : vector<16x32xf32>
    %c2_541 = arith.constant 2 : index
    %c1_542 = arith.constant 1 : index
    %c0_543 = arith.constant 0 : index
    %464 = vector.load %arg19[%c2_541, %c1_542, %c0_543] : memref<6x6x32xf32, #tpu.memory_space<vmem>>, vector<4x4x32xf32>
    %465 = vector.shape_cast %464 : vector<4x4x32xf32> to vector<16x32xf32>
    %c7_544 = arith.constant 7 : index
    %c0_545 = arith.constant 0 : index
    %c0_546 = arith.constant 0 : index
    %466 = vector.load %arg11[%c7_544, %c0_545, %c0_546] : memref<9x32x32xf32, #tpu.memory_space<vmem>>, vector<1x32x32xf32>
    %467 = vector.shape_cast %466 : vector<1x32x32xf32> to vector<32x32xf32>
    %cst_547 = arith.constant dense<0.000000e+00> : vector<16x32xf32>
    %468 = tpu.matmul %465, %467, %cst_547 {dimension_numbers = #tpu.dot_dimension_numbers<[1], [0], [0], [1], [0, 0, 1, 1], [], []>} : vector<16x32xf32>, vector<32x32xf32>, vector<16x32xf32> -> vector<16x32xf32>
    %469 = arith.addf %463, %468 : vector<16x32xf32>
    %c2_548 = arith.constant 2 : index
    %c2_549 = arith.constant 2 : index
    %c0_550 = arith.constant 0 : index
    %470 = vector.load %arg19[%c2_548, %c2_549, %c0_550] : memref<6x6x32xf32, #tpu.memory_space<vmem>>, vector<4x4x32xf32>
    %471 = vector.shape_cast %470 : vector<4x4x32xf32> to vector<16x32xf32>
    %c8_551 = arith.constant 8 : index
    %c0_552 = arith.constant 0 : index
    %c0_553 = arith.constant 0 : index
    %472 = vector.load %arg11[%c8_551, %c0_552, %c0_553] : memref<9x32x32xf32, #tpu.memory_space<vmem>>, vector<1x32x32xf32>
    %473 = vector.shape_cast %472 : vector<1x32x32xf32> to vector<32x32xf32>
    %cst_554 = arith.constant dense<0.000000e+00> : vector<16x32xf32>
    %474 = tpu.matmul %471, %473, %cst_554 {dimension_numbers = #tpu.dot_dimension_numbers<[1], [0], [0], [1], [0, 0, 1, 1], [], []>} : vector<16x32xf32>, vector<32x32xf32>, vector<16x32xf32> -> vector<16x32xf32>
    %475 = arith.addf %469, %474 : vector<16x32xf32>
    %476 = arith.addf %475, %361 : vector<16x32xf32>
    %cst_555 = arith.constant 0.000000e+00 : f32
    %477 = vector.broadcast %cst_555 : f32 to vector<16x32xf32>
    %478 = arith.maximumf %476, %477 : vector<16x32xf32>
    %c0_556 = arith.constant 0 : index
    %c0_557 = arith.constant 0 : index
    %479 = vector.load %arg14[%c0_556, %c0_557] : memref<1x32xf32, #tpu.memory_space<vmem>>, vector<1x32xf32>
    %480 = vector.broadcast %479 : vector<1x32xf32> to vector<16x32xf32>
    %481 = arith.mulf %478, %480 : vector<16x32xf32>
    %cst_558 = arith.constant dense<0.000000e+00> : vector<16xf32>
    %482 = vector.multi_reduction <add>, %481, %cst_558 [1] : vector<16x32xf32> to vector<16xf32>
    %483 = vector.shape_cast %482 : vector<16xf32> to vector<16x1xf32>
    %cst_559 = arith.constant dense<0.000000e+00> : vector<1xf32>
    %484 = vector.multi_reduction <add>, %483, %cst_559 [0] : vector<16x1xf32> to vector<1xf32>
    %485 = vector.shape_cast %484 : vector<1xf32> to vector<1x1xf32>
    %c0_560 = arith.constant 0 : index
    %c0_561 = arith.constant 0 : index
    %486 = vector.load %arg15[%c0_560, %c0_561] : memref<1x1xf32, #tpu.memory_space<vmem>>, vector<1x1xf32>
    %487 = arith.addf %485, %486 : vector<1x1xf32>
    %c0_562 = arith.constant 0 : index
    %c0_563 = arith.constant 0 : index
    %c0_564 = arith.constant 0 : index
    %488 = vector.load %arg16[%c0_562, %c0_563, %c0_564] : memref<1x1x1xf32, #tpu.memory_space<vmem>>, vector<1x1x1xf32>
    %489 = vector.shape_cast %488 : vector<1x1x1xf32> to vector<1x1xf32>
    %490 = vector.shape_cast %487 : vector<1x1xf32> to vector<1x1x1xf32>
    tpu.vector_store %arg16[%c0_562, %c0_563, %c0_564], %490 {strides = array<i32>} : memref<1x1x1xf32, #tpu.memory_space<vmem>>, vector<1x1x1xf32>,
    return
  }
  func.func @transform_0(%arg0: i32) -> (i32, i32, i32, i32) {
    %c0_i32 = arith.constant 0 : i32
    %c0_i32_0 = arith.constant 0 : i32
    %c0_i32_1 = arith.constant 0 : i32
    %c0_i32_2 = arith.constant 0 : i32
    return %arg0, %c0_i32, %c0_i32_0, %c0_i32_1 : i32, i32, i32, i32
  }
  func.func @transform_1(%arg0: i32) -> (i32, i32, i32) {
    %c0_i32 = arith.constant 0 : i32
    %c0_i32_0 = arith.constant 0 : i32
    %c0_i32_1 = arith.constant 0 : i32
    %c0_i32_2 = arith.constant 0 : i32
    return %c0_i32, %c0_i32_0, %c0_i32_1 : i32, i32, i32
  }
  func.func @transform_2(%arg0: i32) -> (i32, i32, i32) {
    %c0_i32 = arith.constant 0 : i32
    %c0_i32_0 = arith.constant 0 : i32
    %c0_i32_1 = arith.constant 0 : i32
    %c0_i32_2 = arith.constant 0 : i32
    return %c0_i32, %c0_i32_0, %c0_i32_1 : i32, i32, i32
  }
  func.func @transform_3(%arg0: i32) -> (i32, i32) {
    %c0_i32 = arith.constant 0 : i32
    %c0_i32_0 = arith.constant 0 : i32
    %c0_i32_1 = arith.constant 0 : i32
    return %c0_i32, %c0_i32_0 : i32, i32
  }
  func.func @transform_4(%arg0: i32) -> (i32, i32, i32) {
    %c0_i32 = arith.constant 0 : i32
    %c0_i32_0 = arith.constant 0 : i32
    %c0_i32_1 = arith.constant 0 : i32
    %c0_i32_2 = arith.constant 0 : i32
    return %c0_i32, %c0_i32_0, %c0_i32_1 : i32, i32, i32
  }
  func.func @transform_5(%arg0: i32) -> (i32, i32, i32) {
    %c0_i32 = arith.constant 0 : i32
    %c0_i32_0 = arith.constant 0 : i32
    %c0_i32_1 = arith.constant 0 : i32
    %c0_i32_2 = arith.constant 0 : i32
    return %c0_i32, %c0_i32_0, %c0_i32_1 : i32, i32, i32
  }
  func.func @transform_6(%arg0: i32) -> (i32, i32) {
    %c0_i32 = arith.constant 0 : i32
    %c0_i32_0 = arith.constant 0 : i32
    %c0_i32_1 = arith.constant 0 : i32
    return %c0_i32, %c0_i32_0 : i32, i32
  }
  func.func @transform_7(%arg0: i32) -> (i32, i32, i32) {
    %c0_i32 = arith.constant 0 : i32
    %c0_i32_0 = arith.constant 0 : i32
    %c0_i32_1 = arith.constant 0 : i32
    %c0_i32_2 = arith.constant 0 : i32
    return %c0_i32, %c0_i32_0, %c0_i32_1 : i32, i32, i32
  }
  func.func @transform_8(%arg0: i32) -> (i32, i32, i32) {
    %c0_i32 = arith.constant 0 : i32
    %c0_i32_0 = arith.constant 0 : i32
    %c0_i32_1 = arith.constant 0 : i32
    %c0_i32_2 = arith.constant 0 : i32
    return %c0_i32, %c0_i32_0, %c0_i32_1 : i32, i32, i32
  }
  func.func @transform_9(%arg0: i32) -> (i32, i32, i32) {
    %c0_i32 = arith.constant 0 : i32
    %c0_i32_0 = arith.constant 0 : i32
    %c0_i32_1 = arith.constant 0 : i32
    %c0_i32_2 = arith.constant 0 : i32
    return %c0_i32, %c0_i32_0, %c0_i32_1 : i32, i32, i32
  }
  func.func @transform_10(%arg0: i32) -> (i32, i32, i32) {
    %c0_i32 = arith.constant 0 : i32
    %c0_i32_0 = arith.constant 0 : i32
    %c0_i32_1 = arith.constant 0 : i32
    %c0_i32_2 = arith.constant 0 : i32
    return %c0_i32, %c0_i32_0, %c0_i32_1 : i32, i32, i32
  }
  func.func @transform_11(%arg0: i32) -> (i32, i32) {
    %c0_i32 = arith.constant 0 : i32
    %c0_i32_0 = arith.constant 0 : i32
    %c0_i32_1 = arith.constant 0 : i32
    return %c0_i32, %c0_i32_0 : i32, i32
  }
  func.func @transform_12(%arg0: i32) -> (i32, i32) {
    %c0_i32 = arith.constant 0 : i32
    %c0_i32_0 = arith.constant 0 : i32
    %c0_i32_1 = arith.constant 0 : i32
    return %c0_i32, %c0_i32_0 : i32, i32
  }
  func.func @transform_13(%arg0: i32) -> (i32, i32) {
    %c0_i32 = arith.constant 0 : i32
    %c0_i32_0 = arith.constant 0 : i32
    %c0_i32_1 = arith.constant 0 : i32
    return %c0_i32, %c0_i32_0 : i32, i32
  }
  func.func @transform_14(%arg0: i32) -> (i32, i32) {
    %c0_i32 = arith.constant 0 : i32
    %c0_i32_0 = arith.constant 0 : i32
    %c0_i32_1 = arith.constant 0 : i32
    return %c0_i32, %c0_i32_0 : i32, i32
  }
  func.func @transform_15(%arg0: i32) -> (i32, i32, i32) {
    %c0_i32 = arith.constant 0 : i32
    %c0_i32_0 = arith.constant 0 : i32
    %c0_i32_1 = arith.constant 0 : i32
    return %arg0, %c0_i32, %c0_i32_0 : i32, i32, i32
  }
}

</mosaic_0001>

<bundles_post_ra>
// kernel: d_resnet_forward.1
= control target key start
LH: loop header
LB: loop body
LE: loop exit
PB: predicated region body
PF: predicated region fallthrough
CT: control target
= control target key end

     0   :  { %s20172_s20 = smov 0   ;;  %s23621_s0 = inlined_call_operand.vmem [shape: f32[2,16,16,32], index: 0, kind: input, shape index: {}]   ;;  %s23622_s1 = inlined_call_operand.vmem [shape: f32[9,32,32], index: 1, kind: input, shape index: {}]   ;;  %s23623_s2 = inlined_call_operand.vmem [shape: f32[9,32,32], index: 2, kind: input, shape index: {}]   ;;  %s23624_s3 = inlined_call_operand.vmem [shape: f32[32,32], index: 3, kind: input, shape index: {}]   ;;  %s23625_s4 = inlined_call_operand.vmem [shape: f32[9,32,32], index: 4, kind: input, shape index: {}]   ;;  %s23626_s5 = inlined_call_operand.vmem [shape: f32[9,32,32], index: 5, kind: input, shape index: {}]   ;;  %s23627_s6 = inlined_call_operand.vmem [shape: f32[32,32], index: 6, kind: input, shape index: {}]   ;;  %s23628_s7 = inlined_call_operand.vmem [shape: f32[9,32,32], index: 7, kind: input, shape index: {}]   ;;  %s23629_s8 = inlined_call_operand.vmem [shape: f32[9,32,32], index: 8, kind: input, shape index: {}]   ;;  %s23630_s9 = inlined_call_operand.vmem [shape: f32[9,32,32], index: 9, kind: input, shape index: {}]   ;;  %s23631_s10 = inlined_call_operand.vmem [shape: f32[9,32,32], index: 10, kind: input, shape index: {}]   ;;  %s23632_s11 = inlined_call_operand.vmem [shape: f32[64,256], index: 11, kind: input, shape index: {}]   ;;  %s23633_s12 = inlined_call_operand.vmem [shape: f32[16,64], index: 12, kind: input, shape index: {}]   ;;  %s23634_s13 = inlined_call_operand.vmem [shape: f32[1,32], index: 13, kind: input, shape index: {}]   ;;  %s23635_s14 = inlined_call_operand.<no memory space> [shape: f32[1,1], index: 14, kind: input, shape index: {}]   ;;  %s23636_s15 = inlined_call_operand.vmem [shape: f32[2,1,1], index: 15, kind: output, shape index: {}]  }
   0x1   :  { %v20_v0 = vstv %s23635_s14 }
   0x2   :  { %21 = vst [vmem:[#allocation5] sm:$0x1] %v20_v0 }
   0x3 LB: > { %s14465_s21 = sadd.s32 4294967295, %s20086_s20   ;;  %p14469_p0 = scmp.ge.s32.totalorder %s20086_s20, 1  ;;  %s20086_s20 = sphi %s20172_s20, %s27_s20  }
   0x4   : > { %p439_p1 = scmp.lt.s32.totalorder %s20086_s20, 3 }
   0x6   : > { %p440_p2 = pnand %p14469_p0, %p439_p1 }
   0x8   : > { %443 = sbr.rel (%p440_p2) target bundleno = 4066 (0xfe2), region = 80 }
   0xf   : > { %v14472_v1 = vld [vmem:[%s23622_s1 + $0x20] sm:$0xff]  ;;  %v14473_v2 = vld [vmem:[%s23622_s1 + $0x28] sm:$0xff]  ;;  %v20189_v3 = vld [vmem:[%s23622_s1 + $0x30] sm:$0xff]  ;;  %vm493_vm0 = vcmask 261120   ;;  %vm496_vm1 = vcmask 254976   ;;  %v23637_v6 = vmov 0.0  }
  0x10   : > { %v20191_v4 = vpack.c.bf16 %v14473_v2, %v14472_v1  ;;  %v20196_v5 = vld [vmem:[%s23622_s1 + $0x38] sm:$0xff]  ;;  %494 = vst.msk [vmem:[#allocation2] sm:$0xff] %vm493_vm0, %v23637_v6  ;;  %495 = vst.msk [vmem:[#allocation2 + $0x8] sm:$0xff] %vm493_vm0, %v23637_v6  ;;  %p485_p3 = scmp.lt.s32.totalorder %s14465_s21, 1  ;;  %v673_v8 = vld [vmem:[%s23622_s1] sm:$0xff]  ;;  %vm10657_vm2 = vcmask 523264  }
  0x11   : > { %498 = vst.msk [vmem:[#allocation2 + $0x18] sm:$0xff] %vm493_vm0, %v23637_v6  ;;  %499 = vst.msk [vmem:[#allocation2 + $0x20] sm:$0xff] %vm493_vm0, %v23637_v6  ;;  %v18605_v7 = vpack.c.bf16 %v20196_v5, %v20189_v3  ;;  %v674_v9 = vld [vmem:[%s23622_s1 + $0x8] sm:$0xff]  ;;  %v675_v11 = vld [vmem:[%s23622_s1 + $0x10] sm:$0xff]  ;;  %vm569_vm3 = vcmask 259072   ;;  %vm10908_vm4 = vcmask 257024  }
  0x12   : > { %501 = vst.msk [vmem:[#allocation2 + $0x30] sm:$0xff] %vm493_vm0, %v23637_v6  ;;  %502 = vst.msk [vmem:[#allocation2 + $0x38] sm:$0xff] %vm493_vm0, %v23637_v6  ;;  %18602 = vmatprep.subr.bf16.mxu0 %v20191_v4  ;;  %s24027_s21 = smov (!%p485_p3, %s14465_s21), 1  ;;  %19289 = vmatprep.subr.bf16.mxu1 %v20191_v4  ;;  %v18609_v10 = vpack.c.bf16 %v674_v9, %v673_v8  ;;  %v676_v12 = vld [vmem:[%s23622_s1 + $0x18] sm:$0xff]  ;;  %v14540_v19 = vld [vmem:[%s23622_s1 + $0x40] sm:$0xff]  ;;  %vm14416_vm5 = vcmask 0  }
  0x13   : > { %504 = vst.msk [vmem:[#allocation2 + $0x48] sm:$0xff] %vm493_vm0, %v23637_v6  ;;  %505 = vst.msk [vmem:[#allocation2 + $0x50] sm:$0xff] %vm493_vm0, %v23637_v6  ;;  %18604 = vmatpush3.bf16.msra.mxu0 %v20191_v4  ;;  %19291 = vmatpush3.bf16.msra.mxu1 %v20191_v4  ;;  %s15537_s18 = sshll.u32 %s24027_s21, 8  ;;  %v14541_v20 = vld [vmem:[%s23622_s1 + $0x48] sm:$0xff]  ;;  %v18613_v24 = vpack.c.bf16 %v676_v12, %v675_v11  ;;  %s492_s27 = scalar_lea.vmem %s23636_s15, %s24027_s21 }
  0x14   : > { %507 = vst.msk [vmem:[#allocation2 + $0x60] sm:$0xff] %vm493_vm0, %v23637_v6  ;;  %508 = vst.msk [vmem:[#allocation2 + $0x68] sm:$0xff] %vm493_vm0, %v23637_v6  ;;  %18606 = vmatprep.subr.bf16.mxu0 %v18605_v7  ;;  %19290 = vmatprep.subr.bf16.mxu1 %v18605_v7  ;;  %s20368_s23 = scalar_lea.vmem %s23621_s0, %s15537_s18  ;;  %v20473_v37 = vpack.c.bf16 %v14541_v20, %v14540_v19 }
  0x15   : > { %510 = vst.msk [vmem:[#allocation2 + $0x78] sm:$0xff] %vm493_vm0, %v23637_v6  ;;  %511 = vst.msk [vmem:[#allocation2 + $0x80] sm:$0xff] %vm493_vm0, %v23637_v6  ;;  %v20377_v13 = vld [vmem:[%s20368_s23] sm:$0xff]  ;;  %v20380_v14 = vld [vmem:[%s20368_s23 + $0x8] sm:$0xff] }
  0x16   : > { %513 = vst.msk [vmem:[#allocation2 + $0x90] sm:$0xff] %vm493_vm0, %v23637_v6  ;;  %514 = vst.msk [vmem:[#allocation2 + $0x98] sm:$0xff] %vm493_vm0, %v23637_v6  ;;  %v20383_v15 = vld [vmem:[%s20368_s23 + $0x10] sm:$0xff]  ;;  %v20392_v18 = vld [vmem:[%s20368_s23 + $0x18] sm:$0xff] }
  0x17   : > { %516 = vst.msk [vmem:[#allocation2 + $0xa8] sm:$0xff] %vm493_vm0, %v23637_v6  ;;  %517 = vst.msk [vmem:[#allocation2 + $0xb0] sm:$0xff] %vm493_vm0, %v23637_v6  ;;  %18608 = vmatpush3.bf16.msra.mxu0 %v18605_v7  ;;  %v677_v16 = vld [vmem:[#allocation2 + $0x1] sm:$0xff]  ;;  %19292 = vmatpush3.bf16.msra.mxu1 %v18605_v7  ;;  %v20410_v23 = vld [vmem:[%s20368_s23 + $0x30] sm:$0xff] }
  0x18   : > { %519 = vst.msk [vmem:[#allocation2 + $0xc0] sm:$0xff] %vm493_vm0, %v23637_v6  ;;  %520 = vst.msk [vmem:[#allocation2 + $0xc8] sm:$0xff] %vm493_vm0, %v23637_v6  ;;  %16776 = vmatprep.mubr.msk.f32.mxu0 %vm493_vm0, %v677_v16  ;;  %18610 = vmatprep.subr.bf16.mxu0 %v18609_v10  ;;  %v20404_v21 = vld [vmem:[%s20368_s23 + $0x20] sm:$0xff]  ;;  %v20407_v22 = vld [vmem:[%s20368_s23 + $0x28] sm:$0xff] }
  0x19   : > { %522 = vst.msk [vmem:[#allocation2 + $0xd8] sm:$0xff] %vm493_vm0, %v23637_v6  ;;  %523 = vst.msk [vmem:[#allocation2 + $0xe0] sm:$0xff] %vm493_vm0, %v23637_v6  ;;  %v20419_v25 = vld [vmem:[%s20368_s23 + $0x38] sm:$0xff]  ;;  %v20422_v26 = vld [vmem:[%s20368_s23 + $0x40] sm:$0xff] }
  0x1a   : > { %525 = vst.msk [vmem:[#allocation2 + $0xf0] sm:$0xff] %vm493_vm0, %v23637_v6  ;;  %526 = vst.msk [vmem:[#allocation2 + $0xf8] sm:$0xff] %vm493_vm0, %v23637_v6  ;;  %v20425_v27 = vld [vmem:[%s20368_s23 + $0x48] sm:$0xff]  ;;  %v20435_v28 = vld [vmem:[%s20368_s23 + $0x50] sm:$0xff] }
  0x1b   : > { %528 = vst.msk [vmem:[#allocation2 + $0x108] sm:$0xff] %vm493_vm0, %v23637_v6  ;;  %529 = vst.msk [vmem:[#allocation2 + $0x110] sm:$0xff] %vm493_vm0, %v23637_v6  ;;  %v20438_v29 = vld [vmem:[%s20368_s23 + $0x58] sm:$0xff]  ;;  %v20441_v30 = vld [vmem:[%s20368_s23 + $0x60] sm:$0xff] }
  0x1c   : > { %531 = vst.msk [vmem:[#allocation2 + $0x120] sm:$0xff] %vm493_vm0, %v23637_v6  ;;  %532 = vst.msk [vmem:[#allocation2 + $0x128] sm:$0xff] %vm493_vm0, %v23637_v6  ;;  %v20450_v31 = vld [vmem:[%s20368_s23 + $0x68] sm:$0xff]  ;;  %v20453_v32 = vld [vmem:[%s20368_s23 + $0x70] sm:$0xff] }
  0x1d   : > { %534 = vst.msk [vmem:[#allocation2 + $0x138] sm:$0xff] %vm493_vm0, %v23637_v6  ;;  %535 = vst.msk [vmem:[#allocation2 + $0x140] sm:$0xff] %vm493_vm0, %v23637_v6  ;;  %v20456_v33 = vld [vmem:[%s20368_s23 + $0x78] sm:$0xff]  ;;  %v20465_v34 = vld [vmem:[%s20368_s23 + $0x80] sm:$0xff] }
  0x1e   : > { %537 = vst.msk [vmem:[#allocation2 + $0x150] sm:$0xff] %vm493_vm0, %v23637_v6  ;;  %538 = vst.msk [vmem:[#allocation2 + $0x158] sm:$0xff] %vm493_vm0, %v23637_v6  ;;  %v20468_v35 = vld [vmem:[%s20368_s23 + $0x88] sm:$0xff]  ;;  %v20471_v36 = vld [vmem:[%s20368_s23 + $0x90] sm:$0xff] }
  0x1f   : > { %540 = vst.msk [vmem:[#allocation2 + $0x168] sm:$0xff] %vm493_vm0, %v23637_v6  ;;  %541 = vst.msk [vmem:[#allocation2 + $0x170] sm:$0xff] %vm493_vm0, %v23637_v6  ;;  %v20482_v38 = vld [vmem:[%s20368_s23 + $0x98] sm:$0xff]  ;;  %v20485_v39 = vld [vmem:[%s20368_s23 + $0xa0] sm:$0xff] }
  0x20   : > { %543 = vst.msk [vmem:[#allocation2 + $0x180] sm:$0xff] %vm493_vm0, %v23637_v6  ;;  %544 = vst.msk [vmem:[#allocation2 + $0x188] sm:$0xff] %vm493_vm0, %v23637_v6  ;;  %v20488_v40 = vld [vmem:[%s20368_s23 + $0xa8] sm:$0xff]  ;;  %v20505_v44 = vld [vmem:[%s20368_s23 + $0xb0] sm:$0xff] }
  0x21   : > { %546 = vst.msk [vmem:[#allocation2 + $0x198] sm:$0xff] %vm493_vm0, %v23637_v6  ;;  %547 = vst.msk [vmem:[#allocation2 + $0x1a0] sm:$0xff] %vm493_vm0, %v23637_v6  ;;  %v20508_v45 = vld [vmem:[%s20368_s23 + $0xb8] sm:$0xff]  ;;  %v20532_v50 = vld [vmem:[%s20368_s23 + $0xc0] sm:$0xff] }
  0x22   : > { %549 = vst.msk [vmem:[#allocation3] sm:$0xff] %vm493_vm0, %v23637_v6  ;;  %551 = vst.msk [vmem:[#allocation3 + $0x10] sm:$0xff] %vm493_vm0, %v23637_v6  ;;  %v20535_v51 = vld [vmem:[%s20368_s23 + $0xc8] sm:$0xff]  ;;  %v20564_v57 = vld [vmem:[%s20368_s23 + $0xd0] sm:$0xff] }
  0x23   : > { %553 = vst.msk [vmem:[#allocation3 + $0x20] sm:$0xff] %vm493_vm0, %v23637_v6  ;;  %555 = vst.msk [vmem:[#allocation3 + $0x30] sm:$0xff] %vm493_vm0, %v23637_v6  ;;  %v20567_v58 = vld [vmem:[%s20368_s23 + $0xd8] sm:$0xff]  ;;  %v20576_v60 = vld [vmem:[%s20368_s23 + $0xe0] sm:$0xff] }
  0x24   : > { %557 = vst.msk [vmem:[#allocation3 + $0x40] sm:$0xff] %vm493_vm0, %v23637_v6  ;;  %559 = vst.msk [vmem:[#allocation3 + $0x50] sm:$0xff] %vm493_vm0, %v23637_v6  ;;  %v20579_v61 = vld [vmem:[%s20368_s23 + $0xe8] sm:$0xff]  ;;  %v641_v12 = vld [vmem:[#allocation2] sm:$0xff] }
  0x25   : > { %561 = vst.msk [vmem:[#allocation3 + $0x60] sm:$0xff] %vm493_vm0, %v23637_v6  ;;  %563 = vst.msk [vmem:[#allocation3 + $0x70] sm:$0xff] %vm493_vm0, %v23637_v6  ;;  %v14542_v16 = vld [vmem:[%s23622_s1 + $0x50] sm:$0xff]  ;;  %v642_v19 = vld [vmem:[#allocation2 + $0x8] sm:$0xff] }
  0x26   : > { %565 = vst.msk [vmem:[#allocation3 + $0x80] sm:$0xff] %vm493_vm0, %v23637_v6  ;;  %567 = vst.msk [vmem:[#allocation3 + $0x90] sm:$0xff] %vm493_vm0, %v23637_v6 }
  0x27   : > { %497 = vst.msk [vmem:[#allocation2 + $0x10] sm:$0x3] %vm496_vm1, %v23637_v6  ;;  %500 = vst.msk [vmem:[#allocation2 + $0x28] sm:$0x3] %vm496_vm1, %v23637_v6 }
  0x28   : > { %503 = vst.msk [vmem:[#allocation2 + $0x40] sm:$0x3] %vm496_vm1, %v23637_v6  ;;  %506 = vst.msk [vmem:[#allocation2 + $0x58] sm:$0x3] %vm496_vm1, %v23637_v6 }
  0x29   : > { %509 = vst.msk [vmem:[#allocation2 + $0x70] sm:$0x3] %vm496_vm1, %v23637_v6  ;;  %512 = vst.msk [vmem:[#allocation2 + $0x88] sm:$0x3] %vm496_vm1, %v23637_v6 }
  0x2a   : > { %515 = vst.msk [vmem:[#allocation2 + $0xa0] sm:$0x3] %vm496_vm1, %v23637_v6  ;;  %518 = vst.msk [vmem:[#allocation2 + $0xb8] sm:$0x3] %vm496_vm1, %v23637_v6 }
  0x2b   : > { %521 = vst.msk [vmem:[#allocation2 + $0xd0] sm:$0x3] %vm496_vm1, %v23637_v6  ;;  %524 = vst.msk [vmem:[#allocation2 + $0xe8] sm:$0x3] %vm496_vm1, %v23637_v6 }
  0x2c   : > { %527 = vst.msk [vmem:[#allocation2 + $0x100] sm:$0x3] %vm496_vm1, %v23637_v6  ;;  %530 = vst.msk [vmem:[#allocation2 + $0x118] sm:$0x3] %vm496_vm1, %v23637_v6 }
  0x2d   : > { %533 = vst.msk [vmem:[#allocation2 + $0x130] sm:$0x3] %vm496_vm1, %v23637_v6  ;;  %536 = vst.msk [vmem:[#allocation2 + $0x148] sm:$0x3] %vm496_vm1, %v23637_v6 }
  0x2e   : > { %539 = vst.msk [vmem:[#allocation2 + $0x160] sm:$0x3] %vm496_vm1, %v23637_v6  ;;  %542 = vst.msk [vmem:[#allocation2 + $0x178] sm:$0x3] %vm496_vm1, %v23637_v6  ;;  %v678_v17 = vld [vmem:[#allocation2 + $0x9] sm:$0xff] }
  0x2f   : > { %545 = vst.msk [vmem:[#allocation2 + $0x190] sm:$0x3] %vm496_vm1, %v23637_v6  ;;  %548 = vst.msk [vmem:[#allocation2 + $0x1a8] sm:$0x3] %vm496_vm1, %v23637_v6  ;;  %16777 = vmatmul.mubr.msk.f32.vlgmr.msra.gmra.mrb[0].mxu0 %vm493_vm0, %v678_v17  ;;  %v14543_v17 = vld [vmem:[%s23622_s1 + $0x58] sm:$0xff] }
  0x30   : > { %550 = vst.msk [vmem:[#allocation3 + $0x8] sm:$0x3] %vm496_vm1, %v23637_v6  ;;  %552 = vst.msk [vmem:[#allocation3 + $0x18] sm:$0x3] %vm496_vm1, %v23637_v6  ;;  %18612 = vmatpush3.bf16.msra.mxu0 %v18609_v10 }
  0x31   : > { %554 = vst.msk [vmem:[#allocation3 + $0x28] sm:$0x3] %vm496_vm1, %v23637_v6  ;;  %556 = vst.msk [vmem:[#allocation3 + $0x38] sm:$0x3] %vm496_vm1, %v23637_v6  ;;  %18614 = vmatprep.subr.bf16.mxu0 %v18613_v24 }
  0x32   : > { %558 = vst.msk [vmem:[#allocation3 + $0x48] sm:$0x3] %vm496_vm1, %v23637_v6  ;;  %560 = vst.msk [vmem:[#allocation3 + $0x58] sm:$0x3] %vm496_vm1, %v23637_v6 }
  0x33   : > { %562 = vst.msk [vmem:[#allocation3 + $0x68] sm:$0x3] %vm496_vm1, %v23637_v6  ;;  %564 = vst.msk [vmem:[#allocation3 + $0x78] sm:$0x3] %vm496_vm1, %v23637_v6 }
  0x34   : > { %566 = vst.msk [vmem:[#allocation3 + $0x88] sm:$0x3] %vm496_vm1, %v23637_v6  ;;  %568 = vst.msk [vmem:[#allocation3 + $0x98] sm:$0x3] %vm496_vm1, %v23637_v6  ;;  %18616 = vmatpush3.bf16.msra.mxu0 %v18613_v24  ;;  %v18621_v24 = vpack.c.bf16 %v14543_v17, %v14542_v16  ;;  %v14576_v6 = vld [vmem:[%s23622_s1 + $0x60] sm:$0xff] }
  0x35   : > { %23802 = vst [vmem:[#allocation6_spill] sm:$0xff] %v20377_v13  ;;  %23803 = vst [vmem:[#allocation7_spill] sm:$0xff] %v20380_v14  ;;  %18618 = vmatprep.subr.bf16.mxu0 %v20473_v37 }
  0x36   : > { %23804 = vst [vmem:[#allocation8_spill] sm:$0xff] %v20383_v15  ;;  %609 = vst.msk [vmem:[#allocation2 + $0x19] sm:$0xff] %vm493_vm0, %v20377_v13 }
  0x37   : > { %610 = vst.msk [vmem:[#allocation2 + $0x21] sm:$0xff] %vm493_vm0, %v20380_v14  ;;  %611 = vst.msk [vmem:[#allocation2 + $0x31] sm:$0xff] %vm493_vm0, %v20383_v15  ;;  %v1357_v14 = vld [vmem:[#allocation2 + $0xa] sm:$0xff] }
  0x38   : > { %23805 = vst [vmem:[#allocation9_spill] sm:$0xff] %v20392_v18  ;;  %612 = vst.msk [vmem:[#allocation2 + $0x39] sm:$0xff] %vm493_vm0, %v20392_v18 }
  0x39   : > { %23806 = vst [vmem:[#allocation10_spill] sm:$0xff] %v20404_v21  ;;  %23807 = vst [vmem:[#allocation11_spill] sm:$0xff] %v20407_v22 }
  0x3a   : > { %23808 = vst [vmem:[#allocation12_spill] sm:$0xff] %v20410_v23  ;;  %613 = vst.msk [vmem:[#allocation2 + $0x49] sm:$0xff] %vm493_vm0, %v20404_v21 }
  0x3b   : > { %614 = vst.msk [vmem:[#allocation2 + $0x51] sm:$0xff] %vm493_vm0, %v20407_v22  ;;  %615 = vst.msk [vmem:[#allocation2 + $0x61] sm:$0xff] %vm493_vm0, %v20410_v23 }
  0x3c   : > { %23809 = vst [vmem:[#allocation13_spill] sm:$0xff] %v20419_v25  ;;  %23810 = vst [vmem:[#allocation14_spill] sm:$0xff] %v20422_v26 }
  0x3d   : > { %23811 = vst [vmem:[#allocation15_spill] sm:$0xff] %v20425_v27  ;;  %616 = vst.msk [vmem:[#allocation2 + $0x69] sm:$0xff] %vm493_vm0, %v20419_v25  ;;  %v20490_v41 = vld [vmem:[#allocation2 + $0x19] sm:$0xff] }
  0x3e   : > { %617 = vst.msk [vmem:[#allocation2 + $0x79] sm:$0xff] %vm493_vm0, %v20422_v26  ;;  %618 = vst.msk [vmem:[#allocation2 + $0x81] sm:$0xff] %vm493_vm0, %v20425_v27  ;;  %v20492_v42 = vld [vmem:[#allocation2 + $0x21] sm:$0xff]  ;;  %v20494_v43 = vld [vmem:[#allocation2 + $0x31] sm:$0xff]  ;;  %16779 = vmatprep.mubr.msk.f32.mxu0 %vm493_vm0, %v20490_v41 }
  0x3f   : > { %23812 = vst [vmem:[#allocation16_spill] sm:$0xff] %v20435_v28  ;;  %23813 = vst [vmem:[#allocation17_spill] sm:$0xff] %v20438_v29  ;;  %16780 = vmatmul.mubr.msk.f32.gmra.mrb[2].mxu0 %vm493_vm0, %v20492_v42  ;;  %v20519_v46 = vld [vmem:[#allocation2 + $0x39] sm:$0xff] }
  0x40   : > { %23814 = vst [vmem:[#allocation18_spill] sm:$0xff] %v20441_v30  ;;  %619 = vst.msk [vmem:[#allocation2 + $0x91] sm:$0xff] %vm493_vm0, %v20435_v28  ;;  %16782 = vmatprep.mubr.msk.f32.mxu0 %vm493_vm0, %v20494_v43  ;;  %v20648_v20 = vld [vmem:[#allocation2 + $0x18] sm:$0xff] }
  0x41   : > { %620 = vst.msk [vmem:[#allocation2 + $0x99] sm:$0xff] %vm493_vm0, %v20438_v29  ;;  %621 = vst.msk [vmem:[#allocation2 + $0xa9] sm:$0xff] %vm493_vm0, %v20441_v30  ;;  %v20521_v47 = vld [vmem:[#allocation2 + $0x49] sm:$0xff]  ;;  %v20670_v17 = vld [vmem:[#allocation2 + $0x38] sm:$0xff] }
  0x42   : > { %23815 = vst [vmem:[#allocation19_spill] sm:$0xff] %v20450_v31  ;;  %23816 = vst [vmem:[#allocation20_spill] sm:$0xff] %v20453_v32  ;;  %v20527_v48 = vld [vmem:[#allocation2 + $0x51] sm:$0xff]  ;;  %v20529_v49 = vld [vmem:[#allocation2 + $0x61] sm:$0xff] }
  0x43   : > { %23817 = vst [vmem:[#allocation21_spill] sm:$0xff] %v20456_v33  ;;  %622 = vst.msk [vmem:[#allocation2 + $0xb1] sm:$0xff] %vm493_vm0, %v20450_v31  ;;  %16783 = vmatmul.mubr.msk.f32.gmra.mrb[4].mxu0 %vm493_vm0, %v20519_v46  ;;  %v20796_v13 = vld [vmem:[#allocation2 + $0x1a] sm:$0xff] }
  0x44   : > { %623 = vst.msk [vmem:[#allocation2 + $0xc1] sm:$0xff] %vm493_vm0, %v20453_v32  ;;  %624 = vst.msk [vmem:[#allocation2 + $0xc9] sm:$0xff] %vm493_vm0, %v20456_v33  ;;  %16785 = vmatprep.mubr.msk.f32.mxu0 %vm493_vm0, %v20521_v47  ;;  %v20545_v52 = vld [vmem:[#allocation2 + $0x69] sm:$0xff] }
  0x45   : > { %23818 = vst [vmem:[#allocation22_spill] sm:$0xff] %v20465_v34  ;;  %23819 = vst [vmem:[#allocation23_spill] sm:$0xff] %v20468_v35  ;;  %v20547_v53 = vld [vmem:[#allocation2 + $0x79] sm:$0xff]  ;;  %v20553_v54 = vld [vmem:[#allocation2 + $0x81] sm:$0xff] }
  0x46   : > { %23820 = vst [vmem:[#allocation24_spill] sm:$0xff] %v20471_v36  ;;  %625 = vst.msk [vmem:[#allocation2 + $0xd9] sm:$0xff] %vm493_vm0, %v20465_v34  ;;  %v14577_v33 = vld [vmem:[%s23622_s1 + $0x68] sm:$0xff]  ;;  %v20662_v32 = vld [vmem:[#allocation2 + $0x30] sm:$0xff] }
  0x47   : > { %626 = vst.msk [vmem:[#allocation2 + $0xe1] sm:$0xff] %vm493_vm0, %v20468_v35  ;;  %627 = vst.msk [vmem:[#allocation2 + $0xf1] sm:$0xff] %vm493_vm0, %v20471_v36  ;;  %16786 = vmatmul.mubr.msk.f32.gmra.mrb[6].mxu0 %vm493_vm0, %v20527_v48  ;;  %v20555_v55 = vld [vmem:[#allocation2 + $0x91] sm:$0xff]  ;;  %v20664_v16 = vpack.c.bf16 %v14577_v33, %v14576_v6  ;;  %v20681_v33 = vld [vmem:[#allocation2 + $0x60] sm:$0xff] }
  0x48   : > { %23821 = vst [vmem:[#allocation25_spill] sm:$0xff] %v20482_v38  ;;  %23822 = vst [vmem:[#allocation26_spill] sm:$0xff] %v20485_v39  ;;  %16788 = vmatprep.mubr.msk.f32.mxu0 %vm493_vm0, %v20529_v49  ;;  %v20561_v56 = vld [vmem:[#allocation2 + $0x99] sm:$0xff]  ;;  %v20569_v59 = vld [vmem:[#allocation2 + $0xa9] sm:$0xff] }
  0x49   : > { %23823 = vst [vmem:[#allocation27_spill] sm:$0xff] %v20488_v40  ;;  %628 = vst.msk [vmem:[#allocation2 + $0xf9] sm:$0xff] %vm493_vm0, %v20482_v38  ;;  %v20679_v6 = vld [vmem:[#allocation2 + $0x50] sm:$0xff]  ;;  %v20695_v31 = vld [vmem:[#allocation2 + $0x80] sm:$0xff] }
  0x4a   : > { %629 = vst.msk [vmem:[#allocation2 + $0x109] sm:$0xff] %vm493_vm0, %v20485_v39  ;;  %630 = vst.msk [vmem:[#allocation2 + $0x111] sm:$0xff] %vm493_vm0, %v20488_v40  ;;  %v20589_v62 = vld [vmem:[#allocation2 + $0xb1] sm:$0xff]  ;;  %v1356_v38 = vld [vmem:[#allocation2 + $0x2] sm:$0xff] }
  0x4b   : > { %23824 = vst [vmem:[#allocation28_spill] sm:$0xff] %v20505_v44  ;;  %23825 = vst [vmem:[#allocation29_spill] sm:$0xff] %v20508_v45  ;;  %16789 = vmatmul.mubr.msk.f32.gmra.mrb[8].mxu0 %vm493_vm0, %v20545_v52  ;;  %v20591_v63 = vld [vmem:[#allocation2 + $0xc1] sm:$0xff]  ;;  %v20597_v0 = vld [vmem:[#allocation2 + $0xc9] sm:$0xff] }
  0x4c   : > { %631 = vst.msk [vmem:[#allocation2 + $0x121] sm:$0xff] %vm493_vm0, %v20505_v44  ;;  %632 = vst.msk [vmem:[#allocation2 + $0x129] sm:$0xff] %vm493_vm0, %v20508_v45  ;;  %16791 = vmatprep.mubr.msk.f32.mxu0 %vm493_vm0, %v20547_v53  ;;  %v20697_v30 = vld [vmem:[#allocation2 + $0x90] sm:$0xff]  ;;  %v20713_v28 = vld [vmem:[#allocation2 + $0xc0] sm:$0xff] }
  0x4d   : > { %23826 = vst [vmem:[#allocation30_spill] sm:$0xff] %v20532_v50  ;;  %23827 = vst [vmem:[#allocation31_spill] sm:$0xff] %v20535_v51  ;;  %v20599_v1 = vld [vmem:[#allocation2 + $0xd9] sm:$0xff]  ;;  %v20711_v29 = vld [vmem:[#allocation2 + $0xb0] sm:$0xff] }
  0x4e   : > { %633 = vst.msk [vmem:[#allocation2 + $0x139] sm:$0xff] %vm493_vm0, %v20532_v50  ;;  %634 = vst.msk [vmem:[#allocation2 + $0x141] sm:$0xff] %vm493_vm0, %v20535_v51  ;;  %v20605_v2 = vld [vmem:[#allocation2 + $0xe1] sm:$0xff]  ;;  %v20607_v3 = vld [vmem:[#allocation2 + $0xf1] sm:$0xff] }
  0x4f   : > { %16792 = vmatmul.mubr.msk.f32.gmra.mrb[10].mxu0 %vm493_vm0, %v20553_v54  ;;  %23828 = vst [vmem:[#allocation32_spill] sm:$0xff] %v20564_v57  ;;  %23829 = vst [vmem:[#allocation33_spill] sm:$0xff] %v20567_v58  ;;  %v20727_v27 = vld [vmem:[#allocation2 + $0xe0] sm:$0xff]  ;;  %v20729_v26 = vld [vmem:[#allocation2 + $0xf0] sm:$0xff] }
  0x50   : > { %16794 = vmatprep.mubr.msk.f32.mxu0 %vm493_vm0, %v20555_v55  ;;  %635 = vst.msk [vmem:[#allocation2 + $0x151] sm:$0xff] %vm493_vm0, %v20564_v57  ;;  %636 = vst.msk [vmem:[#allocation2 + $0x159] sm:$0xff] %vm493_vm0, %v20567_v58  ;;  %v20613_v4 = vld [vmem:[#allocation2 + $0xf9] sm:$0xff]  ;;  %v20719_v58 = vld [vmem:[#allocation2 + $0xc8] sm:$0xff] }
  0x51   : > { %23830 = vst [vmem:[#allocation34_spill] sm:$0xff] %v20576_v60  ;;  %23831 = vst [vmem:[#allocation35_spill] sm:$0xff] %v20579_v61  ;;  %v20615_v5 = vld [vmem:[#allocation2 + $0x109] sm:$0xff]  ;;  %v20621_v7 = vld [vmem:[#allocation2 + $0x111] sm:$0xff] }
  0x52   : > { %637 = vst.msk [vmem:[#allocation2 + $0x169] sm:$0xff] %vm493_vm0, %v20576_v60  ;;  %638 = vst.msk [vmem:[#allocation2 + $0x171] sm:$0xff] %vm493_vm0, %v20579_v61  ;;  %v20703_v61 = vld [vmem:[#allocation2 + $0x98] sm:$0xff]  ;;  %v20705_v60 = vld [vmem:[#allocation2 + $0xa8] sm:$0xff] }
  0x53   : > { %16795 = vmatmul.mubr.msk.f32.gmra.mrb[12].mxu0 %vm493_vm0, %v20561_v56  ;;  %v20623_v8 = vld [vmem:[#allocation2 + $0x121] sm:$0xff]  ;;  %v20629_v9 = vld [vmem:[#allocation2 + $0x129] sm:$0xff]  ;;  %v20721_v57 = vld [vmem:[#allocation2 + $0xd8] sm:$0xff]  ;;  %23836 = vst [vmem:[#allocation40_spill] sm:$0xff] %v20796_v13 }
  0x54   : > { %16797 = vmatprep.mubr.msk.f32.mxu0 %vm493_vm0, %v20569_v59  ;;  %v20735_v51 = vld [vmem:[#allocation2 + $0xf8] sm:$0xff]  ;;  %v20737_v50 = vld [vmem:[#allocation2 + $0x108] sm:$0xff]  ;;  %v20743_v25 = vld [vmem:[#allocation2 + $0x110] sm:$0xff] }
  0x55   : > { %v20631_v10 = vld [vmem:[#allocation2 + $0x139] sm:$0xff]  ;;  %v20637_v11 = vld [vmem:[#allocation2 + $0x141] sm:$0xff]  ;;  %v20764_v40 = vld [vmem:[%s20368_s23 + $0xf0] sm:$0xff] }
  0x56   : > { %23832 = vst [vmem:[#allocation36_spill] sm:$0xff] %v20631_v10  ;;  %23833 = vst [vmem:[#allocation37_spill] sm:$0xff] %v20637_v11  ;;  %v20745_v23 = vld [vmem:[#allocation2 + $0x120] sm:$0xff]  ;;  %v20751_v45 = vld [vmem:[#allocation2 + $0x128] sm:$0xff] }
  0x57   : > { %16798 = vmatmul.mubr.msk.f32.gmra.mrb[14].mxu0 %vm493_vm0, %v20589_v62  ;;  %v20753_v44 = vld [vmem:[#allocation2 + $0x138] sm:$0xff]  ;;  %v20759_v22 = vld [vmem:[#allocation2 + $0x140] sm:$0xff]  ;;  %v20761_v21 = vld [vmem:[#allocation2 + $0x150] sm:$0xff]  ;;  %23834 = vst [vmem:[#allocation38_spill] sm:$0xff] %v20764_v40 }
  0x58   : > { %16800 = vmatprep.mubr.msk.f32.mxu0 %vm493_vm0, %v20591_v63  ;;  %639 = vst.msk [vmem:[#allocation2 + $0x181] sm:$0xff] %vm493_vm0, %v20764_v40  ;;  %v20769_v39 = vld [vmem:[%s20368_s23 + $0xf8] sm:$0xff]  ;;  %v14612_v34 = vld [vmem:[%s23622_s1 + $0x80] sm:$0xff] }
  0x59   : > { %23835 = vst [vmem:[#allocation39_spill] sm:$0xff] %v20769_v39  ;;  %640 = vst.msk [vmem:[#allocation2 + $0x189] sm:$0xff] %vm493_vm0, %v20769_v39  ;;  %v20777_v18 = vld [vmem:[#allocation2 + $0x158] sm:$0xff]  ;;  %v20779_v15 = vld [vmem:[#allocation2 + $0x168] sm:$0xff] }
  0x5a   : > { %v20785_v40 = vld [vmem:[#allocation2 + $0x170] sm:$0xff]  ;;  %v14579_v36 = vld [vmem:[%s23622_s1 + $0x78] sm:$0xff] }
  0x5b   : > { %16801 = vmatmul.mubr.msk.f32.gmra.mrb[16].mxu0 %vm493_vm0, %v20597_v0  ;;  %v14578_v39 = vld [vmem:[%s23622_s1 + $0x70] sm:$0xff] }
  0x5c   : > { %16803 = vmatprep.mubr.msk.f32.mxu0 %vm493_vm0, %v20599_v1  ;;  %v18629_v35 = vpack.c.bf16 %v14579_v36, %v14578_v39  ;;  %v20818_v39 = vld [vmem:[#allocation2 + $0x3a] sm:$0xff] }
  0x5d   : > { %23839 = vst [vmem:[#allocation43_spill] sm:$0xff] %v20818_v39 }
  0x5f   : > { %16804 = vmatmul.mubr.msk.f32.gmra.mrb[18].mxu0 %vm493_vm0, %v20605_v2 }
  0x60   : > { %16806 = vmatprep.mubr.msk.f32.mxu0 %vm493_vm0, %v20607_v3 }
  0x63   : > { %16807 = vmatmul.mubr.msk.f32.gmra.mrb[20].mxu0 %vm493_vm0, %v20613_v4 }
  0x64   : > { %16809 = vmatprep.mubr.msk.f32.mxu0 %vm493_vm0, %v20615_v5 }
  0x67   : > { %16810 = vmatmul.mubr.msk.f32.gmra.mrb[22].mxu0 %vm493_vm0, %v20621_v7 }
  0x68   : > { %16812 = vmatprep.mubr.msk.f32.mxu0 %vm493_vm0, %v20623_v8 }
  0x6b   : > { %16813 = vmatmul.mubr.msk.f32.gmra.mrb[24].mxu0 %vm493_vm0, %v20629_v9 }
  0x6c   : > { %16815 = vmatprep.mubr.msk.f32.mxu0 %vm493_vm0, %v20631_v10  ;;  %v20810_v10 = vld [vmem:[#allocation2 + $0x32] sm:$0xff] }
  0x6d   : > { %23838 = vst [vmem:[#allocation42_spill] sm:$0xff] %v20810_v10 }
  0x6f   : > { %16816 = vmatmul.mubr.msk.f32.gmra.mrb[26].mxu0 %vm493_vm0, %v20637_v11  ;;  %v14613_v11 = vld [vmem:[%s23622_s1 + $0x88] sm:$0xff] }
  0x70   : > { %16832 = vmatprep.mubr.msk.f32.mxu0 %vm493_vm0, %v641_v12  ;;  %v20660_v12 = vld [vmem:[#allocation2 + $0x20] sm:$0xff]  ;;  %v20812_v36 = vpack.c.bf16 %v14613_v11, %v14612_v34  ;;  %v20827_v34 = vld [vmem:[#allocation2 + $0x52] sm:$0xff] }
  0x71   : > { %23841 = vst [vmem:[#allocation45_spill] sm:$0xff] %v20827_v34  ;;  %v20829_v11 = vld [vmem:[#allocation2 + $0x62] sm:$0xff] }
  0x72   : > { %23842 = vst [vmem:[#allocation46_spill] sm:$0xff] %v20829_v11 }
  0x73   : > { %16833 = vmatmul.mubr.msk.f32.vlgmr.msra.gmra.mrb[0].mxu0 %vm493_vm0, %v642_v19  ;;  %v20687_v19 = vld [vmem:[#allocation2 + $0x68] sm:$0xff] }
  0x74   : > { %18620 = vmatpush3.bf16.msra.mxu0 %v20473_v37  ;;  %16835 = vmatprep.mubr.msk.f32.mxu0 %vm493_vm0, %v20648_v20  ;;  %v20672_v37 = vld [vmem:[#allocation2 + $0x48] sm:$0xff] }
  0x75   : > { %18622 = vmatprep.subr.bf16.mxu0 %v18621_v24 }
  0x77   : > { %16836 = vmatmul.mubr.msk.f32.gmra.mrb[2].mxu0 %vm493_vm0, %v20660_v12 }
  0x78   : > { %16838 = vmatprep.mubr.msk.f32.mxu0 %vm493_vm0, %v20662_v32  ;;  %18624 = vmatpush3.bf16.msra.mxu0 %v18621_v24  ;;  %v20689_v24 = vld [vmem:[#allocation2 + $0x78] sm:$0xff] }
  0x79   : > { %18626 = vmatprep.subr.bf16.mxu0 %v20664_v16 }
  0x7b   : > { %16839 = vmatmul.mubr.msk.f32.gmra.mrb[4].mxu0 %vm493_vm0, %v20670_v17 }
  0x7c   : > { %16841 = vmatprep.mubr.msk.f32.mxu0 %vm493_vm0, %v20672_v37 }
  0x7f   : > { %16842 = vmatmul.mubr.msk.f32.gmra.mrb[6].mxu0 %vm493_vm0, %v20679_v6 }
  0x80   : > { %16844 = vmatprep.mubr.msk.f32.mxu0 %vm493_vm0, %v20681_v33 }
  0x83   : > { %16845 = vmatmul.mubr.msk.f32.gmra.mrb[8].mxu0 %vm493_vm0, %v20687_v19 }
  0x84   : > { %16847 = vmatprep.mubr.msk.f32.mxu0 %vm493_vm0, %v20689_v24 }
  0x87   : > { %16848 = vmatmul.mubr.msk.f32.gmra.mrb[10].mxu0 %vm493_vm0, %v20695_v31 }
  0x88   : > { %16850 = vmatprep.mubr.msk.f32.mxu0 %vm493_vm0, %v20697_v30 }
  0x8b   : > { %16851 = vmatmul.mubr.msk.f32.gmra.mrb[12].mxu0 %vm493_vm0, %v20703_v61 }
  0x8c   : > { %16853 = vmatprep.mubr.msk.f32.mxu0 %vm493_vm0, %v20705_v60 }
  0x8f   : > { %16854 = vmatmul.mubr.msk.f32.gmra.mrb[14].mxu0 %vm493_vm0, %v20711_v29 }
  0x90   : > { %16856 = vmatprep.mubr.msk.f32.mxu0 %vm493_vm0, %v20713_v28 }
  0x93   : > { %16857 = vmatmul.mubr.msk.f32.gmra.mrb[16].mxu0 %vm493_vm0, %v20719_v58 }
  0x94   : > { %16859 = vmatprep.mubr.msk.f32.mxu0 %vm493_vm0, %v20721_v57 }
  0x97   : > { %16860 = vmatmul.mubr.msk.f32.gmra.mrb[18].mxu0 %vm493_vm0, %v20727_v27 }
  0x98   : > { %16862 = vmatprep.mubr.msk.f32.mxu0 %vm493_vm0, %v20729_v26 }
  0x9b   : > { %16863 = vmatmul.mubr.msk.f32.gmra.mrb[20].mxu0 %vm493_vm0, %v20735_v51 }
  0x9c   : > { %16865 = vmatprep.mubr.msk.f32.mxu0 %vm493_vm0, %v20737_v50 }
  0x9f   : > { %16866 = vmatmul.mubr.msk.f32.gmra.mrb[22].mxu0 %vm493_vm0, %v20743_v25 }
  0xa0   : > { %16868 = vmatprep.mubr.msk.f32.mxu0 %vm493_vm0, %v20745_v23 }
  0xa3   : > { %16869 = vmatmul.mubr.msk.f32.gmra.mrb[24].mxu0 %vm493_vm0, %v20751_v45 }
  0xa4   : > { %16871 = vmatprep.mubr.msk.f32.mxu0 %vm493_vm0, %v20753_v44 }
  0xa7   : > { %16872 = vmatmul.mubr.msk.f32.gmra.mrb[26].mxu0 %vm493_vm0, %v20759_v22 }
  0xa8   : > { %16874 = vmatprep.mubr.msk.f32.mxu0 %vm493_vm0, %v20761_v21 }
  0xab   : > { %16875 = vmatmul.mubr.msk.f32.gmra.mrb[28].mxu0 %vm493_vm0, %v20777_v18 }
  0xac   : > { %16877 = vmatprep.mubr.msk.f32.mxu0 %vm493_vm0, %v20779_v15 }
  0xaf   : > { %16878 = vmatmul.mubr.msk.f32.gmra.mrb[30].mxu0 %vm493_vm0, %v20785_v40 }
  0xb0   : > { %16888 = vmatprep.mubr.msk.f32.mxu0 %vm493_vm0, %v1356_v38  ;;  %v20808_v38 = vld [vmem:[#allocation2 + $0x22] sm:$0xff] }
  0xb1   : > { %23837 = vst [vmem:[#allocation41_spill] sm:$0xff] %v20808_v38 }
  0xb3   : > { %16889 = vmatmul.mubr.msk.f32.vlgmr.msra.gmra.mrb[0].mxu0 %vm493_vm0, %v1357_v14  ;;  %v20820_v14 = vld [vmem:[#allocation2 + $0x4a] sm:$0xff] }
  0xb4   : > { %18628 = vmatpush3.bf16.msra.mxu0 %v20664_v16  ;;  %16891 = vmatprep.mubr.msk.f32.mxu0 %vm493_vm0, %v20796_v13  ;;  %23840 = vst [vmem:[#allocation44_spill] sm:$0xff] %v20820_v14  ;;  %v20837_v16 = vld [vmem:[#allocation2 + $0x7a] sm:$0xff] }
  0xb5   : > { %18630 = vmatprep.subr.bf16.mxu0 %v18629_v35  ;;  %23844 = vst [vmem:[#allocation48_spill] sm:$0xff] %v20837_v16  ;;  %v14615_v13 = vld [vmem:[%s23622_s1 + $0x98] sm:$0xff] }
  0xb7   : > { %16892 = vmatmul.mubr.msk.f32.gmra.mrb[2].mxu0 %vm493_vm0, %v20808_v38  ;;  %v20931_v38 = vld [vmem:[#allocation2 + $0x16a] sm:$0xff] }
  0xb8   : > { %16894 = vmatprep.mubr.msk.f32.mxu0 %vm493_vm0, %v20810_v10  ;;  %18632 = vmatpush3.bf16.msra.mxu0 %v18629_v35  ;;  %v20835_v35 = vld [vmem:[#allocation2 + $0x6a] sm:$0xff]  ;;  %v20911_v10 = vld [vmem:[#allocation2 + $0x159] sm:$0xff]  ;;  %23865 = vst [vmem:[#allocation69_spill] sm:$0xff] %v20931_v38 }
  0xb9   : > { %18634 = vmatprep.subr.bf16.mxu0 %v20812_v36  ;;  %23843 = vst [vmem:[#allocation47_spill] sm:$0xff] %v20835_v35 }
  0xbb   : > { %16895 = vmatmul.mubr.msk.f32.gmra.mrb[4].mxu0 %vm493_vm0, %v20818_v39  ;;  %v20845_v39 = vld [vmem:[#allocation2 + $0x92] sm:$0xff] }
  0xbc   : > { %16897 = vmatprep.mubr.msk.f32.mxu0 %vm493_vm0, %v20820_v14  ;;  %v20843_v14 = vld [vmem:[#allocation2 + $0x82] sm:$0xff]  ;;  %23846 = vst [vmem:[#allocation50_spill] sm:$0xff] %v20845_v39 }
  0xbd   : > { %23845 = vst [vmem:[#allocation49_spill] sm:$0xff] %v20843_v14 }
  0xbf   : > { %16898 = vmatmul.mubr.msk.f32.gmra.mrb[6].mxu0 %vm493_vm0, %v20827_v34  ;;  %v20853_v34 = vld [vmem:[#allocation2 + $0xaa] sm:$0xff] }
  0xc0   : > { %16900 = vmatprep.mubr.msk.f32.mxu0 %vm493_vm0, %v20829_v11  ;;  %v20851_v11 = vld [vmem:[#allocation2 + $0x9a] sm:$0xff]  ;;  %23848 = vst [vmem:[#allocation52_spill] sm:$0xff] %v20853_v34 }
  0xc1   : > { %23847 = vst [vmem:[#allocation51_spill] sm:$0xff] %v20851_v11 }
  0xc3   : > { %16901 = vmatmul.mubr.msk.f32.gmra.mrb[8].mxu0 %vm493_vm0, %v20835_v35  ;;  %v20861_v35 = vld [vmem:[#allocation2 + $0xc2] sm:$0xff] }
  0xc4   : > { %16903 = vmatprep.mubr.msk.f32.mxu0 %vm493_vm0, %v20837_v16  ;;  %v20859_v16 = vld [vmem:[#allocation2 + $0xb2] sm:$0xff]  ;;  %23850 = vst [vmem:[#allocation54_spill] sm:$0xff] %v20861_v35 }
  0xc5   : > { %23849 = vst [vmem:[#allocation53_spill] sm:$0xff] %v20859_v16 }
  0xc7   : > { %16904 = vmatmul.mubr.msk.f32.gmra.mrb[10].mxu0 %vm493_vm0, %v20843_v14  ;;  %v20869_v14 = vld [vmem:[#allocation2 + $0xda] sm:$0xff] }
  0xc8   : > { %16906 = vmatprep.mubr.msk.f32.mxu0 %vm493_vm0, %v20845_v39  ;;  %v20867_v39 = vld [vmem:[#allocation2 + $0xca] sm:$0xff]  ;;  %23852 = vst [vmem:[#allocation56_spill] sm:$0xff] %v20869_v14 }
  0xc9   : > { %23851 = vst [vmem:[#allocation55_spill] sm:$0xff] %v20867_v39 }
  0xcb   : > { %16907 = vmatmul.mubr.msk.f32.gmra.mrb[12].mxu0 %vm493_vm0, %v20851_v11  ;;  %v20877_v11 = vld [vmem:[#allocation2 + $0xf2] sm:$0xff] }
  0xcc   : > { %16909 = vmatprep.mubr.msk.f32.mxu0 %vm493_vm0, %v20853_v34  ;;  %v20875_v34 = vld [vmem:[#allocation2 + $0xe2] sm:$0xff]  ;;  %23854 = vst [vmem:[#allocation58_spill] sm:$0xff] %v20877_v11 }
  0xcd   : > { %23853 = vst [vmem:[#allocation57_spill] sm:$0xff] %v20875_v34 }
  0xcf   : > { %16910 = vmatmul.mubr.msk.f32.gmra.mrb[14].mxu0 %vm493_vm0, %v20859_v16  ;;  %v20885_v16 = vld [vmem:[#allocation2 + $0x10a] sm:$0xff] }
  0xd0   : > { %16912 = vmatprep.mubr.msk.f32.mxu0 %vm493_vm0, %v20861_v35  ;;  %v20883_v35 = vld [vmem:[#allocation2 + $0xfa] sm:$0xff]  ;;  %23856 = vst [vmem:[#allocation60_spill] sm:$0xff] %v20885_v16 }
  0xd1   : > { %23855 = vst [vmem:[#allocation59_spill] sm:$0xff] %v20883_v35 }
  0xd3   : > { %16913 = vmatmul.mubr.msk.f32.gmra.mrb[16].mxu0 %vm493_vm0, %v20867_v39  ;;  %v20893_v39 = vld [vmem:[#allocation2 + $0x122] sm:$0xff] }
  0xd4   : > { %16915 = vmatprep.mubr.msk.f32.mxu0 %vm493_vm0, %v20869_v14  ;;  %v20891_v14 = vld [vmem:[#allocation2 + $0x112] sm:$0xff]  ;;  %23858 = vst [vmem:[#allocation62_spill] sm:$0xff] %v20893_v39 }
  0xd5   : > { %23857 = vst [vmem:[#allocation61_spill] sm:$0xff] %v20891_v14 }
  0xd7   : > { %16916 = vmatmul.mubr.msk.f32.gmra.mrb[18].mxu0 %vm493_vm0, %v20875_v34  ;;  %v20901_v34 = vld [vmem:[#allocation2 + $0x13a] sm:$0xff] }
  0xd8   : > { %16918 = vmatprep.mubr.msk.f32.mxu0 %vm493_vm0, %v20877_v11  ;;  %v20899_v11 = vld [vmem:[#allocation2 + $0x12a] sm:$0xff]  ;;  %23860 = vst [vmem:[#allocation64_spill] sm:$0xff] %v20901_v34 }
  0xd9   : > { %23859 = vst [vmem:[#allocation63_spill] sm:$0xff] %v20899_v11 }
  0xdb   : > { %16919 = vmatmul.mubr.msk.f32.gmra.mrb[20].mxu0 %vm493_vm0, %v20883_v35  ;;  %v20905_v35 = vld [vmem:[#allocation2 + $0x151] sm:$0xff] }
  0xdc   : > { %16921 = vmatprep.mubr.msk.f32.mxu0 %vm493_vm0, %v20885_v16  ;;  %v20909_v16 = vld [vmem:[#allocation2 + $0x142] sm:$0xff]  ;;  %16818 = vmatprep.mubr.msk.f32.mxu1 %vm493_vm0, %v20905_v35 }
  0xdd   : > { %23861 = vst [vmem:[#allocation65_spill] sm:$0xff] %v20909_v16  ;;  %16819 = vmatmul.mubr.msk.f32.vlgmr.msra.gmra.mrb[0].mxu1 %vm493_vm0, %v20911_v10 }
  0xdf   : > { %16922 = vmatmul.mubr.msk.f32.gmra.mrb[22].mxu0 %vm493_vm0, %v20891_v14  ;;  %v20927_v14 = vld [vmem:[#allocation2 + $0x171] sm:$0xff] }
  0xe0   : > { %16924 = vmatprep.mubr.msk.f32.mxu0 %vm493_vm0, %v20893_v39  ;;  %v20915_v39 = vld [vmem:[#allocation2 + $0x152] sm:$0xff]  ;;  %23864 = vst [vmem:[#allocation68_spill] sm:$0xff] %v20927_v14 }
  0xe1   : > { %23862 = vst [vmem:[#allocation66_spill] sm:$0xff] %v20915_v39 }
  0xe3   : > { %16925 = vmatmul.mubr.msk.f32.gmra.mrb[24].mxu0 %vm493_vm0, %v20899_v11  ;;  %v20921_v11 = vld [vmem:[#allocation2 + $0x169] sm:$0xff] }
  0xe4   : > { %16927 = vmatprep.mubr.msk.f32.mxu0 %vm493_vm0, %v20901_v34  ;;  %v20925_v34 = vld [vmem:[#allocation2 + $0x15a] sm:$0xff]  ;;  %16821 = vmatprep.mubr.msk.f32.mxu1 %vm493_vm0, %v20921_v11 }
  0xe5   : > { %23863 = vst [vmem:[#allocation67_spill] sm:$0xff] %v20925_v34  ;;  %16822 = vmatmul.mubr.msk.f32.gmra.mrb[2].mxu1 %vm493_vm0, %v20927_v14  ;;  %v14649_v14 = vld [vmem:[%s23622_s1 + $0xa8] sm:$0xff] }
  0xe7   : > { %16928 = vmatmul.mubr.msk.f32.gmra.mrb[26].mxu0 %vm493_vm0, %v20909_v16  ;;  %v20939_v16 = vld [vmem:[#allocation2 + $0x172] sm:$0xff] }
  0xe8   : > { %16930 = vmatprep.mubr.msk.f32.mxu0 %vm493_vm0, %v20915_v39  ;;  %23866 = vst [vmem:[#allocation70_spill] sm:$0xff] %v20939_v16  ;;  %v14614_v39 = vld [vmem:[%s23622_s1 + $0x90] sm:$0xff] }
  0xeb   : > { %16931 = vmatmul.mubr.msk.f32.gmra.mrb[28].mxu0 %vm493_vm0, %v20925_v34  ;;  %v18637_v34 = vpack.c.bf16 %v14615_v13, %v14614_v39  ;;  %v21014_v13 = vld [vmem:[#allocation2 + $0x180] sm:$0xff] }
  0xec   : > { %16933 = vmatprep.mubr.msk.f32.mxu0 %vm493_vm0, %v20931_v38  ;;  %v14648_v38 = vld [vmem:[%s23622_s1 + $0xa0] sm:$0xff] }
  0xed   : > { %v14684_v39 = vld [vmem:[%s23622_s1 + $0xc0] sm:$0xff] }
  0xef   : > { %16934 = vmatmul.mubr.msk.f32.gmra.mrb[30].mxu0 %vm493_vm0, %v20939_v16  ;;  %v18641_v16 = vpack.c.bf16 %v14649_v14, %v14648_v38  ;;  %v14651_v38 = vld [vmem:[%s23622_s1 + $0xb8] sm:$0xff]  ;;  %v14685_v14 = vld [vmem:[%s23622_s1 + $0xc8] sm:$0xff] }
  0xf0   : > { %16944 = vmatprep.mubr.msk.f32.mxu0 %vm493_vm0, %v20648_v20  ;;  %v21020_v20 = vld [vmem:[#allocation2 + $0x188] sm:$0xff] }
  0xf3   : > { %16945 = vmatmul.mubr.msk.f32.vlgmr.msra.gmra.mrb[0].mxu0 %vm493_vm0, %v20660_v12  ;;  %v14650_v12 = vld [vmem:[%s23622_s1 + $0xb0] sm:$0xff] }
  0xf4   : > { %18636 = vmatpush3.bf16.msra.mxu0 %v20812_v36  ;;  %16947 = vmatprep.mubr.msk.f32.mxu0 %vm493_vm0, %v20662_v32  ;;  %v18645_v36 = vpack.c.bf16 %v14651_v38, %v14650_v12  ;;  %v23884_v12 = vld [vmem:[#allocation54_spill] sm:$0xff]  ;;  %v23885_v38 = vld [vmem:[#allocation55_spill] sm:$0xff] }
  0xf5   : > { %18638 = vmatprep.subr.bf16.mxu0 %v18637_v34 }
  0xf7   : > { %16948 = vmatmul.mubr.msk.f32.gmra.mrb[2].mxu0 %vm493_vm0, %v20670_v17 }
  0xf8   : > { %16950 = vmatprep.mubr.msk.f32.mxu0 %vm493_vm0, %v20672_v37  ;;  %18640 = vmatpush3.bf16.msra.mxu0 %v18637_v34  ;;  %v18649_v34 = vpack.c.bf16 %v14685_v14, %v14684_v39  ;;  %v23887_v39 = vld [vmem:[#allocation57_spill] sm:$0xff]  ;;  %v23888_v14 = vld [vmem:[#allocation58_spill] sm:$0xff] }
  0xf9   : > { %18642 = vmatprep.subr.bf16.mxu0 %v18641_v16 }
  0xfb   : > { %16951 = vmatmul.mubr.msk.f32.gmra.mrb[4].mxu0 %vm493_vm0, %v20679_v6 }
  0xfc   : > { %16953 = vmatprep.mubr.msk.f32.mxu0 %vm493_vm0, %v20681_v33 }
  0xff   : > { %16954 = vmatmul.mubr.msk.f32.gmra.mrb[6].mxu0 %vm493_vm0, %v20687_v19 }
 0x100   : > { %16956 = vmatprep.mubr.msk.f32.mxu0 %vm493_vm0, %v20689_v24 }
 0x103   : > { %16957 = vmatmul.mubr.msk.f32.gmra.mrb[8].mxu0 %vm493_vm0, %v20695_v31 }
 0x104   : > { %16959 = vmatprep.mubr.msk.f32.mxu0 %vm493_vm0, %v20697_v30 }
 0x107   : > { %16960 = vmatmul.mubr.msk.f32.gmra.mrb[10].mxu0 %vm493_vm0, %v20703_v61 }
 0x108   : > { %16962 = vmatprep.mubr.msk.f32.mxu0 %vm493_vm0, %v20705_v60 }
 0x10b   : > { %16963 = vmatmul.mubr.msk.f32.gmra.mrb[12].mxu0 %vm493_vm0, %v20711_v29 }
 0x10c   : > { %16965 = vmatprep.mubr.msk.f32.mxu0 %vm493_vm0, %v20713_v28 }
 0x10f   : > { %16966 = vmatmul.mubr.msk.f32.gmra.mrb[14].mxu0 %vm493_vm0, %v20719_v58 }
 0x110   : > { %16968 = vmatprep.mubr.msk.f32.mxu0 %vm493_vm0, %v20721_v57 }
 0x113   : > { %16969 = vmatmul.mubr.msk.f32.gmra.mrb[16].mxu0 %vm493_vm0, %v20727_v27 }
 0x114   : > { %16971 = vmatprep.mubr.msk.f32.mxu0 %vm493_vm0, %v20729_v26 }
 0x117   : > { %16972 = vmatmul.mubr.msk.f32.gmra.mrb[18].mxu0 %vm493_vm0, %v20735_v51 }
 0x118   : > { %16974 = vmatprep.mubr.msk.f32.mxu0 %vm493_vm0, %v20737_v50 }
 0x11b   : > { %16975 = vmatmul.mubr.msk.f32.gmra.mrb[20].mxu0 %vm493_vm0, %v20743_v25 }
 0x11c   : > { %16977 = vmatprep.mubr.msk.f32.mxu0 %vm493_vm0, %v20745_v23 }
 0x11f   : > { %16978 = vmatmul.mubr.msk.f32.gmra.mrb[22].mxu0 %vm493_vm0, %v20751_v45 }
 0x120   : > { %16980 = vmatprep.mubr.msk.f32.mxu0 %vm493_vm0, %v20753_v44 }
 0x123   : > { %16981 = vmatmul.mubr.msk.f32.gmra.mrb[24].mxu0 %vm493_vm0, %v20759_v22 }
 0x124   : > { %16983 = vmatprep.mubr.msk.f32.mxu0 %vm493_vm0, %v20761_v21 }
 0x127   : > { %16984 = vmatmul.mubr.msk.f32.gmra.mrb[26].mxu0 %vm493_vm0, %v20777_v18 }
 0x128   : > { %16986 = vmatprep.mubr.msk.f32.mxu0 %vm493_vm0, %v20779_v15 }
 0x12b   : > { %16987 = vmatmul.mubr.msk.f32.gmra.mrb[28].mxu0 %vm493_vm0, %v20785_v40 }
 0x12c   : > { %16989 = vmatprep.mubr.msk.f32.mxu0 %vm493_vm0, %v21014_v13 }
 0x12f   : > { %16990 = vmatmul.mubr.msk.f32.gmra.mrb[30].mxu0 %vm493_vm0, %v21020_v20 }
 0x130   : > { %17000 = vmatprep.mubr.msk.f32.mxu0 %vm493_vm0, %v20490_v41  ;;  %v23867_v41 = vld [vmem:[#allocation36_spill] sm:$0xff] }
 0x133   : > { %17001 = vmatmul.mubr.msk.f32.vlgmr.msra.gmra.mrb[0].mxu0 %vm493_vm0, %v20492_v42  ;;  %v23868_v42 = vld [vmem:[#allocation37_spill] sm:$0xff] }
 0x134   : > { %18644 = vmatpush3.bf16.msra.mxu0 %v18641_v16  ;;  %17003 = vmatprep.mubr.msk.f32.mxu0 %vm493_vm0, %v20494_v43  ;;  %v21094_v43 = vld [vmem:[#allocation2 + $0x181] sm:$0xff]  ;;  %v23883_v16 = vld [vmem:[#allocation53_spill] sm:$0xff] }
 0x135   : > { %18646 = vmatprep.subr.bf16.mxu0 %v18645_v36 }
 0x137   : > { %17004 = vmatmul.mubr.msk.f32.gmra.mrb[2].mxu0 %vm493_vm0, %v20519_v46  ;;  %v23869_v46 = vld [vmem:[#allocation68_spill] sm:$0xff] }
 0x138   : > { %17006 = vmatprep.mubr.msk.f32.mxu0 %vm493_vm0, %v20521_v47  ;;  %18648 = vmatpush3.bf16.msra.mxu0 %v18645_v36  ;;  %v21100_v47 = vld [vmem:[#allocation2 + $0x189] sm:$0xff]  ;;  %v23886_v36 = vld [vmem:[#allocation56_spill] sm:$0xff] }
 0x139   : > { %18650 = vmatprep.subr.bf16.mxu0 %v18649_v34 }
 0x13b   : > { %17007 = vmatmul.mubr.msk.f32.gmra.mrb[4].mxu0 %vm493_vm0, %v20527_v48  ;;  %v14686_v48 = vld [vmem:[%s23622_s1 + $0xd0] sm:$0xff] }
 0x13c   : > { %17009 = vmatprep.mubr.msk.f32.mxu0 %vm493_vm0, %v20529_v49  ;;  %v14687_v49 = vld [vmem:[%s23622_s1 + $0xd8] sm:$0xff] }
 0x13f   : > { %17010 = vmatmul.mubr.msk.f32.gmra.mrb[6].mxu0 %vm493_vm0, %v20545_v52  ;;  %v23870_v52 = vld [vmem:[#allocation40_spill] sm:$0xff] }
 0x140   : > { %17012 = vmatprep.mubr.msk.f32.mxu0 %vm493_vm0, %v20547_v53  ;;  %v18653_v53 = vpack.c.bf16 %v14687_v49, %v14686_v48  ;;  %v23892_v48 = vld [vmem:[#allocation62_spill] sm:$0xff]  ;;  %v23893_v49 = vld [vmem:[#allocation63_spill] sm:$0xff] }
 0x143   : > { %17013 = vmatmul.mubr.msk.f32.gmra.mrb[8].mxu0 %vm493_vm0, %v20553_v54  ;;  %v14720_v54 = vld [vmem:[%s23622_s1 + $0xe0] sm:$0xff] }
 0x144   : > { %17015 = vmatprep.mubr.msk.f32.mxu0 %vm493_vm0, %v20555_v55  ;;  %v14721_v55 = vld [vmem:[%s23622_s1 + $0xe8] sm:$0xff] }
 0x147   : > { %17016 = vmatmul.mubr.msk.f32.gmra.mrb[10].mxu0 %vm493_vm0, %v20561_v56  ;;  %v23871_v56 = vld [vmem:[#allocation41_spill] sm:$0xff] }
 0x148   : > { %17018 = vmatprep.mubr.msk.f32.mxu0 %vm493_vm0, %v20569_v59  ;;  %v23872_v59 = vld [vmem:[#allocation42_spill] sm:$0xff] }
 0x14b   : > { %17019 = vmatmul.mubr.msk.f32.gmra.mrb[12].mxu0 %vm493_vm0, %v20589_v62  ;;  %v18657_v62 = vpack.c.bf16 %v14721_v55, %v14720_v54  ;;  %v23896_v54 = vld [vmem:[#allocation66_spill] sm:$0xff]  ;;  %v23897_v55 = vld [vmem:[#allocation67_spill] sm:$0xff] }
 0x14c   : > { %17021 = vmatprep.mubr.msk.f32.mxu0 %vm493_vm0, %v20591_v63  ;;  %v23873_v63 = vld [vmem:[#allocation43_spill] sm:$0xff] }
 0x14f   : > { %17022 = vmatmul.mubr.msk.f32.gmra.mrb[14].mxu0 %vm493_vm0, %v20597_v0  ;;  %v23874_v0 = vld [vmem:[#allocation44_spill] sm:$0xff] }
 0x150   : > { %17024 = vmatprep.mubr.msk.f32.mxu0 %vm493_vm0, %v20599_v1  ;;  %v23875_v1 = vld [vmem:[#allocation45_spill] sm:$0xff] }
 0x153   : > { %17025 = vmatmul.mubr.msk.f32.gmra.mrb[16].mxu0 %vm493_vm0, %v20605_v2  ;;  %v23876_v2 = vld [vmem:[#allocation46_spill] sm:$0xff] }
 0x154   : > { %17027 = vmatprep.mubr.msk.f32.mxu0 %vm493_vm0, %v20607_v3  ;;  %v23877_v3 = vld [vmem:[#allocation47_spill] sm:$0xff] }
 0x157   : > { %17028 = vmatmul.mubr.msk.f32.gmra.mrb[18].mxu0 %vm493_vm0, %v20613_v4  ;;  %v23878_v4 = vld [vmem:[#allocation48_spill] sm:$0xff] }
 0x158   : > { %17030 = vmatprep.mubr.msk.f32.mxu0 %vm493_vm0, %v20615_v5  ;;  %v23879_v5 = vld [vmem:[#allocation49_spill] sm:$0xff] }
 0x15b   : > { %17031 = vmatmul.mubr.msk.f32.gmra.mrb[20].mxu0 %vm493_vm0, %v20621_v7  ;;  %v23880_v7 = vld [vmem:[#allocation50_spill] sm:$0xff] }
 0x15c   : > { %17033 = vmatprep.mubr.msk.f32.mxu0 %vm493_vm0, %v20623_v8  ;;  %v23881_v8 = vld [vmem:[#allocation51_spill] sm:$0xff] }
 0x15f   : > { %17034 = vmatmul.mubr.msk.f32.gmra.mrb[22].mxu0 %vm493_vm0, %v20629_v9  ;;  %v23882_v9 = vld [vmem:[#allocation52_spill] sm:$0xff] }
 0x160   : > { %17036 = vmatprep.mubr.msk.f32.mxu0 %vm493_vm0, %v23867_v41  ;;  %v23890_v41 = vld [vmem:[#allocation60_spill] sm:$0xff] }
 0x163   : > { %17037 = vmatmul.mubr.msk.f32.gmra.mrb[24].mxu0 %vm493_vm0, %v23868_v42  ;;  %v23891_v42 = vld [vmem:[#allocation61_spill] sm:$0xff] }
 0x164   : > { %17039 = vmatprep.mubr.msk.f32.mxu0 %vm493_vm0, %v20905_v35 }
 0x167   : > { %17040 = vmatmul.mubr.msk.f32.gmra.mrb[26].mxu0 %vm493_vm0, %v20911_v10 }
 0x168   : > { %17042 = vmatprep.mubr.msk.f32.mxu0 %vm493_vm0, %v20921_v11 }
 0x16b   : > { %17043 = vmatmul.mubr.msk.f32.gmra.mrb[28].mxu0 %vm493_vm0, %v23869_v46 }
 0x16c   : > { %17045 = vmatprep.mubr.msk.f32.mxu0 %vm493_vm0, %v21094_v43 }
 0x16f   : > { %17046 = vmatmul.mubr.msk.f32.gmra.mrb[30].mxu0 %vm493_vm0, %v21100_v47 }
 0x170   : > { %17056 = vmatprep.mubr.msk.f32.mxu0 %vm493_vm0, %v23870_v52  ;;  %v23894_v52 = vld [vmem:[#allocation64_spill] sm:$0xff] }
 0x173   : > { %17057 = vmatmul.mubr.msk.f32.vlgmr.msra.gmra.mrb[0].mxu0 %vm493_vm0, %v23871_v56  ;;  %v23898_v56 = vld [vmem:[#allocation69_spill] sm:$0xff] }
 0x174   : > { %18652 = vmatpush3.bf16.msra.mxu0 %v18649_v34  ;;  %17059 = vmatprep.mubr.msk.f32.mxu0 %vm493_vm0, %v23872_v59  ;;  %v23889_v34 = vld [vmem:[#allocation59_spill] sm:$0xff] }
 0x175   : > { %18654 = vmatprep.subr.bf16.mxu0 %v18653_v53 }
 0x177   : > { %17060 = vmatmul.mubr.msk.f32.gmra.mrb[2].mxu0 %vm493_vm0, %v23873_v63 }
 0x178   : > { %17062 = vmatprep.mubr.msk.f32.mxu0 %vm493_vm0, %v23874_v0  ;;  %18656 = vmatpush3.bf16.msra.mxu0 %v18653_v53  ;;  %v23895_v53 = vld [vmem:[#allocation65_spill] sm:$0xff] }
 0x179   : > { %18658 = vmatprep.subr.bf16.mxu0 %v18657_v62 }
 0x17b   : > { %17063 = vmatmul.mubr.msk.f32.gmra.mrb[4].mxu0 %vm493_vm0, %v23875_v1 }
 0x17c   : > { %17065 = vmatprep.mubr.msk.f32.mxu0 %vm493_vm0, %v23876_v2 }
 0x17f   : > { %17066 = vmatmul.mubr.msk.f32.gmra.mrb[6].mxu0 %vm493_vm0, %v23877_v3 }
 0x180   : > { %17068 = vmatprep.mubr.msk.f32.mxu0 %vm493_vm0, %v23878_v4 }
 0x183   : > { %17069 = vmatmul.mubr.msk.f32.gmra.mrb[8].mxu0 %vm493_vm0, %v23879_v5 }
 0x184   : > { %17071 = vmatprep.mubr.msk.f32.mxu0 %vm493_vm0, %v23880_v7 }
 0x187   : > { %17072 = vmatmul.mubr.msk.f32.gmra.mrb[10].mxu0 %vm493_vm0, %v23881_v8 }
 0x188   : > { %17074 = vmatprep.mubr.msk.f32.mxu0 %vm493_vm0, %v23882_v9 }
 0x18b   : > { %17075 = vmatmul.mubr.msk.f32.gmra.mrb[12].mxu0 %vm493_vm0, %v23883_v16 }
 0x18c   : > { %17077 = vmatprep.mubr.msk.f32.mxu0 %vm493_vm0, %v23884_v12 }
 0x18f   : > { %17078 = vmatmul.mubr.msk.f32.gmra.mrb[14].mxu0 %vm493_vm0, %v23885_v38 }
 0x190   : > { %17080 = vmatprep.mubr.msk.f32.mxu0 %vm493_vm0, %v23886_v36 }
 0x193   : > { %17081 = vmatmul.mubr.msk.f32.gmra.mrb[16].mxu0 %vm493_vm0, %v23887_v39 }
 0x194   : > { %17083 = vmatprep.mubr.msk.f32.mxu0 %vm493_vm0, %v23888_v14 }
 0x197   : > { %17084 = vmatmul.mubr.msk.f32.gmra.mrb[18].mxu0 %vm493_vm0, %v23889_v34 }
 0x198   : > { %17086 = vmatprep.mubr.msk.f32.mxu0 %vm493_vm0, %v23890_v41 }
 0x19b   : > { %17087 = vmatmul.mubr.msk.f32.gmra.mrb[20].mxu0 %vm493_vm0, %v23891_v42  ;;  %v21174_v42 = vld [vmem:[#allocation2 + $0x182] sm:$0xff] }
 0x19c   : > { %17089 = vmatprep.mubr.msk.f32.mxu0 %vm493_vm0, %v23892_v48  ;;  %23899 = vst [vmem:[#allocation36_spill] sm:$0xff] %v21174_v42  ;;  %v23900_v48 = vld [vmem:[#allocation70_spill] sm:$0xff] }
 0x19f   : > { %17090 = vmatmul.mubr.msk.f32.gmra.mrb[22].mxu0 %vm493_vm0, %v23893_v49 }
 0x1a0   : > { %17092 = vmatprep.mubr.msk.f32.mxu0 %vm493_vm0, %v23894_v52  ;;  %v21180_v52 = vld [vmem:[#allocation2 + $0x18a] sm:$0xff] }
 0x1a1   : > { %23901 = vst [vmem:[#allocation37_spill] sm:$0xff] %v21180_v52 }
 0x1a3   : > { %17093 = vmatmul.mubr.msk.f32.gmra.mrb[24].mxu0 %vm493_vm0, %v23895_v53 }
 0x1a4   : > { %17095 = vmatprep.mubr.msk.f32.mxu0 %vm493_vm0, %v23896_v54  ;;  %v14722_v54 = vld [vmem:[%s23622_s1 + $0xf0] sm:$0xff] }
 0x1a7   : > { %17096 = vmatmul.mubr.msk.f32.gmra.mrb[26].mxu0 %vm493_vm0, %v23897_v55  ;;  %v14723_v55 = vld [vmem:[%s23622_s1 + $0xf8] sm:$0xff] }
 0x1a8   : > { %17098 = vmatprep.mubr.msk.f32.mxu0 %vm493_vm0, %v23898_v56  ;;  %v14757_v56 = vld [vmem:[%s23622_s1 + $0x108] sm:$0xff] }
 0x1ab   : > { %17099 = vmatmul.mubr.msk.f32.gmra.mrb[28].mxu0 %vm493_vm0, %v23900_v48  ;;  %v18661_v48 = vpack.c.bf16 %v14723_v55, %v14722_v54  ;;  %v14861_v54 = vld [vmem:[%s23623_s2 + $0x48] sm:$0xff] }
 0x1ac   : > { %17101 = vmatprep.mubr.msk.f32.mxu0 %vm493_vm0, %v21174_v42  ;;  %v14756_v42 = vld [vmem:[%s23622_s1 + $0x100] sm:$0xff] }
 0x1af   : > { %17102 = vmatmul.mubr.msk.f32.gmra.mrb[30].mxu0 %vm493_vm0, %v21180_v52  ;;  %v18665_v52 = vpack.c.bf16 %v14757_v56, %v14756_v42 }
 0x1b0   : > { %17112 = vmatprep.mubr.msk.f32.mxu0 %vm493_vm0, %v20662_v32  ;;  %v3314_v32 = vld [vmem:[#allocation2 + $0x81] sm:$0xff]  ;;  %v21390_v42 = vpop.f32.mrb[0].mxu1 }
 0x1b3   : > { %17113 = vmatmul.mubr.msk.f32.vlgmr.msra.gmra.mrb[0].mxu0 %vm493_vm0, %v20670_v17  ;;  %v3324_v17 = vld [vmem:[#allocation2 + $0xf9] sm:$0xff] }
 0x1b4   : > { %18660 = vmatpush3.bf16.msra.mxu0 %v18657_v62  ;;  %17115 = vmatprep.mubr.msk.f32.mxu0 %vm493_vm0, %v20672_v37  ;;  %v3325_v37 = vld [vmem:[#allocation2 + $0x109] sm:$0xff]  ;;  %v3338_v62 = vld [vmem:[#allocation2 + $0x1a1] sm:$0xff] }
 0x1b5   : > { %18662 = vmatprep.subr.bf16.mxu0 %v18661_v48 }
 0x1b7   : > { %17116 = vmatmul.mubr.msk.f32.gmra.mrb[2].mxu0 %vm493_vm0, %v20679_v6  ;;  %v3326_v6 = vld [vmem:[#allocation2 + $0x111] sm:$0xff] }
 0x1b8   : > { %17118 = vmatprep.mubr.msk.f32.mxu0 %vm493_vm0, %v20681_v33  ;;  %18664 = vmatpush3.bf16.msra.mxu0 %v18661_v48  ;;  %v3327_v33 = vld [vmem:[#allocation2 + $0x121] sm:$0xff]  ;;  %v21392_v48 = vpop.f32.mrb[1].mxu1 }
 0x1b9   : > { %18666 = vmatprep.subr.bf16.mxu0 %v18665_v52 }
 0x1bb   : > { %17119 = vmatmul.mubr.msk.f32.gmra.mrb[4].mxu0 %vm493_vm0, %v20687_v19  ;;  %v3328_v19 = vld [vmem:[#allocation2 + $0x129] sm:$0xff] }
 0x1bc   : > { %17121 = vmatprep.mubr.msk.f32.mxu0 %vm493_vm0, %v20689_v24  ;;  %v3329_v24 = vld [vmem:[#allocation2 + $0x139] sm:$0xff] }
 0x1bf   : > { %17122 = vmatmul.mubr.msk.f32.gmra.mrb[6].mxu0 %vm493_vm0, %v20695_v31  ;;  %v3313_v31 = vld [vmem:[#allocation2 + $0x79] sm:$0xff] }
 0x1c0   : > { %17124 = vmatprep.mubr.msk.f32.mxu0 %vm493_vm0, %v20697_v30  ;;  %v3312_v30 = vld [vmem:[#allocation2 + $0x69] sm:$0xff] }
 0x1c3   : > { %17125 = vmatmul.mubr.msk.f32.gmra.mrb[8].mxu0 %vm493_vm0, %v20703_v61  ;;  %v3323_v61 = vld [vmem:[#allocation2 + $0xf1] sm:$0xff] }
 0x1c4   : > { %17127 = vmatprep.mubr.msk.f32.mxu0 %vm493_vm0, %v20705_v60  ;;  %v3322_v60 = vld [vmem:[#allocation2 + $0xe1] sm:$0xff] }
 0x1c7   : > { %17128 = vmatmul.mubr.msk.f32.gmra.mrb[10].mxu0 %vm493_vm0, %v20711_v29  ;;  %v3311_v29 = vld [vmem:[#allocation2 + $0x61] sm:$0xff] }
 0x1c8   : > { %17130 = vmatprep.mubr.msk.f32.mxu0 %vm493_vm0, %v20713_v28  ;;  %v3310_v28 = vld [vmem:[#allocation2 + $0x51] sm:$0xff] }
 0x1cb   : > { %17131 = vmatmul.mubr.msk.f32.gmra.mrb[12].mxu0 %vm493_vm0, %v20719_v58  ;;  %v3321_v58 = vld [vmem:[#allocation2 + $0xd9] sm:$0xff] }
 0x1cc   : > { %17133 = vmatprep.mubr.msk.f32.mxu0 %vm493_vm0, %v20721_v57  ;;  %v3320_v57 = vld [vmem:[#allocation2 + $0xc9] sm:$0xff] }
 0x1cf   : > { %17134 = vmatmul.mubr.msk.f32.gmra.mrb[14].mxu0 %vm493_vm0, %v20727_v27 }
 0x1d0   : > { %17136 = vmatprep.mubr.msk.f32.mxu0 %vm493_vm0, %v20729_v26  ;;  %v3309_v26 = vld [vmem:[#allocation2 + $0x49] sm:$0xff] }
 0x1d3   : > { %17137 = vmatmul.mubr.msk.f32.gmra.mrb[16].mxu0 %vm493_vm0, %v20735_v51  ;;  %v3319_v51 = vld [vmem:[#allocation2 + $0xc1] sm:$0xff] }
 0x1d4   : > { %17139 = vmatprep.mubr.msk.f32.mxu0 %vm493_vm0, %v20737_v50  ;;  %v3318_v50 = vld [vmem:[#allocation2 + $0xb1] sm:$0xff] }
 0x1d7   : > { %17140 = vmatmul.mubr.msk.f32.gmra.mrb[18].mxu0 %vm493_vm0, %v20743_v25  ;;  %v3308_v25 = vld [vmem:[#allocation2 + $0x39] sm:$0xff] }
 0x1d8   : > { %17142 = vmatprep.mubr.msk.f32.mxu0 %vm493_vm0, %v20745_v23  ;;  %v2947_v23 = vld [vmem:[#allocation2 + $0x198] sm:$0xff] }
 0x1db   : > { %17143 = vmatmul.mubr.msk.f32.gmra.mrb[20].mxu0 %vm493_vm0, %v20751_v45  ;;  %v3317_v45 = vld [vmem:[#allocation2 + $0xa9] sm:$0xff] }
 0x1dc   : > { %17145 = vmatprep.mubr.msk.f32.mxu0 %vm493_vm0, %v20753_v44  ;;  %v3316_v44 = vld [vmem:[#allocation2 + $0x99] sm:$0xff] }
 0x1df   : > { %17146 = vmatmul.mubr.msk.f32.gmra.mrb[22].mxu0 %vm493_vm0, %v20759_v22  ;;  %v2948_v22 = vld [vmem:[#allocation2 + $0x1a0] sm:$0xff] }
 0x1e0   : > { %17148 = vmatprep.mubr.msk.f32.mxu0 %vm493_vm0, %v20761_v21  ;;  %v3307_v21 = vld [vmem:[#allocation2 + $0x31] sm:$0xff] }
 0x1e3   : > { %17149 = vmatmul.mubr.msk.f32.gmra.mrb[24].mxu0 %vm493_vm0, %v20777_v18  ;;  %v14758_v18 = vld [vmem:[%s23622_s1 + $0x110] sm:$0xff] }
 0x1e4   : > { %17151 = vmatprep.mubr.msk.f32.mxu0 %vm493_vm0, %v20779_v15  ;;  %v14759_v15 = vld [vmem:[%s23622_s1 + $0x118] sm:$0xff] }
 0x1e5   : > { %v18669_v27 = vpack.c.bf16 %v14759_v15, %v14758_v18 }
 0x1e7   : > { %17152 = vmatmul.mubr.msk.f32.gmra.mrb[26].mxu0 %vm493_vm0, %v20785_v40  ;;  %v3315_v40 = vld [vmem:[#allocation2 + $0x91] sm:$0xff] }
 0x1e8   : > { %17154 = vmatprep.mubr.msk.f32.mxu0 %vm493_vm0, %v21014_v13  ;;  %v3330_v13 = vld [vmem:[#allocation2 + $0x141] sm:$0xff] }
 0x1eb   : > { %17155 = vmatmul.mubr.msk.f32.gmra.mrb[28].mxu0 %vm493_vm0, %v21020_v20  ;;  %v3337_v20 = vld [vmem:[#allocation2 + $0x199] sm:$0xff] }
 0x1ec   : > { %17157 = vmatprep.mubr.msk.f32.mxu0 %vm493_vm0, %v2947_v23 }
 0x1ef   : > { %17158 = vmatmul.mubr.msk.f32.gmra.mrb[30].mxu0 %vm493_vm0, %v2948_v22 }
 0x1f0   : > { %17168 = vmatprep.mubr.msk.f32.mxu0 %vm493_vm0, %v3307_v21 }
 0x1f3   : > { %17169 = vmatmul.mubr.msk.f32.vlgmr.msra.gmra.mrb[0].mxu0 %vm493_vm0, %v3308_v25 }
 0x1f4   : > { %18668 = vmatpush3.bf16.msra.mxu0 %v18665_v52  ;;  %17171 = vmatprep.mubr.msk.f32.mxu0 %vm493_vm0, %v3309_v26 }
 0x1f5   : > { %18670 = vmatprep.subr.bf16.mxu0 %v18669_v27 }
 0x1f7   : > { %17172 = vmatmul.mubr.msk.f32.gmra.mrb[2].mxu0 %vm493_vm0, %v3310_v28 }
 0x1f8   : > { %17174 = vmatprep.mubr.msk.f32.mxu0 %vm493_vm0, %v3311_v29  ;;  %18672 = vmatpush3.bf16.msra.mxu0 %v18669_v27 }
 0x1fb   : > { %17175 = vmatmul.mubr.msk.f32.gmra.mrb[4].mxu0 %vm493_vm0, %v3312_v30 }
 0x1fc   : > { %17177 = vmatprep.mubr.msk.f32.mxu0 %vm493_vm0, %v3313_v31 }
 0x1ff   : > { %17178 = vmatmul.mubr.msk.f32.gmra.mrb[6].mxu0 %vm493_vm0, %v3314_v32 }
 0x200   : > { %17180 = vmatprep.mubr.msk.f32.mxu0 %vm493_vm0, %v3315_v40 }
 0x203   : > { %17181 = vmatmul.mubr.msk.f32.gmra.mrb[8].mxu0 %vm493_vm0, %v3316_v44 }
 0x204   : > { %17183 = vmatprep.mubr.msk.f32.mxu0 %vm493_vm0, %v3317_v45 }
 0x207   : > { %17184 = vmatmul.mubr.msk.f32.gmra.mrb[10].mxu0 %vm493_vm0, %v3318_v50 }
 0x208   : > { %17186 = vmatprep.mubr.msk.f32.mxu0 %vm493_vm0, %v3319_v51 }
 0x20b   : > { %17187 = vmatmul.mubr.msk.f32.gmra.mrb[12].mxu0 %vm493_vm0, %v3320_v57 }
 0x20c   : > { %17189 = vmatprep.mubr.msk.f32.mxu0 %vm493_vm0, %v3321_v58 }
 0x20f   : > { %17190 = vmatmul.mubr.msk.f32.gmra.mrb[14].mxu0 %vm493_vm0, %v3322_v60 }
 0x210   : > { %17192 = vmatprep.mubr.msk.f32.mxu0 %vm493_vm0, %v3323_v61 }
 0x213   : > { %17193 = vmatmul.mubr.msk.f32.gmra.mrb[16].mxu0 %vm493_vm0, %v3324_v17 }
 0x214   : > { %17195 = vmatprep.mubr.msk.f32.mxu0 %vm493_vm0, %v3325_v37 }
 0x217   : > { %17196 = vmatmul.mubr.msk.f32.gmra.mrb[18].mxu0 %vm493_vm0, %v3326_v6 }
 0x218   : > { %17198 = vmatprep.mubr.msk.f32.mxu0 %vm493_vm0, %v3327_v33 }
 0x21b   : > { %17199 = vmatmul.mubr.msk.f32.gmra.mrb[20].mxu0 %vm493_vm0, %v3328_v19 }
 0x21c   : > { %17201 = vmatprep.mubr.msk.f32.mxu0 %vm493_vm0, %v3329_v24 }
 0x21f   : > { %17202 = vmatmul.mubr.msk.f32.gmra.mrb[22].mxu0 %vm493_vm0, %v3330_v13 }
 0x220   : > { %17204 = vmatprep.mubr.msk.f32.mxu0 %vm493_vm0, %v20905_v35  ;;  %v23904_v35 = vld [vmem:[#allocation64_spill] sm:$0xff] }
 0x223   : > { %17205 = vmatmul.mubr.msk.f32.gmra.mrb[24].mxu0 %vm493_vm0, %v20911_v10  ;;  %v23902_v10 = vld [vmem:[#allocation61_spill] sm:$0xff] }
 0x224   : > { %17207 = vmatprep.mubr.msk.f32.mxu0 %vm493_vm0, %v20921_v11  ;;  %v23903_v11 = vld [vmem:[#allocation62_spill] sm:$0xff] }
 0x227   : > { %17208 = vmatmul.mubr.msk.f32.gmra.mrb[26].mxu0 %vm493_vm0, %v23869_v46  ;;  %v23906_v46 = vld [vmem:[#allocation67_spill] sm:$0xff] }
 0x228   : > { %17210 = vmatprep.mubr.msk.f32.mxu0 %vm493_vm0, %v21094_v43  ;;  %v23905_v43 = vld [vmem:[#allocation66_spill] sm:$0xff] }
 0x22b   : > { %17211 = vmatmul.mubr.msk.f32.gmra.mrb[28].mxu0 %vm493_vm0, %v21100_v47  ;;  %v23907_v47 = vld [vmem:[#allocation69_spill] sm:$0xff] }
 0x22c   : > { %17213 = vmatprep.mubr.msk.f32.mxu0 %vm493_vm0, %v3337_v20 }
 0x22f   : > { %17214 = vmatmul.mubr.msk.f32.gmra.mrb[30].mxu0 %vm493_vm0, %v3338_v62 }
 0x230   : > { %17224 = vmatprep.mubr.msk.f32.mxu0 %vm493_vm0, %v23872_v59  ;;  %v23908_v59 = vld [vmem:[#allocation70_spill] sm:$0xff] }
 0x233   : > { %17225 = vmatmul.mubr.msk.f32.vlgmr.msra.gmra.mrb[0].mxu0 %vm493_vm0, %v23873_v63  ;;  %v23909_v63 = vld [vmem:[#allocation36_spill] sm:$0xff] }
 0x234   : > { %17227 = vmatprep.mubr.msk.f32.mxu0 %vm493_vm0, %v23874_v0  ;;  %v3727_v0 = vld [vmem:[#allocation2 + $0x19a] sm:$0xff] }
 0x237   : > { %17228 = vmatmul.mubr.msk.f32.gmra.mrb[2].mxu0 %vm493_vm0, %v23875_v1  ;;  %v23910_v1 = vld [vmem:[#allocation37_spill] sm:$0xff] }
 0x238   : > { %17230 = vmatprep.mubr.msk.f32.mxu0 %vm493_vm0, %v23876_v2  ;;  %v3728_v2 = vld [vmem:[#allocation2 + $0x1a2] sm:$0xff] }
 0x23b   : > { %17231 = vmatmul.mubr.msk.f32.gmra.mrb[4].mxu0 %vm493_vm0, %v23877_v3  ;;  %v14792_v3 = vld [vmem:[%s23623_s2 + $0x20] sm:$0xff] }
 0x23c   : > { %17233 = vmatprep.mubr.msk.f32.mxu0 %vm493_vm0, %v23878_v4  ;;  %v14793_v4 = vld [vmem:[%s23623_s2 + $0x28] sm:$0xff] }
 0x23f   : > { %17234 = vmatmul.mubr.msk.f32.gmra.mrb[6].mxu0 %vm493_vm0, %v23879_v5  ;;  %v18673_v5 = vpack.c.bf16 %v14793_v4, %v14792_v3 }
 0x240   : > { %17236 = vmatprep.mubr.msk.f32.mxu0 %vm493_vm0, %v23880_v7  ;;  %v14794_v7 = vld [vmem:[%s23623_s2 + $0x30] sm:$0xff] }
 0x241   : > { %18674 = vmatprep.subr.bf16.mxu1 %v18673_v5 }
 0x242   : > { %18676 = vmatpush3.bf16.msra.mxu1 %v18673_v5 }
 0x243   : > { %17237 = vmatmul.mubr.msk.f32.gmra.mrb[8].mxu0 %vm493_vm0, %v23881_v8  ;;  %v14795_v8 = vld [vmem:[%s23623_s2 + $0x38] sm:$0xff] }
 0x244   : > { %17239 = vmatprep.mubr.msk.f32.mxu0 %vm493_vm0, %v23882_v9  ;;  %v18677_v9 = vpack.c.bf16 %v14795_v8, %v14794_v7 }
 0x246   : > { %18678 = vmatprep.subr.bf16.mxu1 %v18677_v9 }
 0x247   : > { %17240 = vmatmul.mubr.msk.f32.gmra.mrb[10].mxu0 %vm493_vm0, %v23883_v16  ;;  %18680 = vmatpush3.bf16.msra.mxu1 %v18677_v9  ;;  %v4187_v16 = vld [vmem:[#allocation2 + $0x1] sm:$0xff] }
 0x248   : > { %17242 = vmatprep.mubr.msk.f32.mxu0 %vm493_vm0, %v23884_v12  ;;  %17280 = vmatprep.mubr.msk.f32.mxu1 %vm493_vm0, %v4187_v16  ;;  %v4188_v12 = vld [vmem:[#allocation2 + $0x9] sm:$0xff] }
 0x24a   : > { %17281 = vmatmul.mubr.msk.f32.vlgmr.msra.gmra.mrb[4].mxu1 %vm493_vm0, %v4188_v12 }
 0x24b   : > { %17243 = vmatmul.mubr.msk.f32.gmra.mrb[12].mxu0 %vm493_vm0, %v23885_v38  ;;  %v4183_v38 = vld [vmem:[%s23623_s2] sm:$0xff] }
 0x24c   : > { %17245 = vmatprep.mubr.msk.f32.mxu0 %vm493_vm0, %v23886_v36  ;;  %v4184_v36 = vld [vmem:[%s23623_s2 + $0x8] sm:$0xff] }
 0x24f   : > { %17246 = vmatmul.mubr.msk.f32.gmra.mrb[14].mxu0 %vm493_vm0, %v23887_v39  ;;  %v18681_v39 = vpack.c.bf16 %v4184_v36, %v4183_v38 }
 0x250   : > { %17248 = vmatprep.mubr.msk.f32.mxu0 %vm493_vm0, %v23888_v14  ;;  %v4185_v14 = vld [vmem:[%s23623_s2 + $0x10] sm:$0xff] }
 0x251   : > { %18682 = vmatprep.subr.bf16.mxu1 %v18681_v39 }
 0x252   : > { %18684 = vmatpush3.bf16.msra.mxu1 %v18681_v39 }
 0x253   : > { %17249 = vmatmul.mubr.msk.f32.gmra.mrb[16].mxu0 %vm493_vm0, %v23889_v34  ;;  %v4186_v34 = vld [vmem:[%s23623_s2 + $0x18] sm:$0xff] }
 0x254   : > { %17251 = vmatprep.mubr.msk.f32.mxu0 %vm493_vm0, %v23890_v41  ;;  %v18685_v41 = vpack.c.bf16 %v4186_v34, %v4185_v14 }
 0x256   : > { %18686 = vmatprep.subr.bf16.mxu1 %v18685_v41 }
 0x257   : > { %17252 = vmatmul.mubr.msk.f32.gmra.mrb[18].mxu0 %vm493_vm0, %v23902_v10  ;;  %18688 = vmatpush3.bf16.msra.mxu1 %v18685_v41 }
 0x258   : > { %17254 = vmatprep.mubr.msk.f32.mxu0 %vm493_vm0, %v23903_v11 }
 0x25b   : > { %17255 = vmatmul.mubr.msk.f32.gmra.mrb[20].mxu0 %vm493_vm0, %v23893_v49  ;;  %v21394_v49 = vpop.f32.mrb[2].mxu1 }
 0x25c   : > { %17257 = vmatprep.mubr.msk.f32.mxu0 %vm493_vm0, %v23904_v35  ;;  %v21396_v52 = vpop.f32.mrb[3].mxu1 }
 0x25f   : > { %17258 = vmatmul.mubr.msk.f32.gmra.mrb[22].mxu0 %vm493_vm0, %v23895_v53  ;;  %v14860_v53 = vld [vmem:[%s23623_s2 + $0x40] sm:$0xff] }
 0x260   : > { %17260 = vmatprep.mubr.msk.f32.mxu0 %vm493_vm0, %v23905_v43  ;;  %v21404_v55 = vpack.c.bf16 %v14861_v54, %v14860_v53 }
 0x262   : > { %18690 = vmatprep.subr.bf16.mxu1 %v21404_v55 }
 0x263   : > { %17261 = vmatmul.mubr.msk.f32.gmra.mrb[24].mxu0 %vm493_vm0, %v23906_v46 }
 0x264   : > { %17263 = vmatprep.mubr.msk.f32.mxu0 %vm493_vm0, %v23907_v47 }
 0x267   : > { %17264 = vmatmul.mubr.msk.f32.gmra.mrb[26].mxu0 %vm493_vm0, %v23908_v59 }
 0x268   : > { %17266 = vmatprep.mubr.msk.f32.mxu0 %vm493_vm0, %v23909_v63 }
 0x26b   : > { %17267 = vmatmul.mubr.msk.f32.gmra.mrb[28].mxu0 %vm493_vm0, %v23910_v1 }
 0x26c   : > { %17269 = vmatprep.mubr.msk.f32.mxu0 %vm493_vm0, %v3727_v0 }
 0x26f   : > { %17270 = vmatmul.mubr.msk.f32.gmra.mrb[30].mxu0 %vm493_vm0, %v3728_v2 }
 0x306   : > { %v17226_v56 = vpop.f32.mrb[0].mxu0 }
 0x307   : > { %v4088_v23 = vmax.f32 %v17226_v56, 0.0  ;;  %v3896_v22 = vpop.f32.mrb[1].mxu0 }
 0x308   : > { %v4087_v21 = vmax.f32 %v3896_v22, 0.0 }
 0x309   : > { %4120 = vst.msk [vmem:[#allocation2 + $0x21] sm:$0xff] %vm493_vm0, %v4088_v23 }
 0x30a   : > { %4119 = vst.msk [vmem:[#allocation2 + $0x19] sm:$0xff] %vm493_vm0, %v4087_v21  ;;  %v17229_v18 = vpop.f32.mrb[2].mxu0 }
 0x30b   : > { %v4090_v15 = vmax.f32 %v17229_v18, 0.0  ;;  %v3906_v25 = vpop.f32.mrb[3].mxu0 }
 0x30c   : > { %v4089_v26 = vmax.f32 %v3906_v25, 0.0 }
 0x30d   : > { %4122 = vst.msk [vmem:[#allocation2 + $0x39] sm:$0xff] %vm493_vm0, %v4090_v15 }
 0x30e   : > { %4121 = vst.msk [vmem:[#allocation2 + $0x31] sm:$0xff] %vm493_vm0, %v4089_v26  ;;  %v17232_v27 = vpop.f32.mrb[4].mxu0 }
 0x30f   : > { %v4092_v28 = vmax.f32 %v17232_v27, 0.0  ;;  %v3916_v29 = vpop.f32.mrb[5].mxu0 }
 0x310   : > { %v4091_v30 = vmax.f32 %v3916_v29, 0.0  ;;  %v21417_v40 = vld [vmem:[#allocation2 + $0x21] sm:$0xff] }
 0x311   : > { %4124 = vst.msk [vmem:[#allocation2 + $0x51] sm:$0xff] %vm493_vm0, %v4092_v28  ;;  %v21412_v31 = vld [vmem:[#allocation2 + $0x19] sm:$0xff] }
 0x312   : > { %4123 = vst.msk [vmem:[#allocation2 + $0x49] sm:$0xff] %vm493_vm0, %v4091_v30  ;;  %v17235_v32 = vpop.f32.mrb[6].mxu0  ;;  %17283 = vmatprep.mubr.msk.f32.mxu1 %vm493_vm0, %v21412_v31 }
 0x313   : > { %v4094_v44 = vmax.f32 %v17235_v32, 0.0  ;;  %v3926_v45 = vpop.f32.mrb[7].mxu0  ;;  %17284 = vmatmul.mubr.msk.f32.gmra.mrb[6].mxu1 %vm493_vm0, %v21417_v40 }
 0x314   : > { %v4093_v50 = vmax.f32 %v3926_v45, 0.0  ;;  %v21427_v58 = vld [vmem:[#allocation2 + $0x39] sm:$0xff] }
 0x315   : > { %4126 = vst.msk [vmem:[#allocation2 + $0x69] sm:$0xff] %vm493_vm0, %v4094_v44  ;;  %v21422_v51 = vld [vmem:[#allocation2 + $0x31] sm:$0xff] }
 0x316   : > { %4125 = vst.msk [vmem:[#allocation2 + $0x61] sm:$0xff] %vm493_vm0, %v4093_v50  ;;  %v17238_v57 = vpop.f32.mrb[8].mxu0  ;;  %17286 = vmatprep.mubr.msk.f32.mxu1 %vm493_vm0, %v21422_v51 }
 0x317   : > { %v4096_v60 = vmax.f32 %v17238_v57, 0.0  ;;  %v3936_v61 = vpop.f32.mrb[9].mxu0  ;;  %17287 = vmatmul.mubr.msk.f32.gmra.mrb[8].mxu1 %vm493_vm0, %v21427_v58 }
 0x318   : > { %v4095_v17 = vmax.f32 %v3936_v61, 0.0  ;;  %v21437_v33 = vld [vmem:[#allocation2 + $0x51] sm:$0xff] }
 0x319   : > { %4128 = vst.msk [vmem:[#allocation2 + $0x81] sm:$0xff] %vm493_vm0, %v4096_v60  ;;  %v21432_v37 = vld [vmem:[#allocation2 + $0x49] sm:$0xff] }
 0x31a   : > { %4127 = vst.msk [vmem:[#allocation2 + $0x79] sm:$0xff] %vm493_vm0, %v4095_v17  ;;  %v17241_v6 = vpop.f32.mrb[10].mxu0  ;;  %17289 = vmatprep.mubr.msk.f32.mxu1 %vm493_vm0, %v21432_v37 }
 0x31b   : > { %v4098_v19 = vmax.f32 %v17241_v6, 0.0  ;;  %v3946_v24 = vpop.f32.mrb[11].mxu0  ;;  %17290 = vmatmul.mubr.msk.f32.gmra.mrb[10].mxu1 %vm493_vm0, %v21437_v33 }
 0x31c   : > { %v4097_v13 = vmax.f32 %v3946_v24, 0.0  ;;  %v21447_v10 = vld [vmem:[#allocation2 + $0x69] sm:$0xff] }
 0x31d   : > { %4130 = vst.msk [vmem:[#allocation2 + $0x99] sm:$0xff] %vm493_vm0, %v4098_v19  ;;  %v21442_v20 = vld [vmem:[#allocation2 + $0x61] sm:$0xff] }
 0x31e   : > { %4129 = vst.msk [vmem:[#allocation2 + $0x91] sm:$0xff] %vm493_vm0, %v4097_v13  ;;  %v17244_v62 = vpop.f32.mrb[12].mxu0  ;;  %17292 = vmatprep.mubr.msk.f32.mxu1 %vm493_vm0, %v21442_v20 }
 0x31f   : > { %v4100_v11 = vmax.f32 %v17244_v62, 0.0  ;;  %v3956_v35 = vpop.f32.mrb[13].mxu0  ;;  %17293 = vmatmul.mubr.msk.f32.gmra.mrb[12].mxu1 %vm493_vm0, %v21447_v10 }
 0x320   : > { %v4099_v43 = vmax.f32 %v3956_v35, 0.0  ;;  %v21457_v59 = vld [vmem:[#allocation2 + $0x81] sm:$0xff] }
 0x321   : > { %4132 = vst.msk [vmem:[#allocation2 + $0xb1] sm:$0xff] %vm493_vm0, %v4100_v11  ;;  %v21452_v46 = vld [vmem:[#allocation2 + $0x79] sm:$0xff] }
 0x322   : > { %4131 = vst.msk [vmem:[#allocation2 + $0xa9] sm:$0xff] %vm493_vm0, %v4099_v43  ;;  %v17247_v47 = vpop.f32.mrb[14].mxu0  ;;  %17295 = vmatprep.mubr.msk.f32.mxu1 %vm493_vm0, %v21452_v46 }
 0x323   : > { %v4102_v63 = vmax.f32 %v17247_v47, 0.0  ;;  %v3966_v0 = vpop.f32.mrb[15].mxu0  ;;  %17296 = vmatmul.mubr.msk.f32.gmra.mrb[14].mxu1 %vm493_vm0, %v21457_v59 }
 0x324   : > { %v4101_v1 = vmax.f32 %v3966_v0, 0.0  ;;  %v21467_v4 = vld [vmem:[#allocation2 + $0x99] sm:$0xff] }
 0x325   : > { %4134 = vst.msk [vmem:[#allocation2 + $0xc9] sm:$0xff] %vm493_vm0, %v4102_v63  ;;  %v21462_v2 = vld [vmem:[#allocation2 + $0x91] sm:$0xff] }
 0x326   : > { %4133 = vst.msk [vmem:[#allocation2 + $0xc1] sm:$0xff] %vm493_vm0, %v4101_v1  ;;  %v17250_v3 = vpop.f32.mrb[16].mxu0  ;;  %17298 = vmatprep.mubr.msk.f32.mxu1 %vm493_vm0, %v21462_v2 }
 0x327   : > { %v4104_v5 = vmax.f32 %v17250_v3, 0.0  ;;  %v3976_v7 = vpop.f32.mrb[17].mxu0  ;;  %17299 = vmatmul.mubr.msk.f32.gmra.mrb[16].mxu1 %vm493_vm0, %v21467_v4 }
 0x328   : > { %v4103_v8 = vmax.f32 %v3976_v7, 0.0  ;;  %v21477_v12 = vld [vmem:[#allocation2 + $0xb1] sm:$0xff] }
 0x329   : > { %4136 = vst.msk [vmem:[#allocation2 + $0xe1] sm:$0xff] %vm493_vm0, %v4104_v5  ;;  %v21472_v9 = vld [vmem:[#allocation2 + $0xa9] sm:$0xff] }
 0x32a   : > { %4135 = vst.msk [vmem:[#allocation2 + $0xd9] sm:$0xff] %vm493_vm0, %v4103_v8  ;;  %v17253_v16 = vpop.f32.mrb[18].mxu0  ;;  %17301 = vmatprep.mubr.msk.f32.mxu1 %vm493_vm0, %v21472_v9  ;;  %v4151_v8 = vld [vmem:[#allocation2] sm:$0xff] }
 0x32b   : > { %v4106_v38 = vmax.f32 %v17253_v16, 0.0  ;;  %v3986_v36 = vpop.f32.mrb[19].mxu0  ;;  %17302 = vmatmul.mubr.msk.f32.gmra.mrb[18].mxu1 %vm493_vm0, %v21477_v12  ;;  %v14862_v16 = vld [vmem:[%s23623_s2 + $0x50] sm:$0xff] }
 0x32c   : > { %v4105_v39 = vmax.f32 %v3986_v36, 0.0  ;;  %v21487_v41 = vld [vmem:[#allocation2 + $0xc9] sm:$0xff] }
 0x32d   : > { %4138 = vst.msk [vmem:[#allocation2 + $0xf9] sm:$0xff] %vm493_vm0, %v4106_v38  ;;  %v21482_v14 = vld [vmem:[#allocation2 + $0xc1] sm:$0xff]  ;;  %v14863_v38 = vld [vmem:[%s23623_s2 + $0x58] sm:$0xff] }
 0x32e   : > { %4137 = vst.msk [vmem:[#allocation2 + $0xf1] sm:$0xff] %vm493_vm0, %v4105_v39  ;;  %v17256_v34 = vpop.f32.mrb[20].mxu0  ;;  %17304 = vmatprep.mubr.msk.f32.mxu1 %vm493_vm0, %v21482_v14  ;;  %v4152_v36 = vld [vmem:[#allocation2 + $0x8] sm:$0xff]  ;;  %v18693_v39 = vpack.c.bf16 %v14863_v38, %v14862_v16 }
 0x32f   : > { %v4108_v53 = vmax.f32 %v17256_v34, 0.0  ;;  %v3996_v54 = vpop.f32.mrb[21].mxu0  ;;  %17305 = vmatmul.mubr.msk.f32.gmra.mrb[20].mxu1 %vm493_vm0, %v21487_v41  ;;  %v14896_v34 = vld [vmem:[%s23623_s2 + $0x60] sm:$0xff] }
 0x330   : > { %v4107_v56 = vmax.f32 %v3996_v54, 0.0  ;;  %v21497_v21 = vld [vmem:[#allocation2 + $0xe1] sm:$0xff]  ;;  %v21577_v54 = vld [vmem:[#allocation2 + $0x18] sm:$0xff] }
 0x331   : > { %4140 = vst.msk [vmem:[#allocation2 + $0x111] sm:$0xff] %vm493_vm0, %v4108_v53  ;;  %v21492_v23 = vld [vmem:[#allocation2 + $0xd9] sm:$0xff]  ;;  %v14897_v53 = vld [vmem:[%s23623_s2 + $0x68] sm:$0xff] }
 0x332   : > { %4139 = vst.msk [vmem:[#allocation2 + $0x109] sm:$0xff] %vm493_vm0, %v4107_v56  ;;  %v17259_v22 = vpop.f32.mrb[22].mxu0  ;;  %17307 = vmatprep.mubr.msk.f32.mxu1 %vm493_vm0, %v21492_v23  ;;  %v21582_v56 = vpack.c.bf16 %v14897_v53, %v14896_v34  ;;  %v14898_v34 = vld [vmem:[%s23623_s2 + $0x70] sm:$0xff]  ;;  %v14899_v53 = vld [vmem:[%s23623_s2 + $0x78] sm:$0xff] }
 0x333   : > { %v4110_v18 = vmax.f32 %v17259_v22, 0.0  ;;  %v4006_v15 = vpop.f32.mrb[23].mxu0  ;;  %17308 = vmatmul.mubr.msk.f32.gmra.mrb[22].mxu1 %vm493_vm0, %v21497_v21  ;;  %v21584_v22 = vld [vmem:[#allocation2 + $0x20] sm:$0xff] }
 0x334   : > { %v4109_v25 = vmax.f32 %v4006_v15, 0.0  ;;  %v21507_v28 = vld [vmem:[#allocation2 + $0xf9] sm:$0xff] }
 0x335   : > { %4142 = vst.msk [vmem:[#allocation2 + $0x129] sm:$0xff] %vm493_vm0, %v4110_v18  ;;  %v21502_v26 = vld [vmem:[#allocation2 + $0xf1] sm:$0xff] }
 0x336   : > { %4141 = vst.msk [vmem:[#allocation2 + $0x121] sm:$0xff] %vm493_vm0, %v4109_v25  ;;  %v17262_v27 = vpop.f32.mrb[24].mxu0  ;;  %17310 = vmatprep.mubr.msk.f32.mxu1 %vm493_vm0, %v21502_v26  ;;  %v21588_v18 = vld [vmem:[#allocation2 + $0x30] sm:$0xff]  ;;  %v21593_v15 = vld [vmem:[#allocation2 + $0x38] sm:$0xff] }
 0x337   : > { %v4112_v29 = vmax.f32 %v17262_v27, 0.0  ;;  %v4016_v30 = vpop.f32.mrb[25].mxu0  ;;  %17311 = vmatmul.mubr.msk.f32.gmra.mrb[24].mxu1 %vm493_vm0, %v21507_v28  ;;  %v21601_v25 = vld [vmem:[#allocation2 + $0x50] sm:$0xff]  ;;  %v21605_v27 = vld [vmem:[#allocation2 + $0x60] sm:$0xff] }
 0x338   : > { %v4111_v32 = vmax.f32 %v4016_v30, 0.0  ;;  %v21517_v50 = vld [vmem:[#allocation2 + $0x111] sm:$0xff] }
 0x339   : > { %4144 = vst.msk [vmem:[#allocation2 + $0x141] sm:$0xff] %vm493_vm0, %v4112_v29  ;;  %v21512_v44 = vld [vmem:[#allocation2 + $0x109] sm:$0xff]  ;;  %v21613_v30 = vld [vmem:[#allocation2 + $0x78] sm:$0xff] }
 0x33a   : > { %4143 = vst.msk [vmem:[#allocation2 + $0x139] sm:$0xff] %vm493_vm0, %v4111_v32  ;;  %v17265_v45 = vpop.f32.mrb[26].mxu0  ;;  %17313 = vmatprep.mubr.msk.f32.mxu1 %vm493_vm0, %v21512_v44  ;;  %v21609_v29 = vld [vmem:[#allocation2 + $0x68] sm:$0xff]  ;;  %v21617_v32 = vld [vmem:[#allocation2 + $0x80] sm:$0xff] }
 0x33b   : > { %v4114_v57 = vmax.f32 %v17265_v45, 0.0  ;;  %v4026_v60 = vpop.f32.mrb[27].mxu0  ;;  %17314 = vmatmul.mubr.msk.f32.gmra.mrb[26].mxu1 %vm493_vm0, %v21517_v50  ;;  %v21621_v45 = vld [vmem:[#allocation2 + $0x90] sm:$0xff] }
 0x33c   : > { %v4113_v61 = vmax.f32 %v4026_v60, 0.0  ;;  %v21527_v19 = vld [vmem:[#allocation2 + $0x129] sm:$0xff] }
 0x33d   : > { %4146 = vst.msk [vmem:[#allocation2 + $0x159] sm:$0xff] %vm493_vm0, %v4114_v57  ;;  %v21522_v17 = vld [vmem:[#allocation2 + $0x121] sm:$0xff]  ;;  %v21625_v57 = vld [vmem:[#allocation2 + $0x98] sm:$0xff] }
 0x33e   : > { %4145 = vst.msk [vmem:[#allocation2 + $0x151] sm:$0xff] %vm493_vm0, %v4113_v61  ;;  %v17268_v6 = vpop.f32.mrb[28].mxu0  ;;  %17316 = vmatprep.mubr.msk.f32.mxu1 %vm493_vm0, %v21522_v17  ;;  %v21629_v60 = vld [vmem:[#allocation2 + $0xa8] sm:$0xff]  ;;  %v21633_v61 = vld [vmem:[#allocation2 + $0xb0] sm:$0xff] }
 0x33f   : > { %v19293_v24 = vadd.f32 %v17268_v6, %v21390_v42  ;;  %v4036_v13 = vpop.f32.mrb[29].mxu0  ;;  %17317 = vmatmul.mubr.msk.f32.gmra.mrb[28].mxu1 %vm493_vm0, %v21527_v19  ;;  %v21637_v6 = vld [vmem:[#allocation2 + $0xc0] sm:$0xff] }
 0x340   : > { %v19294_v62 = vadd.f32 %v4036_v13, %v21392_v48  ;;  %v21537_v63 = vld [vmem:[#allocation2 + $0x141] sm:$0xff]  ;;  %v21645_v13 = vld [vmem:[#allocation2 + $0xd8] sm:$0xff] }
 0x341   : > { %v4116_v11 = vmax.f32 %v19293_v24, 0.0  ;;  %v21533_v35 = vld [vmem:[#allocation2 + $0x139] sm:$0xff]  ;;  %23911 = vst [vmem:[#allocation68_spill] sm:$0xff] %v21537_v63  ;;  %v21641_v24 = vld [vmem:[#allocation2 + $0xc8] sm:$0xff] }
 0x342   : > { %v4115_v43 = vmax.f32 %v19294_v62, 0.0  ;;  %v17271_v47 = vpop.f32.mrb[30].mxu0  ;;  %17319 = vmatprep.mubr.msk.f32.mxu1 %vm493_vm0, %v21533_v35  ;;  %v21649_v62 = vld [vmem:[#allocation2 + $0xe0] sm:$0xff] }
 0x343   : > { %4148 = vst.msk [vmem:[#allocation2 + $0x171] sm:$0xff] %vm493_vm0, %v4116_v11  ;;  %v19295_v42 = vadd.f32 %v17271_v47, %v21394_v49  ;;  %v4046_v0 = vpop.f32.mrb[31].mxu0  ;;  %17320 = vmatmul.mubr.msk.f32.gmra.mrb[30].mxu1 %vm493_vm0, %v21537_v63  ;;  %v21653_v11 = vld [vmem:[#allocation2 + $0xf0] sm:$0xff]  ;;  %v21661_v47 = vld [vmem:[#allocation2 + $0x108] sm:$0xff]  ;;  %v21715_v63 = vld [vmem:[#allocation2 + $0x1a] sm:$0xff] }
 0x344   : > { %4147 = vst.msk [vmem:[#allocation2 + $0x169] sm:$0xff] %vm493_vm0, %v4115_v43  ;;  %v19296_v48 = vadd.f32 %v4046_v0, %v21396_v52  ;;  %v21549_v7 = vld [vmem:[#allocation2 + $0x159] sm:$0xff] }
 0x345   : > { %v4118_v1 = vmax.f32 %v19295_v42, 0.0  ;;  %v21545_v3 = vld [vmem:[#allocation2 + $0x151] sm:$0xff]  ;;  %23913 = vst [vmem:[#allocation41_spill] sm:$0xff] %v21549_v7  ;;  %v21669_v0 = vld [vmem:[#allocation2 + $0x120] sm:$0xff] }
 0x346   : > { %23912 = vst [vmem:[#allocation40_spill] sm:$0xff] %v21545_v3  ;;  %v4117_v5 = vmax.f32 %v19296_v48, 0.0  ;;  %17322 = vmatprep.mubr.msk.f32.mxu1 %vm493_vm0, %v21545_v3  ;;  %v21657_v43 = vld [vmem:[#allocation2 + $0xf8] sm:$0xff]  ;;  %v21665_v42 = vld [vmem:[#allocation2 + $0x110] sm:$0xff]  ;;  %v21673_v48 = vld [vmem:[#allocation2 + $0x128] sm:$0xff] }
 0x347   : > { %4150 = vst.msk [vmem:[#allocation2 + $0x189] sm:$0xff] %vm493_vm0, %v4118_v1  ;;  %17323 = vmatmul.mubr.msk.f32.gmra.mrb[32].mxu1 %vm493_vm0, %v21549_v7  ;;  %v21677_v1 = vld [vmem:[#allocation2 + $0x138] sm:$0xff]  ;;  %v14932_v7 = vld [vmem:[%s23623_s2 + $0x80] sm:$0xff]  ;;  %v14933_v3 = vld [vmem:[%s23623_s2 + $0x88] sm:$0xff] }
 0x348   : > { %4149 = vst.msk [vmem:[#allocation2 + $0x181] sm:$0xff] %vm493_vm0, %v4117_v5  ;;  %v21681_v5 = vld [vmem:[#allocation2 + $0x140] sm:$0xff]  ;;  %v21689_v16 = vld [vmem:[#allocation2 + $0x158] sm:$0xff] }
 0x34a   : > { %v21559_v52 = vld [vmem:[#allocation2 + $0x171] sm:$0xff] }
 0x34b   : > { %v21555_v49 = vld [vmem:[#allocation2 + $0x169] sm:$0xff]  ;;  %23915 = vst [vmem:[#allocation43_spill] sm:$0xff] %v21559_v52 }
 0x34c   : > { %23914 = vst [vmem:[#allocation42_spill] sm:$0xff] %v21555_v49  ;;  %17325 = vmatprep.mubr.msk.f32.mxu1 %vm493_vm0, %v21555_v49  ;;  %v21693_v38 = vld [vmem:[#allocation2 + $0x168] sm:$0xff]  ;;  %v18701_v49 = vpack.c.bf16 %v14899_v53, %v14898_v34  ;;  %v21726_v53 = vld [vmem:[#allocation2 + $0x32] sm:$0xff] }
 0x34d   : > { %17326 = vmatmul.mubr.msk.f32.gmra.mrb[34].mxu1 %vm493_vm0, %v21559_v52  ;;  %v4867_v52 = vld [vmem:[#allocation2 + $0xa] sm:$0xff]  ;;  %v21722_v34 = vld [vmem:[#allocation2 + $0x22] sm:$0xff]  ;;  %23916 = vst [vmem:[#allocation44_spill] sm:$0xff] %v21726_v53 }
 0x34e   : > { %17336 = vmatprep.mubr.msk.f32.mxu1 %vm493_vm0, %v4151_v8  ;;  %v21685_v8 = vld [vmem:[#allocation2 + $0x150] sm:$0xff] }
 0x351   : > { %17337 = vmatmul.mubr.msk.f32.vlgmr.msra.gmra.mrb[4].mxu1 %vm493_vm0, %v4152_v36  ;;  %v4866_v36 = vld [vmem:[#allocation2 + $0x2] sm:$0xff] }
 0x352   : > { %17339 = vmatprep.mubr.msk.f32.mxu1 %vm493_vm0, %v21577_v54  ;;  %18692 = vmatpush3.bf16.msra.mxu1 %v21404_v55  ;;  %v21597_v55 = vld [vmem:[#allocation2 + $0x48] sm:$0xff] }
 0x353   : > { %18694 = vmatprep.subr.bf16.mxu1 %v18693_v39 }
 0x355   : > { %17340 = vmatmul.mubr.msk.f32.gmra.mrb[6].mxu1 %vm493_vm0, %v21584_v22 }
 0x356   : > { %17342 = vmatprep.mubr.msk.f32.mxu1 %vm493_vm0, %v21588_v18  ;;  %18696 = vmatpush3.bf16.msra.mxu1 %v18693_v39  ;;  %v21697_v39 = vld [vmem:[#allocation2 + $0x170] sm:$0xff] }
 0x357   : > { %18698 = vmatprep.subr.bf16.mxu1 %v21582_v56 }
 0x359   : > { %17343 = vmatmul.mubr.msk.f32.gmra.mrb[8].mxu1 %vm493_vm0, %v21593_v15 }
 0x35a   : > { %17345 = vmatprep.mubr.msk.f32.mxu1 %vm493_vm0, %v21597_v55 }
 0x35d   : > { %17346 = vmatmul.mubr.msk.f32.gmra.mrb[10].mxu1 %vm493_vm0, %v21601_v25 }
 0x35e   : > { %17348 = vmatprep.mubr.msk.f32.mxu1 %vm493_vm0, %v21605_v27 }
 0x361   : > { %17349 = vmatmul.mubr.msk.f32.gmra.mrb[12].mxu1 %vm493_vm0, %v21609_v29 }
 0x362   : > { %17351 = vmatprep.mubr.msk.f32.mxu1 %vm493_vm0, %v21613_v30 }
 0x365   : > { %17352 = vmatmul.mubr.msk.f32.gmra.mrb[14].mxu1 %vm493_vm0, %v21617_v32 }
 0x366   : > { %17354 = vmatprep.mubr.msk.f32.mxu1 %vm493_vm0, %v21621_v45 }
 0x369   : > { %17355 = vmatmul.mubr.msk.f32.gmra.mrb[16].mxu1 %vm493_vm0, %v21625_v57 }
 0x36a   : > { %17357 = vmatprep.mubr.msk.f32.mxu1 %vm493_vm0, %v21629_v60 }
 0x36d   : > { %17358 = vmatmul.mubr.msk.f32.gmra.mrb[18].mxu1 %vm493_vm0, %v21633_v61 }
 0x36e   : > { %17360 = vmatprep.mubr.msk.f32.mxu1 %vm493_vm0, %v21637_v6 }
 0x371   : > { %17361 = vmatmul.mubr.msk.f32.gmra.mrb[20].mxu1 %vm493_vm0, %v21641_v24 }
 0x372   : > { %17363 = vmatprep.mubr.msk.f32.mxu1 %vm493_vm0, %v21645_v13 }
 0x375   : > { %17364 = vmatmul.mubr.msk.f32.gmra.mrb[22].mxu1 %vm493_vm0, %v21649_v62 }
 0x376   : > { %17366 = vmatprep.mubr.msk.f32.mxu1 %vm493_vm0, %v21653_v11 }
 0x379   : > { %17367 = vmatmul.mubr.msk.f32.gmra.mrb[24].mxu1 %vm493_vm0, %v21657_v43 }
 0x37a   : > { %17369 = vmatprep.mubr.msk.f32.mxu1 %vm493_vm0, %v21661_v47 }
 0x37d   : > { %17370 = vmatmul.mubr.msk.f32.gmra.mrb[26].mxu1 %vm493_vm0, %v21665_v42 }
 0x37e   : > { %17372 = vmatprep.mubr.msk.f32.mxu1 %vm493_vm0, %v21669_v0 }
 0x381   : > { %17373 = vmatmul.mubr.msk.f32.gmra.mrb[28].mxu1 %vm493_vm0, %v21673_v48 }
 0x382   : > { %17375 = vmatprep.mubr.msk.f32.mxu1 %vm493_vm0, %v21677_v1 }
 0x385   : > { %17376 = vmatmul.mubr.msk.f32.gmra.mrb[30].mxu1 %vm493_vm0, %v21681_v5 }
 0x386   : > { %17378 = vmatprep.mubr.msk.f32.mxu1 %vm493_vm0, %v21685_v8 }
 0x389   : > { %17379 = vmatmul.mubr.msk.f32.gmra.mrb[32].mxu1 %vm493_vm0, %v21689_v16 }
 0x38a   : > { %17381 = vmatprep.mubr.msk.f32.mxu1 %vm493_vm0, %v21693_v38 }
 0x38d   : > { %17382 = vmatmul.mubr.msk.f32.gmra.mrb[34].mxu1 %vm493_vm0, %v21697_v39 }
 0x38e   : > { %17392 = vmatprep.mubr.msk.f32.mxu1 %vm493_vm0, %v4866_v36  ;;  %v21720_v36 = vpack.c.bf16 %v14933_v3, %v14932_v7  ;;  %v21735_v3 = vld [vmem:[#allocation2 + $0x4a] sm:$0xff]  ;;  %v21739_v7 = vld [vmem:[#allocation2 + $0x52] sm:$0xff] }
 0x38f   : > { %23918 = vst [vmem:[#allocation46_spill] sm:$0xff] %v21735_v3  ;;  %23919 = vst [vmem:[#allocation47_spill] sm:$0xff] %v21739_v7 }
 0x391   : > { %17393 = vmatmul.mubr.msk.f32.vlgmr.msra.gmra.mrb[4].mxu1 %vm493_vm0, %v4867_v52  ;;  %v21731_v52 = vld [vmem:[#allocation2 + $0x3a] sm:$0xff] }
 0x392   : > { %17395 = vmatprep.mubr.msk.f32.mxu1 %vm493_vm0, %v21715_v63  ;;  %18700 = vmatpush3.bf16.msra.mxu1 %v21582_v56  ;;  %23917 = vst [vmem:[#allocation45_spill] sm:$0xff] %v21731_v52  ;;  %v21743_v56 = vld [vmem:[#allocation2 + $0x62] sm:$0xff] }
 0x393   : > { %18702 = vmatprep.subr.bf16.mxu1 %v18701_v49  ;;  %23920 = vst [vmem:[#allocation48_spill] sm:$0xff] %v21743_v56 }
 0x395   : > { %17396 = vmatmul.mubr.msk.f32.gmra.mrb[6].mxu1 %vm493_vm0, %v21722_v34 }
 0x396   : > { %17398 = vmatprep.mubr.msk.f32.mxu1 %vm493_vm0, %v21726_v53  ;;  %18704 = vmatpush3.bf16.msra.mxu1 %v18701_v49  ;;  %v21747_v49 = vld [vmem:[#allocation2 + $0x6a] sm:$0xff] }
 0x397   : > { %18706 = vmatprep.subr.bf16.mxu1 %v21720_v36  ;;  %23921 = vst [vmem:[#allocation49_spill] sm:$0xff] %v21747_v49  ;;  %v14969_v53 = vld [vmem:[%s23623_s2 + $0xa8] sm:$0xff] }
 0x399   : > { %17399 = vmatmul.mubr.msk.f32.gmra.mrb[8].mxu1 %vm493_vm0, %v21731_v52  ;;  %v21751_v52 = vld [vmem:[#allocation2 + $0x7a] sm:$0xff] }
 0x39a   : > { %17401 = vmatprep.mubr.msk.f32.mxu1 %vm493_vm0, %v21735_v3  ;;  %23922 = vst [vmem:[#allocation50_spill] sm:$0xff] %v21751_v52  ;;  %v21755_v3 = vld [vmem:[#allocation2 + $0x82] sm:$0xff] }
 0x39b   : > { %23923 = vst [vmem:[#allocation51_spill] sm:$0xff] %v21755_v3 }
 0x39d   : > { %17402 = vmatmul.mubr.msk.f32.gmra.mrb[10].mxu1 %vm493_vm0, %v21739_v7  ;;  %v21759_v7 = vld [vmem:[#allocation2 + $0x92] sm:$0xff] }
 0x39e   : > { %17404 = vmatprep.mubr.msk.f32.mxu1 %vm493_vm0, %v21743_v56  ;;  %23924 = vst [vmem:[#allocation52_spill] sm:$0xff] %v21759_v7  ;;  %v21763_v56 = vld [vmem:[#allocation2 + $0x9a] sm:$0xff] }
 0x39f   : > { %23925 = vst [vmem:[#allocation53_spill] sm:$0xff] %v21763_v56 }
 0x3a1   : > { %17405 = vmatmul.mubr.msk.f32.gmra.mrb[12].mxu1 %vm493_vm0, %v21747_v49  ;;  %v21767_v49 = vld [vmem:[#allocation2 + $0xaa] sm:$0xff] }
 0x3a2   : > { %17407 = vmatprep.mubr.msk.f32.mxu1 %vm493_vm0, %v21751_v52  ;;  %23926 = vst [vmem:[#allocation54_spill] sm:$0xff] %v21767_v49  ;;  %v21771_v52 = vld [vmem:[#allocation2 + $0xb2] sm:$0xff] }
 0x3a3   : > { %23927 = vst [vmem:[#allocation55_spill] sm:$0xff] %v21771_v52 }
 0x3a5   : > { %17408 = vmatmul.mubr.msk.f32.gmra.mrb[14].mxu1 %vm493_vm0, %v21755_v3  ;;  %v21775_v3 = vld [vmem:[#allocation2 + $0xc2] sm:$0xff] }
 0x3a6   : > { %17410 = vmatprep.mubr.msk.f32.mxu1 %vm493_vm0, %v21759_v7  ;;  %23928 = vst [vmem:[#allocation56_spill] sm:$0xff] %v21775_v3  ;;  %v21779_v7 = vld [vmem:[#allocation2 + $0xca] sm:$0xff] }
 0x3a7   : > { %23929 = vst [vmem:[#allocation57_spill] sm:$0xff] %v21779_v7 }
 0x3a9   : > { %17411 = vmatmul.mubr.msk.f32.gmra.mrb[16].mxu1 %vm493_vm0, %v21763_v56  ;;  %v21783_v56 = vld [vmem:[#allocation2 + $0xda] sm:$0xff] }
 0x3aa   : > { %17413 = vmatprep.mubr.msk.f32.mxu1 %vm493_vm0, %v21767_v49  ;;  %23930 = vst [vmem:[#allocation58_spill] sm:$0xff] %v21783_v56  ;;  %v21787_v49 = vld [vmem:[#allocation2 + $0xe2] sm:$0xff] }
 0x3ab   : > { %23931 = vst [vmem:[#allocation59_spill] sm:$0xff] %v21787_v49 }
 0x3ad   : > { %17414 = vmatmul.mubr.msk.f32.gmra.mrb[18].mxu1 %vm493_vm0, %v21771_v52  ;;  %v21791_v52 = vld [vmem:[#allocation2 + $0xf2] sm:$0xff] }
 0x3ae   : > { %17416 = vmatprep.mubr.msk.f32.mxu1 %vm493_vm0, %v21775_v3  ;;  %23932 = vst [vmem:[#allocation60_spill] sm:$0xff] %v21791_v52  ;;  %v21795_v3 = vld [vmem:[#allocation2 + $0xfa] sm:$0xff] }
 0x3af   : > { %23933 = vst [vmem:[#allocation63_spill] sm:$0xff] %v21795_v3 }
 0x3b1   : > { %17417 = vmatmul.mubr.msk.f32.gmra.mrb[20].mxu1 %vm493_vm0, %v21779_v7  ;;  %v21799_v7 = vld [vmem:[#allocation2 + $0x10a] sm:$0xff] }
 0x3b2   : > { %17419 = vmatprep.mubr.msk.f32.mxu1 %vm493_vm0, %v21783_v56  ;;  %23934 = vst [vmem:[#allocation65_spill] sm:$0xff] %v21799_v7  ;;  %v21803_v56 = vld [vmem:[#allocation2 + $0x112] sm:$0xff] }
 0x3b3   : > { %23935 = vst [vmem:[#allocation61_spill] sm:$0xff] %v21803_v56 }
 0x3b5   : > { %17420 = vmatmul.mubr.msk.f32.gmra.mrb[22].mxu1 %vm493_vm0, %v21787_v49  ;;  %v21807_v49 = vld [vmem:[#allocation2 + $0x122] sm:$0xff] }
 0x3b6   : > { %17422 = vmatprep.mubr.msk.f32.mxu1 %vm493_vm0, %v21791_v52  ;;  %23936 = vst [vmem:[#allocation62_spill] sm:$0xff] %v21807_v49  ;;  %v21811_v52 = vld [vmem:[#allocation2 + $0x12a] sm:$0xff] }
 0x3b7   : > { %23937 = vst [vmem:[#allocation64_spill] sm:$0xff] %v21811_v52 }
 0x3b9   : > { %17423 = vmatmul.mubr.msk.f32.gmra.mrb[24].mxu1 %vm493_vm0, %v21795_v3  ;;  %v21815_v3 = vld [vmem:[#allocation2 + $0x13a] sm:$0xff] }
 0x3ba   : > { %17425 = vmatprep.mubr.msk.f32.mxu1 %vm493_vm0, %v21799_v7  ;;  %23938 = vst [vmem:[#allocation66_spill] sm:$0xff] %v21815_v3  ;;  %v21819_v7 = vld [vmem:[#allocation2 + $0x142] sm:$0xff] }
 0x3bb   : > { %23939 = vst [vmem:[#allocation67_spill] sm:$0xff] %v21819_v7 }
 0x3bd   : > { %17426 = vmatmul.mubr.msk.f32.gmra.mrb[26].mxu1 %vm493_vm0, %v21803_v56  ;;  %v21823_v56 = vld [vmem:[#allocation2 + $0x152] sm:$0xff] }
 0x3be   : > { %17428 = vmatprep.mubr.msk.f32.mxu1 %vm493_vm0, %v21807_v49  ;;  %23940 = vst [vmem:[#allocation69_spill] sm:$0xff] %v21823_v56  ;;  %v21827_v49 = vld [vmem:[#allocation2 + $0x15a] sm:$0xff] }
 0x3bf   : > { %23941 = vst [vmem:[#allocation70_spill] sm:$0xff] %v21827_v49 }
 0x3c1   : > { %17429 = vmatmul.mubr.msk.f32.gmra.mrb[28].mxu1 %vm493_vm0, %v21811_v52  ;;  %v21831_v52 = vld [vmem:[#allocation2 + $0x16a] sm:$0xff] }
 0x3c2   : > { %17431 = vmatprep.mubr.msk.f32.mxu1 %vm493_vm0, %v21815_v3  ;;  %23942 = vst [vmem:[#allocation36_spill] sm:$0xff] %v21831_v52  ;;  %v21835_v3 = vld [vmem:[#allocation2 + $0x172] sm:$0xff] }
 0x3c3   : > { %23943 = vst [vmem:[#allocation37_spill] sm:$0xff] %v21835_v3 }
 0x3c5   : > { %17432 = vmatmul.mubr.msk.f32.gmra.mrb[30].mxu1 %vm493_vm0, %v21819_v7  ;;  %v14934_v7 = vld [vmem:[%s23623_s2 + $0x90] sm:$0xff] }
 0x3c6   : > { %17434 = vmatprep.mubr.msk.f32.mxu1 %vm493_vm0, %v21823_v56  ;;  %v14935_v56 = vld [vmem:[%s23623_s2 + $0x98] sm:$0xff] }
 0x3c9   : > { %17435 = vmatmul.mubr.msk.f32.gmra.mrb[32].mxu1 %vm493_vm0, %v21827_v49  ;;  %v18709_v49 = vpack.c.bf16 %v14935_v56, %v14934_v7  ;;  %v15004_v7 = vld [vmem:[%s23623_s2 + $0xc0] sm:$0xff]  ;;  %v15005_v56 = vld [vmem:[%s23623_s2 + $0xc8] sm:$0xff] }
 0x3ca   : > { %17437 = vmatprep.mubr.msk.f32.mxu1 %vm493_vm0, %v21831_v52  ;;  %v14968_v52 = vld [vmem:[%s23623_s2 + $0xa0] sm:$0xff] }
 0x3cd   : > { %17438 = vmatmul.mubr.msk.f32.gmra.mrb[34].mxu1 %vm493_vm0, %v21835_v3  ;;  %v18713_v3 = vpack.c.bf16 %v14969_v53, %v14968_v52  ;;  %v14971_v53 = vld [vmem:[%s23623_s2 + $0xb8] sm:$0xff] }
 0x3ce   : > { %17448 = vmatprep.mubr.msk.f32.mxu1 %vm493_vm0, %v21577_v54  ;;  %v21912_v54 = vld [vmem:[#allocation2 + $0x180] sm:$0xff] }
 0x3d1   : > { %17449 = vmatmul.mubr.msk.f32.vlgmr.msra.gmra.mrb[4].mxu1 %vm493_vm0, %v21584_v22  ;;  %v21916_v22 = vld [vmem:[#allocation2 + $0x188] sm:$0xff] }
 0x3d2   : > { %17451 = vmatprep.mubr.msk.f32.mxu1 %vm493_vm0, %v21588_v18  ;;  %18708 = vmatpush3.bf16.msra.mxu1 %v21720_v36  ;;  %v14970_v36 = vld [vmem:[%s23623_s2 + $0xb0] sm:$0xff] }
 0x3d3   : > { %18710 = vmatprep.subr.bf16.mxu1 %v18709_v49  ;;  %v18717_v52 = vpack.c.bf16 %v14971_v53, %v14970_v36  ;;  %v23964_v36 = vld [vmem:[#allocation59_spill] sm:$0xff]  ;;  %v23965_v53 = vld [vmem:[#allocation60_spill] sm:$0xff] }
 0x3d5   : > { %17452 = vmatmul.mubr.msk.f32.gmra.mrb[6].mxu1 %vm493_vm0, %v21593_v15 }
 0x3d6   : > { %17454 = vmatprep.mubr.msk.f32.mxu1 %vm493_vm0, %v21597_v55  ;;  %18712 = vmatpush3.bf16.msra.mxu1 %v18709_v49  ;;  %v18721_v49 = vpack.c.bf16 %v15005_v56, %v15004_v7  ;;  %v23967_v7 = vld [vmem:[#allocation65_spill] sm:$0xff] }
 0x3d7   : > { %18714 = vmatprep.subr.bf16.mxu1 %v18713_v3  ;;  %v23968_v56 = vld [vmem:[#allocation61_spill] sm:$0xff] }
 0x3d9   : > { %17455 = vmatmul.mubr.msk.f32.gmra.mrb[8].mxu1 %vm493_vm0, %v21601_v25 }
 0x3da   : > { %17457 = vmatprep.mubr.msk.f32.mxu1 %vm493_vm0, %v21605_v27 }
 0x3dd   : > { %17458 = vmatmul.mubr.msk.f32.gmra.mrb[10].mxu1 %vm493_vm0, %v21609_v29 }
 0x3de   : > { %17460 = vmatprep.mubr.msk.f32.mxu1 %vm493_vm0, %v21613_v30 }
 0x3e1   : > { %17461 = vmatmul.mubr.msk.f32.gmra.mrb[12].mxu1 %vm493_vm0, %v21617_v32 }
 0x3e2   : > { %17463 = vmatprep.mubr.msk.f32.mxu1 %vm493_vm0, %v21621_v45 }
 0x3e5   : > { %17464 = vmatmul.mubr.msk.f32.gmra.mrb[14].mxu1 %vm493_vm0, %v21625_v57 }
 0x3e6   : > { %17466 = vmatprep.mubr.msk.f32.mxu1 %vm493_vm0, %v21629_v60 }
 0x3e9   : > { %17467 = vmatmul.mubr.msk.f32.gmra.mrb[16].mxu1 %vm493_vm0, %v21633_v61 }
 0x3ea   : > { %17469 = vmatprep.mubr.msk.f32.mxu1 %vm493_vm0, %v21637_v6 }
 0x3ed   : > { %17470 = vmatmul.mubr.msk.f32.gmra.mrb[18].mxu1 %vm493_vm0, %v21641_v24 }
 0x3ee   : > { %17472 = vmatprep.mubr.msk.f32.mxu1 %vm493_vm0, %v21645_v13 }
 0x3f1   : > { %17473 = vmatmul.mubr.msk.f32.gmra.mrb[20].mxu1 %vm493_vm0, %v21649_v62 }
 0x3f2   : > { %17475 = vmatprep.mubr.msk.f32.mxu1 %vm493_vm0, %v21653_v11 }
 0x3f5   : > { %17476 = vmatmul.mubr.msk.f32.gmra.mrb[22].mxu1 %vm493_vm0, %v21657_v43 }
 0x3f6   : > { %17478 = vmatprep.mubr.msk.f32.mxu1 %vm493_vm0, %v21661_v47 }
 0x3f9   : > { %17479 = vmatmul.mubr.msk.f32.gmra.mrb[24].mxu1 %vm493_vm0, %v21665_v42 }
 0x3fa   : > { %17481 = vmatprep.mubr.msk.f32.mxu1 %vm493_vm0, %v21669_v0 }
 0x3fd   : > { %17482 = vmatmul.mubr.msk.f32.gmra.mrb[26].mxu1 %vm493_vm0, %v21673_v48 }
 0x3fe   : > { %17484 = vmatprep.mubr.msk.f32.mxu1 %vm493_vm0, %v21677_v1 }
 0x401   : > { %17485 = vmatmul.mubr.msk.f32.gmra.mrb[28].mxu1 %vm493_vm0, %v21681_v5 }
 0x402   : > { %17487 = vmatprep.mubr.msk.f32.mxu1 %vm493_vm0, %v21685_v8 }
 0x405   : > { %17488 = vmatmul.mubr.msk.f32.gmra.mrb[30].mxu1 %vm493_vm0, %v21689_v16 }
 0x406   : > { %17490 = vmatprep.mubr.msk.f32.mxu1 %vm493_vm0, %v21693_v38 }
 0x409   : > { %17491 = vmatmul.mubr.msk.f32.gmra.mrb[32].mxu1 %vm493_vm0, %v21697_v39 }
 0x40a   : > { %17493 = vmatprep.mubr.msk.f32.mxu1 %vm493_vm0, %v21912_v54 }
 0x40d   : > { %17494 = vmatmul.mubr.msk.f32.gmra.mrb[34].mxu1 %vm493_vm0, %v21916_v22 }
 0x40e   : > { %17504 = vmatprep.mubr.msk.f32.mxu1 %vm493_vm0, %v21412_v31  ;;  %v23944_v31 = vld [vmem:[#allocation68_spill] sm:$0xff] }
 0x411   : > { %17505 = vmatmul.mubr.msk.f32.vlgmr.msra.gmra.mrb[4].mxu1 %vm493_vm0, %v21417_v40  ;;  %v23945_v40 = vld [vmem:[#allocation40_spill] sm:$0xff] }
 0x412   : > { %17507 = vmatprep.mubr.msk.f32.mxu1 %vm493_vm0, %v21422_v51  ;;  %18716 = vmatpush3.bf16.msra.mxu1 %v18713_v3  ;;  %v23946_v51 = vld [vmem:[#allocation41_spill] sm:$0xff]  ;;  %v23963_v3 = vld [vmem:[#allocation58_spill] sm:$0xff] }
 0x413   : > { %18718 = vmatprep.subr.bf16.mxu1 %v18717_v52 }
 0x415   : > { %17508 = vmatmul.mubr.msk.f32.gmra.mrb[6].mxu1 %vm493_vm0, %v21427_v58  ;;  %v23947_v58 = vld [vmem:[#allocation42_spill] sm:$0xff] }
 0x416   : > { %17510 = vmatprep.mubr.msk.f32.mxu1 %vm493_vm0, %v21432_v37  ;;  %18720 = vmatpush3.bf16.msra.mxu1 %v18717_v52  ;;  %v23948_v37 = vld [vmem:[#allocation43_spill] sm:$0xff] }
 0x417   : > { %18722 = vmatprep.subr.bf16.mxu1 %v18721_v49  ;;  %v23966_v52 = vld [vmem:[#allocation63_spill] sm:$0xff] }
 0x419   : > { %17511 = vmatmul.mubr.msk.f32.gmra.mrb[8].mxu1 %vm493_vm0, %v21437_v33  ;;  %v21992_v33 = vld [vmem:[#allocation2 + $0x181] sm:$0xff] }
 0x41a   : > { %17513 = vmatprep.mubr.msk.f32.mxu1 %vm493_vm0, %v21442_v20  ;;  %v21996_v20 = vld [vmem:[#allocation2 + $0x189] sm:$0xff] }
 0x41d   : > { %17514 = vmatmul.mubr.msk.f32.gmra.mrb[10].mxu1 %vm493_vm0, %v21447_v10  ;;  %v15006_v10 = vld [vmem:[%s23623_s2 + $0xd0] sm:$0xff] }
 0x41e   : > { %17516 = vmatprep.mubr.msk.f32.mxu1 %vm493_vm0, %v21452_v46  ;;  %v15007_v46 = vld [vmem:[%s23623_s2 + $0xd8] sm:$0xff] }
 0x421   : > { %17517 = vmatmul.mubr.msk.f32.gmra.mrb[12].mxu1 %vm493_vm0, %v21457_v59  ;;  %v18725_v59 = vpack.c.bf16 %v15007_v46, %v15006_v10  ;;  %v23970_v10 = vld [vmem:[#allocation64_spill] sm:$0xff]  ;;  %v23971_v46 = vld [vmem:[#allocation66_spill] sm:$0xff] }
 0x422   : > { %17519 = vmatprep.mubr.msk.f32.mxu1 %vm493_vm0, %v21462_v2  ;;  %v15040_v2 = vld [vmem:[%s23623_s2 + $0xe0] sm:$0xff] }
 0x425   : > { %17520 = vmatmul.mubr.msk.f32.gmra.mrb[14].mxu1 %vm493_vm0, %v21467_v4  ;;  %v15041_v4 = vld [vmem:[%s23623_s2 + $0xe8] sm:$0xff] }
 0x426   : > { %17522 = vmatprep.mubr.msk.f32.mxu1 %vm493_vm0, %v21472_v9  ;;  %v23949_v9 = vld [vmem:[#allocation44_spill] sm:$0xff] }
 0x429   : > { %17523 = vmatmul.mubr.msk.f32.gmra.mrb[16].mxu1 %vm493_vm0, %v21477_v12  ;;  %v18729_v12 = vpack.c.bf16 %v15041_v4, %v15040_v2  ;;  %v23973_v2 = vld [vmem:[#allocation69_spill] sm:$0xff]  ;;  %v23974_v4 = vld [vmem:[#allocation70_spill] sm:$0xff] }
 0x42a   : > { %17525 = vmatprep.mubr.msk.f32.mxu1 %vm493_vm0, %v21482_v14  ;;  %v23950_v14 = vld [vmem:[#allocation45_spill] sm:$0xff] }
 0x42d   : > { %17526 = vmatmul.mubr.msk.f32.gmra.mrb[18].mxu1 %vm493_vm0, %v21487_v41  ;;  %v23951_v41 = vld [vmem:[#allocation46_spill] sm:$0xff] }
 0x42e   : > { %17528 = vmatprep.mubr.msk.f32.mxu1 %vm493_vm0, %v21492_v23  ;;  %v23952_v23 = vld [vmem:[#allocation47_spill] sm:$0xff] }
 0x431   : > { %17529 = vmatmul.mubr.msk.f32.gmra.mrb[20].mxu1 %vm493_vm0, %v21497_v21  ;;  %v23953_v21 = vld [vmem:[#allocation48_spill] sm:$0xff] }
 0x432   : > { %17531 = vmatprep.mubr.msk.f32.mxu1 %vm493_vm0, %v21502_v26  ;;  %v23954_v26 = vld [vmem:[#allocation49_spill] sm:$0xff] }
 0x435   : > { %17532 = vmatmul.mubr.msk.f32.gmra.mrb[22].mxu1 %vm493_vm0, %v21507_v28  ;;  %v23955_v28 = vld [vmem:[#allocation50_spill] sm:$0xff] }
 0x436   : > { %17534 = vmatprep.mubr.msk.f32.mxu1 %vm493_vm0, %v21512_v44  ;;  %v23956_v44 = vld [vmem:[#allocation51_spill] sm:$0xff] }
 0x439   : > { %17535 = vmatmul.mubr.msk.f32.gmra.mrb[24].mxu1 %vm493_vm0, %v21517_v50  ;;  %v23957_v50 = vld [vmem:[#allocation52_spill] sm:$0xff] }
 0x43a   : > { %17537 = vmatprep.mubr.msk.f32.mxu1 %vm493_vm0, %v21522_v17  ;;  %v23958_v17 = vld [vmem:[#allocation53_spill] sm:$0xff] }
 0x43d   : > { %17538 = vmatmul.mubr.msk.f32.gmra.mrb[26].mxu1 %vm493_vm0, %v21527_v19  ;;  %v23959_v19 = vld [vmem:[#allocation54_spill] sm:$0xff] }
 0x43e   : > { %17540 = vmatprep.mubr.msk.f32.mxu1 %vm493_vm0, %v21533_v35  ;;  %v23960_v35 = vld [vmem:[#allocation55_spill] sm:$0xff] }
 0x441   : > { %17541 = vmatmul.mubr.msk.f32.gmra.mrb[28].mxu1 %vm493_vm0, %v23944_v31 }
 0x442   : > { %17543 = vmatprep.mubr.msk.f32.mxu1 %vm493_vm0, %v23945_v40 }
 0x445   : > { %17544 = vmatmul.mubr.msk.f32.gmra.mrb[30].mxu1 %vm493_vm0, %v23946_v51 }
 0x446   : > { %17546 = vmatprep.mubr.msk.f32.mxu1 %vm493_vm0, %v23947_v58 }
 0x449   : > { %17547 = vmatmul.mubr.msk.f32.gmra.mrb[32].mxu1 %vm493_vm0, %v23948_v37 }
 0x44a   : > { %17549 = vmatprep.mubr.msk.f32.mxu1 %vm493_vm0, %v21992_v33 }
 0x44d   : > { %17550 = vmatmul.mubr.msk.f32.gmra.mrb[34].mxu1 %vm493_vm0, %v21996_v20 }
 0x44e   : > { %17560 = vmatprep.mubr.msk.f32.mxu1 %vm493_vm0, %v21715_v63  ;;  %v23961_v63 = vld [vmem:[#allocation56_spill] sm:$0xff] }
 0x451   : > { %17561 = vmatmul.mubr.msk.f32.vlgmr.msra.gmra.mrb[4].mxu1 %vm493_vm0, %v21722_v34  ;;  %v23962_v34 = vld [vmem:[#allocation57_spill] sm:$0xff] }
 0x452   : > { %17563 = vmatprep.mubr.msk.f32.mxu1 %vm493_vm0, %v23949_v9  ;;  %18724 = vmatpush3.bf16.msra.mxu1 %v18721_v49  ;;  %v23969_v49 = vld [vmem:[#allocation62_spill] sm:$0xff] }
 0x453   : > { %18726 = vmatprep.subr.bf16.mxu1 %v18725_v59 }
 0x455   : > { %17564 = vmatmul.mubr.msk.f32.gmra.mrb[6].mxu1 %vm493_vm0, %v23950_v14 }
 0x456   : > { %17566 = vmatprep.mubr.msk.f32.mxu1 %vm493_vm0, %v23951_v41  ;;  %18728 = vmatpush3.bf16.msra.mxu1 %v18725_v59  ;;  %v23972_v59 = vld [vmem:[#allocation67_spill] sm:$0xff] }
 0x457   : > { %18730 = vmatprep.subr.bf16.mxu1 %v18729_v12 }
 0x459   : > { %17567 = vmatmul.mubr.msk.f32.gmra.mrb[8].mxu1 %vm493_vm0, %v23952_v23 }
 0x45a   : > { %17569 = vmatprep.mubr.msk.f32.mxu1 %vm493_vm0, %v23953_v21 }
 0x45d   : > { %17570 = vmatmul.mubr.msk.f32.gmra.mrb[10].mxu1 %vm493_vm0, %v23954_v26 }
 0x45e   : > { %17572 = vmatprep.mubr.msk.f32.mxu1 %vm493_vm0, %v23955_v28 }
 0x461   : > { %17573 = vmatmul.mubr.msk.f32.gmra.mrb[12].mxu1 %vm493_vm0, %v23956_v44 }
 0x462   : > { %17575 = vmatprep.mubr.msk.f32.mxu1 %vm493_vm0, %v23957_v50 }
 0x465   : > { %17576 = vmatmul.mubr.msk.f32.gmra.mrb[14].mxu1 %vm493_vm0, %v23958_v17 }
 0x466   : > { %17578 = vmatprep.mubr.msk.f32.mxu1 %vm493_vm0, %v23959_v19 }
 0x469   : > { %17579 = vmatmul.mubr.msk.f32.gmra.mrb[16].mxu1 %vm493_vm0, %v23960_v35 }
 0x46a   : > { %17581 = vmatprep.mubr.msk.f32.mxu1 %vm493_vm0, %v23961_v63 }
 0x46d   : > { %17582 = vmatmul.mubr.msk.f32.gmra.mrb[18].mxu1 %vm493_vm0, %v23962_v34 }
 0x46e   : > { %17584 = vmatprep.mubr.msk.f32.mxu1 %vm493_vm0, %v23963_v3  ;;  %v15077_v3 = vld [vmem:[%s23623_s2 + $0x108] sm:$0xff] }
 0x471   : > { %17585 = vmatmul.mubr.msk.f32.gmra.mrb[20].mxu1 %vm493_vm0, %v23964_v36  ;;  %v15076_v36 = vld [vmem:[%s23623_s2 + $0x100] sm:$0xff] }
 0x472   : > { %17587 = vmatprep.mubr.msk.f32.mxu1 %vm493_vm0, %v23965_v53 }
 0x475   : > { %17588 = vmatmul.mubr.msk.f32.gmra.mrb[22].mxu1 %vm493_vm0, %v23966_v52 }
 0x476   : > { %17590 = vmatprep.mubr.msk.f32.mxu1 %vm493_vm0, %v23967_v7  ;;  %v23975_v7 = vld [vmem:[#allocation36_spill] sm:$0xff] }
 0x479   : > { %17591 = vmatmul.mubr.msk.f32.gmra.mrb[24].mxu1 %vm493_vm0, %v23968_v56  ;;  %v23976_v56 = vld [vmem:[#allocation37_spill] sm:$0xff] }
 0x47a   : > { %17593 = vmatprep.mubr.msk.f32.mxu1 %vm493_vm0, %v23969_v49  ;;  %v22072_v49 = vld [vmem:[#allocation2 + $0x182] sm:$0xff] }
 0x47b   : > { %23977 = vst [vmem:[#allocation68_spill] sm:$0xff] %v22072_v49 }
 0x47d   : > { %17594 = vmatmul.mubr.msk.f32.gmra.mrb[26].mxu1 %vm493_vm0, %v23970_v10  ;;  %v23981_v10 = vld [vmem:[#allocation7_spill] sm:$0xff] }
 0x47e   : > { %17596 = vmatprep.mubr.msk.f32.mxu1 %vm493_vm0, %v23971_v46  ;;  %v22076_v46 = vld [vmem:[#allocation2 + $0x18a] sm:$0xff] }
 0x481   : > { %17597 = vmatmul.mubr.msk.f32.gmra.mrb[28].mxu1 %vm493_vm0, %v23972_v59 }
 0x482   : > { %17599 = vmatprep.mubr.msk.f32.mxu1 %vm493_vm0, %v23973_v2  ;;  %v15042_v2 = vld [vmem:[%s23623_s2 + $0xf0] sm:$0xff] }
 0x485   : > { %17600 = vmatmul.mubr.msk.f32.gmra.mrb[30].mxu1 %vm493_vm0, %v23974_v4  ;;  %v15043_v4 = vld [vmem:[%s23623_s2 + $0xf8] sm:$0xff] }
 0x486   : > { %17602 = vmatprep.mubr.msk.f32.mxu1 %vm493_vm0, %v23975_v7  ;;  %v23979_v7 = vld [vmem:[#allocation23_spill] sm:$0xff]  ;;  %v18733_v53 = vpack.c.bf16 %v15043_v4, %v15042_v2 }
 0x487   : > { %v23997_v2 = vld [vmem:[#allocation15_spill] sm:$0xff] }
 0x489   : > { %17603 = vmatmul.mubr.msk.f32.gmra.mrb[32].mxu1 %vm493_vm0, %v23976_v56  ;;  %v23978_v56 = vld [vmem:[#allocation22_spill] sm:$0xff] }
 0x48a   : > { %17605 = vmatprep.mubr.msk.f32.mxu1 %vm493_vm0, %v22072_v49  ;;  %v18745_v59 = vpack.c.bf16 %v23979_v7, %v23978_v56  ;;  %v23980_v49 = vld [vmem:[#allocation6_spill] sm:$0xff]  ;;  %v23982_v7 = vld [vmem:[#allocation24_spill] sm:$0xff]  ;;  %v23983_v56 = vld [vmem:[#allocation25_spill] sm:$0xff] }
 0x48b   : > { %v18747_v52 = vpack.c.bf16 %v23981_v10, %v23980_v49  ;;  %v18749_v49 = vpack.c.bf16 %v23983_v56, %v23982_v7  ;;  %v23984_v10 = vld [vmem:[#allocation8_spill] sm:$0xff]  ;;  %v24001_v7 = vld [vmem:[#allocation17_spill] sm:$0xff] }
 0x48c   : > { %18746 = vmatprep.subr.bf16.mxu0 %v18745_v59 }
 0x48d   : > { %17606 = vmatmul.mubr.msk.f32.gmra.mrb[34].mxu1 %vm493_vm0, %v22076_v46  ;;  %18748 = vmatpush3.bf16.msra.mxu0 %v18747_v52 }
 0x48e   : > { %17616 = vmatprep.mubr.msk.f32.mxu1 %vm493_vm0, %v21588_v18  ;;  %v22102_v18 = vpack.c.bf16 %v15077_v3, %v15076_v36  ;;  %18750 = vmatprep.subr.bf16.mxu0 %v18749_v49  ;;  %v23989_v3 = vld [vmem:[#allocation11_spill] sm:$0xff] }
 0x48f   : > { %v24005_v49 = vld [vmem:[#allocation19_spill] sm:$0xff] }
 0x491   : > { %17617 = vmatmul.mubr.msk.f32.vlgmr.msra.gmra.mrb[4].mxu1 %vm493_vm0, %v21593_v15  ;;  %v23985_v15 = vld [vmem:[#allocation9_spill] sm:$0xff] }
 0x492   : > { %17619 = vmatprep.mubr.msk.f32.mxu1 %vm493_vm0, %v21597_v55  ;;  %18732 = vmatpush3.bf16.msra.mxu1 %v18729_v12  ;;  %v18751_v52 = vpack.c.bf16 %v23985_v15, %v23984_v10  ;;  %v23986_v55 = vld [vmem:[#allocation26_spill] sm:$0xff]  ;;  %v24009_v15 = vld [vmem:[#allocation21_spill] sm:$0xff] }
 0x493   : > { %18734 = vmatprep.subr.bf16.mxu1 %v18733_v53  ;;  %v23988_v12 = vld [vmem:[#allocation10_spill] sm:$0xff] }
 0x494   : > { %18752 = vmatpush3.bf16.msra.mxu0 %v18751_v52  ;;  %v18755_v36 = vpack.c.bf16 %v23989_v3, %v23988_v12  ;;  %v6817_v3 = vld [vmem:[#allocation2 + $0x39] sm:$0xff] }
 0x495   : > { %17620 = vmatmul.mubr.msk.f32.gmra.mrb[6].mxu1 %vm493_vm0, %v21601_v25  ;;  %v23987_v25 = vld [vmem:[#allocation27_spill] sm:$0xff] }
 0x496   : > { %17622 = vmatprep.mubr.msk.f32.mxu1 %vm493_vm0, %v21605_v27  ;;  %18736 = vmatpush3.bf16.msra.mxu1 %v18733_v53  ;;  %v18753_v27 = vpack.c.bf16 %v23987_v25, %v23986_v55  ;;  %v23993_v53 = vld [vmem:[#allocation13_spill] sm:$0xff]  ;;  %v22198_v25 = vld [vmem:[%s23632_s11 + $0x8] sm:$0xff] }
 0x497   : > { %18738 = vmatprep.subr.bf16.mxu1 %v22102_v18  ;;  %v6456_v55 = vld [vmem:[#allocation2 + $0x198] sm:$0xff]  ;;  %7676 = vmatprep.mubr.f32.mxu0 %v22198_v25 }
 0x498   : > { %18754 = vmatprep.subr.bf16.mxu0 %v18753_v27  ;;  %v22208_v27 = vld [vmem:[%s23632_s11 + $0x18] sm:$0xff] }
 0x499   : > { %17623 = vmatmul.mubr.msk.f32.gmra.mrb[8].mxu1 %vm493_vm0, %v21609_v29  ;;  %18756 = vmatpush3.bf16.msra.mxu0 %v18755_v36  ;;  %v23990_v29 = vld [vmem:[#allocation28_spill] sm:$0xff] }
 0x49a   : > { %17625 = vmatprep.mubr.msk.f32.mxu1 %vm493_vm0, %v21613_v30  ;;  %v23991_v30 = vld [vmem:[#allocation29_spill] sm:$0xff]  ;;  %v22217_v36 = vld [vmem:[%s23632_s11 + $0x10] sm:$0xff] }
 0x49d   : > { %17626 = vmatmul.mubr.msk.f32.gmra.mrb[10].mxu1 %vm493_vm0, %v21617_v32  ;;  %v18757_v32 = vpack.c.bf16 %v23991_v30, %v23990_v29  ;;  %v6818_v29 = vld [vmem:[#allocation2 + $0x49] sm:$0xff] }
 0x49e   : > { %17628 = vmatprep.mubr.msk.f32.mxu1 %vm493_vm0, %v21621_v45  ;;  %v23992_v45 = vld [vmem:[#allocation12_spill] sm:$0xff]  ;;  %v22223_v30 = vld [vmem:[%s23632_s11 + $0x28] sm:$0xff] }
 0x49f   : > { %v18759_v59 = vpack.c.bf16 %v23993_v53, %v23992_v45  ;;  %18758 = vmatprep.subr.bf16.mxu0 %v18757_v32  ;;  %v6819_v32 = vld [vmem:[#allocation2 + $0x51] sm:$0xff]  ;;  %v22232_v45 = vld [vmem:[%s23632_s11 + $0x20] sm:$0xff] }
 0x4a0   : > { %v6820_v53 = vld [vmem:[#allocation2 + $0x61] sm:$0xff] }
 0x4a1   : > { %17629 = vmatmul.mubr.msk.f32.gmra.mrb[12].mxu1 %vm493_vm0, %v21625_v57  ;;  %18760 = vmatpush3.bf16.msra.mxu0 %v18759_v59  ;;  %v23994_v57 = vld [vmem:[#allocation30_spill] sm:$0xff]  ;;  %v22238_v59 = vld [vmem:[%s23632_s11 + $0x38] sm:$0xff] }
 0x4a2   : > { %17631 = vmatprep.mubr.msk.f32.mxu1 %vm493_vm0, %v21629_v60  ;;  %v23995_v60 = vld [vmem:[#allocation31_spill] sm:$0xff] }
 0x4a5   : > { %17632 = vmatmul.mubr.msk.f32.gmra.mrb[14].mxu1 %vm493_vm0, %v21633_v61  ;;  %v18761_v61 = vpack.c.bf16 %v23995_v60, %v23994_v57  ;;  %v22246_v57 = vld [vmem:[%s23632_s11 + $0x30] sm:$0xff]  ;;  %v6822_v60 = vld [vmem:[#allocation2 + $0x79] sm:$0xff] }
 0x4a6   : > { %17634 = vmatprep.mubr.msk.f32.mxu1 %vm493_vm0, %v21637_v6  ;;  %v23996_v6 = vld [vmem:[#allocation14_spill] sm:$0xff] }
 0x4a7   : > { %v18763_v4 = vpack.c.bf16 %v23997_v2, %v23996_v6  ;;  %18762 = vmatprep.subr.bf16.mxu0 %v18761_v61  ;;  %v22252_v61 = vld [vmem:[%s23632_s11 + $0x48] sm:$0xff]  ;;  %v22260_v2 = vld [vmem:[%s23632_s11 + $0x40] sm:$0xff] }
 0x4a8   : > { %v6823_v6 = vld [vmem:[#allocation2 + $0x81] sm:$0xff] }
 0x4a9   : > { %17635 = vmatmul.mubr.msk.f32.gmra.mrb[16].mxu1 %vm493_vm0, %v21641_v24  ;;  %18764 = vmatpush3.bf16.msra.mxu0 %v18763_v4  ;;  %v23998_v24 = vld [vmem:[#allocation32_spill] sm:$0xff] }
 0x4aa   : > { %17637 = vmatprep.mubr.msk.f32.mxu1 %vm493_vm0, %v21645_v13  ;;  %v23999_v13 = vld [vmem:[#allocation33_spill] sm:$0xff]  ;;  %v6824_v4 = vld [vmem:[#allocation2 + $0x91] sm:$0xff] }
 0x4ad   : > { %17638 = vmatmul.mubr.msk.f32.gmra.mrb[18].mxu1 %vm493_vm0, %v21649_v62  ;;  %v18765_v62 = vpack.c.bf16 %v23999_v13, %v23998_v24  ;;  %v22266_v24 = vld [vmem:[%s23632_s11 + $0x58] sm:$0xff] }
 0x4ae   : > { %17640 = vmatprep.mubr.msk.f32.mxu1 %vm493_vm0, %v21653_v11  ;;  %v24000_v11 = vld [vmem:[#allocation16_spill] sm:$0xff]  ;;  %v6825_v13 = vld [vmem:[#allocation2 + $0x99] sm:$0xff] }
 0x4af   : > { %v18767_v56 = vpack.c.bf16 %v24001_v7, %v24000_v11  ;;  %18766 = vmatprep.subr.bf16.mxu0 %v18765_v62  ;;  %v22274_v62 = vld [vmem:[%s23632_s11 + $0x50] sm:$0xff]  ;;  %v22280_v7 = vld [vmem:[%s23632_s11 + $0x68] sm:$0xff] }
 0x4b0   : > { %v6826_v11 = vld [vmem:[#allocation2 + $0xa9] sm:$0xff] }
 0x4b1   : > { %17641 = vmatmul.mubr.msk.f32.gmra.mrb[20].mxu1 %vm493_vm0, %v21657_v43  ;;  %18768 = vmatpush3.bf16.msra.mxu0 %v18767_v56  ;;  %v24002_v43 = vld [vmem:[#allocation34_spill] sm:$0xff]  ;;  %v6827_v56 = vld [vmem:[#allocation2 + $0xb1] sm:$0xff] }
 0x4b2   : > { %17643 = vmatprep.mubr.msk.f32.mxu1 %vm493_vm0, %v21661_v47  ;;  %v24003_v47 = vld [vmem:[#allocation35_spill] sm:$0xff] }
 0x4b5   : > { %17644 = vmatmul.mubr.msk.f32.gmra.mrb[22].mxu1 %vm493_vm0, %v21665_v42  ;;  %v18769_v42 = vpack.c.bf16 %v24003_v47, %v24002_v43  ;;  %v22288_v43 = vld [vmem:[%s23632_s11 + $0x60] sm:$0xff] }
 0x4b6   : > { %17646 = vmatprep.mubr.msk.f32.mxu1 %vm493_vm0, %v21669_v0  ;;  %v24004_v0 = vld [vmem:[#allocation18_spill] sm:$0xff] }
 0x4b7   : > { %v18771_v10 = vpack.c.bf16 %v24005_v49, %v24004_v0  ;;  %18770 = vmatprep.subr.bf16.mxu0 %v18769_v42  ;;  %v6828_v47 = vld [vmem:[#allocation2 + $0xc1] sm:$0xff]  ;;  %v22294_v42 = vld [vmem:[%s23632_s11 + $0x78] sm:$0xff]  ;;  %v6829_v0 = vld [vmem:[#allocation2 + $0xc9] sm:$0xff] }
 0x4b8   : > { %v22302_v49 = vld [vmem:[%s23632_s11 + $0x70] sm:$0xff] }
 0x4b9   : > { %17647 = vmatmul.mubr.msk.f32.gmra.mrb[24].mxu1 %vm493_vm0, %v21673_v48  ;;  %18772 = vmatpush3.bf16.msra.mxu0 %v18771_v10  ;;  %v24006_v48 = vld [vmem:[#allocation38_spill] sm:$0xff]  ;;  %v6830_v10 = vld [vmem:[#allocation2 + $0xd9] sm:$0xff] }
 0x4ba   : > { %17649 = vmatprep.mubr.msk.f32.mxu1 %vm493_vm0, %v21677_v1  ;;  %v24007_v1 = vld [vmem:[#allocation39_spill] sm:$0xff] }
 0x4bd   : > { %17650 = vmatmul.mubr.msk.f32.gmra.mrb[26].mxu1 %vm493_vm0, %v21681_v5  ;;  %v18773_v5 = vpack.c.bf16 %v24007_v1, %v24006_v48  ;;  %v6831_v48 = vld [vmem:[#allocation2 + $0xe1] sm:$0xff]  ;;  %v6832_v1 = vld [vmem:[#allocation2 + $0xf1] sm:$0xff] }
 0x4be   : > { %17652 = vmatprep.mubr.msk.f32.mxu1 %vm493_vm0, %v21685_v8  ;;  %v24008_v8 = vld [vmem:[#allocation20_spill] sm:$0xff] }
 0x4bf   : > { %v18775_v52 = vpack.c.bf16 %v24009_v15, %v24008_v8  ;;  %18774 = vmatprep.subr.bf16.mxu0 %v18773_v5  ;;  %v6833_v5 = vld [vmem:[#allocation2 + $0xf9] sm:$0xff]  ;;  %v6834_v8 = vld [vmem:[#allocation2 + $0x109] sm:$0xff]  ;;  %v6835_v15 = vld [vmem:[#allocation2 + $0x111] sm:$0xff] }
 0x4c1   : > { %17653 = vmatmul.mubr.msk.f32.gmra.mrb[28].mxu1 %vm493_vm0, %v21689_v16  ;;  %18776 = vmatpush3.bf16.msra.mxu0 %v18775_v52  ;;  %v6457_v16 = vld [vmem:[#allocation2 + $0x1a0] sm:$0xff] }
 0x4c2   : > { %17655 = vmatprep.mubr.msk.f32.mxu1 %vm493_vm0, %v21693_v38  ;;  %v6816_v38 = vld [vmem:[#allocation2 + $0x31] sm:$0xff]  ;;  %v6836_v52 = vld [vmem:[#allocation2 + $0x121] sm:$0xff] }
 0x4c5   : > { %17656 = vmatmul.mubr.msk.f32.gmra.mrb[30].mxu1 %vm493_vm0, %v21697_v39  ;;  %v15078_v39 = vld [vmem:[%s23623_s2 + $0x110] sm:$0xff] }
 0x4c6   : > { %17658 = vmatprep.mubr.msk.f32.mxu1 %vm493_vm0, %v21912_v54  ;;  %v15079_v54 = vld [vmem:[%s23623_s2 + $0x118] sm:$0xff] }
 0x4c7   : > { %v18741_v12 = vpack.c.bf16 %v15079_v54, %v15078_v39  ;;  %v7720_v39 = vld [vmem:[%s23624_s3 + $0x18] sm:$0xff] }
 0x4c9   : > { %17659 = vmatmul.mubr.msk.f32.gmra.mrb[32].mxu1 %vm493_vm0, %v21916_v22  ;;  %v22203_v22 = vld [vmem:[%s23632_s11] sm:$0xff] }
 0x4ca   : > { %17661 = vmatprep.mubr.msk.f32.mxu1 %vm493_vm0, %v6456_v55  ;;  %7677 = vmatmul.mubr.f32.vlgmr.msra.gmra.mrb[32].mxu0 %v22203_v22  ;;  %v6837_v55 = vld [vmem:[#allocation2 + $0x129] sm:$0xff] }
 0x4cb   : > { %7681 = vmatprep.mubr.f32.mxu0 %v22208_v27 }
 0x4cd   : > { %17662 = vmatmul.mubr.msk.f32.gmra.mrb[34].mxu1 %vm493_vm0, %v6457_v16  ;;  %v6838_v16 = vld [vmem:[#allocation2 + $0x139] sm:$0xff] }
 0x4ce   : > { %17672 = vmatprep.mubr.msk.f32.mxu1 %vm493_vm0, %v6816_v38  ;;  %7682 = vmatmul.mubr.f32.gmra.mrb[34].mxu0 %v22217_v36  ;;  %v6846_v38 = vld [vmem:[#allocation2 + $0x199] sm:$0xff] }
 0x4cf   : > { %7686 = vmatprep.mubr.f32.mxu0 %v22223_v30 }
 0x4d1   : > { %17673 = vmatmul.mubr.msk.f32.vlgmr.msra.gmra.mrb[4].mxu1 %vm493_vm0, %v6817_v3 }
 0x4d2   : > { %17675 = vmatprep.mubr.msk.f32.mxu1 %vm493_vm0, %v6818_v29  ;;  %18740 = vmatpush3.bf16.msra.mxu1 %v22102_v18  ;;  %v6821_v18 = vld [vmem:[#allocation2 + $0x69] sm:$0xff] }
 0x4d3   : > { %18742 = vmatprep.subr.bf16.mxu1 %v18741_v12  ;;  %7687 = vmatmul.mubr.f32.gmra.mrb[36].mxu0 %v22232_v45 }
 0x4d4   : > { %7691 = vmatprep.mubr.f32.mxu0 %v22238_v59 }
 0x4d5   : > { %17676 = vmatmul.mubr.msk.f32.gmra.mrb[6].mxu1 %vm493_vm0, %v6819_v32 }
 0x4d6   : > { %17678 = vmatprep.mubr.msk.f32.mxu1 %vm493_vm0, %v6820_v53  ;;  %18744 = vmatpush3.bf16.msra.mxu1 %v18741_v12 }
 0x4d7   : > { %7692 = vmatmul.mubr.f32.gmra.mrb[38].mxu0 %v22246_v57 }
 0x4d8   : > { %7696 = vmatprep.mubr.f32.mxu0 %v22252_v61 }
 0x4d9   : > { %17679 = vmatmul.mubr.msk.f32.gmra.mrb[8].mxu1 %vm493_vm0, %v6821_v18 }
 0x4da   : > { %17681 = vmatprep.mubr.msk.f32.mxu1 %vm493_vm0, %v6822_v60 }
 0x4db   : > { %7697 = vmatmul.mubr.f32.gmra.mrb[40].mxu0 %v22260_v2 }
 0x4dc   : > { %7701 = vmatprep.mubr.f32.mxu0 %v22266_v24 }
 0x4dd   : > { %17682 = vmatmul.mubr.msk.f32.gmra.mrb[10].mxu1 %vm493_vm0, %v6823_v6 }
 0x4de   : > { %17684 = vmatprep.mubr.msk.f32.mxu1 %vm493_vm0, %v6824_v4 }
 0x4df   : > { %7702 = vmatmul.mubr.f32.gmra.mrb[42].mxu0 %v22274_v62 }
 0x4e0   : > { %7706 = vmatprep.mubr.f32.mxu0 %v22280_v7 }
 0x4e1   : > { %17685 = vmatmul.mubr.msk.f32.gmra.mrb[12].mxu1 %vm493_vm0, %v6825_v13 }
 0x4e2   : > { %17687 = vmatprep.mubr.msk.f32.mxu1 %vm493_vm0, %v6826_v11 }
 0x4e3   : > { %7707 = vmatmul.mubr.f32.gmra.mrb[44].mxu0 %v22288_v43 }
 0x4e4   : > { %7711 = vmatprep.mubr.f32.mxu0 %v22294_v42 }
 0x4e5   : > { %17688 = vmatmul.mubr.msk.f32.gmra.mrb[14].mxu1 %vm493_vm0, %v6827_v56 }
 0x4e6   : > { %17690 = vmatprep.mubr.msk.f32.mxu1 %vm493_vm0, %v6828_v47 }
 0x4e7   : > { %7712 = vmatmul.mubr.f32.gmra.mrb[46].mxu0 %v22302_v49 }
 0x4e8   : > { %7914 = vmatprep.mubr.f32.mxu0 %v22198_v25 }
 0x4e9   : > { %17691 = vmatmul.mubr.msk.f32.gmra.mrb[16].mxu1 %vm493_vm0, %v6829_v0 }
 0x4ea   : > { %17693 = vmatprep.mubr.msk.f32.mxu1 %vm493_vm0, %v6830_v10 }
 0x4ed   : > { %17694 = vmatmul.mubr.msk.f32.gmra.mrb[18].mxu1 %vm493_vm0, %v6831_v48 }
 0x4ee   : > { %17696 = vmatprep.mubr.msk.f32.mxu1 %vm493_vm0, %v6832_v1 }
 0x4f1   : > { %17697 = vmatmul.mubr.msk.f32.gmra.mrb[20].mxu1 %vm493_vm0, %v6833_v5 }
 0x4f2   : > { %17699 = vmatprep.mubr.msk.f32.mxu1 %vm493_vm0, %v6834_v8 }
 0x4f5   : > { %17700 = vmatmul.mubr.msk.f32.gmra.mrb[22].mxu1 %vm493_vm0, %v6835_v15 }
 0x4f6   : > { %17702 = vmatprep.mubr.msk.f32.mxu1 %vm493_vm0, %v6836_v52 }
 0x4f9   : > { %17703 = vmatmul.mubr.msk.f32.gmra.mrb[24].mxu1 %vm493_vm0, %v6837_v55 }
 0x4fa   : > { %17705 = vmatprep.mubr.msk.f32.mxu1 %vm493_vm0, %v6838_v16 }
 0x4fd   : > { %17706 = vmatmul.mubr.msk.f32.gmra.mrb[26].mxu1 %vm493_vm0, %v23944_v31  ;;  %v6847_v31 = vld [vmem:[#allocation2 + $0x1a1] sm:$0xff] }
 0x4fe   : > { %17708 = vmatprep.mubr.msk.f32.mxu1 %vm493_vm0, %v23945_v40  ;;  %v24010_v40 = vld [vmem:[#allocation58_spill] sm:$0xff] }
 0x501   : > { %17709 = vmatmul.mubr.msk.f32.gmra.mrb[28].mxu1 %vm493_vm0, %v23946_v51  ;;  %v24011_v51 = vld [vmem:[#allocation59_spill] sm:$0xff] }
 0x502   : > { %17711 = vmatprep.mubr.msk.f32.mxu1 %vm493_vm0, %v23947_v58  ;;  %v24012_v58 = vld [vmem:[#allocation60_spill] sm:$0xff] }
 0x505   : > { %17712 = vmatmul.mubr.msk.f32.gmra.mrb[30].mxu1 %vm493_vm0, %v23948_v37  ;;  %v24013_v37 = vld [vmem:[#allocation63_spill] sm:$0xff] }
 0x506   : > { %17714 = vmatprep.mubr.msk.f32.mxu1 %vm493_vm0, %v21992_v33  ;;  %v24014_v33 = vld [vmem:[#allocation65_spill] sm:$0xff] }
 0x509   : > { %17715 = vmatmul.mubr.msk.f32.gmra.mrb[32].mxu1 %vm493_vm0, %v21996_v20  ;;  %v24015_v20 = vld [vmem:[#allocation61_spill] sm:$0xff] }
 0x50a   : > { %17717 = vmatprep.mubr.msk.f32.mxu1 %vm493_vm0, %v6846_v38 }
 0x50d   : > { %17718 = vmatmul.mubr.msk.f32.gmra.mrb[34].mxu1 %vm493_vm0, %v6847_v31 }
 0x50e   : > { %17728 = vmatprep.mubr.msk.f32.mxu1 %vm493_vm0, %v23949_v9  ;;  %v24016_v9 = vld [vmem:[#allocation62_spill] sm:$0xff] }
 0x511   : > { %17729 = vmatmul.mubr.msk.f32.vlgmr.msra.gmra.mrb[4].mxu1 %vm493_vm0, %v23950_v14  ;;  %v24017_v14 = vld [vmem:[#allocation64_spill] sm:$0xff] }
 0x512   : > { %17731 = vmatprep.mubr.msk.f32.mxu1 %vm493_vm0, %v23951_v41  ;;  %v24018_v41 = vld [vmem:[#allocation66_spill] sm:$0xff] }
 0x515   : > { %17732 = vmatmul.mubr.msk.f32.gmra.mrb[6].mxu1 %vm493_vm0, %v23952_v23  ;;  %v24019_v23 = vld [vmem:[#allocation67_spill] sm:$0xff] }
 0x516   : > { %17734 = vmatprep.mubr.msk.f32.mxu1 %vm493_vm0, %v23953_v21  ;;  %v24020_v21 = vld [vmem:[#allocation69_spill] sm:$0xff] }
 0x519   : > { %17735 = vmatmul.mubr.msk.f32.gmra.mrb[8].mxu1 %vm493_vm0, %v23954_v26  ;;  %v24021_v26 = vld [vmem:[#allocation70_spill] sm:$0xff] }
 0x51a   : > { %17737 = vmatprep.mubr.msk.f32.mxu1 %vm493_vm0, %v23955_v28  ;;  %v24022_v28 = vld [vmem:[#allocation36_spill] sm:$0xff] }
 0x51d   : > { %17738 = vmatmul.mubr.msk.f32.gmra.mrb[10].mxu1 %vm493_vm0, %v23956_v44  ;;  %v24023_v44 = vld [vmem:[#allocation37_spill] sm:$0xff] }
 0x51e   : > { %17740 = vmatprep.mubr.msk.f32.mxu1 %vm493_vm0, %v23957_v50  ;;  %v24024_v50 = vld [vmem:[#allocation68_spill] sm:$0xff] }
 0x521   : > { %17741 = vmatmul.mubr.msk.f32.gmra.mrb[12].mxu1 %vm493_vm0, %v23958_v17  ;;  %v7236_v17 = vld [vmem:[#allocation2 + $0x19a] sm:$0xff] }
 0x522   : > { %17743 = vmatprep.mubr.msk.f32.mxu1 %vm493_vm0, %v23959_v19  ;;  %v7237_v19 = vld [vmem:[#allocation2 + $0x1a2] sm:$0xff] }
 0x525   : > { %17744 = vmatmul.mubr.msk.f32.gmra.mrb[14].mxu1 %vm493_vm0, %v23960_v35  ;;  %v7717_v35 = vld [vmem:[%s23624_s3] sm:$0xff] }
 0x526   : > { %17746 = vmatprep.mubr.msk.f32.mxu1 %vm493_vm0, %v23961_v63  ;;  %v7718_v63 = vld [vmem:[%s23624_s3 + $0x8] sm:$0xff] }
 0x529   : > { %17747 = vmatmul.mubr.msk.f32.gmra.mrb[16].mxu1 %vm493_vm0, %v23962_v34  ;;  %v18777_v34 = vpack.c.bf16 %v7718_v63, %v7717_v35 }
 0x52a   : > { %17749 = vmatprep.mubr.msk.f32.mxu1 %vm493_vm0, %v24010_v40 }
 0x52b   : > { %18778 = vmatprep.subr.bf16.mxu1 %v18777_v34 }
 0x52c   : > { %18780 = vmatpush3.bf16.msra.mxu1 %v18777_v34 }
 0x52d   : > { %17750 = vmatmul.mubr.msk.f32.gmra.mrb[18].mxu1 %vm493_vm0, %v24011_v51 }
 0x52e   : > { %17752 = vmatprep.mubr.msk.f32.mxu1 %vm493_vm0, %v24012_v58 }
 0x531   : > { %17753 = vmatmul.mubr.msk.f32.gmra.mrb[20].mxu1 %vm493_vm0, %v24013_v37 }
 0x532   : > { %17755 = vmatprep.mubr.msk.f32.mxu1 %vm493_vm0, %v24014_v33 }
 0x535   : > { %17756 = vmatmul.mubr.msk.f32.gmra.mrb[22].mxu1 %vm493_vm0, %v24015_v20 }
 0x536   : > { %17758 = vmatprep.mubr.msk.f32.mxu1 %vm493_vm0, %v24016_v9 }
 0x539   : > { %17759 = vmatmul.mubr.msk.f32.gmra.mrb[24].mxu1 %vm493_vm0, %v24017_v14 }
 0x53a   : > { %17761 = vmatprep.mubr.msk.f32.mxu1 %vm493_vm0, %v24018_v41 }
 0x53d   : > { %17762 = vmatmul.mubr.msk.f32.gmra.mrb[26].mxu1 %vm493_vm0, %v24019_v23 }
 0x53e   : > { %17764 = vmatprep.mubr.msk.f32.mxu1 %vm493_vm0, %v24020_v21 }
 0x541   : > { %17765 = vmatmul.mubr.msk.f32.gmra.mrb[28].mxu1 %vm493_vm0, %v24021_v26 }
 0x542   : > { %17767 = vmatprep.mubr.msk.f32.mxu1 %vm493_vm0, %v24022_v28 }
 0x545   : > { %17768 = vmatmul.mubr.msk.f32.gmra.mrb[30].mxu1 %vm493_vm0, %v24023_v44 }
 0x546   : > { %17770 = vmatprep.mubr.msk.f32.mxu1 %vm493_vm0, %v24024_v50 }
 0x549   : > { %17771 = vmatmul.mubr.msk.f32.gmra.mrb[32].mxu1 %vm493_vm0, %v22076_v46  ;;  %v7719_v46 = vld [vmem:[%s23624_s3 + $0x10] sm:$0xff] }
 0x54a   : > { %17773 = vmatprep.mubr.msk.f32.mxu1 %vm493_vm0, %v7236_v17  ;;  %v18781_v54 = vpack.c.bf16 %v7720_v39, %v7719_v46 }
 0x54c   : > { %18782 = vmatprep.subr.bf16.mxu1 %v18781_v54 }
 0x54d   : > { %17774 = vmatmul.mubr.msk.f32.gmra.mrb[34].mxu1 %vm493_vm0, %v7237_v19 }
 0x54e   : > { %18784 = vmatpush3.bf16.msra.mxu1 %v18781_v54 }
 0x59d   : > { %v16218_v25 = vpop.f32.mrb[32].mxu0 }
 0x59e   : > { %v16219_v12 = vpop.f32.mrb[33].mxu0 }
 0x59f   : > { %v16220_v3 = vadd.f32 %v16219_v12, %v16218_v25 }
 0x5a1   : > { %v16221_v29 = vpop.f32.mrb[34].mxu0  ;;  %17784 = vmatprep.mubr.msk.f32.mxu1 %vm493_vm0, %v16220_v3 }
 0x5a2   : > { %v16222_v32 = vpop.f32.mrb[35].mxu0 }
 0x5a3   : > { %v16223_v53 = vadd.f32 %v16222_v32, %v16221_v29 }
 0x5a5   : > { %17785 = vmatmul.mubr.msk.f32.vlgmr.msra.gmra.mrb[36].mxu1 %vm493_vm0, %v16223_v53 }
 0x5a6   : > { %v16224_v18 = vpop.f32.mrb[36].mxu0 }
 0x5a7   : > { %v16225_v60 = vpop.f32.mrb[37].mxu0 }
 0x5a8   : > { %v16226_v6 = vadd.f32 %v16225_v60, %v16224_v18 }
 0x5aa   : > { %v16227_v4 = vpop.f32.mrb[38].mxu0  ;;  %17787 = vmatprep.mubr.msk.f32.mxu1 %vm493_vm0, %v16226_v6 }
 0x5ab   : > { %v16228_v13 = vpop.f32.mrb[39].mxu0 }
 0x5ac   : > { %v16229_v11 = vadd.f32 %v16228_v13, %v16227_v4 }
 0x5ae   : > { %17788 = vmatmul.mubr.msk.f32.gmra.mrb[38].mxu1 %vm493_vm0, %v16229_v11  ;;  %v16230_v56 = vpop.f32.mrb[40].mxu0 }
 0x5af   : > { %v16231_v47 = vpop.f32.mrb[41].mxu0 }
 0x5b0   : > { %v16232_v0 = vadd.f32 %v16231_v47, %v16230_v56 }
 0x5b2   : > { %v16233_v10 = vpop.f32.mrb[42].mxu0  ;;  %17790 = vmatprep.mubr.msk.f32.mxu1 %vm493_vm0, %v16232_v0 }
 0x5b3   : > { %v16234_v48 = vpop.f32.mrb[43].mxu0 }
 0x5b4   : > { %v16235_v1 = vadd.f32 %v16234_v48, %v16233_v10 }
 0x5b6   : > { %17791 = vmatmul.mubr.msk.f32.gmra.mrb[40].mxu1 %vm493_vm0, %v16235_v1  ;;  %v16236_v5 = vpop.f32.mrb[44].mxu0 }
 0x5b7   : > { %v16237_v8 = vpop.f32.mrb[45].mxu0 }
 0x5b8   : > { %v16238_v15 = vadd.f32 %v16237_v8, %v16236_v5 }
 0x5ba   : > { %v16239_v52 = vpop.f32.mrb[46].mxu0  ;;  %17793 = vmatprep.mubr.msk.f32.mxu1 %vm493_vm0, %v16238_v15 }
 0x5bb   : > { %v16240_v55 = vpop.f32.mrb[47].mxu0 }
 0x5bc   : > { %v16241_v16 = vadd.f32 %v16240_v55, %v16239_v52 }
 0x5be   : > { %17794 = vmatmul.mubr.msk.f32.gmra.mrb[42].mxu1 %vm493_vm0, %v16241_v16  ;;  %v7980_v16 = vld [vmem:[%s23625_s4] sm:$0xff] }
 0x5e4   : > { %v17730_v38 = vpop.f32.mrb[4].mxu1 }
 0x5e5   : > { %v7405_v31 = vpop.f32.mrb[5].mxu1 }
 0x5e6   : > { %v18787_v40 = vpack.c.bf16 %v17730_v38, %v7405_v31  ;;  %v7981_v38 = vld [vmem:[%s23625_s4 + $0x8] sm:$0xff] }
 0x5e7   : > { %v18825_v31 = vpack.c.bf16 %v7981_v38, %v7980_v16  ;;  %v15225_v16 = vld [vmem:[%s23626_s5 + $0x28] sm:$0xff]  ;;  %v15226_v38 = vld [vmem:[%s23626_s5 + $0x30] sm:$0xff] }
 0x5e8   : > { %v17733_v51 = vpop.f32.mrb[6].mxu1 }
 0x5e9   : > { %v7415_v58 = vpop.f32.mrb[7].mxu1 }
 0x5ea   : > { %v18791_v37 = vpack.c.bf16 %v17733_v51, %v7415_v58 }
 0x5ec   : > { %v17736_v33 = vpop.f32.mrb[8].mxu1 }
 0x5ed   : > { %v7425_v20 = vpop.f32.mrb[9].mxu1 }
 0x5ee   : > { %v18795_v9 = vpack.c.bf16 %v17736_v33, %v7425_v20 }
 0x5f0   : > { %v17739_v14 = vpop.f32.mrb[10].mxu1 }
 0x5f1   : > { %v7435_v41 = vpop.f32.mrb[11].mxu1 }
 0x5f2   : > { %v18799_v23 = vpack.c.bf16 %v17739_v14, %v7435_v41 }
 0x5f4   : > { %v17742_v21 = vpop.f32.mrb[12].mxu1 }
 0x5f5   : > { %v7445_v26 = vpop.f32.mrb[13].mxu1 }
 0x5f6   : > { %v18803_v28 = vpack.c.bf16 %v17742_v21, %v7445_v26 }
 0x5f8   : > { %v17745_v44 = vpop.f32.mrb[14].mxu1 }
 0x5f9   : > { %v7455_v50 = vpop.f32.mrb[15].mxu1 }
 0x5fa   : > { %v18807_v17 = vpack.c.bf16 %v17745_v44, %v7455_v50  ;;  %v7982_v50 = vld [vmem:[%s23625_s4 + $0x10] sm:$0xff] }
 0x5fc   : > { %v17748_v19 = vpop.f32.mrb[16].mxu1 }
 0x5fd   : > { %v7465_v35 = vpop.f32.mrb[17].mxu1 }
 0x5fe   : > { %v18811_v63 = vpack.c.bf16 %v17748_v19, %v7465_v35 }
 0x600   : > { %v17751_v34 = vpop.f32.mrb[18].mxu1 }
 0x601   : > { %v7475_v46 = vpop.f32.mrb[19].mxu1 }
 0x602   : > { %v18815_v39 = vpack.c.bf16 %v17751_v34, %v7475_v46 }
 0x604   : > { %v17754_v54 = vpop.f32.mrb[20].mxu1 }
 0x605   : > { %v7485_v25 = vpop.f32.mrb[21].mxu1 }
 0x606   : > { %v18785_v12 = vpack.c.bf16 %v17754_v54, %v7485_v25  ;;  %v15140_v25 = vld [vmem:[%s23625_s4 + $0x40] sm:$0xff] }
 0x608   : > { %v17757_v3 = vpop.f32.mrb[22].mxu1  ;;  %18786 = vmatprep.subr.bf16.mxu0 %v18785_v12  ;;  %v15141_v12 = vld [vmem:[%s23625_s4 + $0x48] sm:$0xff] }
 0x609   : > { %v7495_v29 = vpop.f32.mrb[23].mxu1  ;;  %18788 = vmatpush3.bf16.msra.mxu0 %v18787_v40 }
 0x60a   : > { %v18789_v32 = vpack.c.bf16 %v17757_v3, %v7495_v29 }
 0x60c   : > { %v17760_v53 = vpop.f32.mrb[24].mxu1  ;;  %18790 = vmatprep.subr.bf16.mxu0 %v18789_v32 }
 0x60d   : > { %v7505_v18 = vpop.f32.mrb[25].mxu1  ;;  %18792 = vmatpush3.bf16.msra.mxu0 %v18791_v37 }
 0x60e   : > { %v18793_v60 = vpack.c.bf16 %v17760_v53, %v7505_v18 }
 0x610   : > { %v17763_v6 = vpop.f32.mrb[26].mxu1  ;;  %18794 = vmatprep.subr.bf16.mxu0 %v18793_v60  ;;  %v18833_v60 = vpack.c.bf16 %v15141_v12, %v15140_v25 }
 0x611   : > { %v7515_v4 = vpop.f32.mrb[27].mxu1  ;;  %18796 = vmatpush3.bf16.msra.mxu0 %v18795_v9 }
 0x612   : > { %v18797_v13 = vpack.c.bf16 %v17763_v6, %v7515_v4 }
 0x614   : > { %v17766_v11 = vpop.f32.mrb[28].mxu1  ;;  %18798 = vmatprep.subr.bf16.mxu0 %v18797_v13 }
 0x615   : > { %v7525_v56 = vpop.f32.mrb[29].mxu1  ;;  %18800 = vmatpush3.bf16.msra.mxu0 %v18799_v23 }
 0x616   : > { %v18801_v47 = vpack.c.bf16 %v17766_v11, %v7525_v56 }
 0x618   : > { %v17769_v0 = vpop.f32.mrb[30].mxu1  ;;  %18802 = vmatprep.subr.bf16.mxu0 %v18801_v47 }
 0x619   : > { %v7535_v10 = vpop.f32.mrb[31].mxu1  ;;  %18804 = vmatpush3.bf16.msra.mxu0 %v18803_v28 }
 0x61a   : > { %v18805_v48 = vpack.c.bf16 %v17769_v0, %v7535_v10 }
 0x61c   : > { %v17772_v1 = vpop.f32.mrb[32].mxu1  ;;  %18806 = vmatprep.subr.bf16.mxu0 %v18805_v48 }
 0x61d   : > { %v7545_v5 = vpop.f32.mrb[33].mxu1  ;;  %18808 = vmatpush3.bf16.msra.mxu0 %v18807_v17  ;;  %v7983_v17 = vld [vmem:[%s23625_s4 + $0x18] sm:$0xff] }
 0x61e   : > { %v18809_v8 = vpack.c.bf16 %v17772_v1, %v7545_v5 }
 0x620   : > { %v17775_v15 = vpop.f32.mrb[34].mxu1  ;;  %18810 = vmatprep.subr.bf16.mxu0 %v18809_v8 }
 0x621   : > { %v7555_v52 = vpop.f32.mrb[35].mxu1  ;;  %18812 = vmatpush3.bf16.msra.mxu0 %v18811_v63 }
 0x622   : > { %v18813_v55 = vpack.c.bf16 %v17775_v15, %v7555_v52 }
 0x624   : > { %18814 = vmatprep.subr.bf16.mxu0 %v18813_v55 }
 0x625   : > { %18816 = vmatpush3.bf16.msra.mxu0 %v18815_v39  ;;  %v18829_v39 = vpack.c.bf16 %v7983_v17, %v7982_v50  ;;  %v15154_v17 = vld [vmem:[%s23625_s4 + $0x70] sm:$0xff] }
 0x628   : > { %7915 = vmatmul.mubr.f32.vlgmr.msra.gmra.mrb[48].mxu0 %v22203_v22 }
 0x629   : > { %7919 = vmatprep.mubr.f32.mxu0 %v22208_v27 }
 0x62c   : > { %7920 = vmatmul.mubr.f32.gmra.mrb[50].mxu0 %v22217_v36  ;;  %v15120_v36 = vld [vmem:[%s23625_s4 + $0x20] sm:$0xff] }
 0x62d   : > { %7924 = vmatprep.mubr.f32.mxu0 %v22223_v30  ;;  %v15121_v30 = vld [vmem:[%s23625_s4 + $0x28] sm:$0xff] }
 0x630   : > { %7925 = vmatmul.mubr.f32.gmra.mrb[52].mxu0 %v22232_v45  ;;  %v18817_v45 = vpack.c.bf16 %v15121_v30, %v15120_v36 }
 0x631   : > { %7929 = vmatprep.mubr.f32.mxu0 %v22238_v59 }
 0x632   : > { %18818 = vmatprep.subr.bf16.mxu1 %v18817_v45 }
 0x633   : > { %18820 = vmatpush3.bf16.msra.mxu1 %v18817_v45 }
 0x634   : > { %7930 = vmatmul.mubr.f32.gmra.mrb[54].mxu0 %v22246_v57 }
 0x635   : > { %7934 = vmatprep.mubr.f32.mxu0 %v22252_v61  ;;  %v15122_v61 = vld [vmem:[%s23625_s4 + $0x30] sm:$0xff] }
 0x638   : > { %7935 = vmatmul.mubr.f32.gmra.mrb[56].mxu0 %v22260_v2  ;;  %v15123_v2 = vld [vmem:[%s23625_s4 + $0x38] sm:$0xff] }
 0x639   : > { %7939 = vmatprep.mubr.f32.mxu0 %v22266_v24  ;;  %v18821_v24 = vpack.c.bf16 %v15123_v2, %v15122_v61 }
 0x63b   : > { %18822 = vmatprep.subr.bf16.mxu1 %v18821_v24 }
 0x63c   : > { %7940 = vmatmul.mubr.f32.gmra.mrb[58].mxu0 %v22274_v62  ;;  %18824 = vmatpush3.bf16.msra.mxu1 %v18821_v24  ;;  %v7984_v62 = vld [vmem:[#allocation3 + $0x1] sm:$0xff] }
 0x63d   : > { %7944 = vmatprep.mubr.f32.mxu0 %v22280_v7  ;;  %17804 = vmatprep.mubr.msk.f32.mxu1 %vm493_vm0, %v7984_v62 }
 0x63e   : > { %18826 = vmatprep.subr.bf16.mxu1 %v18825_v31 }
 0x640   : > { %7945 = vmatmul.mubr.f32.gmra.mrb[60].mxu0 %v22288_v43 }
 0x641   : > { %7949 = vmatprep.mubr.f32.mxu0 %v22294_v42 }
 0x644   : > { %7950 = vmatmul.mubr.f32.gmra.mrb[62].mxu0 %v22302_v49 }
 0x645   : > { %17984 = vmatprep.mubr.msk.f32.mxu0 %vm493_vm0, %v7984_v62  ;;  %v22507_v62 = vld [vmem:[#allocation3] sm:$0xff] }
 0x678   : > { %v17786_v22 = vpop.f32.mrb[36].mxu1 }
 0x679   : > { %v7811_v27 = vpop.f32.mrb[37].mxu1 }
 0x681   : > { %v17789_v59 = vpop.f32.mrb[38].mxu1 }
 0x682   : > { %v7821_v57 = vpop.f32.mrb[39].mxu1 }
 0x689   : > { %v17792_v7 = vpop.f32.mrb[40].mxu1 }
 0x68a   : > { %v7831_v43 = vpop.f32.mrb[41].mxu1 }
 0x691   : > { %v22443_v42 = vpop.f32.mrb[42].mxu1 }
 0x692   : > { %v22445_v49 = vpop.f32.mrb[43].mxu1 }
 0x6fb   : > { %v16286_v40 = vpop.f32.mrb[48].mxu0 }
 0x6fc   : > { %v16287_v51 = vpop.f32.mrb[49].mxu0 }
 0x6fd   : > { %v16288_v58 = vadd.f32 %v16287_v51, %v16286_v40  ;;  %v15227_v51 = vld [vmem:[%s23626_s5 + $0x38] sm:$0xff] }
 0x6ff   : > { %v7917_v37 = vadd.f32 %v16288_v58, %v7811_v27  ;;  %v16289_v33 = vpop.f32.mrb[50].mxu0 }
 0x700   : > { %v16290_v20 = vpop.f32.mrb[51].mxu0 }
 0x701   : > { %v7955_v9 = vmax.f32 %v7917_v37, 0.0  ;;  %v16291_v14 = vadd.f32 %v16290_v20, %v16289_v33  ;;  %v15153_v33 = vld [vmem:[%s23625_s4 + $0x68] sm:$0xff]  ;;  %v18893_v20 = vpack.c.bf16 %v15227_v51, %v15226_v38  ;;  %v15212_v38 = vld [vmem:[%s23625_s4 + $0x100] sm:$0xff] }
 0x702   : > { %v22709_v51 = vld [vmem:[#allocation3 + $0x90] sm:$0xff] }
 0x703   : > { %7964 = vst.msk [vmem:[#allocation3 + $0x11] sm:$0xff] %vm493_vm0, %v7955_v9  ;;  %v7922_v41 = vadd.f32 %v17786_v22, %v16291_v14  ;;  %v16292_v23 = vpop.f32.mrb[52].mxu0 }
 0x704   : > { %v16293_v21 = vpop.f32.mrb[53].mxu0 }
 0x705   : > { %v7956_v26 = vmax.f32 %v7922_v41, 0.0  ;;  %v16294_v28 = vadd.f32 %v16293_v21, %v16292_v23  ;;  %v22454_v44 = vpack.c.bf16 %v7922_v41, %v7917_v37  ;;  %v15152_v37 = vld [vmem:[%s23625_s4 + $0x60] sm:$0xff] }
 0x706   : > { %v18841_v14 = vpack.c.bf16 %v15153_v33, %v15152_v37  ;;  %v15215_v37 = vld [vmem:[%s23625_s4 + $0x118] sm:$0xff] }
 0x707   : > { %7965 = vst.msk [vmem:[#allocation3 + $0x21] sm:$0xff] %vm493_vm0, %v7956_v26  ;;  %v7927_v19 = vadd.f32 %v16294_v28, %v7821_v57  ;;  %v16295_v35 = vpop.f32.mrb[54].mxu0  ;;  %v22560_v28 = vld [vmem:[#allocation3 + $0x2] sm:$0xff] }
 0x708   : > { %v16296_v63 = vpop.f32.mrb[55].mxu0 }
 0x709   : > { %v7957_v34 = vmax.f32 %v7927_v19, 0.0  ;;  %v16297_v46 = vadd.f32 %v16296_v63, %v16295_v35 }
 0x70a   : > { %v22463_v54 = vld [vmem:[#allocation3 + $0x11] sm:$0xff] }
 0x70b   : > { %7966 = vst.msk [vmem:[#allocation3 + $0x31] sm:$0xff] %vm493_vm0, %v7957_v34  ;;  %v7932_v3 = vadd.f32 %v17789_v59, %v16297_v46  ;;  %v16298_v29 = vpop.f32.mrb[56].mxu0  ;;  %17805 = vmatmul.mubr.msk.f32.vlgmr.msra.gmra.mrb[44].mxu1 %vm493_vm0, %v22463_v54  ;;  %v7973_v58 = vld [vmem:[#allocation3 + $0x10] sm:$0xff]  ;;  %v15165_v46 = vld [vmem:[%s23625_s4 + $0x88] sm:$0xff] }
 0x70c   : > { %v16299_v32 = vpop.f32.mrb[57].mxu0  ;;  %18828 = vmatpush3.bf16.msra.mxu1 %v18825_v31  ;;  %v8256_v63 = vld [vmem:[#allocation3 + $0x12] sm:$0xff] }
 0x70d   : > { %v7958_v53 = vmax.f32 %v7932_v3, 0.0  ;;  %v16300_v18 = vadd.f32 %v16299_v32, %v16298_v29  ;;  %18830 = vmatprep.subr.bf16.mxu1 %v18829_v39  ;;  %v22474_v6 = vpack.c.bf16 %v7932_v3, %v7927_v19  ;;  %v15155_v19 = vld [vmem:[%s23625_s4 + $0x78] sm:$0xff]  ;;  %v15164_v34 = vld [vmem:[%s23625_s4 + $0x80] sm:$0xff] }
 0x70e   : > { %v22476_v4 = vld [vmem:[#allocation3 + $0x21] sm:$0xff]  ;;  %v18845_v35 = vpack.c.bf16 %v15155_v19, %v15154_v17  ;;  %v18849_v25 = vpack.c.bf16 %v15165_v46, %v15164_v34  ;;  %v15245_v34 = vld [vmem:[%s23626_s5 + $0x48] sm:$0xff] }
 0x70f   : > { %7967 = vst.msk [vmem:[#allocation3 + $0x41] sm:$0xff] %vm493_vm0, %v7958_v53  ;;  %v7937_v13 = vadd.f32 %v16300_v18, %v7831_v43  ;;  %v16301_v11 = vpop.f32.mrb[58].mxu0  ;;  %17807 = vmatprep.mubr.msk.f32.mxu1 %vm493_vm0, %v22476_v4  ;;  %v15142_v43 = vld [vmem:[%s23625_s4 + $0x50] sm:$0xff] }
 0x710   : > { %v16302_v56 = vpop.f32.mrb[59].mxu0  ;;  %18832 = vmatpush3.bf16.msra.mxu1 %v18829_v39  ;;  %v22540_v9 = vld [vmem:[#allocation3 + $0x20] sm:$0xff] }
 0x711   : > { %v7959_v47 = vmax.f32 %v7937_v13, 0.0  ;;  %v16303_v0 = vadd.f32 %v16302_v56, %v16301_v11  ;;  %18834 = vmatprep.subr.bf16.mxu1 %v18833_v60  ;;  %v22581_v39 = vld [vmem:[#allocation3 + $0x22] sm:$0xff]  ;;  %v15176_v11 = vld [vmem:[%s23625_s4 + $0xa0] sm:$0xff]  ;;  %v15177_v56 = vld [vmem:[%s23625_s4 + $0xa8] sm:$0xff] }
 0x712   : > { %v22481_v10 = vld [vmem:[#allocation3 + $0x31] sm:$0xff]  ;;  %v15166_v18 = vld [vmem:[%s23625_s4 + $0x90] sm:$0xff] }
 0x713   : > { %7968 = vst.msk [vmem:[#allocation3 + $0x51] sm:$0xff] %vm493_vm0, %v7959_v47  ;;  %v7942_v48 = vadd.f32 %v17792_v7, %v16303_v0  ;;  %v16304_v1 = vpop.f32.mrb[60].mxu0  ;;  %17808 = vmatmul.mubr.msk.f32.gmra.mrb[46].mxu1 %vm493_vm0, %v22481_v10  ;;  %v22544_v41 = vld [vmem:[#allocation3 + $0x30] sm:$0xff]  ;;  %v18857_v47 = vpack.c.bf16 %v15177_v56, %v15176_v11 }
 0x714   : > { %v16305_v5 = vpop.f32.mrb[61].mxu0  ;;  %v22585_v12 = vld [vmem:[#allocation3 + $0x32] sm:$0xff] }
 0x715   : > { %v7960_v8 = vmax.f32 %v7942_v48, 0.0  ;;  %v16306_v15 = vadd.f32 %v16305_v5, %v16304_v1  ;;  %v22486_v52 = vpack.c.bf16 %v7942_v48, %v7937_v13  ;;  %v15178_v48 = vld [vmem:[%s23625_s4 + $0xb0] sm:$0xff]  ;;  %v15179_v1 = vld [vmem:[%s23625_s4 + $0xb8] sm:$0xff] }
 0x716   : > { %v22488_v55 = vld [vmem:[#allocation3 + $0x41] sm:$0xff]  ;;  %v18861_v5 = vpack.c.bf16 %v15179_v1, %v15178_v48  ;;  %v10739_v48 = vld [vmem:[%s23627_s6] sm:$0xff]  ;;  %v10740_v1 = vld [vmem:[%s23627_s6 + $0x8] sm:$0xff] }
 0x717   : > { %7969 = vst.msk [vmem:[#allocation3 + $0x61] sm:$0xff] %vm493_vm0, %v7960_v8  ;;  %v7947_v22 = vadd.f32 %v16306_v15, %v22445_v49  ;;  %v16307_v27 = vpop.f32.mrb[62].mxu0  ;;  %17810 = vmatprep.mubr.msk.f32.mxu1 %vm493_vm0, %v22488_v55  ;;  %v15224_v49 = vld [vmem:[%s23626_s5 + $0x20] sm:$0xff]  ;;  %v22548_v23 = vld [vmem:[#allocation3 + $0x40] sm:$0xff]  ;;  %v15189_v15 = vld [vmem:[%s23625_s4 + $0xc8] sm:$0xff] }
 0x718   : > { %v16308_v36 = vpop.f32.mrb[63].mxu0  ;;  %v18889_v40 = vpack.c.bf16 %v15225_v16, %v15224_v49  ;;  %v22589_v3 = vld [vmem:[#allocation3 + $0x42] sm:$0xff]  ;;  %v15188_v8 = vld [vmem:[%s23625_s4 + $0xc0] sm:$0xff] }
 0x719   : > { %v7961_v30 = vmax.f32 %v7947_v22, 0.0  ;;  %v16309_v45 = vadd.f32 %v16308_v36, %v16307_v27  ;;  %v15190_v27 = vld [vmem:[%s23625_s4 + $0xd0] sm:$0xff]  ;;  %v15191_v36 = vld [vmem:[%s23625_s4 + $0xd8] sm:$0xff] }
 0x71a   : > { %v22494_v59 = vld [vmem:[#allocation3 + $0x51] sm:$0xff]  ;;  %18890 = vmatprep.subr.bf16.mxu0 %v18889_v40  ;;  %v15203_v49 = vld [vmem:[%s23625_s4 + $0xf8] sm:$0xff] }
 0x71b   : > { %7970 = vst.msk [vmem:[#allocation3 + $0x71] sm:$0xff] %vm493_vm0, %v7961_v30  ;;  %v7952_v57 = vadd.f32 %v22443_v42, %v16309_v45  ;;  %17811 = vmatmul.mubr.msk.f32.gmra.mrb[48].mxu1 %vm493_vm0, %v22494_v59  ;;  %v15143_v42 = vld [vmem:[%s23625_s4 + $0x58] sm:$0xff]  ;;  %18892 = vmatpush3.bf16.msra.mxu0 %v18889_v40  ;;  %v22552_v21 = vld [vmem:[#allocation3 + $0x50] sm:$0xff]  ;;  %v18869_v30 = vpack.c.bf16 %v15191_v36, %v15190_v27 }
 0x71c   : > { %v18837_v31 = vpack.c.bf16 %v15143_v42, %v15142_v43  ;;  %18894 = vmatprep.subr.bf16.mxu0 %v18893_v20  ;;  %v22593_v29 = vld [vmem:[#allocation3 + $0x52] sm:$0xff]  ;;  %v15202_v42 = vld [vmem:[%s23625_s4 + $0xf0] sm:$0xff] }
 0x71d   : > { %v7962_v61 = vmax.f32 %v7952_v57, 0.0  ;;  %v22500_v2 = vpack.c.bf16 %v7952_v57, %v7947_v22  ;;  %v18865_v22 = vpack.c.bf16 %v15189_v15, %v15188_v8  ;;  %v15200_v45 = vld [vmem:[%s23625_s4 + $0xe0] sm:$0xff]  ;;  %v15201_v57 = vld [vmem:[%s23625_s4 + $0xe8] sm:$0xff]  ;;  %v18877_v16 = vpack.c.bf16 %v15203_v49, %v15202_v42  ;;  %v15259_v42 = vld [vmem:[%s23626_s5 + $0x78] sm:$0xff] }
 0x71e   : > { %v22502_v24 = vld [vmem:[#allocation3 + $0x61] sm:$0xff] }
 0x71f   : > { %7971 = vst.msk [vmem:[#allocation3 + $0x81] sm:$0xff] %vm493_vm0, %v7962_v61  ;;  %17813 = vmatprep.mubr.msk.f32.mxu1 %vm493_vm0, %v22502_v24  ;;  %18896 = vmatpush3.bf16.msra.mxu0 %v18893_v20  ;;  %v22556_v26 = vld [vmem:[#allocation3 + $0x60] sm:$0xff]  ;;  %v18873_v61 = vpack.c.bf16 %v15201_v57, %v15200_v45 }
 0x720   : > { %v22597_v32 = vld [vmem:[#allocation3 + $0x62] sm:$0xff] }
 0x722   : > { %v22509_v7 = vld [vmem:[#allocation3 + $0x71] sm:$0xff] }
 0x723   : > { %17814 = vmatmul.mubr.msk.f32.gmra.mrb[50].mxu1 %vm493_vm0, %v22509_v7  ;;  %v22562_v50 = vld [vmem:[#allocation3 + $0x70] sm:$0xff] }
 0x724   : > { %17824 = vmatprep.mubr.msk.f32.mxu1 %vm493_vm0, %v22507_v62  ;;  %v22601_v53 = vld [vmem:[#allocation3 + $0x72] sm:$0xff] }
 0x726   : > { %v8412_v0 = vld [vmem:[#allocation3 + $0x80] sm:$0xff] }
 0x727   : > { %17825 = vmatmul.mubr.msk.f32.vlgmr.msra.gmra.mrb[44].mxu1 %vm493_vm0, %v7973_v58  ;;  %v8712_v43 = vld [vmem:[#allocation3 + $0x82] sm:$0xff] }
 0x728   : > { %17827 = vmatprep.mubr.msk.f32.mxu1 %vm493_vm0, %v22540_v9  ;;  %18836 = vmatpush3.bf16.msra.mxu1 %v18833_v60  ;;  %v15167_v60 = vld [vmem:[%s23625_s4 + $0x98] sm:$0xff] }
 0x729   : > { %18838 = vmatprep.subr.bf16.mxu1 %v18837_v31  ;;  %v18853_v13 = vpack.c.bf16 %v15167_v60, %v15166_v18 }
 0x72b   : > { %17828 = vmatmul.mubr.msk.f32.gmra.mrb[46].mxu1 %vm493_vm0, %v22544_v41 }
 0x72c   : > { %17830 = vmatprep.mubr.msk.f32.mxu1 %vm493_vm0, %v22548_v23  ;;  %18840 = vmatpush3.bf16.msra.mxu1 %v18837_v31  ;;  %v15213_v31 = vld [vmem:[%s23625_s4 + $0x108] sm:$0xff] }
 0x72d   : > { %18842 = vmatprep.subr.bf16.mxu1 %v18841_v14  ;;  %v18881_v40 = vpack.c.bf16 %v15213_v31, %v15212_v38  ;;  %v15268_v38 = vld [vmem:[%s23626_s5 + $0x80] sm:$0xff]  ;;  %v15269_v31 = vld [vmem:[%s23626_s5 + $0x88] sm:$0xff] }
 0x72f   : > { %17831 = vmatmul.mubr.msk.f32.gmra.mrb[48].mxu1 %vm493_vm0, %v22552_v21 }
 0x730   : > { %17833 = vmatprep.mubr.msk.f32.mxu1 %vm493_vm0, %v22556_v26 }
 0x733   : > { %17834 = vmatmul.mubr.msk.f32.gmra.mrb[50].mxu1 %vm493_vm0, %v22562_v50 }
 0x734   : > { %17844 = vmatprep.mubr.msk.f32.mxu1 %vm493_vm0, %v22560_v28 }
 0x737   : > { %17845 = vmatmul.mubr.msk.f32.vlgmr.msra.gmra.mrb[44].mxu1 %vm493_vm0, %v8256_v63 }
 0x738   : > { %17847 = vmatprep.mubr.msk.f32.mxu1 %vm493_vm0, %v22581_v39  ;;  %18844 = vmatpush3.bf16.msra.mxu1 %v18841_v14 }
 0x739   : > { %18846 = vmatprep.subr.bf16.mxu1 %v18845_v35 }
 0x73b   : > { %17848 = vmatmul.mubr.msk.f32.gmra.mrb[46].mxu1 %vm493_vm0, %v22585_v12 }
 0x73c   : > { %17850 = vmatprep.mubr.msk.f32.mxu1 %vm493_vm0, %v22589_v3  ;;  %18848 = vmatpush3.bf16.msra.mxu1 %v18845_v35 }
 0x73d   : > { %18850 = vmatprep.subr.bf16.mxu1 %v18849_v25 }
 0x73f   : > { %17851 = vmatmul.mubr.msk.f32.gmra.mrb[48].mxu1 %vm493_vm0, %v22593_v29 }
 0x740   : > { %17853 = vmatprep.mubr.msk.f32.mxu1 %vm493_vm0, %v22597_v32 }
 0x743   : > { %17854 = vmatmul.mubr.msk.f32.gmra.mrb[50].mxu1 %vm493_vm0, %v22601_v53 }
 0x744   : > { %17864 = vmatprep.mubr.msk.f32.mxu1 %vm493_vm0, %v7973_v58  ;;  %v15214_v58 = vld [vmem:[%s23625_s4 + $0x110] sm:$0xff] }
 0x745   : > { %v18885_v33 = vpack.c.bf16 %v15215_v37, %v15214_v58 }
 0x747   : > { %17865 = vmatmul.mubr.msk.f32.vlgmr.msra.gmra.mrb[44].mxu1 %vm493_vm0, %v22540_v9 }
 0x748   : > { %17867 = vmatprep.mubr.msk.f32.mxu1 %vm493_vm0, %v22544_v41  ;;  %18852 = vmatpush3.bf16.msra.mxu1 %v18849_v25  ;;  %v22794_v25 = vld [vmem:[%s23633_s12] sm:$0xff] }
 0x749   : > { %18854 = vmatprep.subr.bf16.mxu1 %v18853_v13 }
 0x74b   : > { %17868 = vmatmul.mubr.msk.f32.gmra.mrb[46].mxu1 %vm493_vm0, %v22548_v23 }
 0x74c   : > { %17870 = vmatprep.mubr.msk.f32.mxu1 %vm493_vm0, %v22552_v21  ;;  %18856 = vmatpush3.bf16.msra.mxu1 %v18853_v13 }
 0x74d   : > { %18858 = vmatprep.subr.bf16.mxu1 %v18857_v47 }
 0x74f   : > { %17871 = vmatmul.mubr.msk.f32.gmra.mrb[48].mxu1 %vm493_vm0, %v22556_v26 }
 0x750   : > { %17873 = vmatprep.mubr.msk.f32.mxu1 %vm493_vm0, %v22562_v50 }
 0x753   : > { %17874 = vmatmul.mubr.msk.f32.gmra.mrb[50].mxu1 %vm493_vm0, %v8412_v0 }
 0x754   : > { %17884 = vmatprep.mubr.msk.f32.mxu1 %vm493_vm0, %v22463_v54  ;;  %v8562_v54 = vld [vmem:[#allocation3 + $0x81] sm:$0xff] }
 0x757   : > { %17885 = vmatmul.mubr.msk.f32.vlgmr.msra.gmra.mrb[44].mxu1 %vm493_vm0, %v22476_v4 }
 0x758   : > { %17887 = vmatprep.mubr.msk.f32.mxu1 %vm493_vm0, %v22481_v10  ;;  %18860 = vmatpush3.bf16.msra.mxu1 %v18857_v47  ;;  %v15246_v47 = vld [vmem:[%s23626_s5 + $0x50] sm:$0xff] }
 0x759   : > { %18862 = vmatprep.subr.bf16.mxu1 %v18861_v5 }
 0x75b   : > { %17888 = vmatmul.mubr.msk.f32.gmra.mrb[46].mxu1 %vm493_vm0, %v22488_v55 }
 0x75c   : > { %17890 = vmatprep.mubr.msk.f32.mxu1 %vm493_vm0, %v22494_v59  ;;  %18864 = vmatpush3.bf16.msra.mxu1 %v18861_v5  ;;  %v18977_v5 = vpack.c.bf16 %v10740_v1, %v10739_v48  ;;  %v15318_v1 = vld [vmem:[%s23626_s5 + $0x110] sm:$0xff] }
 0x75d   : > { %18866 = vmatprep.subr.bf16.mxu1 %v18865_v22 }
 0x75f   : > { %17891 = vmatmul.mubr.msk.f32.gmra.mrb[48].mxu1 %vm493_vm0, %v22502_v24 }
 0x760   : > { %17893 = vmatprep.mubr.msk.f32.mxu1 %vm493_vm0, %v22509_v7 }
 0x763   : > { %17894 = vmatmul.mubr.msk.f32.gmra.mrb[50].mxu1 %vm493_vm0, %v8562_v54 }
 0x764   : > { %17904 = vmatprep.mubr.msk.f32.mxu1 %vm493_vm0, %v8256_v63  ;;  %v15244_v63 = vld [vmem:[%s23626_s5 + $0x40] sm:$0xff] }
 0x767   : > { %17905 = vmatmul.mubr.msk.f32.vlgmr.msra.gmra.mrb[44].mxu1 %vm493_vm0, %v22581_v39 }
 0x768   : > { %17907 = vmatprep.mubr.msk.f32.mxu1 %vm493_vm0, %v22585_v12  ;;  %18868 = vmatpush3.bf16.msra.mxu1 %v18865_v22  ;;  %v15256_v22 = vld [vmem:[%s23626_s5 + $0x60] sm:$0xff] }
 0x769   : > { %18870 = vmatprep.subr.bf16.mxu1 %v18869_v30 }
 0x76b   : > { %17908 = vmatmul.mubr.msk.f32.gmra.mrb[46].mxu1 %vm493_vm0, %v22589_v3 }
 0x76c   : > { %17910 = vmatprep.mubr.msk.f32.mxu1 %vm493_vm0, %v22593_v29  ;;  %18872 = vmatpush3.bf16.msra.mxu1 %v18869_v30 }
 0x76d   : > { %18874 = vmatprep.subr.bf16.mxu1 %v18873_v61 }
 0x76f   : > { %17911 = vmatmul.mubr.msk.f32.gmra.mrb[48].mxu1 %vm493_vm0, %v22597_v32 }
 0x770   : > { %17913 = vmatprep.mubr.msk.f32.mxu1 %vm493_vm0, %v22601_v53 }
 0x773   : > { %17914 = vmatmul.mubr.msk.f32.gmra.mrb[50].mxu1 %vm493_vm0, %v8712_v43 }
 0x774   : > { %17924 = vmatprep.mubr.msk.f32.mxu1 %vm493_vm0, %v22540_v9 }
 0x777   : > { %17925 = vmatmul.mubr.msk.f32.vlgmr.msra.gmra.mrb[44].mxu1 %vm493_vm0, %v22544_v41  ;;  %v9332_v41 = vld [vmem:[%s23626_s5 + $0x10] sm:$0xff] }
 0x778   : > { %17927 = vmatprep.mubr.msk.f32.mxu1 %vm493_vm0, %v22548_v23  ;;  %18876 = vmatpush3.bf16.msra.mxu1 %v18873_v61  ;;  %v9333_v23 = vld [vmem:[%s23626_s5 + $0x18] sm:$0xff] }
 0x779   : > { %18878 = vmatprep.subr.bf16.mxu1 %v18877_v16  ;;  %v18901_v19 = vpack.c.bf16 %v9333_v23, %v9332_v41  ;;  %v15292_v23 = vld [vmem:[%s23626_s5 + $0xc0] sm:$0xff] }
 0x77b   : > { %17928 = vmatmul.mubr.msk.f32.gmra.mrb[46].mxu1 %vm493_vm0, %v22552_v21 }
 0x77c   : > { %17930 = vmatprep.mubr.msk.f32.mxu1 %vm493_vm0, %v22556_v26  ;;  %18880 = vmatpush3.bf16.msra.mxu1 %v18877_v16 }
 0x77d   : > { %18882 = vmatprep.subr.bf16.mxu1 %v18881_v40 }
 0x77f   : > { %17931 = vmatmul.mubr.msk.f32.gmra.mrb[48].mxu1 %vm493_vm0, %v22562_v50 }
 0x780   : > { %17933 = vmatprep.mubr.msk.f32.mxu1 %vm493_vm0, %v8412_v0  ;;  %v15247_v0 = vld [vmem:[%s23626_s5 + $0x58] sm:$0xff] }
 0x781   : > { %v18909_v8 = vpack.c.bf16 %v15247_v0, %v15246_v47  ;;  %v15316_v47 = vld [vmem:[%s23626_s5 + $0x100] sm:$0xff]  ;;  %v15317_v0 = vld [vmem:[%s23626_s5 + $0x108] sm:$0xff] }
 0x782   : > { %v18953_v48 = vpack.c.bf16 %v15317_v0, %v15316_v47  ;;  %v15356_v47 = vld [vmem:[%s23628_s7 + $0x90] sm:$0xff]  ;;  %v15357_v0 = vld [vmem:[%s23628_s7 + $0x98] sm:$0xff] }
 0x783   : > { %17934 = vmatmul.mubr.msk.f32.gmra.mrb[50].mxu1 %vm493_vm0, %v22709_v51 }
 0x784   : > { %17944 = vmatprep.mubr.msk.f32.mxu1 %vm493_vm0, %v22476_v4  ;;  %v22733_v4 = vld [vmem:[#allocation3 + $0x91] sm:$0xff] }
 0x787   : > { %17945 = vmatmul.mubr.msk.f32.vlgmr.msra.gmra.mrb[44].mxu1 %vm493_vm0, %v22481_v10  ;;  %v9331_v10 = vld [vmem:[%s23626_s5 + $0x8] sm:$0xff] }
 0x788   : > { %18884 = vmatpush3.bf16.msra.mxu1 %v18881_v40  ;;  %17947 = vmatprep.mubr.msk.f32.mxu1 %vm493_vm0, %v22488_v55 }
 0x789   : > { %18886 = vmatprep.subr.bf16.mxu1 %v18885_v33 }
 0x78b   : > { %17948 = vmatmul.mubr.msk.f32.gmra.mrb[46].mxu1 %vm493_vm0, %v22494_v59 }
 0x78c   : > { %18888 = vmatpush3.bf16.msra.mxu1 %v18885_v33  ;;  %17950 = vmatprep.mubr.msk.f32.mxu1 %vm493_vm0, %v22502_v24 }
 0x78d   : > { %18962 = vmatprep.subr.bf16.mxu1 %v22454_v44 }
 0x78f   : > { %17951 = vmatmul.mubr.msk.f32.gmra.mrb[48].mxu1 %vm493_vm0, %v22509_v7 }
 0x790   : > { %17953 = vmatprep.mubr.msk.f32.mxu1 %vm493_vm0, %v8562_v54  ;;  %v15257_v54 = vld [vmem:[%s23626_s5 + $0x68] sm:$0xff] }
 0x793   : > { %17954 = vmatmul.mubr.msk.f32.gmra.mrb[50].mxu1 %vm493_vm0, %v22733_v4 }
 0x794   : > { %17964 = vmatprep.mubr.msk.f32.mxu1 %vm493_vm0, %v22581_v39 }
 0x797   : > { %17965 = vmatmul.mubr.msk.f32.vlgmr.msra.gmra.mrb[44].mxu1 %vm493_vm0, %v22585_v12 }
 0x798   : > { %18964 = vmatpush3.bf16.msra.mxu1 %v22454_v44  ;;  %17967 = vmatprep.mubr.msk.f32.mxu1 %vm493_vm0, %v22589_v3  ;;  %v22755_v44 = vld [vmem:[#allocation3 + $0x92] sm:$0xff] }
 0x799   : > { %18966 = vmatprep.subr.bf16.mxu1 %v22474_v6 }
 0x79b   : > { %17968 = vmatmul.mubr.msk.f32.gmra.mrb[46].mxu1 %vm493_vm0, %v22593_v29  ;;  %v22801_v29 = vld [vmem:[%s23633_s12 + $0x8] sm:$0xff] }
 0x79c   : > { %18968 = vmatpush3.bf16.msra.mxu1 %v22474_v6  ;;  %17970 = vmatprep.mubr.msk.f32.mxu1 %vm493_vm0, %v22597_v32  ;;  %v9330_v6 = vld [vmem:[%s23626_s5] sm:$0xff] }
 0x79d   : > { %18970 = vmatprep.subr.bf16.mxu1 %v22486_v52 }
 0x79f   : > { %17971 = vmatmul.mubr.msk.f32.gmra.mrb[48].mxu1 %vm493_vm0, %v22601_v53  ;;  %v18905_v53 = vpack.c.bf16 %v15245_v34, %v15244_v63  ;;  %v15304_v63 = vld [vmem:[%s23626_s5 + $0xe0] sm:$0xff]  ;;  %v15305_v34 = vld [vmem:[%s23626_s5 + $0xe8] sm:$0xff] }
 0x7a0   : > { %18972 = vmatpush3.bf16.msra.mxu1 %v22486_v52  ;;  %17973 = vmatprep.mubr.msk.f32.mxu1 %vm493_vm0, %v8712_v43  ;;  %v18897_v52 = vpack.c.bf16 %v9331_v10, %v9330_v6  ;;  %v15258_v43 = vld [vmem:[%s23626_s5 + $0x70] sm:$0xff] }
 0x7a1   : > { %18974 = vmatprep.subr.bf16.mxu1 %v22500_v2  ;;  %v18917_v49 = vpack.c.bf16 %v15259_v42, %v15258_v43  ;;  %v15336_v43 = vld [vmem:[%s23628_s7 + $0x30] sm:$0xff] }
 0x7a2   : > { %18898 = vmatprep.subr.bf16.mxu0 %v18897_v52 }
 0x7a3   : > { %17974 = vmatmul.mubr.msk.f32.gmra.mrb[50].mxu1 %vm493_vm0, %v22755_v44 }
 0x7a4   : > { %18976 = vmatpush3.bf16.msra.mxu1 %v22500_v2  ;;  %18172 = vmatprep.mubr.msk.f32.mxu1 %vm10657_vm2, %v22794_v25 }
 0x7a5   : > { %18978 = vmatprep.subr.bf16.mxu1 %v18977_v5 }
 0x7a7   : > { %18173 = vmatmul.mubr.msk.f32.vlgmr.msra.gmra.mrb[52].mxu1 %vm10657_vm2, %v22801_v29 }
 0x7a8   : > { %18980 = vmatpush3.bf16.msra.mxu1 %v18977_v5  ;;  %v15319_v5 = vld [vmem:[%s23626_s5 + $0x118] sm:$0xff] }
 0x86a   : > { %v17966_v55 = vpop.f32.mrb[44].mxu1 }
 0x86b   : > { %v9307_v59 = vmax.f32 %v17966_v55, 0.0  ;;  %v9259_v24 = vpop.f32.mrb[45].mxu1  ;;  %v15271_v55 = vld [vmem:[%s23626_s5 + $0x98] sm:$0xff] }
 0x86c   : > { %v9306_v7 = vmax.f32 %v9259_v24, 0.0  ;;  %v15280_v24 = vld [vmem:[%s23626_s5 + $0xa0] sm:$0xff] }
 0x86d   : > { %9315 = vst.msk [vmem:[#allocation3 + $0x21] sm:$0xff] %vm493_vm0, %v9307_v59 }
 0x86e   : > { %9314 = vst.msk [vmem:[#allocation3 + $0x11] sm:$0xff] %vm493_vm0, %v9306_v7  ;;  %v17969_v20 = vpop.f32.mrb[46].mxu1  ;;  %v15281_v7 = vld [vmem:[%s23626_s5 + $0xa8] sm:$0xff] }
 0x86f   : > { %v9309_v2 = vmax.f32 %v17969_v20, 0.0  ;;  %v9269_v9 = vpop.f32.mrb[47].mxu1  ;;  %v18929_v20 = vpack.c.bf16 %v15281_v7, %v15280_v24 }
 0x870   : > { %v9308_v14 = vmax.f32 %v9269_v9, 0.0  ;;  %v15282_v9 = vld [vmem:[%s23626_s5 + $0xb0] sm:$0xff] }
 0x871   : > { %9317 = vst.msk [vmem:[#allocation3 + $0x41] sm:$0xff] %vm493_vm0, %v9309_v2 }
 0x872   : > { %9316 = vst.msk [vmem:[#allocation3 + $0x31] sm:$0xff] %vm493_vm0, %v9308_v14  ;;  %v17972_v21 = vpop.f32.mrb[48].mxu1  ;;  %v15283_v14 = vld [vmem:[%s23626_s5 + $0xb8] sm:$0xff] }
 0x873   : > { %v9311_v26 = vmax.f32 %v17972_v21, 0.0  ;;  %v9279_v50 = vpop.f32.mrb[49].mxu1  ;;  %v18933_v41 = vpack.c.bf16 %v15283_v14, %v15282_v9  ;;  %v15293_v21 = vld [vmem:[%s23626_s5 + $0xc8] sm:$0xff]  ;;  %v15344_v14 = vld [vmem:[%s23628_s7 + $0x50] sm:$0xff] }
 0x874   : > { %v9310_v17 = vmax.f32 %v9279_v50, 0.0  ;;  %v22789_v39 = vld [vmem:[#allocation3 + $0x21] sm:$0xff] }
 0x875   : > { %9319 = vst.msk [vmem:[#allocation3 + $0x61] sm:$0xff] %vm493_vm0, %v9311_v26  ;;  %v22778_v35 = vld [vmem:[#allocation3 + $0x11] sm:$0xff]  ;;  %v22850_v27 = vld [vmem:[#allocation3 + $0x20] sm:$0xff]  ;;  %v18937_v26 = vpack.c.bf16 %v15293_v21, %v15292_v23 }
 0x876   : > { %9318 = vst.msk [vmem:[#allocation3 + $0x51] sm:$0xff] %vm493_vm0, %v9310_v17  ;;  %v17975_v46 = vpop.f32.mrb[50].mxu1  ;;  %17985 = vmatmul.mubr.msk.f32.vlgmr.msra.gmra.mrb[64].mxu0 %vm493_vm0, %v22778_v35  ;;  %v9323_v15 = vld [vmem:[#allocation3 + $0x10] sm:$0xff]  ;;  %v22889_v40 = vld [vmem:[#allocation3 + $0x22] sm:$0xff]  ;;  %v15349_v21 = vld [vmem:[%s23628_s7 + $0x68] sm:$0xff] }
 0x877   : > { %v9313_v12 = vmax.f32 %v17975_v46, 0.0  ;;  %v9289_v3 = vpop.f32.mrb[51].mxu1  ;;  %17987 = vmatprep.mubr.msk.f32.mxu0 %vm493_vm0, %v22789_v39  ;;  %18900 = vmatpush3.bf16.msra.mxu0 %v18897_v52  ;;  %v9606_v16 = vld [vmem:[#allocation3 + $0x12] sm:$0xff]  ;;  %v15270_v52 = vld [vmem:[%s23626_s5 + $0x90] sm:$0xff]  ;;  %v18945_v46 = vpack.c.bf16 %v15305_v34, %v15304_v63  ;;  %v15351_v63 = vld [vmem:[%s23628_s7 + $0x78] sm:$0xff] }
 0x878   : > { %v9312_v32 = vmax.f32 %v9289_v3, 0.0  ;;  %18902 = vmatprep.subr.bf16.mxu0 %v18901_v19  ;;  %v22813_v60 = vld [vmem:[#allocation3 + $0x41] sm:$0xff]  ;;  %v18925_v59 = vpack.c.bf16 %v15271_v55, %v15270_v52  ;;  %v15348_v23 = vld [vmem:[%s23628_s7 + $0x60] sm:$0xff] }
 0x879   : > { %9321 = vst.msk [vmem:[#allocation3 + $0x81] sm:$0xff] %vm493_vm0, %v9313_v12  ;;  %v22806_v18 = vld [vmem:[#allocation3 + $0x31] sm:$0xff]  ;;  %v22858_v30 = vld [vmem:[#allocation3 + $0x40] sm:$0xff]  ;;  %v10920_v52 = vld [vmem:[%s23628_s7 + $0x18] sm:$0xff] }
 0x87a   : > { %9320 = vst.msk [vmem:[#allocation3 + $0x71] sm:$0xff] %vm493_vm0, %v9312_v32  ;;  %17988 = vmatmul.mubr.msk.f32.gmra.mrb[66].mxu0 %vm493_vm0, %v22806_v18  ;;  %v22854_v36 = vld [vmem:[#allocation3 + $0x30] sm:$0xff]  ;;  %v22897_v37 = vld [vmem:[#allocation3 + $0x42] sm:$0xff] }
 0x87b   : > { %17990 = vmatprep.mubr.msk.f32.mxu0 %vm493_vm0, %v22813_v60  ;;  %18904 = vmatpush3.bf16.msra.mxu0 %v18901_v19  ;;  %v22893_v58 = vld [vmem:[#allocation3 + $0x32] sm:$0xff]  ;;  %v15294_v17 = vld [vmem:[%s23626_s5 + $0xd0] sm:$0xff]  ;;  %v15295_v19 = vld [vmem:[%s23626_s5 + $0xd8] sm:$0xff] }
 0x87c   : > { %18906 = vmatprep.subr.bf16.mxu0 %v18905_v53  ;;  %v22821_v11 = vld [vmem:[#allocation3 + $0x61] sm:$0xff] }
 0x87d   : > { %v22817_v13 = vld [vmem:[#allocation3 + $0x51] sm:$0xff]  ;;  %v22866_v57 = vld [vmem:[#allocation3 + $0x60] sm:$0xff]  ;;  %v15307_v32 = vld [vmem:[%s23626_s5 + $0xf8] sm:$0xff] }
 0x87e   : > { %17991 = vmatmul.mubr.msk.f32.gmra.mrb[68].mxu0 %vm493_vm0, %v22817_v13  ;;  %v22862_v45 = vld [vmem:[#allocation3 + $0x50] sm:$0xff]  ;;  %v22905_v6 = vld [vmem:[#allocation3 + $0x62] sm:$0xff] }
 0x87f   : > { %17993 = vmatprep.mubr.msk.f32.mxu0 %vm493_vm0, %v22821_v11  ;;  %v22901_v33 = vld [vmem:[#allocation3 + $0x52] sm:$0xff]  ;;  %v15306_v3 = vld [vmem:[%s23626_s5 + $0xf0] sm:$0xff] }
 0x880   : > { %v9762_v2 = vld [vmem:[#allocation3 + $0x80] sm:$0xff] }
 0x881   : > { %v22825_v56 = vld [vmem:[#allocation3 + $0x71] sm:$0xff]  ;;  %v9912_v50 = vld [vmem:[#allocation3 + $0x81] sm:$0xff] }
 0x882   : > { %17994 = vmatmul.mubr.msk.f32.gmra.mrb[70].mxu0 %vm493_vm0, %v22825_v56  ;;  %v22870_v61 = vld [vmem:[#allocation3 + $0x70] sm:$0xff]  ;;  %v10062_v12 = vld [vmem:[#allocation3 + $0x82] sm:$0xff] }
 0x883   : > { %18004 = vmatprep.mubr.msk.f32.mxu0 %vm493_vm0, %v22507_v62  ;;  %v18913_v62 = vpack.c.bf16 %v15257_v54, %v15256_v22  ;;  %v22909_v10 = vld [vmem:[#allocation3 + $0x72] sm:$0xff] }
 0x886   : > { %18005 = vmatmul.mubr.msk.f32.vlgmr.msra.gmra.mrb[64].mxu0 %vm493_vm0, %v9323_v15 }
 0x887   : > { %18007 = vmatprep.mubr.msk.f32.mxu0 %vm493_vm0, %v22850_v27  ;;  %18908 = vmatpush3.bf16.msra.mxu0 %v18905_v53  ;;  %v18949_v53 = vpack.c.bf16 %v15307_v32, %v15306_v3  ;;  %v15354_v3 = vld [vmem:[%s23628_s7 + $0x80] sm:$0xff]  ;;  %v15355_v32 = vld [vmem:[%s23628_s7 + $0x88] sm:$0xff] }
 0x888   : > { %18910 = vmatprep.subr.bf16.mxu0 %v18909_v8 }
 0x88a   : > { %18008 = vmatmul.mubr.msk.f32.gmra.mrb[66].mxu0 %vm493_vm0, %v22854_v36 }
 0x88b   : > { %18010 = vmatprep.mubr.msk.f32.mxu0 %vm493_vm0, %v22858_v30  ;;  %18912 = vmatpush3.bf16.msra.mxu0 %v18909_v8  ;;  %v18957_v8 = vpack.c.bf16 %v15319_v5, %v15318_v1  ;;  %v19037_v1 = vpack.c.bf16 %v15357_v0, %v15356_v47  ;;  %v15394_v47 = vld [vmem:[%s23629_s8 + $0x50] sm:$0xff]  ;;  %v15395_v0 = vld [vmem:[%s23629_s8 + $0x58] sm:$0xff] }
 0x88c   : > { %18914 = vmatprep.subr.bf16.mxu0 %v18913_v62 }
 0x88e   : > { %18011 = vmatmul.mubr.msk.f32.gmra.mrb[68].mxu0 %vm493_vm0, %v22862_v45 }
 0x88f   : > { %18013 = vmatprep.mubr.msk.f32.mxu0 %vm493_vm0, %v22866_v57 }
 0x892   : > { %18014 = vmatmul.mubr.msk.f32.gmra.mrb[70].mxu0 %vm493_vm0, %v22870_v61 }
 0x893   : > { %18024 = vmatprep.mubr.msk.f32.mxu0 %vm493_vm0, %v22560_v28  ;;  %v18921_v28 = vpack.c.bf16 %v15269_v31, %v15268_v38  ;;  %v10918_v38 = vld [vmem:[%s23628_s7 + $0x8] sm:$0xff] }
 0x896   : > { %18025 = vmatmul.mubr.msk.f32.vlgmr.msra.gmra.mrb[64].mxu0 %vm493_vm0, %v9606_v16 }
 0x897   : > { %18027 = vmatprep.mubr.msk.f32.mxu0 %vm493_vm0, %v22889_v40  ;;  %18916 = vmatpush3.bf16.msra.mxu0 %v18913_v62 }
 0x898   : > { %18918 = vmatprep.subr.bf16.mxu0 %v18917_v49 }
 0x89a   : > { %18028 = vmatmul.mubr.msk.f32.gmra.mrb[66].mxu0 %vm493_vm0, %v22893_v58 }
 0x89b   : > { %18030 = vmatprep.mubr.msk.f32.mxu0 %vm493_vm0, %v22897_v37  ;;  %18920 = vmatpush3.bf16.msra.mxu0 %v18917_v49  ;;  %v15337_v49 = vld [vmem:[%s23628_s7 + $0x38] sm:$0xff] }
 0x89c   : > { %18922 = vmatprep.subr.bf16.mxu0 %v18921_v28 }
 0x89e   : > { %18031 = vmatmul.mubr.msk.f32.gmra.mrb[68].mxu0 %vm493_vm0, %v22901_v33 }
 0x89f   : > { %18033 = vmatprep.mubr.msk.f32.mxu0 %vm493_vm0, %v22905_v6 }
 0x8a2   : > { %18034 = vmatmul.mubr.msk.f32.gmra.mrb[70].mxu0 %vm493_vm0, %v22909_v10 }
 0x8a3   : > { %18044 = vmatprep.mubr.msk.f32.mxu0 %vm493_vm0, %v9323_v15 }
 0x8a6   : > { %18045 = vmatmul.mubr.msk.f32.vlgmr.msra.gmra.mrb[64].mxu0 %vm493_vm0, %v22850_v27 }
 0x8a7   : > { %18047 = vmatprep.mubr.msk.f32.mxu0 %vm493_vm0, %v22854_v36  ;;  %18924 = vmatpush3.bf16.msra.mxu0 %v18921_v28 }
 0x8a8   : > { %18926 = vmatprep.subr.bf16.mxu0 %v18925_v59 }
 0x8aa   : > { %18048 = vmatmul.mubr.msk.f32.gmra.mrb[66].mxu0 %vm493_vm0, %v22858_v30 }
 0x8ab   : > { %18050 = vmatprep.mubr.msk.f32.mxu0 %vm493_vm0, %v22862_v45  ;;  %18928 = vmatpush3.bf16.msra.mxu0 %v18925_v59  ;;  %v15342_v59 = vld [vmem:[%s23628_s7 + $0x40] sm:$0xff] }
 0x8ac   : > { %18930 = vmatprep.subr.bf16.mxu0 %v18929_v20 }
 0x8ae   : > { %18051 = vmatmul.mubr.msk.f32.gmra.mrb[68].mxu0 %vm493_vm0, %v22866_v57 }
 0x8af   : > { %18053 = vmatprep.mubr.msk.f32.mxu0 %vm493_vm0, %v22870_v61 }
 0x8b2   : > { %18054 = vmatmul.mubr.msk.f32.gmra.mrb[70].mxu0 %vm493_vm0, %v9762_v2 }
 0x8b3   : > { %18064 = vmatprep.mubr.msk.f32.mxu0 %vm493_vm0, %v22778_v35  ;;  %v18941_v35 = vpack.c.bf16 %v15295_v19, %v15294_v17  ;;  %v19025_v19 = vpack.c.bf16 %v15349_v21, %v15348_v23 }
 0x8b6   : > { %18065 = vmatmul.mubr.msk.f32.vlgmr.msra.gmra.mrb[64].mxu0 %vm493_vm0, %v22789_v39 }
 0x8b7   : > { %18067 = vmatprep.mubr.msk.f32.mxu0 %vm493_vm0, %v22806_v18  ;;  %18932 = vmatpush3.bf16.msra.mxu0 %v18929_v20 }
 0x8b8   : > { %18934 = vmatprep.subr.bf16.mxu0 %v18933_v41 }
 0x8ba   : > { %18068 = vmatmul.mubr.msk.f32.gmra.mrb[66].mxu0 %vm493_vm0, %v22813_v60 }
 0x8bb   : > { %18070 = vmatprep.mubr.msk.f32.mxu0 %vm493_vm0, %v22817_v13  ;;  %18936 = vmatpush3.bf16.msra.mxu0 %v18933_v41  ;;  %v15345_v41 = vld [vmem:[%s23628_s7 + $0x58] sm:$0xff] }
 0x8bc   : > { %18938 = vmatprep.subr.bf16.mxu0 %v18937_v26 }
 0x8be   : > { %18071 = vmatmul.mubr.msk.f32.gmra.mrb[68].mxu0 %vm493_vm0, %v22821_v11 }
 0x8bf   : > { %18073 = vmatprep.mubr.msk.f32.mxu0 %vm493_vm0, %v22825_v56 }
 0x8c2   : > { %18074 = vmatmul.mubr.msk.f32.gmra.mrb[70].mxu0 %vm493_vm0, %v9912_v50 }
 0x8c3   : > { %18084 = vmatprep.mubr.msk.f32.mxu0 %vm493_vm0, %v9606_v16  ;;  %v19005_v16 = vpack.c.bf16 %v15337_v49, %v15336_v43 }
 0x8c6   : > { %18085 = vmatmul.mubr.msk.f32.vlgmr.msra.gmra.mrb[64].mxu0 %vm493_vm0, %v22889_v40 }
 0x8c7   : > { %18087 = vmatprep.mubr.msk.f32.mxu0 %vm493_vm0, %v22893_v58  ;;  %18940 = vmatpush3.bf16.msra.mxu0 %v18937_v26 }
 0x8c8   : > { %18942 = vmatprep.subr.bf16.mxu0 %v18941_v35 }
 0x8ca   : > { %18088 = vmatmul.mubr.msk.f32.gmra.mrb[66].mxu0 %vm493_vm0, %v22897_v37 }
 0x8cb   : > { %18090 = vmatprep.mubr.msk.f32.mxu0 %vm493_vm0, %v22901_v33  ;;  %18944 = vmatpush3.bf16.msra.mxu0 %v18941_v35  ;;  %v15350_v35 = vld [vmem:[%s23628_s7 + $0x70] sm:$0xff] }
 0x8cc   : > { %18946 = vmatprep.subr.bf16.mxu0 %v18945_v46 }
 0x8ce   : > { %18091 = vmatmul.mubr.msk.f32.gmra.mrb[68].mxu0 %vm493_vm0, %v22905_v6 }
 0x8cf   : > { %18093 = vmatprep.mubr.msk.f32.mxu0 %vm493_vm0, %v22909_v10 }
 0x8d2   : > { %18094 = vmatmul.mubr.msk.f32.gmra.mrb[70].mxu0 %vm493_vm0, %v10062_v12 }
 0x8d3   : > { %18104 = vmatprep.mubr.msk.f32.mxu0 %vm493_vm0, %v22850_v27 }
 0x8d6   : > { %18105 = vmatmul.mubr.msk.f32.vlgmr.msra.gmra.mrb[64].mxu0 %vm493_vm0, %v22854_v36 }
 0x8d7   : > { %18107 = vmatprep.mubr.msk.f32.mxu0 %vm493_vm0, %v22858_v30  ;;  %18948 = vmatpush3.bf16.msra.mxu0 %v18945_v46  ;;  %v19029_v46 = vpack.c.bf16 %v15351_v63, %v15350_v35  ;;  %v11792_v35 = vld [vmem:[%s23629_s8 + $0x18] sm:$0xff] }
 0x8d8   : > { %18950 = vmatprep.subr.bf16.mxu0 %v18949_v53 }
 0x8da   : > { %18108 = vmatmul.mubr.msk.f32.gmra.mrb[66].mxu0 %vm493_vm0, %v22862_v45 }
 0x8db   : > { %18110 = vmatprep.mubr.msk.f32.mxu0 %vm493_vm0, %v22866_v57  ;;  %18952 = vmatpush3.bf16.msra.mxu0 %v18949_v53  ;;  %v15334_v57 = vld [vmem:[%s23628_s7 + $0x20] sm:$0xff]  ;;  %v19033_v53 = vpack.c.bf16 %v15355_v32, %v15354_v3  ;;  %v15393_v32 = vld [vmem:[%s23629_s8 + $0x48] sm:$0xff] }
 0x8dc   : > { %18954 = vmatprep.subr.bf16.mxu0 %v18953_v48 }
 0x8de   : > { %18111 = vmatmul.mubr.msk.f32.gmra.mrb[68].mxu0 %vm493_vm0, %v22870_v61  ;;  %v15335_v61 = vld [vmem:[%s23628_s7 + $0x28] sm:$0xff] }
 0x8df   : > { %18113 = vmatprep.mubr.msk.f32.mxu0 %vm493_vm0, %v9762_v2  ;;  %v19001_v42 = vpack.c.bf16 %v15335_v61, %v15334_v57  ;;  %v15343_v2 = vld [vmem:[%s23628_s7 + $0x48] sm:$0xff]  ;;  %v15374_v57 = vld [vmem:[%s23628_s7 + $0xf0] sm:$0xff]  ;;  %v15375_v61 = vld [vmem:[%s23628_s7 + $0xf8] sm:$0xff] }
 0x8e0   : > { %v19017_v9 = vpack.c.bf16 %v15343_v2, %v15342_v59  ;;  %v11789_v2 = vld [vmem:[%s23629_s8] sm:$0xff] }
 0x8e2   : > { %18114 = vmatmul.mubr.msk.f32.gmra.mrb[70].mxu0 %vm493_vm0, %v22709_v51  ;;  %v10741_v51 = vld [vmem:[%s23627_s6 + $0x10] sm:$0xff] }
 0x8e3   : > { %18124 = vmatprep.mubr.msk.f32.mxu0 %vm493_vm0, %v22789_v39 }
 0x8e6   : > { %18125 = vmatmul.mubr.msk.f32.vlgmr.msra.gmra.mrb[64].mxu0 %vm493_vm0, %v22806_v18  ;;  %v18174_v18 = vpop.f32.mrb[52].mxu1 }
 0x8e7   : > { %18127 = vmatprep.mubr.msk.f32.mxu0 %vm493_vm0, %v22813_v60  ;;  %18956 = vmatpush3.bf16.msra.mxu0 %v18953_v48  ;;  %v10730_v60 = vpop.f32.mrb[53].mxu1 }
 0x8e8   : > { %18958 = vmatprep.subr.bf16.mxu0 %v18957_v8  ;;  %18183 = vmatprep.mubr.msk.f32.mxu1 %vm493_vm0, %v10730_v60 }
 0x8ea   : > { %18128 = vmatmul.mubr.msk.f32.gmra.mrb[66].mxu0 %vm493_vm0, %v22817_v13 }
 0x8eb   : > { %18130 = vmatprep.mubr.msk.f32.mxu0 %vm493_vm0, %v22821_v11  ;;  %18960 = vmatpush3.bf16.msra.mxu0 %v18957_v8  ;;  %v15360_v8 = vld [vmem:[%s23628_s7 + $0xa0] sm:$0xff] }
 0x8ee   : > { %18131 = vmatmul.mubr.msk.f32.gmra.mrb[68].mxu0 %vm493_vm0, %v22825_v56 }
 0x8ef   : > { %18133 = vmatprep.mubr.msk.f32.mxu0 %vm493_vm0, %v9912_v50  ;;  %v19021_v50 = vpack.c.bf16 %v15345_v41, %v15344_v14 }
 0x8f2   : > { %18134 = vmatmul.mubr.msk.f32.gmra.mrb[70].mxu0 %vm493_vm0, %v22733_v4  ;;  %v10742_v4 = vld [vmem:[%s23627_s6 + $0x18] sm:$0xff] }
 0x8f3   : > { %18144 = vmatprep.mubr.msk.f32.mxu0 %vm493_vm0, %v22889_v40  ;;  %v18981_v39 = vpack.c.bf16 %v10742_v4, %v10741_v51  ;;  %v15361_v51 = vld [vmem:[%s23628_s7 + $0xa8] sm:$0xff] }
 0x8f4   : > { %v19041_v4 = vpack.c.bf16 %v15361_v51, %v15360_v8  ;;  %v19093_v8 = vpack.c.bf16 %v15395_v0, %v15394_v47 }
 0x8f5   : > { %18982 = vmatprep.subr.bf16.mxu1 %v18981_v39 }
 0x8f6   : > { %18145 = vmatmul.mubr.msk.f32.vlgmr.msra.gmra.mrb[64].mxu0 %vm493_vm0, %v22893_v58  ;;  %18984 = vmatpush3.bf16.msra.mxu1 %v18981_v39  ;;  %v15362_v39 = vld [vmem:[%s23628_s7 + $0xb0] sm:$0xff] }
 0x8f7   : > { %18147 = vmatprep.mubr.msk.f32.mxu0 %vm493_vm0, %v22897_v37 }
 0x8f9   : > { %18184 = vmatmul.mubr.msk.f32.vlgmr.msra.gmra.mrb[54].mxu1 %vm493_vm0, %v18174_v18  ;;  %v15363_v18 = vld [vmem:[%s23628_s7 + $0xb8] sm:$0xff] }
 0x8fa   : > { %18148 = vmatmul.mubr.msk.f32.gmra.mrb[66].mxu0 %vm493_vm0, %v22901_v33  ;;  %18202 = vmatprep.mubr.msk.f32.mxu1 %vm10657_vm2, %v22794_v25 }
 0x8fb   : > { %18150 = vmatprep.mubr.msk.f32.mxu0 %vm493_vm0, %v22905_v6 }
 0x8fe   : > { %18151 = vmatmul.mubr.msk.f32.gmra.mrb[68].mxu0 %vm493_vm0, %v22909_v10  ;;  %v10919_v10 = vld [vmem:[%s23628_s7 + $0x10] sm:$0xff] }
 0x8ff   : > { %18153 = vmatprep.mubr.msk.f32.mxu0 %vm493_vm0, %v10062_v12  ;;  %v19013_v7 = vpack.c.bf16 %v10920_v52, %v10919_v10  ;;  %v15384_v52 = vld [vmem:[%s23629_s8 + $0x20] sm:$0xff] }
 0x902   : > { %18154 = vmatmul.mubr.msk.f32.gmra.mrb[70].mxu0 %vm493_vm0, %v22755_v44  ;;  %v24025_v44 = vmov 0.0  }
 0x903   : > { %572 = vst.msk [vmem:[#allocation4 + $0x10] sm:$0x3f] %vm569_vm3, %v24025_v44  ;;  %573 = vst.msk [vmem:[#allocation4 + $0x18] sm:$0x3f] %vm569_vm3, %v24025_v44 }
 0x904   : > { %574 = vst.msk [vmem:[#allocation4 + $0x20] sm:$0x3f] %vm569_vm3, %v24025_v44  ;;  %570 = vst.msk [vmem:[#allocation4] sm:$0x3f] %vm569_vm3, %v24025_v44 }
 0x905   : > { %571 = vst.msk [vmem:[#allocation4 + $0x8] sm:$0x3f] %vm569_vm3, %v24025_v44  ;;  %575 = vst.msk [vmem:[#allocation4 + $0x28] sm:$0x3f] %vm569_vm3, %v24025_v44  ;;  %v19045_v44 = vpack.c.bf16 %v15363_v18, %v15362_v39  ;;  %v15400_v39 = vld [vmem:[%s23629_s8 + $0x70] sm:$0xff]  ;;  %v15401_v18 = vld [vmem:[%s23629_s8 + $0x78] sm:$0xff] }
 0x9c9   : > { %v18146_v13 = vpop.f32.mrb[64].mxu0 }
 0x9ca   : > { %v10608_v11 = vpop.f32.mrb[65].mxu0 }
 0x9cb   : > { %v18985_v56 = vpack.c.bf16 %v18146_v13, %v10608_v11  ;;  %v15366_v11 = vld [vmem:[%s23628_s7 + $0xc0] sm:$0xff] }
 0x9cd   : > { %v18149_v15 = vpop.f32.mrb[66].mxu0  ;;  %18986 = vmatprep.subr.bf16.mxu1 %v18985_v56 }
 0x9ce   : > { %v10618_v22 = vpop.f32.mrb[67].mxu0  ;;  %18988 = vmatpush3.bf16.msra.mxu1 %v18985_v56  ;;  %v15367_v56 = vld [vmem:[%s23628_s7 + $0xc8] sm:$0xff] }
 0x9cf   : > { %v18989_v25 = vpack.c.bf16 %v18149_v15, %v10618_v22  ;;  %v19049_v15 = vpack.c.bf16 %v15367_v56, %v15366_v11  ;;  %v15368_v22 = vld [vmem:[%s23628_s7 + $0xd0] sm:$0xff]  ;;  %v15404_v11 = vld [vmem:[%s23629_s8 + $0x80] sm:$0xff]  ;;  %v15405_v56 = vld [vmem:[%s23629_s8 + $0x88] sm:$0xff] }
 0x9d1   : > { %v18152_v54 = vpop.f32.mrb[68].mxu0  ;;  %18990 = vmatprep.subr.bf16.mxu1 %v18989_v25 }
 0x9d2   : > { %v10628_v27 = vpop.f32.mrb[69].mxu0  ;;  %18992 = vmatpush3.bf16.msra.mxu1 %v18989_v25  ;;  %v15369_v25 = vld [vmem:[%s23628_s7 + $0xd8] sm:$0xff] }
 0x9d3   : > { %v18993_v62 = vpack.c.bf16 %v18152_v54, %v10628_v27  ;;  %v19053_v27 = vpack.c.bf16 %v15369_v25, %v15368_v22  ;;  %v15406_v22 = vld [vmem:[%s23629_s8 + $0x90] sm:$0xff]  ;;  %v15407_v25 = vld [vmem:[%s23629_s8 + $0x98] sm:$0xff] }
 0x9d5   : > { %v18155_v36 = vpop.f32.mrb[70].mxu0  ;;  %18994 = vmatprep.subr.bf16.mxu1 %v18993_v62 }
 0x9d6   : > { %v10638_v30 = vpop.f32.mrb[71].mxu0  ;;  %18996 = vmatpush3.bf16.msra.mxu1 %v18993_v62 }
 0x9d7   : > { %v18997_v45 = vpack.c.bf16 %v18155_v36, %v10638_v30  ;;  %v15372_v36 = vld [vmem:[%s23628_s7 + $0xe0] sm:$0xff]  ;;  %v15373_v30 = vld [vmem:[%s23628_s7 + $0xe8] sm:$0xff] }
 0x9d9   : > { %18998 = vmatprep.subr.bf16.mxu1 %v18997_v45 }
 0x9da   : > { %19000 = vmatpush3.bf16.msra.mxu1 %v18997_v45  ;;  %v19057_v45 = vpack.c.bf16 %v15373_v30, %v15372_v36  ;;  %v15410_v36 = vld [vmem:[%s23629_s8 + $0xa0] sm:$0xff]  ;;  %v15411_v30 = vld [vmem:[%s23629_s8 + $0xa8] sm:$0xff] }
 0x9db   : > { %19002 = vmatprep.subr.bf16.mxu1 %v19001_v42 }
 0x9dd   : > { %18203 = vmatmul.mubr.msk.f32.vlgmr.msra.gmra.mrb[54].mxu1 %vm10657_vm2, %v22801_v29  ;;  %v10917_v29 = vld [vmem:[%s23628_s7] sm:$0xff] }
 0x9de   : > { %19004 = vmatpush3.bf16.msra.mxu1 %v19001_v42  ;;  %v19009_v31 = vpack.c.bf16 %v10918_v38, %v10917_v29  ;;  %v19061_v42 = vpack.c.bf16 %v15375_v61, %v15374_v57  ;;  %v15379_v29 = vld [vmem:[%s23628_s7 + $0x108] sm:$0xff]  ;;  %v15412_v57 = vld [vmem:[%s23629_s8 + $0xb0] sm:$0xff]  ;;  %v15413_v61 = vld [vmem:[%s23629_s8 + $0xb8] sm:$0xff] }
 0x9df   : > { %19006 = vmatprep.subr.bf16.mxu1 %v19005_v16 }
 0x9e2   : > { %19008 = vmatpush3.bf16.msra.mxu1 %v19005_v16  ;;  %v15378_v16 = vld [vmem:[%s23628_s7 + $0x100] sm:$0xff] }
 0x9e3   : > { %19010 = vmatprep.subr.bf16.mxu1 %v19009_v31  ;;  %v19065_v38 = vpack.c.bf16 %v15379_v29, %v15378_v16  ;;  %v15416_v16 = vld [vmem:[%s23629_s8 + $0xc0] sm:$0xff]  ;;  %v15417_v29 = vld [vmem:[%s23629_s8 + $0xc8] sm:$0xff] }
 0xab0   : > { %v23091_v40 = vpop.f32.mrb[54].mxu1 }
 0xab1   : > { %v10900_v28 = vmax.f32 %v23091_v40, 0.0  ;;  %v23094_v58 = vpop.f32.mrb[55].mxu1 }
 0xab2   : > { %v10899_v37 = vmax.f32 %v23094_v58, 0.0 }
 0xab3   : > { %v10904_v33 = vcombine.high %v10900_v28, %v10900_v28  ;;  %10911 = vst.msk [vmem:[#allocation4 + $0x19] sm:$0xf] %vm10908_vm4, %v10900_v28  ;;  %v15381_v28 = vld [vmem:[%s23628_s7 + $0x118] sm:$0xff] }
 0xab4   : > { %v10903_v6 = vcombine.high %v10899_v37, %v10899_v37  ;;  %10909 = vst.msk [vmem:[#allocation4 + $0x9] sm:$0xf] %vm10908_vm4, %v10899_v37 }
 0xab5   : > { %10912 = vst.msk [vmem:[#allocation4 + $0x21] sm:$0xf] %vm10908_vm4, %v10904_v33 }
 0xab6   : > { %10910 = vst.msk [vmem:[#allocation4 + $0x11] sm:$0xf] %vm10908_vm4, %v10903_v6 }
 0xabb   : > { %v20008_v55 = vld [vmem:[#allocation4 + $0x1] ss:$8 sps:$4 sm:$0xff]  }
 0xabc   : > { %18213 = vmatprep.mubr.msk.f32.mxu1 %vm493_vm0, %v20008_v55  ;;  %v20010_v20 = vld [vmem:[#allocation4] ss:$8 sps:$4 sm:$0xff]   ;;  %v15385_v55 = vld [vmem:[%s23629_s8 + $0x28] sm:$0xff] }
 0xabd   : > { %v20009_v24 = vld [vmem:[#allocation4 + $0x11] ss:$8 sps:$4 sm:$0xff]   ;;  %v20012_v17 = vld [vmem:[#allocation4 + $0x2] ss:$8 sps:$4 sm:$0xff]   ;;  %v19073_v59 = vpack.c.bf16 %v15385_v55, %v15384_v52 }
 0xabe   : > { %18214 = vmatmul.mubr.msk.f32.vlgmr.msra.gmra.mrb[56].mxu1 %vm493_vm0, %v20009_v24  ;;  %v20011_v26 = vld [vmem:[#allocation4 + $0x10] ss:$8 sps:$4 sm:$0xff]   ;;  %v20021_v43 = vld [vmem:[#allocation4 + $0x20] ss:$8 sps:$4 sm:$0xff]  }
 0xabf   : > { %19012 = vmatpush3.bf16.msra.mxu1 %v19009_v31  ;;  %18224 = vmatprep.mubr.msk.f32.mxu1 %vm493_vm0, %v20010_v20  ;;  %v20013_v34 = vld [vmem:[#allocation4 + $0x12] ss:$8 sps:$4 sm:$0xff]   ;;  %v15380_v31 = vld [vmem:[%s23628_s7 + $0x110] sm:$0xff] }
 0xac0   : > { %19014 = vmatprep.subr.bf16.mxu1 %v19013_v7  ;;  %v20014_v12 = vld [vmem:[#allocation4 + $0x8] ss:$8 sps:$4 sm:$0xff]   ;;  %v20015_v48 = vld [vmem:[#allocation4 + $0x18] ss:$8 sps:$4 sm:$0xff]   ;;  %v19069_v33 = vpack.c.bf16 %v15381_v28, %v15380_v31  ;;  %19074 = vmatprep.subr.bf16.mxu0 %v19073_v59 }
 0xac1   : > { %v20016_v5 = vld [vmem:[#allocation4 + $0x9] ss:$8 sps:$4 sm:$0xff]   ;;  %v20017_v60 = vld [vmem:[#allocation4 + $0x19] ss:$8 sps:$4 sm:$0xff]   ;;  %19076 = vmatpush3.bf16.msra.mxu0 %v19073_v59 }
 0xac2   : > { %v20018_v13 = vld [vmem:[#allocation4 + $0xa] ss:$8 sps:$4 sm:$0xff]   ;;  %v20019_v54 = vld [vmem:[#allocation4 + $0x1a] ss:$8 sps:$4 sm:$0xff]  }
 0xac3   : > { %19016 = vmatpush3.bf16.msra.mxu1 %v19013_v7  ;;  %v20020_v62 = vld [vmem:[#allocation4 + $0x10] ss:$8 sps:$4 sm:$0xff]   ;;  %v20023_v37 = vld [vmem:[#allocation4 + $0x21] ss:$8 sps:$4 sm:$0xff]  }
 0xac4   : > { %19018 = vmatprep.subr.bf16.mxu1 %v19017_v9  ;;  %v20022_v49 = vld [vmem:[#allocation4 + $0x11] ss:$8 sps:$4 sm:$0xff]   ;;  %v20025_v10 = vld [vmem:[#allocation4 + $0x22] ss:$8 sps:$4 sm:$0xff]  }
 0xac5   : > { %v20024_v6 = vld [vmem:[#allocation4 + $0x12] ss:$8 sps:$4 sm:$0xff]   ;;  %v15386_v24 = vld [vmem:[%s23629_s8 + $0x30] sm:$0xff]  ;;  %v15387_v7 = vld [vmem:[%s23629_s8 + $0x38] sm:$0xff] }
 0xac6   : > { %18225 = vmatmul.mubr.msk.f32.vlgmr.msra.gmra.mrb[56].mxu1 %vm493_vm0, %v20011_v26  ;;  %v19077_v20 = vpack.c.bf16 %v15387_v7, %v15386_v24  ;;  %v15418_v31 = vld [vmem:[%s23629_s8 + $0xd0] sm:$0xff]  ;;  %v15419_v28 = vld [vmem:[%s23629_s8 + $0xd8] sm:$0xff]  ;;  %v15423_v52 = vld [vmem:[%s23629_s8 + $0xe8] sm:$0xff] }
 0xac7   : > { %19020 = vmatpush3.bf16.msra.mxu1 %v19017_v9  ;;  %18235 = vmatprep.mubr.msk.f32.mxu1 %vm493_vm0, %v20012_v17  ;;  %v11790_v9 = vld [vmem:[%s23629_s8 + $0x8] sm:$0xff]  ;;  %v15424_v59 = vld [vmem:[%s23629_s8 + $0xf0] sm:$0xff]  ;;  %v15425_v24 = vld [vmem:[%s23629_s8 + $0xf8] sm:$0xff] }
 0xac8   : > { %19022 = vmatprep.subr.bf16.mxu1 %v19021_v50  ;;  %19078 = vmatprep.subr.bf16.mxu0 %v19077_v20  ;;  %v19081_v14 = vpack.c.bf16 %v11790_v9, %v11789_v2  ;;  %v15428_v9 = vld [vmem:[%s23629_s8 + $0x100] sm:$0xff] }
 0xac9   : > { %19080 = vmatpush3.bf16.msra.mxu0 %v19077_v20  ;;  %v19133_v20 = vpack.c.bf16 %v15425_v24, %v15424_v59  ;;  %v15462_v59 = vld [vmem:[%s23630_s9 + $0xb0] sm:$0xff]  ;;  %v15463_v24 = vld [vmem:[%s23630_s9 + $0xb8] sm:$0xff] }
 0xaca   : > { %19082 = vmatprep.subr.bf16.mxu0 %v19081_v14 }
 0xacb   : > { %19024 = vmatpush3.bf16.msra.mxu1 %v19021_v50 }
 0xacc   : > { %19026 = vmatprep.subr.bf16.mxu1 %v19025_v19 }
 0xace   : > { %18236 = vmatmul.mubr.msk.f32.vlgmr.msra.gmra.mrb[56].mxu1 %vm493_vm0, %v20013_v34  ;;  %v15392_v34 = vld [vmem:[%s23629_s8 + $0x40] sm:$0xff] }
 0xacf   : > { %19028 = vmatpush3.bf16.msra.mxu1 %v19025_v19  ;;  %18246 = vmatprep.mubr.msk.f32.mxu1 %vm493_vm0, %v20014_v12  ;;  %v11791_v19 = vld [vmem:[%s23629_s8 + $0x10] sm:$0xff] }
 0xad0   : > { %19030 = vmatprep.subr.bf16.mxu1 %v19029_v46  ;;  %v19085_v12 = vpack.c.bf16 %v11792_v35, %v11791_v19  ;;  %v15434_v35 = vld [vmem:[%s23630_s9 + $0x20] sm:$0xff] }
 0xad3   : > { %19032 = vmatpush3.bf16.msra.mxu1 %v19029_v46 }
 0xad4   : > { %19034 = vmatprep.subr.bf16.mxu1 %v19033_v53 }
 0xad6   : > { %18247 = vmatmul.mubr.msk.f32.vlgmr.msra.gmra.mrb[56].mxu1 %vm493_vm0, %v20015_v48  ;;  %v15398_v48 = vld [vmem:[%s23629_s8 + $0x60] sm:$0xff] }
 0xad7   : > { %19036 = vmatpush3.bf16.msra.mxu1 %v19033_v53  ;;  %18257 = vmatprep.mubr.msk.f32.mxu1 %vm493_vm0, %v20016_v5  ;;  %v19089_v53 = vpack.c.bf16 %v15393_v32, %v15392_v34  ;;  %v15436_v34 = vld [vmem:[%s23630_s9 + $0x30] sm:$0xff]  ;;  %v12662_v32 = vld [vmem:[%s23630_s9] sm:$0xff] }
 0xad8   : > { %19038 = vmatprep.subr.bf16.mxu1 %v19037_v1 }
 0xadb   : > { %19040 = vmatpush3.bf16.msra.mxu1 %v19037_v1  ;;  %v15399_v1 = vld [vmem:[%s23629_s8 + $0x68] sm:$0xff] }
 0xadc   : > { %19042 = vmatprep.subr.bf16.mxu1 %v19041_v4 }
 0xade   : > { %18258 = vmatmul.mubr.msk.f32.vlgmr.msra.gmra.mrb[56].mxu1 %vm493_vm0, %v20017_v60 }
 0xadf   : > { %19044 = vmatpush3.bf16.msra.mxu1 %v19041_v4  ;;  %18268 = vmatprep.mubr.msk.f32.mxu1 %vm493_vm0, %v20018_v13  ;;  %v19097_v4 = vpack.c.bf16 %v15399_v1, %v15398_v48 }
 0xae0   : > { %19046 = vmatprep.subr.bf16.mxu1 %v19045_v44 }
 0xae3   : > { %19048 = vmatpush3.bf16.msra.mxu1 %v19045_v44  ;;  %v19101_v44 = vpack.c.bf16 %v15401_v18, %v15400_v39 }
 0xae4   : > { %19050 = vmatprep.subr.bf16.mxu1 %v19049_v15 }
 0xae6   : > { %18269 = vmatmul.mubr.msk.f32.vlgmr.msra.gmra.mrb[56].mxu1 %vm493_vm0, %v20019_v54 }
 0xae7   : > { %19052 = vmatpush3.bf16.msra.mxu1 %v19049_v15  ;;  %18279 = vmatprep.mubr.msk.f32.mxu1 %vm493_vm0, %v20020_v62  ;;  %v19105_v15 = vpack.c.bf16 %v15405_v56, %v15404_v11  ;;  %v15443_v56 = vld [vmem:[%s23630_s9 + $0x48] sm:$0xff] }
 0xae8   : > { %19054 = vmatprep.subr.bf16.mxu1 %v19053_v27 }
 0xaeb   : > { %19056 = vmatpush3.bf16.msra.mxu1 %v19053_v27  ;;  %v19109_v27 = vpack.c.bf16 %v15407_v25, %v15406_v22  ;;  %v15444_v22 = vld [vmem:[%s23630_s9 + $0x50] sm:$0xff]  ;;  %v15445_v25 = vld [vmem:[%s23630_s9 + $0x58] sm:$0xff] }
 0xaec   : > { %19058 = vmatprep.subr.bf16.mxu1 %v19057_v45 }
 0xaee   : > { %18280 = vmatmul.mubr.msk.f32.vlgmr.msra.gmra.mrb[56].mxu1 %vm493_vm0, %v20021_v43 }
 0xaef   : > { %19060 = vmatpush3.bf16.msra.mxu1 %v19057_v45  ;;  %18290 = vmatprep.mubr.msk.f32.mxu1 %vm493_vm0, %v20022_v49  ;;  %v19113_v45 = vpack.c.bf16 %v15411_v30, %v15410_v36  ;;  %v19165_v36 = vpack.c.bf16 %v15445_v25, %v15444_v22 }
 0xaf0   : > { %19062 = vmatprep.subr.bf16.mxu1 %v19061_v42 }
 0xaf3   : > { %19064 = vmatpush3.bf16.msra.mxu1 %v19061_v42  ;;  %v19117_v42 = vpack.c.bf16 %v15413_v61, %v15412_v57  ;;  %v15450_v57 = vld [vmem:[%s23630_s9 + $0x70] sm:$0xff]  ;;  %v15451_v61 = vld [vmem:[%s23630_s9 + $0x78] sm:$0xff] }
 0xaf4   : > { %19066 = vmatprep.subr.bf16.mxu1 %v19065_v38 }
 0xaf6   : > { %18291 = vmatmul.mubr.msk.f32.vlgmr.msra.gmra.mrb[56].mxu1 %vm493_vm0, %v20023_v37 }
 0xaf7   : > { %19068 = vmatpush3.bf16.msra.mxu1 %v19065_v38  ;;  %18301 = vmatprep.mubr.msk.f32.mxu1 %vm493_vm0, %v20024_v6  ;;  %v19121_v38 = vpack.c.bf16 %v15417_v29, %v15416_v16  ;;  %v15454_v16 = vld [vmem:[%s23630_s9 + $0x80] sm:$0xff]  ;;  %v15455_v29 = vld [vmem:[%s23630_s9 + $0x88] sm:$0xff] }
 0xaf8   : > { %19070 = vmatprep.subr.bf16.mxu1 %v19069_v33 }
 0xafb   : > { %19072 = vmatpush3.bf16.msra.mxu1 %v19069_v33  ;;  %v19125_v33 = vpack.c.bf16 %v15419_v28, %v15418_v31  ;;  %v15456_v31 = vld [vmem:[%s23630_s9 + $0x90] sm:$0xff]  ;;  %v15457_v28 = vld [vmem:[%s23630_s9 + $0x98] sm:$0xff] }
 0xafe   : > { %18302 = vmatmul.mubr.msk.f32.vlgmr.msra.gmra.mrb[56].mxu1 %vm493_vm0, %v20025_v10  ;;  %v15422_v10 = vld [vmem:[%s23629_s8 + $0xe0] sm:$0xff] }
 0xaff   : > { %v19129_v55 = vpack.c.bf16 %v15423_v52, %v15422_v10  ;;  %v15460_v10 = vld [vmem:[%s23630_s9 + $0xa0] sm:$0xff]  ;;  %v15461_v52 = vld [vmem:[%s23630_s9 + $0xa8] sm:$0xff] }
 0xbd1   : > { %v18303_v41 = vpop.f32.mrb[56].mxu1 }
 0xbd2   : > { %v11774_v23 = vmax.f32 %v18303_v41, 0.0  ;;  %v11762_v21 = vpop.f32.mrb[57].mxu1 }
 0xbd3   : > { %v11773_v26 = vmax.f32 %v11762_v21, 0.0  ;;  %v15431_v21 = vld [vmem:[%s23629_s8 + $0x118] sm:$0xff] }
 0xbd4   : > { %v11778_v50 = vcombine.high %v11774_v23, %v11774_v23  ;;  %11783 = vst.msk [vmem:[#allocation4 + $0x19] sm:$0xf] %vm10908_vm4, %v11774_v23  ;;  %v15430_v23 = vld [vmem:[%s23629_s8 + $0x110] sm:$0xff] }
 0xbd5   : > { %v11777_v17 = vcombine.high %v11773_v26, %v11773_v26  ;;  %11781 = vst.msk [vmem:[#allocation4 + $0x9] sm:$0xf] %vm10908_vm4, %v11773_v26 }
 0xbd6   : > { %11784 = vst.msk [vmem:[#allocation4 + $0x21] sm:$0xf] %vm10908_vm4, %v11778_v50  ;;  %v19141_v50 = vpack.c.bf16 %v15431_v21, %v15430_v23  ;;  %v15468_v23 = vld [vmem:[%s23630_s9 + $0xd0] sm:$0xff]  ;;  %v15469_v21 = vld [vmem:[%s23630_s9 + $0xd8] sm:$0xff] }
 0xbd7   : > { %11782 = vst.msk [vmem:[#allocation4 + $0x11] sm:$0xf] %vm10908_vm4, %v11777_v17 }
 0xbdc   : > { %v20026_v63 = vld [vmem:[#allocation4 + $0x1] ss:$8 sps:$4 sm:$0xff]  }
 0xbdd   : > { %18312 = vmatprep.mubr.msk.f32.mxu0 %vm493_vm0, %v20026_v63  ;;  %v20028_v3 = vld [vmem:[#allocation4] ss:$8 sps:$4 sm:$0xff]   ;;  %v15435_v63 = vld [vmem:[%s23630_s9 + $0x28] sm:$0xff] }
 0xbde   : > { %v20027_v46 = vld [vmem:[#allocation4 + $0x11] ss:$8 sps:$4 sm:$0xff]   ;;  %v20030_v51 = vld [vmem:[#allocation4 + $0x2] ss:$8 sps:$4 sm:$0xff]  }
 0xbdf   : > { %18313 = vmatmul.mubr.msk.f32.vlgmr.msra.gmra.mrb[72].mxu0 %vm493_vm0, %v20027_v46  ;;  %v20029_v5 = vld [vmem:[#allocation4 + $0x10] ss:$8 sps:$4 sm:$0xff]   ;;  %v20039_v7 = vld [vmem:[#allocation4 + $0x20] ss:$8 sps:$4 sm:$0xff]   ;;  %v19145_v46 = vpack.c.bf16 %v15435_v63, %v15434_v35 }
 0xbe0   : > { %19084 = vmatpush3.bf16.msra.mxu0 %v19081_v14  ;;  %18323 = vmatprep.mubr.msk.f32.mxu0 %vm493_vm0, %v20028_v3  ;;  %v20031_v60 = vld [vmem:[#allocation4 + $0x12] ss:$8 sps:$4 sm:$0xff]   ;;  %v20041_v26 = vld [vmem:[#allocation4 + $0x21] ss:$8 sps:$4 sm:$0xff]  }
 0xbe1   : > { %19086 = vmatprep.subr.bf16.mxu0 %v19085_v12  ;;  %v20032_v13 = vld [vmem:[#allocation4 + $0x8] ss:$8 sps:$4 sm:$0xff]   ;;  %v20033_v54 = vld [vmem:[#allocation4 + $0x18] ss:$8 sps:$4 sm:$0xff]   ;;  %19146 = vmatprep.subr.bf16.mxu1 %v19145_v46 }
 0xbe2   : > { %v20034_v62 = vld [vmem:[#allocation4 + $0x9] ss:$8 sps:$4 sm:$0xff]   ;;  %v20035_v43 = vld [vmem:[#allocation4 + $0x19] ss:$8 sps:$4 sm:$0xff]   ;;  %19148 = vmatpush3.bf16.msra.mxu1 %v19145_v46 }
 0xbe3   : > { %v20036_v49 = vld [vmem:[#allocation4 + $0xa] ss:$8 sps:$4 sm:$0xff]   ;;  %v20037_v37 = vld [vmem:[#allocation4 + $0x1a] ss:$8 sps:$4 sm:$0xff]  }
 0xbe4   : > { %19088 = vmatpush3.bf16.msra.mxu0 %v19085_v12  ;;  %v20038_v6 = vld [vmem:[#allocation4 + $0x10] ss:$8 sps:$4 sm:$0xff]   ;;  %v20043_v19 = vld [vmem:[#allocation4 + $0x22] ss:$8 sps:$4 sm:$0xff]  }
 0xbe5   : > { %19090 = vmatprep.subr.bf16.mxu0 %v19089_v53  ;;  %v20040_v2 = vld [vmem:[#allocation4 + $0x11] ss:$8 sps:$4 sm:$0xff]   ;;  %v15437_v12 = vld [vmem:[%s23630_s9 + $0x38] sm:$0xff] }
 0xbe6   : > { %v15429_v14 = vld [vmem:[%s23629_s8 + $0x108] sm:$0xff]  ;;  %v19149_v3 = vpack.c.bf16 %v15437_v12, %v15436_v34  ;;  %v15474_v34 = vld [vmem:[%s23630_s9 + $0xf0] sm:$0xff]  ;;  %v15475_v46 = vld [vmem:[%s23630_s9 + $0xf8] sm:$0xff] }
 0xbe7   : > { %18324 = vmatmul.mubr.msk.f32.vlgmr.msra.gmra.mrb[72].mxu0 %vm493_vm0, %v20029_v5  ;;  %v19137_v41 = vpack.c.bf16 %v15429_v14, %v15428_v9  ;;  %v20042_v17 = vld [vmem:[#allocation4 + $0x12] ss:$8 sps:$4 sm:$0xff]  }
 0xbe8   : > { %19092 = vmatpush3.bf16.msra.mxu0 %v19089_v53  ;;  %18334 = vmatprep.mubr.msk.f32.mxu0 %vm493_vm0, %v20030_v51  ;;  %v12663_v53 = vld [vmem:[%s23630_s9 + $0x8] sm:$0xff]  ;;  %v15466_v9 = vld [vmem:[%s23630_s9 + $0xc0] sm:$0xff] }
 0xbe9   : > { %19094 = vmatprep.subr.bf16.mxu0 %v19093_v8  ;;  %19150 = vmatprep.subr.bf16.mxu1 %v19149_v3  ;;  %v19153_v47 = vpack.c.bf16 %v12663_v53, %v12662_v32  ;;  %v15467_v14 = vld [vmem:[%s23630_s9 + $0xc8] sm:$0xff]  ;;  %v15478_v53 = vld [vmem:[%s23630_s9 + $0x100] sm:$0xff] }
 0xbea   : > { %19152 = vmatpush3.bf16.msra.mxu1 %v19149_v3  ;;  %v15473_v35 = vld [vmem:[%s23630_s9 + $0xe8] sm:$0xff]  ;;  %v19205_v3 = vpack.c.bf16 %v15475_v46, %v15474_v34  ;;  %v15512_v34 = vld [vmem:[%s23631_s10 + $0xb0] sm:$0xff]  ;;  %v15513_v46 = vld [vmem:[%s23631_s10 + $0xb8] sm:$0xff] }
 0xbeb   : > { %19154 = vmatprep.subr.bf16.mxu1 %v19153_v47 }
 0xbec   : > { %19096 = vmatpush3.bf16.msra.mxu0 %v19093_v8 }
 0xbed   : > { %19098 = vmatprep.subr.bf16.mxu0 %v19097_v4 }
 0xbef   : > { %18335 = vmatmul.mubr.msk.f32.vlgmr.msra.gmra.mrb[72].mxu0 %vm493_vm0, %v20031_v60  ;;  %v15442_v60 = vld [vmem:[%s23630_s9 + $0x40] sm:$0xff] }
 0xbf0   : > { %19100 = vmatpush3.bf16.msra.mxu0 %v19097_v4  ;;  %18345 = vmatprep.mubr.msk.f32.mxu0 %vm493_vm0, %v20032_v13 }
 0xbf1   : > { %19102 = vmatprep.subr.bf16.mxu0 %v19101_v44 }
 0xbf4   : > { %19104 = vmatpush3.bf16.msra.mxu0 %v19101_v44 }
 0xbf5   : > { %19106 = vmatprep.subr.bf16.mxu0 %v19105_v15 }
 0xbf7   : > { %18346 = vmatmul.mubr.msk.f32.vlgmr.msra.gmra.mrb[72].mxu0 %vm493_vm0, %v20033_v54  ;;  %v15448_v54 = vld [vmem:[%s23630_s9 + $0x60] sm:$0xff] }
 0xbf8   : > { %19108 = vmatpush3.bf16.msra.mxu0 %v19105_v15  ;;  %18356 = vmatprep.mubr.msk.f32.mxu0 %vm493_vm0, %v20034_v62  ;;  %v19161_v15 = vpack.c.bf16 %v15443_v56, %v15442_v60  ;;  %v15486_v60 = vld [vmem:[%s23631_s10 + $0x30] sm:$0xff]  ;;  %v13533_v56 = vld [vmem:[%s23631_s10] sm:$0xff] }
 0xbf9   : > { %19110 = vmatprep.subr.bf16.mxu0 %v19109_v27 }
 0xbfc   : > { %19112 = vmatpush3.bf16.msra.mxu0 %v19109_v27  ;;  %v15449_v27 = vld [vmem:[%s23630_s9 + $0x68] sm:$0xff] }
 0xbfd   : > { %19114 = vmatprep.subr.bf16.mxu0 %v19113_v45 }
 0xbff   : > { %18357 = vmatmul.mubr.msk.f32.vlgmr.msra.gmra.mrb[72].mxu0 %vm493_vm0, %v20035_v43 }
 0xc00   : > { %19116 = vmatpush3.bf16.msra.mxu0 %v19113_v45  ;;  %18367 = vmatprep.mubr.msk.f32.mxu0 %vm493_vm0, %v20036_v49  ;;  %v19169_v45 = vpack.c.bf16 %v15449_v27, %v15448_v54 }
 0xc01   : > { %19118 = vmatprep.subr.bf16.mxu0 %v19117_v42 }
 0xc04   : > { %19120 = vmatpush3.bf16.msra.mxu0 %v19117_v42  ;;  %v19173_v42 = vpack.c.bf16 %v15451_v61, %v15450_v57  ;;  %v13536_v57 = vld [vmem:[%s23631_s10 + $0x18] sm:$0xff] }
 0xc05   : > { %19122 = vmatprep.subr.bf16.mxu0 %v19121_v38 }
 0xc07   : > { %18368 = vmatmul.mubr.msk.f32.vlgmr.msra.gmra.mrb[72].mxu0 %vm493_vm0, %v20037_v37 }
 0xc08   : > { %19124 = vmatpush3.bf16.msra.mxu0 %v19121_v38  ;;  %18378 = vmatprep.mubr.msk.f32.mxu0 %vm493_vm0, %v20038_v6  ;;  %v19177_v38 = vpack.c.bf16 %v15455_v29, %v15454_v16  ;;  %v15493_v29 = vld [vmem:[%s23631_s10 + $0x48] sm:$0xff] }
 0xc09   : > { %19126 = vmatprep.subr.bf16.mxu0 %v19125_v33 }
 0xc0c   : > { %19128 = vmatpush3.bf16.msra.mxu0 %v19125_v33  ;;  %v19181_v33 = vpack.c.bf16 %v15457_v28, %v15456_v31  ;;  %v15494_v31 = vld [vmem:[%s23631_s10 + $0x50] sm:$0xff]  ;;  %v15495_v28 = vld [vmem:[%s23631_s10 + $0x58] sm:$0xff] }
 0xc0d   : > { %19130 = vmatprep.subr.bf16.mxu0 %v19129_v55 }
 0xc0f   : > { %18379 = vmatmul.mubr.msk.f32.vlgmr.msra.gmra.mrb[72].mxu0 %vm493_vm0, %v20039_v7 }
 0xc10   : > { %19132 = vmatpush3.bf16.msra.mxu0 %v19129_v55  ;;  %18389 = vmatprep.mubr.msk.f32.mxu0 %vm493_vm0, %v20040_v2  ;;  %v19185_v55 = vpack.c.bf16 %v15461_v52, %v15460_v10  ;;  %v19237_v10 = vpack.c.bf16 %v15495_v28, %v15494_v31 }
 0xc11   : > { %19134 = vmatprep.subr.bf16.mxu0 %v19133_v20 }
 0xc14   : > { %19136 = vmatpush3.bf16.msra.mxu0 %v19133_v20  ;;  %v19189_v20 = vpack.c.bf16 %v15463_v24, %v15462_v59  ;;  %v15500_v59 = vld [vmem:[%s23631_s10 + $0x70] sm:$0xff]  ;;  %v15501_v24 = vld [vmem:[%s23631_s10 + $0x78] sm:$0xff] }
 0xc15   : > { %19138 = vmatprep.subr.bf16.mxu0 %v19137_v41 }
 0xc17   : > { %18390 = vmatmul.mubr.msk.f32.vlgmr.msra.gmra.mrb[72].mxu0 %vm493_vm0, %v20041_v26 }
 0xc18   : > { %19140 = vmatpush3.bf16.msra.mxu0 %v19137_v41  ;;  %18400 = vmatprep.mubr.msk.f32.mxu0 %vm493_vm0, %v20042_v17  ;;  %v19193_v41 = vpack.c.bf16 %v15467_v14, %v15466_v9  ;;  %v15504_v9 = vld [vmem:[%s23631_s10 + $0x80] sm:$0xff]  ;;  %v15505_v14 = vld [vmem:[%s23631_s10 + $0x88] sm:$0xff] }
 0xc19   : > { %19142 = vmatprep.subr.bf16.mxu0 %v19141_v50 }
 0xc1c   : > { %19144 = vmatpush3.bf16.msra.mxu0 %v19141_v50  ;;  %v19197_v50 = vpack.c.bf16 %v15469_v21, %v15468_v23  ;;  %v15506_v23 = vld [vmem:[%s23631_s10 + $0x90] sm:$0xff]  ;;  %v15507_v21 = vld [vmem:[%s23631_s10 + $0x98] sm:$0xff] }
 0xc1f   : > { %18401 = vmatmul.mubr.msk.f32.vlgmr.msra.gmra.mrb[72].mxu0 %vm493_vm0, %v20043_v19  ;;  %v15472_v19 = vld [vmem:[%s23630_s9 + $0xe0] sm:$0xff] }
 0xc20   : > { %v19201_v63 = vpack.c.bf16 %v15473_v35, %v15472_v19  ;;  %v15510_v19 = vld [vmem:[%s23631_s10 + $0xa0] sm:$0xff]  ;;  %v15511_v35 = vld [vmem:[%s23631_s10 + $0xa8] sm:$0xff] }
 0xcf2   : > { %v18402_v0 = vpop.f32.mrb[72].mxu0 }
 0xcf3   : > { %v23358_v48 = vadd.f32 %v18402_v0, %v23091_v40  ;;  %v12633_v1 = vpop.f32.mrb[73].mxu0  ;;  %v12664_v40 = vld [vmem:[%s23630_s9 + $0x10] sm:$0xff] }
 0xcf4   : > { %v23361_v5 = vadd.f32 %v12633_v1, %v23094_v58  ;;  %v12665_v58 = vld [vmem:[%s23630_s9 + $0x18] sm:$0xff]  ;;  %v15480_v1 = vld [vmem:[%s23630_s9 + $0x110] sm:$0xff] }
 0xcf5   : > { %v12647_v8 = vmax.f32 %v23358_v48, 0.0  ;;  %v19157_v13 = vpack.c.bf16 %v12665_v58, %v12664_v40  ;;  %v15484_v58 = vld [vmem:[%s23631_s10 + $0x20] sm:$0xff] }
 0xcf6   : > { %v12646_v51 = vmax.f32 %v23361_v5, 0.0 }
 0xcf7   : > { %v12651_v4 = vcombine.high %v12647_v8, %v12647_v8  ;;  %12656 = vst.msk [vmem:[#allocation4 + $0x19] sm:$0xf] %vm10908_vm4, %v12647_v8  ;;  %v15481_v8 = vld [vmem:[%s23630_s9 + $0x118] sm:$0xff] }
 0xcf8   : > { %v12650_v39 = vcombine.high %v12646_v51, %v12646_v51  ;;  %12654 = vst.msk [vmem:[#allocation4 + $0x9] sm:$0xf] %vm10908_vm4, %v12646_v51 }
 0xcf9   : > { %12657 = vst.msk [vmem:[#allocation4 + $0x21] sm:$0xf] %vm10908_vm4, %v12651_v4  ;;  %v19213_v4 = vpack.c.bf16 %v15481_v8, %v15480_v1  ;;  %v15518_v1 = vld [vmem:[%s23631_s10 + $0xd0] sm:$0xff]  ;;  %v15519_v8 = vld [vmem:[%s23631_s10 + $0xd8] sm:$0xff] }
 0xcfa   : > { %12655 = vst.msk [vmem:[#allocation4 + $0x11] sm:$0xf] %vm10908_vm4, %v12650_v39 }
 0xcff   : > { %v20044_v18 = vld [vmem:[#allocation4 + $0x1] ss:$8 sps:$4 sm:$0xff]  }
 0xd00   : > { %18411 = vmatprep.mubr.msk.f32.mxu1 %vm493_vm0, %v20044_v18  ;;  %v20046_v11 = vld [vmem:[#allocation4] ss:$8 sps:$4 sm:$0xff]   ;;  %v15485_v18 = vld [vmem:[%s23631_s10 + $0x28] sm:$0xff] }
 0xd01   : > { %v20045_v44 = vld [vmem:[#allocation4 + $0x11] ss:$8 sps:$4 sm:$0xff]   ;;  %v20048_v30 = vld [vmem:[#allocation4 + $0x2] ss:$8 sps:$4 sm:$0xff]  }
 0xd02   : > { %18412 = vmatmul.mubr.msk.f32.vlgmr.msra.gmra.mrb[58].mxu1 %vm493_vm0, %v20045_v44  ;;  %v20047_v62 = vld [vmem:[#allocation4 + $0x10] ss:$8 sps:$4 sm:$0xff]   ;;  %v20057_v12 = vld [vmem:[#allocation4 + $0x20] ss:$8 sps:$4 sm:$0xff]   ;;  %v19217_v44 = vpack.c.bf16 %v15485_v18, %v15484_v58 }
 0xd03   : > { %19156 = vmatpush3.bf16.msra.mxu1 %v19153_v47  ;;  %18422 = vmatprep.mubr.msk.f32.mxu1 %vm493_vm0, %v20046_v11  ;;  %v20049_v43 = vld [vmem:[#allocation4 + $0x12] ss:$8 sps:$4 sm:$0xff]   ;;  %v20059_v51 = vld [vmem:[#allocation4 + $0x21] ss:$8 sps:$4 sm:$0xff]  }
 0xd04   : > { %19158 = vmatprep.subr.bf16.mxu1 %v19157_v13  ;;  %v20050_v49 = vld [vmem:[#allocation4 + $0x8] ss:$8 sps:$4 sm:$0xff]   ;;  %v20051_v37 = vld [vmem:[#allocation4 + $0x18] ss:$8 sps:$4 sm:$0xff]   ;;  %19218 = vmatprep.subr.bf16.mxu0 %v19217_v44 }
 0xd05   : > { %v20052_v6 = vld [vmem:[#allocation4 + $0x9] ss:$8 sps:$4 sm:$0xff]   ;;  %v20053_v7 = vld [vmem:[#allocation4 + $0x19] ss:$8 sps:$4 sm:$0xff]   ;;  %19220 = vmatpush3.bf16.msra.mxu0 %v19217_v44 }
 0xd06   : > { %v20054_v2 = vld [vmem:[#allocation4 + $0xa] ss:$8 sps:$4 sm:$0xff]   ;;  %v20055_v26 = vld [vmem:[#allocation4 + $0x1a] ss:$8 sps:$4 sm:$0xff]  }
 0xd07   : > { %19160 = vmatpush3.bf16.msra.mxu1 %v19157_v13  ;;  %v20056_v17 = vld [vmem:[#allocation4 + $0x10] ss:$8 sps:$4 sm:$0xff]   ;;  %v20061_v40 = vld [vmem:[#allocation4 + $0x22] ss:$8 sps:$4 sm:$0xff]  }
 0xd08   : > { %19162 = vmatprep.subr.bf16.mxu1 %v19161_v15  ;;  %v20058_v32 = vld [vmem:[#allocation4 + $0x11] ss:$8 sps:$4 sm:$0xff]   ;;  %v15487_v13 = vld [vmem:[%s23631_s10 + $0x38] sm:$0xff] }
 0xd09   : > { %v15479_v47 = vld [vmem:[%s23630_s9 + $0x108] sm:$0xff]  ;;  %v19221_v11 = vpack.c.bf16 %v15487_v13, %v15486_v60  ;;  %v15524_v60 = vld [vmem:[%s23631_s10 + $0xf0] sm:$0xff]  ;;  %v15525_v44 = vld [vmem:[%s23631_s10 + $0xf8] sm:$0xff] }
 0xd0a   : > { %18423 = vmatmul.mubr.msk.f32.vlgmr.msra.gmra.mrb[58].mxu1 %vm493_vm0, %v20047_v62  ;;  %v19209_v0 = vpack.c.bf16 %v15479_v47, %v15478_v53  ;;  %v20060_v39 = vld [vmem:[#allocation4 + $0x12] ss:$8 sps:$4 sm:$0xff]  }
 0xd0b   : > { %19164 = vmatpush3.bf16.msra.mxu1 %v19161_v15  ;;  %18433 = vmatprep.mubr.msk.f32.mxu1 %vm493_vm0, %v20048_v30  ;;  %v13534_v15 = vld [vmem:[%s23631_s10 + $0x8] sm:$0xff]  ;;  %v15516_v53 = vld [vmem:[%s23631_s10 + $0xc0] sm:$0xff] }
 0xd0c   : > { %19166 = vmatprep.subr.bf16.mxu1 %v19165_v36  ;;  %19222 = vmatprep.subr.bf16.mxu0 %v19221_v11  ;;  %v19225_v22 = vpack.c.bf16 %v13534_v15, %v13533_v56  ;;  %v15517_v47 = vld [vmem:[%s23631_s10 + $0xc8] sm:$0xff]  ;;  %v15528_v15 = vld [vmem:[%s23631_s10 + $0x100] sm:$0xff] }
 0xd0d   : > { %19224 = vmatpush3.bf16.msra.mxu0 %v19221_v11  ;;  %v15523_v58 = vld [vmem:[%s23631_s10 + $0xe8] sm:$0xff]  ;;  %v19277_v11 = vpack.c.bf16 %v15525_v44, %v15524_v60 }
 0xd0e   : > { %19226 = vmatprep.subr.bf16.mxu0 %v19225_v22 }
 0xd0f   : > { %19168 = vmatpush3.bf16.msra.mxu1 %v19165_v36 }
 0xd10   : > { %19170 = vmatprep.subr.bf16.mxu1 %v19169_v45 }
 0xd12   : > { %18434 = vmatmul.mubr.msk.f32.vlgmr.msra.gmra.mrb[58].mxu1 %vm493_vm0, %v20049_v43  ;;  %v15492_v43 = vld [vmem:[%s23631_s10 + $0x40] sm:$0xff] }
 0xd13   : > { %19172 = vmatpush3.bf16.msra.mxu1 %v19169_v45  ;;  %18444 = vmatprep.mubr.msk.f32.mxu1 %vm493_vm0, %v20050_v49  ;;  %v13535_v45 = vld [vmem:[%s23631_s10 + $0x10] sm:$0xff] }
 0xd14   : > { %19174 = vmatprep.subr.bf16.mxu1 %v19173_v42  ;;  %v19229_v49 = vpack.c.bf16 %v13536_v57, %v13535_v45 }
 0xd17   : > { %19176 = vmatpush3.bf16.msra.mxu1 %v19173_v42 }
 0xd18   : > { %19178 = vmatprep.subr.bf16.mxu1 %v19177_v38 }
 0xd1a   : > { %18445 = vmatmul.mubr.msk.f32.vlgmr.msra.gmra.mrb[58].mxu1 %vm493_vm0, %v20051_v37  ;;  %v15498_v37 = vld [vmem:[%s23631_s10 + $0x60] sm:$0xff] }
 0xd1b   : > { %19180 = vmatpush3.bf16.msra.mxu1 %v19177_v38  ;;  %18455 = vmatprep.mubr.msk.f32.mxu1 %vm493_vm0, %v20052_v6  ;;  %v19233_v38 = vpack.c.bf16 %v15493_v29, %v15492_v43 }
 0xd1c   : > { %19182 = vmatprep.subr.bf16.mxu1 %v19181_v33 }
 0xd1f   : > { %19184 = vmatpush3.bf16.msra.mxu1 %v19181_v33  ;;  %v15499_v33 = vld [vmem:[%s23631_s10 + $0x68] sm:$0xff] }
 0xd20   : > { %19186 = vmatprep.subr.bf16.mxu1 %v19185_v55 }
 0xd22   : > { %18456 = vmatmul.mubr.msk.f32.vlgmr.msra.gmra.mrb[58].mxu1 %vm493_vm0, %v20053_v7 }
 0xd23   : > { %19188 = vmatpush3.bf16.msra.mxu1 %v19185_v55  ;;  %18466 = vmatprep.mubr.msk.f32.mxu1 %vm493_vm0, %v20054_v2  ;;  %v19241_v55 = vpack.c.bf16 %v15499_v33, %v15498_v37 }
 0xd24   : > { %19190 = vmatprep.subr.bf16.mxu1 %v19189_v20 }
 0xd27   : > { %19192 = vmatpush3.bf16.msra.mxu1 %v19189_v20  ;;  %v19245_v20 = vpack.c.bf16 %v15501_v24, %v15500_v59  ;;  %v14414_v24 = vld [vmem:[#allocation5] sm:$0x1] }
 0xd28   : > { %19194 = vmatprep.subr.bf16.mxu1 %v19193_v41 }
 0xd2a   : > { %18467 = vmatmul.mubr.msk.f32.vlgmr.msra.gmra.mrb[58].mxu1 %vm493_vm0, %v20055_v26 }
 0xd2b   : > { %19196 = vmatpush3.bf16.msra.mxu1 %v19193_v41  ;;  %18477 = vmatprep.mubr.msk.f32.mxu1 %vm493_vm0, %v20056_v17  ;;  %v19249_v41 = vpack.c.bf16 %v15505_v14, %v15504_v9 }
 0xd2c   : > { %19198 = vmatprep.subr.bf16.mxu1 %v19197_v50 }
 0xd2f   : > { %19200 = vmatpush3.bf16.msra.mxu1 %v19197_v50  ;;  %v19253_v50 = vpack.c.bf16 %v15507_v21, %v15506_v23 }
 0xd30   : > { %19202 = vmatprep.subr.bf16.mxu1 %v19201_v63 }
 0xd32   : > { %18478 = vmatmul.mubr.msk.f32.vlgmr.msra.gmra.mrb[58].mxu1 %vm493_vm0, %v20057_v12 }
 0xd33   : > { %19204 = vmatpush3.bf16.msra.mxu1 %v19201_v63  ;;  %18488 = vmatprep.mubr.msk.f32.mxu1 %vm493_vm0, %v20058_v32  ;;  %v19257_v63 = vpack.c.bf16 %v15511_v35, %v15510_v19 }
 0xd34   : > { %19206 = vmatprep.subr.bf16.mxu1 %v19205_v3 }
 0xd37   : > { %19208 = vmatpush3.bf16.msra.mxu1 %v19205_v3  ;;  %v19261_v3 = vpack.c.bf16 %v15513_v46, %v15512_v34 }
 0xd38   : > { %19210 = vmatprep.subr.bf16.mxu1 %v19209_v0 }
 0xd3a   : > { %18489 = vmatmul.mubr.msk.f32.vlgmr.msra.gmra.mrb[58].mxu1 %vm493_vm0, %v20059_v51 }
 0xd3b   : > { %19212 = vmatpush3.bf16.msra.mxu1 %v19209_v0  ;;  %18499 = vmatprep.mubr.msk.f32.mxu1 %vm493_vm0, %v20060_v39  ;;  %v19265_v0 = vpack.c.bf16 %v15517_v47, %v15516_v53 }
 0xd3c   : > { %19214 = vmatprep.subr.bf16.mxu1 %v19213_v4 }
 0xd3f   : > { %19216 = vmatpush3.bf16.msra.mxu1 %v19213_v4  ;;  %v19269_v4 = vpack.c.bf16 %v15519_v8, %v15518_v1 }
 0xd42   : > { %18500 = vmatmul.mubr.msk.f32.vlgmr.msra.gmra.mrb[58].mxu1 %vm493_vm0, %v20061_v40  ;;  %v15522_v40 = vld [vmem:[%s23631_s10 + $0xe0] sm:$0xff] }
 0xd43   : > { %v19273_v18 = vpack.c.bf16 %v15523_v58, %v15522_v40 }
 0xe15   : > { %v18501_v25 = vpop.f32.mrb[58].mxu1 }
 0xe16   : > { %v13518_v54 = vmax.f32 %v18501_v25, 0.0  ;;  %v13506_v27 = vpop.f32.mrb[59].mxu1 }
 0xe17   : > { %v13517_v62 = vmax.f32 %v13506_v27, 0.0  ;;  %v15531_v27 = vld [vmem:[%s23631_s10 + $0x118] sm:$0xff] }
 0xe18   : > { %v13522_v36 = vcombine.high %v13518_v54, %v13518_v54  ;;  %13527 = vst.msk [vmem:[#allocation4 + $0x19] sm:$0xf] %vm10908_vm4, %v13518_v54  ;;  %v15530_v54 = vld [vmem:[%s23631_s10 + $0x110] sm:$0xff] }
 0xe19   : > { %v13521_v30 = vcombine.high %v13517_v62, %v13517_v62  ;;  %13525 = vst.msk [vmem:[#allocation4 + $0x9] sm:$0xf] %vm10908_vm4, %v13517_v62 }
 0xe1a   : > { %13528 = vst.msk [vmem:[#allocation4 + $0x21] sm:$0xf] %vm10908_vm4, %v13522_v36  ;;  %v19285_v36 = vpack.c.bf16 %v15531_v27, %v15530_v54 }
 0xe1b   : > { %13526 = vst.msk [vmem:[#allocation4 + $0x11] sm:$0xf] %vm10908_vm4, %v13521_v30 }
 0xe20   : > { %v20062_v61 = vld [vmem:[#allocation4 + $0x1] ss:$8 sps:$4 sm:$0xff]  }
 0xe21   : > { %18510 = vmatprep.mubr.msk.f32.mxu0 %vm493_vm0, %v20062_v61  ;;  %v20064_v16 = vld [vmem:[#allocation4] ss:$8 sps:$4 sm:$0xff]  }
 0xe22   : > { %v20063_v42 = vld [vmem:[#allocation4 + $0x11] ss:$8 sps:$4 sm:$0xff]   ;;  %v20066_v52 = vld [vmem:[#allocation4 + $0x2] ss:$8 sps:$4 sm:$0xff]  }
 0xe23   : > { %18511 = vmatmul.mubr.msk.f32.vlgmr.msra.gmra.mrb[74].mxu0 %vm493_vm0, %v20063_v42  ;;  %v20065_v6 = vld [vmem:[#allocation4 + $0x10] ss:$8 sps:$4 sm:$0xff]   ;;  %v20075_v13 = vld [vmem:[#allocation4 + $0x20] ss:$8 sps:$4 sm:$0xff]  }
 0xe24   : > { %19228 = vmatpush3.bf16.msra.mxu0 %v19225_v22  ;;  %18521 = vmatprep.mubr.msk.f32.mxu0 %vm493_vm0, %v20064_v16  ;;  %v20067_v7 = vld [vmem:[#allocation4 + $0x12] ss:$8 sps:$4 sm:$0xff]   ;;  %v20077_v62 = vld [vmem:[#allocation4 + $0x21] ss:$8 sps:$4 sm:$0xff]  }
 0xe25   : > { %19230 = vmatprep.subr.bf16.mxu0 %v19229_v49  ;;  %v20068_v2 = vld [vmem:[#allocation4 + $0x8] ss:$8 sps:$4 sm:$0xff]   ;;  %v20069_v26 = vld [vmem:[#allocation4 + $0x18] ss:$8 sps:$4 sm:$0xff]  }
 0xe26   : > { %v20070_v17 = vld [vmem:[#allocation4 + $0x9] ss:$8 sps:$4 sm:$0xff]   ;;  %v20071_v12 = vld [vmem:[#allocation4 + $0x19] ss:$8 sps:$4 sm:$0xff]  }
 0xe27   : > { %v20072_v32 = vld [vmem:[#allocation4 + $0xa] ss:$8 sps:$4 sm:$0xff]   ;;  %v20073_v51 = vld [vmem:[#allocation4 + $0x1a] ss:$8 sps:$4 sm:$0xff]  }
 0xe28   : > { %19232 = vmatpush3.bf16.msra.mxu0 %v19229_v49  ;;  %v20074_v39 = vld [vmem:[#allocation4 + $0x10] ss:$8 sps:$4 sm:$0xff]   ;;  %v20079_v45 = vld [vmem:[#allocation4 + $0x22] ss:$8 sps:$4 sm:$0xff]  }
 0xe29   : > { %19234 = vmatprep.subr.bf16.mxu0 %v19233_v38  ;;  %v20076_v56 = vld [vmem:[#allocation4 + $0x11] ss:$8 sps:$4 sm:$0xff]   ;;  %v15534_v49 = vld [vmem:[%s23634_s13] ss:$0 sm:$0xff] }
 0xe2a   : > { %v15529_v22 = vld [vmem:[%s23631_s10 + $0x108] sm:$0xff] }
 0xe2b   : > { %18522 = vmatmul.mubr.msk.f32.vlgmr.msra.gmra.mrb[74].mxu0 %vm493_vm0, %v20065_v6  ;;  %v19281_v25 = vpack.c.bf16 %v15529_v22, %v15528_v15  ;;  %v20078_v30 = vld [vmem:[#allocation4 + $0x12] ss:$8 sps:$4 sm:$0xff]  }
 0xe2c   : > { %19236 = vmatpush3.bf16.msra.mxu0 %v19233_v38  ;;  %18532 = vmatprep.mubr.msk.f32.mxu0 %vm493_vm0, %v20066_v52 }
 0xe2d   : > { %19238 = vmatprep.subr.bf16.mxu0 %v19237_v10 }
 0xe30   : > { %19240 = vmatpush3.bf16.msra.mxu0 %v19237_v10 }
 0xe31   : > { %19242 = vmatprep.subr.bf16.mxu0 %v19241_v55 }
 0xe33   : > { %18533 = vmatmul.mubr.msk.f32.vlgmr.msra.gmra.mrb[74].mxu0 %vm493_vm0, %v20067_v7 }
 0xe34   : > { %19244 = vmatpush3.bf16.msra.mxu0 %v19241_v55  ;;  %18543 = vmatprep.mubr.msk.f32.mxu0 %vm493_vm0, %v20068_v2 }
 0xe35   : > { %19246 = vmatprep.subr.bf16.mxu0 %v19245_v20 }
 0xe38   : > { %19248 = vmatpush3.bf16.msra.mxu0 %v19245_v20 }
 0xe39   : > { %19250 = vmatprep.subr.bf16.mxu0 %v19249_v41 }
 0xe3b   : > { %18544 = vmatmul.mubr.msk.f32.vlgmr.msra.gmra.mrb[74].mxu0 %vm493_vm0, %v20069_v26 }
 0xe3c   : > { %19252 = vmatpush3.bf16.msra.mxu0 %v19249_v41  ;;  %18554 = vmatprep.mubr.msk.f32.mxu0 %vm493_vm0, %v20070_v17 }
 0xe3d   : > { %19254 = vmatprep.subr.bf16.mxu0 %v19253_v50 }
 0xe40   : > { %19256 = vmatpush3.bf16.msra.mxu0 %v19253_v50 }
 0xe41   : > { %19258 = vmatprep.subr.bf16.mxu0 %v19257_v63 }
 0xe43   : > { %18555 = vmatmul.mubr.msk.f32.vlgmr.msra.gmra.mrb[74].mxu0 %vm493_vm0, %v20071_v12 }
 0xe44   : > { %19260 = vmatpush3.bf16.msra.mxu0 %v19257_v63  ;;  %18565 = vmatprep.mubr.msk.f32.mxu0 %vm493_vm0, %v20072_v32 }
 0xe45   : > { %19262 = vmatprep.subr.bf16.mxu0 %v19261_v3 }
 0xe48   : > { %19264 = vmatpush3.bf16.msra.mxu0 %v19261_v3 }
 0xe49   : > { %19266 = vmatprep.subr.bf16.mxu0 %v19265_v0 }
 0xe4b   : > { %18566 = vmatmul.mubr.msk.f32.vlgmr.msra.gmra.mrb[74].mxu0 %vm493_vm0, %v20073_v51 }
 0xe4c   : > { %19268 = vmatpush3.bf16.msra.mxu0 %v19265_v0  ;;  %18576 = vmatprep.mubr.msk.f32.mxu0 %vm493_vm0, %v20074_v39 }
 0xe4d   : > { %19270 = vmatprep.subr.bf16.mxu0 %v19269_v4 }
 0xe50   : > { %19272 = vmatpush3.bf16.msra.mxu0 %v19269_v4 }
 0xe51   : > { %19274 = vmatprep.subr.bf16.mxu0 %v19273_v18 }
 0xe53   : > { %18577 = vmatmul.mubr.msk.f32.vlgmr.msra.gmra.mrb[74].mxu0 %vm493_vm0, %v20075_v13 }
 0xe54   : > { %19276 = vmatpush3.bf16.msra.mxu0 %v19273_v18  ;;  %18587 = vmatprep.mubr.msk.f32.mxu0 %vm493_vm0, %v20076_v56 }
 0xe55   : > { %19278 = vmatprep.subr.bf16.mxu0 %v19277_v11 }
 0xe58   : > { %19280 = vmatpush3.bf16.msra.mxu0 %v19277_v11 }
 0xe59   : > { %19282 = vmatprep.subr.bf16.mxu0 %v19281_v25 }
 0xe5b   : > { %18588 = vmatmul.mubr.msk.f32.vlgmr.msra.gmra.mrb[74].mxu0 %vm493_vm0, %v20077_v62 }
 0xe5c   : > { %19284 = vmatpush3.bf16.msra.mxu0 %v19281_v25  ;;  %18598 = vmatprep.mubr.msk.f32.mxu0 %vm493_vm0, %v20078_v30 }
 0xe5d   : > { %19286 = vmatprep.subr.bf16.mxu0 %v19285_v36 }
 0xe60   : > { %19288 = vmatpush3.bf16.msra.mxu0 %v19285_v36 }
 0xe63   : > { %18599 = vmatmul.mubr.msk.f32.vlgmr.msra.gmra.mrb[74].mxu0 %vm493_vm0, %v20079_v45 }
 0xf36   : > { %v18600_v57 = vpop.f32.mrb[74].mxu0 }
 0xf37   : > { %v14389_v61 = vadd.f32 %v18600_v57, %v23358_v48  ;;  %v14377_v43 = vpop.f32.mrb[75].mxu0 }
 0xf38   : > { %v14388_v42 = vadd.f32 %v14377_v43, %v23361_v5 }
 0xf39   : > { %v14391_v16 = vmax.f32 %v14389_v61, 0.0 }
 0xf3a   : > { %v14390_v29 = vmax.f32 %v14388_v42, 0.0 }
 0xf3b   : > { %v14400_v28 = vmul.f32 %v15534_v49, %v14391_v16 }
 0xf3c   : > { %v14399_v38 = vmul.f32 %v15534_v49, %v14390_v29 }
 0xf3d   : > { %v14404_v37 = vsel %vm493_vm0, %v14400_v28, 0.0 }
 0xf3e   : > { %v14401_v31 = vsel %vm493_vm0, %v14399_v38, 0.0 }
 0xf3f   : > { %14402 = vadd.xlane.f32.xlu0 %v14401_v31 }
 0xf43   : > { %14405 = vadd.xlane.f32.xlu0 %v14404_v37 }
 0xfcc   : > { %v14403_v33 = vpop.xlane.xlu0 %14402 }
 0xfd0   : > { %v14406_v48 = vpop.xlane.xlu0 %14405 }
 0xfd1   : > { %v14407_v6 = vadd.f32 %v14406_v48, %v14403_v33 }
 0xfd3   : > { %v14408_v10 = vrot.slane %v14407_v6, 4 }
 0xfd5   : > { %v14409_v5 = vadd.f32 %v14408_v10, %v14407_v6 }
 0xfd7   : > { %v14410_v52 = vrot.slane %v14409_v5, 2 }
 0xfd9   : > { %v14411_v55 = vadd.f32 %v14410_v52, %v14409_v5 }
 0xfdb   : > { %v14412_v59 = vrot.slane %v14411_v55, 1 }
 0xfdd   : > { %v14413_v7 = vadd.f32 %v14412_v59, %v14411_v55 }
 0xfdf   : > { %v14415_v20 = vadd.f32 %v14414_v24, %v14413_v7 }
 0xfe1   : > { %14417 = vst.msk [vmem:[%s492_s27] sm:$0x1] %vm14416_vm5, %v14415_v20 }
 0xfe2 PF: > { %s27_s20 = sadd.s32 1, %s20086_s20  }
 0xfe3   : > { %p24_p4 = scmp.ge.s32.totalorder %s27_s20, 4  }
 0xfe5   :  { %26 = sbr.rel (!%p24_p4) target bundleno = 3 (0x3), region = 180 }

</bundles_post_ra>
